<compile_context>
chip_gen: v7x
topology: tpu7x:2x2x1
jax: 0.10.0
libtpu: 0.0.40
codegen_flags: <defaults>
</compile_context>

<pallas_src>
import functools

import jax
import jax.numpy as jnp
from jax import lax
from jax.experimental import pallas as pl
from jax.experimental.pallas import tpu as pltpu

EPS = 1e-5


def _pick_vmem_limit():
    """Generation-aware scoped-VMEM budget (~3/4 of physical, capped at 96 MiB)."""
    cap = None
    try:
        cap = getattr(pltpu.get_tpu_info(), "vmem_capacity_bytes", None)
    except Exception:
        cap = None
    if not cap:
        cap = 64 * 1024 * 1024          # conservative (v7x-sized) fallback
    return int(min(cap * 3 // 4, 96 * 1024 * 1024))


VMEM_LIMIT = _pick_vmem_limit()


# ---------------------------------------------------------------------------
# Pallas kernels
# ---------------------------------------------------------------------------
def stage_a_kernel(xp_ref, wx_ref, w4_ref, y_ref, s_ref, ss_ref, *, H, W):
    """Fused [1x1 convs: b2-reduce | b3-reduce | b1] + [maxpool3x3 + 1x1: b4].

    xp:  (1, H+2, W+2, Cin) bf16 with -inf halo (halo only used by the pool).
    wx:  (Cin, n2r+n3r+n1) bf16;  w4: (Cin, pool) bf16.
    y:   (1, H*W, C_A) bf16 lane-dense slab ordered [r2 | r3 | b1 | b4].
    s/ss:(1, 1, C_A) f32 per-image partial sum / sum-of-squares.
    """
    xp = xp_ref[0]                                   # (H+2, W+2, Cin) bf16
    cin = xp.shape[-1]

    # Shared-input 1x1 convs (interior slice == original x, never touches halo).
    x_in = xp[1:H + 1, 1:W + 1, :]
    yx = jnp.dot(x_in.reshape(H * W, cin), wx_ref[...],
                 preferred_element_type=jnp.float32)

    # Branch4: separable 3x3/s1/p1 max-pool (2 + 2 max ops) fused with 1x1.
    hmax = jnp.maximum(jnp.maximum(xp[:, 0:W, :], xp[:, 1:W + 1, :]),
                       xp[:, 2:W + 2, :])            # (H+2, W, Cin)
    m = jnp.maximum(jnp.maximum(hmax[0:H], hmax[1:H + 1]), hmax[2:H + 2])
    y4 = jnp.dot(m.reshape(H * W, cin), w4_ref[...],
                 preferred_element_type=jnp.float32)

    y = jnp.concatenate([yx, y4], axis=-1)           # (HW, C_A) f32
    y_ref[0] = y.astype(y_ref.dtype)                 # bf16 intermediate to HBM
    # Per-image partial BN stats in f32 (reduced across N in the XLA wrapper,
    # keeping this grid axis "parallel").
    s_ref[0] = jnp.sum(y, axis=0, keepdims=True)
    ss_ref[0] = jnp.sum(y * y, axis=0, keepdims=True)


def conv3_kernel(ap_ref, scale_ref, shift_ref, w_ref, y_ref, s_ref, ss_ref,
                 *, H, W):
    """3x3 / stride-1 / pad-1 conv with the preceding BN+ReLU fused on the input.

    ap:     (1, H+2, W+2, Cin) bf16  RAW previous-conv output, zero spatial halo.
    scale / shift: (1, Cin) f32      input-BN affine (from batch statistics).
    w:      (3, 3*Cin, Cout) bf16    per-dy fat-K weights (K index = dx*Cin + c).
    y:      (1, H*W, Cout) bf16      raw conv output; s/ss: (1, 1, Cout) partials.
    """
    xin = ap_ref[0].astype(jnp.float32)              # (H+2, W+2, Cin)
    cin = xin.shape[-1]
    cout = y_ref.shape[-1]

    # Fused input BatchNorm + ReLU (f32 epilogue math).
    a = jnp.maximum(xin * scale_ref[...] + shift_ref[...], 0.0)
    # Keep the spatial halo exactly zero (ReLU(shift) != 0 in general).
    ri = lax.broadcasted_iota(jnp.int32, (H + 2, W + 2, cin), 0)
    ci = lax.broadcasted_iota(jnp.int32, (H + 2, W + 2, cin), 1)
    interior = (ri >= 1) & (ri <= H) & (ci >= 1) & (ci <= W)
    a = jnp.where(interior, a, 0.0).astype(jnp.bfloat16)

    # 3 fat-K matmuls (K = 3*Cin), one per dy, instead of 9 K=Cin matmuls.
    acc = jnp.zeros((H * W, cout), jnp.float32)
    for dy in range(3):
        rows = a[dy:dy + H]                          # (H, W+2, Cin)
        slab = jnp.concatenate(
            [rows[:, 0:W, :], rows[:, 1:W + 1, :], rows[:, 2:W + 2, :]],
            axis=-1)                                 # (H, W, 3*Cin)
        acc = acc + jnp.dot(slab.reshape(H * W, 3 * cin), w_ref[dy],
                            preferred_element_type=jnp.float32)

    y_ref[0] = acc.astype(y_ref.dtype)               # bf16 intermediate to HBM
    s_ref[0] = jnp.sum(acc, axis=0, keepdims=True)
    ss_ref[0] = jnp.sum(acc * acc, axis=0, keepdims=True)


def finalize_kernel(slab_ref, y2_ref, y3_ref, scale_ref, shift_ref, o_ref,
                    *, off1, n1):
    """BatchNorm+ReLU epilogue for all 4 branches; lane-dense concat output.

    slab: (TM, C_A) bf16 stage-A slab [r2 | r3 | b1 | b4]  (b1/b4 lanes used).
    y2:   (TM, n3) bf16 raw branch2 conv output.
    y3:   (TM, n5) bf16 raw branch3 conv output.
    scale/shift: (1, n1+n3+n5+pool) f32 in output channel order.
    o:    (TM, n1+n3+n5+pool) f32.
    """
    slab = slab_ref[...].astype(jnp.float32)
    b1 = slab[:, off1:off1 + n1]
    b4 = slab[:, off1 + n1:]
    pre = jnp.concatenate(
        [b1, y2_ref[...].astype(jnp.float32), y3_ref[...].astype(jnp.float32),
         b4], axis=-1)
    o_ref[...] = jnp.maximum(pre * scale_ref[...] + shift_ref[...], 0.0)


# ---------------------------------------------------------------------------
# Pallas wrappers
# ---------------------------------------------------------------------------
def stage_a(xp, wx, w4, H, W):
    N, cin = xp.shape[0], xp.shape[-1]
    cx, c4 = wx.shape[1], w4.shape[1]
    ca = cx + c4
    HW = H * W
    flops = 2 * N * HW * cin * ca + 4 * N * (H + 2) * W * cin
    bytes_acc = (xp.size * 2 + (wx.size + w4.size) * 2
                 + N * HW * ca * 2 + 2 * N * ca * 4)
    return pl.pallas_call(
        functools.partial(stage_a_kernel, H=H, W=W),
        out_shape=(
            jax.ShapeDtypeStruct((N, HW, ca), jnp.bfloat16),
            jax.ShapeDtypeStruct((N, 1, ca), jnp.float32),
            jax.ShapeDtypeStruct((N, 1, ca), jnp.float32),
        ),
        grid=(N,),
        in_specs=[
            pl.BlockSpec((1, H + 2, W + 2, cin), lambda n: (n, 0, 0, 0)),
            pl.BlockSpec((cin, cx), lambda n: (0, 0)),
            pl.BlockSpec((cin, c4), lambda n: (0, 0)),
        ],
        out_specs=(
            pl.BlockSpec((1, HW, ca), lambda n: (n, 0, 0)),
            pl.BlockSpec((1, 1, ca), lambda n: (n, 0, 0)),
            pl.BlockSpec((1, 1, ca), lambda n: (n, 0, 0)),
        ),
        compiler_params=pltpu.CompilerParams(
            dimension_semantics=("parallel",),        # megacore-shardable (v7x)
            vmem_limit_bytes=VMEM_LIMIT),
        cost_estimate=pl.CostEstimate(flops=int(flops), transcendentals=0,
                                      bytes_accessed=int(bytes_acc)),
    )(xp, wx, w4)


def conv3(ap, scale_in, shift_in, w3, H, W):
    N, cin = ap.shape[0], ap.shape[-1]
    cout = w3.shape[-1]
    HW = H * W
    flops = 2 * 9 * N * HW * cin * cout + 3 * N * (H + 2) * (W + 2) * cin
    bytes_acc = (ap.size * 2 + w3.size * 2 + 2 * cin * 4
                 + N * HW * cout * 2 + 2 * N * cout * 4)
    return pl.pallas_call(
        functools.partial(conv3_kernel, H=H, W=W),
        out_shape=(
            jax.ShapeDtypeStruct((N, HW, cout), jnp.bfloat16),
            jax.ShapeDtypeStruct((N, 1, cout), jnp.float32),
            jax.ShapeDtypeStruct((N, 1, cout), jnp.float32),
        ),
        grid=(N,),
        in_specs=[
            pl.BlockSpec((1, H + 2, W + 2, cin), lambda n: (n, 0, 0, 0)),
            pl.BlockSpec((1, cin), lambda n: (0, 0)),
            pl.BlockSpec((1, cin), lambda n: (0, 0)),
            pl.BlockSpec((3, 3 * cin, cout), lambda n: (0, 0, 0)),
        ],
        out_specs=(
            pl.BlockSpec((1, HW, cout), lambda n: (n, 0, 0)),
            pl.BlockSpec((1, 1, cout), lambda n: (n, 0, 0)),
            pl.BlockSpec((1, 1, cout), lambda n: (n, 0, 0)),
        ),
        compiler_params=pltpu.CompilerParams(
            dimension_semantics=("parallel",),
            vmem_limit_bytes=VMEM_LIMIT),
        cost_estimate=pl.CostEstimate(flops=int(flops), transcendentals=0,
                                      bytes_accessed=int(bytes_acc)),
    )(ap, scale_in.reshape(1, cin), shift_in.reshape(1, cin), w3)


def _row_tile(m):
    """Largest row tile (<= 4096) that divides m; memory-bound epilogue."""
    if m <= 4096:
        return m
    for t in (4096, 2048, 1024, 512, 256, 128, 64, 32, 16, 8):
        if m % t == 0:
            return t
    return m


def finalize(slab, y2, y3, scale, shift, off1, n1):
    M, ca = slab.shape
    n3, n5 = y2.shape[1], y3.shape[1]
    cout = scale.shape[0]
    TM = _row_tile(M)
    return pl.pallas_call(
        functools.partial(finalize_kernel, off1=off1, n1=n1),
        out_shape=jax.ShapeDtypeStruct((M, cout), jnp.float32),
        grid=(M // TM,),
        in_specs=[
            pl.BlockSpec((TM, ca), lambda i: (i, 0)),
            pl.BlockSpec((TM, n3), lambda i: (i, 0)),
            pl.BlockSpec((TM, n5), lambda i: (i, 0)),
            pl.BlockSpec((1, cout), lambda i: (0, 0)),
            pl.BlockSpec((1, cout), lambda i: (0, 0)),
        ],
        out_specs=pl.BlockSpec((TM, cout), lambda i: (i, 0)),
        compiler_params=pltpu.CompilerParams(
            dimension_semantics=("parallel",),
            vmem_limit_bytes=VMEM_LIMIT),
    )(slab, y2, y3, scale.reshape(1, cout), shift.reshape(1, cout))


# ---------------------------------------------------------------------------
# Glue: BN affine from partial sums, weight reshaping, parameter init
# ---------------------------------------------------------------------------
def _scale_shift(s_part, ss_part, gamma, beta, m_total):
    """Training-mode BatchNorm affine (biased var) from per-image partial sums.

    Note: E[x^2]-E[x]^2 in f32 is adequate at these activation scales; a
    Welford-style centered accumulation could replace it if needed.
    """
    s = jnp.sum(s_part, axis=(0, 1))
    ss = jnp.sum(ss_part, axis=(0, 1))
    mean = s / m_total
    var = jnp.maximum(ss / m_total - mean * mean, 0.0)
    scale = gamma * lax.rsqrt(var + EPS)
    shift = beta - mean * scale
    return scale, shift


def _w1x1(w):   # (Cout, Cin, 1, 1) -> (Cin, Cout) bf16
    return jnp.transpose(w[:, :, 0, 0], (1, 0)).astype(jnp.bfloat16)


def _w3x3(w):   # (Cout, Cin, 3, 3) -> (3, 3*Cin, Cout) bf16; K index = dx*Cin + c
    cout, cin = w.shape[0], w.shape[1]
    return jnp.transpose(w, (2, 3, 1, 0)).reshape(3, 3 * cin, cout).astype(
        jnp.bfloat16)


def init_conv_bn(key, cin, cout, k):
    # Conv bias omitted: cancelled exactly by training-mode BN mean subtraction.
    kw, kg, kbt = jax.random.split(key, 3)
    return dict(
        w=0.1 * jax.random.normal(kw, (cout, cin, k, k), jnp.float32),
        gamma=1.0 + 0.1 * jax.random.normal(kg, (cout,), jnp.float32),
        beta=0.1 * jax.random.normal(kbt, (cout,), jnp.float32),
    )


def init_inception_params(key, in_planes, n1x1, n3x3red, n3x3,
                          n5x5red, n5x5, pool_planes):
    keys = jax.random.split(key, 7)
    return dict(
        b1=[init_conv_bn(keys[0], in_planes, n1x1, 1)],
        b2=[init_conv_bn(keys[1], in_planes, n3x3red, 1),
            init_conv_bn(keys[2], n3x3red, n3x3, 3)],
        b3=[init_conv_bn(keys[3], in_planes, n5x5red, 1),
            init_conv_bn(keys[4], n5x5red, n5x5, 3),
            init_conv_bn(keys[5], n5x5, n5x5, 3)],
        b4=[init_conv_bn(keys[6], in_planes, pool_planes, 1)],
    )


# ---------------------------------------------------------------------------
# Inception forward (NCHW in / NCHW out, like PyTorch)
# ---------------------------------------------------------------------------
@jax.jit
def inception_forward(x_nchw, params):
    N, Cin, H, W = x_nchw.shape
    M = N * H * W

    # NHWC bf16 input with -inf halo (halo only consumed by the max-pool).
    x = jnp.transpose(x_nchw, (0, 2, 3, 1)).astype(jnp.bfloat16)
    xp = jnp.pad(x, ((0, 0), (1, 1), (1, 1), (0, 0)),
                 constant_values=-jnp.inf)

    p1, p2a, p2b = params['b1'][0], params['b2'][0], params['b2'][1]
    p3a, p3b, p3c = params['b3'][0], params['b3'][1], params['b3'][2]
    p4 = params['b4'][0]

    n1, n2r, n3r = p1['w'].shape[0], p2a['w'].shape[0], p3a['w'].shape[0]
    n3, n5, pool = p2b['w'].shape[0], p3b['w'].shape[0], p4['w'].shape[0]
    cx = n2r + n3r + n1
    cA = cx + pool

    # Stage A slab order [r2 | r3 | b1 | b4]: conv3 inputs first, finals last.
    wx = jnp.concatenate([_w1x1(p2a['w']), _w1x1(p3a['w']), _w1x1(p1['w'])],
                         axis=1)
    w4 = _w1x1(p4['w'])
    yA, sA, ssA = stage_a(xp, wx, w4, H, W)            # (N, HW, cA) bf16

    gA = jnp.concatenate([p2a['gamma'], p3a['gamma'], p1['gamma'], p4['gamma']])
    bA = jnp.concatenate([p2a['beta'], p3a['beta'], p1['beta'], p4['beta']])
    scaleA, shiftA = _scale_shift(sA, ssA, gA, bA, float(M))

    slab = yA.reshape(M, cA)

    def pad_nhwc(raw_2d, c):     # zero spatial halo for the raw bf16 conv output
        return jnp.pad(raw_2d.reshape(N, H, W, c),
                       ((0, 0), (1, 1), (1, 1), (0, 0)))

    # Branch2: 1x1(reduce) -> [fused BN+ReLU] -> 3x3.
    y2, s2, ss2 = conv3(pad_nhwc(slab[:, :n2r], n2r),
                        scaleA[:n2r], shiftA[:n2r], _w3x3(p2b['w']), H, W)
    scale2, shift2 = _scale_shift(s2, ss2, p2b['gamma'], p2b['beta'], float(M))

    # Branch3: 1x1(reduce) -> 3x3 -> 3x3 (input BN+ReLU fused into each conv).
    t3, s3b, ss3b = conv3(pad_nhwc(slab[:, n2r:n2r + n3r], n3r),
                          scaleA[n2r:n2r + n3r], shiftA[n2r:n2r + n3r],
                          _w3x3(p3b['w']), H, W)
    scale3b, shift3b = _scale_shift(s3b, ss3b, p3b['gamma'], p3b['beta'],
                                    float(M))
    y3, s3c, ss3c = conv3(pad_nhwc(t3.reshape(M, n5), n5),
                          scale3b, shift3b, _w3x3(p3c['w']), H, W)
    scale3, shift3 = _scale_shift(s3c, ss3c, p3c['gamma'], p3c['beta'],
                                  float(M))

    # Final BN+ReLU epilogue; lane-dense output in PyTorch order [b1|b2|b3|b4].
    scale_out = jnp.concatenate(
        [scaleA[n2r + n3r:cx], scale2, scale3, scaleA[cx:]])
    shift_out = jnp.concatenate(
        [shiftA[n2r + n3r:cx], shift2, shift3, shiftA[cx:]])
    out2d = finalize(slab, y2.reshape(M, n3), y3.reshape(M, n5),
                     scale_out, shift_out, off1=n2r + n3r, n1=n1)

    out = out2d.reshape(N, H, W, -1)
    return jnp.transpose(out, (0, 3, 1, 2))            # NCHW


# ---------------------------------------------------------------------------
# Pure-JAX f32 reference (training-mode BatchNorm, bias-free convs)
# ---------------------------------------------------------------------------
def _conv_ref(x, w, pad):
    return lax.conv_general_dilated(
        x, w, (1, 1), [(pad, pad), (pad, pad)],
        dimension_numbers=('NHWC', 'OIHW', 'NHWC'))


def _bn_relu_ref(y, gamma, beta):
    mean = jnp.mean(y, axis=(0, 1, 2))
    var = jnp.mean(jnp.square(y - mean), axis=(0, 1, 2))
    return jnp.maximum((y - mean) * (gamma * lax.rsqrt(var + EPS)) + beta, 0.0)


def inception_reference(x_nchw, params):
    x = jnp.transpose(x_nchw, (0, 2, 3, 1))
    p1, p2a, p2b = params['b1'][0], params['b2'][0], params['b2'][1]
    p3a, p3b, p3c = params['b3'][0], params['b3'][1], params['b3'][2]
    p4 = params['b4'][0]

    def cbr(t, p, pad):
        return _bn_relu_ref(_conv_ref(t, p['w'], pad), p['gamma'], p['beta'])

    o1 = cbr(x, p1, 0)
    o2 = cbr(cbr(x, p2a, 0), p2b, 1)
    o3 = cbr(cbr(cbr(x, p3a, 0), p3b, 1), p3c, 1)
    xpool = lax.reduce_window(x, -jnp.inf, lax.max, (1, 3, 3, 1), (1, 1, 1, 1),
                              [(0, 0), (1, 1), (1, 1), (0, 0)])
    o4 = cbr(xpool, p4, 0)
    out = jnp.concatenate([o1, o2, o3, o4], axis=-1)
    return jnp.transpose(out, (0, 3, 1, 2))


# ---------------------------------------------------------------------------
if __name__ == "__main__":
    key = jax.random.PRNGKey(0)
    k_x, k_p = jax.random.split(key)

    # Small Inception config: in=4, n1x1=8, n3x3red=4, n3x3=8,
    # n5x5red=4, n5x5=8, pool=8  -> output channels = 32
    in_planes, n1x1, n3x3red, n3x3, n5x5red, n5x5, pool_planes = 4, 8, 4, 8, 4, 8, 8
    N, H, W = 2, 16, 16

    x = jax.random.normal(k_x, (N, in_planes, H, W), jnp.float32)
    params = init_inception_params(k_p, in_planes, n1x1, n3x3red, n3x3,
                                   n5x5red, n5x5, pool_planes)

    out = jax.block_until_ready(inception_forward(x, params))

    expected_c = n1x1 + n3x3 + n5x5 + pool_planes
    assert out.shape == (N, expected_c, H, W), out.shape
    assert out.dtype == jnp.float32
    assert bool(jnp.all(jnp.isfinite(out)))
    assert bool(jnp.all(out >= 0.0))                   # ReLU output

    # Loose numerical check vs. f32 reference (kernels use bf16 conv operands).
    ref = inception_reference(x, params)
    max_err = float(jnp.max(jnp.abs(out - ref)))
    assert max_err < 0.25, f"max abs error vs reference too large: {max_err}"

    print("KERNEL_OK")
</pallas_src>

<mosaic_0001>
module attributes {stable_mosaic.version = 11 : i64} {
  func.func @stage_a_kernel(%arg0: i32, %arg1: memref<1x18x18x4xbf16, #tpu.memory_space<vmem>>, %arg2: memref<4x16xbf16, #tpu.memory_space<vmem>>, %arg3: memref<4x8xbf16, #tpu.memory_space<vmem>>, %arg4: memref<1x256x24xbf16, #tpu.memory_space<vmem>>, %arg5: memref<1x1x24xf32, #tpu.memory_space<vmem>>, %arg6: memref<1x1x24xf32, #tpu.memory_space<vmem>>) attributes {dimension_semantics = [#tpu.dimension_semantics<parallel>], iteration_bounds = array<i64: 2>, scalar_prefetch = 0 : i64, scratch_operands = 0 : i64, tpu.core_type = #tpu.core_type<tc>, window_params = [{transform_indices = @transform_0, window_bounds = array<i64: 1, 18, 18, 4>}, {pipeline_mode = #tpu.pipeline_mode<synchronous>, transform_indices = @transform_1, window_bounds = array<i64: 4, 16>}, {pipeline_mode = #tpu.pipeline_mode<synchronous>, transform_indices = @transform_2, window_bounds = array<i64: 4, 8>}, {transform_indices = @transform_3, window_bounds = array<i64: 1, 256, 24>}, {transform_indices = @transform_4, window_bounds = array<i64: 1, 1, 24>}, {transform_indices = @transform_5, window_bounds = array<i64: 1, 1, 24>}]} {
    %c0 = arith.constant 0 : index
    %c0_0 = arith.constant 0 : index
    %c0_1 = arith.constant 0 : index
    %c0_2 = arith.constant 0 : index
    %0 = vector.load %arg1[%c0, %c0_0, %c0_1, %c0_2] : memref<1x18x18x4xbf16, #tpu.memory_space<vmem>>, vector<1x18x18x4xbf16>
    %1 = vector.shape_cast %0 : vector<1x18x18x4xbf16> to vector<18x18x4xbf16>
    %2 = vector.extract_strided_slice %1 {offsets = [1, 1, 0], sizes = [16, 16, 4], strides = [1, 1, 1]} : vector<18x18x4xbf16> to vector<16x16x4xbf16>
    %3 = vector.shape_cast %2 : vector<16x16x4xbf16> to vector<256x4xbf16>
    %c0_3 = arith.constant 0 : index
    %c0_4 = arith.constant 0 : index
    %4 = vector.load %arg2[%c0_3, %c0_4] : memref<4x16xbf16, #tpu.memory_space<vmem>>, vector<4x16xbf16>
    %cst = arith.constant dense<0.000000e+00> : vector<256x16xf32>
    %5 = tpu.matmul %3, %4, %cst {dimension_numbers = #tpu.dot_dimension_numbers<[1], [0], [0], [1], [0, 0, 1, 1], [], []>} : vector<256x4xbf16>, vector<4x16xbf16>, vector<256x16xf32> -> vector<256x16xf32>
    %6 = vector.extract_strided_slice %1 {offsets = [0, 0, 0], sizes = [18, 16, 4], strides = [1, 1, 1]} : vector<18x18x4xbf16> to vector<18x16x4xbf16>
    %7 = vector.extract_strided_slice %1 {offsets = [0, 1, 0], sizes = [18, 16, 4], strides = [1, 1, 1]} : vector<18x18x4xbf16> to vector<18x16x4xbf16>
    %8 = arith.maximumf %6, %7 : vector<18x16x4xbf16>
    %9 = vector.extract_strided_slice %1 {offsets = [0, 2, 0], sizes = [18, 16, 4], strides = [1, 1, 1]} : vector<18x18x4xbf16> to vector<18x16x4xbf16>
    %10 = arith.maximumf %8, %9 : vector<18x16x4xbf16>
    %11 = vector.extract_strided_slice %10 {offsets = [0, 0, 0], sizes = [16, 16, 4], strides = [1, 1, 1]} : vector<18x16x4xbf16> to vector<16x16x4xbf16>
    %12 = vector.extract_strided_slice %10 {offsets = [1, 0, 0], sizes = [16, 16, 4], strides = [1, 1, 1]} : vector<18x16x4xbf16> to vector<16x16x4xbf16>
    %13 = arith.maximumf %11, %12 : vector<16x16x4xbf16>
    %14 = vector.extract_strided_slice %10 {offsets = [2, 0, 0], sizes = [16, 16, 4], strides = [1, 1, 1]} : vector<18x16x4xbf16> to vector<16x16x4xbf16>
    %15 = arith.maximumf %13, %14 : vector<16x16x4xbf16>
    %16 = vector.shape_cast %15 : vector<16x16x4xbf16> to vector<256x4xbf16>
    %c0_5 = arith.constant 0 : index
    %c0_6 = arith.constant 0 : index
    %17 = vector.load %arg3[%c0_5, %c0_6] : memref<4x8xbf16, #tpu.memory_space<vmem>>, vector<4x8xbf16>
    %cst_7 = arith.constant dense<0.000000e+00> : vector<256x8xf32>
    %18 = tpu.matmul %16, %17, %cst_7 {dimension_numbers = #tpu.dot_dimension_numbers<[1], [0], [0], [1], [0, 0, 1, 1], [], []>} : vector<256x4xbf16>, vector<4x8xbf16>, vector<256x8xf32> -> vector<256x8xf32>
    %19 = tpu.concatenate %5, %18 in 1 : vector<256x16xf32>, vector<256x8xf32> -> vector<256x24xf32>
    %20 = arith.truncf %19 : vector<256x24xf32> to vector<256x24xbf16>
    %c0_8 = arith.constant 0 : index
    %c0_9 = arith.constant 0 : index
    %c0_10 = arith.constant 0 : index
    %21 = vector.load %arg4[%c0_8, %c0_9, %c0_10] : memref<1x256x24xbf16, #tpu.memory_space<vmem>>, vector<1x256x24xbf16>
    %22 = vector.shape_cast %21 : vector<1x256x24xbf16> to vector<256x24xbf16>
    %23 = vector.shape_cast %20 : vector<256x24xbf16> to vector<1x256x24xbf16>
    tpu.vector_store %arg4[%c0_8, %c0_9, %c0_10], %23 {strides = array<i32>} : memref<1x256x24xbf16, #tpu.memory_space<vmem>>, vector<1x256x24xbf16>,
    %cst_11 = arith.constant dense<0.000000e+00> : vector<24xf32>
    %24 = vector.multi_reduction <add>, %19, %cst_11 [0] : vector<256x24xf32> to vector<24xf32>
    %25 = vector.shape_cast %24 : vector<24xf32> to vector<1x24xf32>
    %c0_12 = arith.constant 0 : index
    %c0_13 = arith.constant 0 : index
    %c0_14 = arith.constant 0 : index
    %26 = vector.load %arg5[%c0_12, %c0_13, %c0_14] : memref<1x1x24xf32, #tpu.memory_space<vmem>>, vector<1x1x24xf32>
    %27 = vector.shape_cast %26 : vector<1x1x24xf32> to vector<1x24xf32>
    %28 = vector.shape_cast %25 : vector<1x24xf32> to vector<1x1x24xf32>
    tpu.vector_store %arg5[%c0_12, %c0_13, %c0_14], %28 {strides = array<i32>} : memref<1x1x24xf32, #tpu.memory_space<vmem>>, vector<1x1x24xf32>,
    %29 = arith.mulf %19, %19 : vector<256x24xf32>
    %cst_15 = arith.constant dense<0.000000e+00> : vector<24xf32>
    %30 = vector.multi_reduction <add>, %29, %cst_15 [0] : vector<256x24xf32> to vector<24xf32>
    %31 = vector.shape_cast %30 : vector<24xf32> to vector<1x24xf32>
    %c0_16 = arith.constant 0 : index
    %c0_17 = arith.constant 0 : index
    %c0_18 = arith.constant 0 : index
    %32 = vector.load %arg6[%c0_16, %c0_17, %c0_18] : memref<1x1x24xf32, #tpu.memory_space<vmem>>, vector<1x1x24xf32>
    %33 = vector.shape_cast %32 : vector<1x1x24xf32> to vector<1x24xf32>
    %34 = vector.shape_cast %31 : vector<1x24xf32> to vector<1x1x24xf32>
    tpu.vector_store %arg6[%c0_16, %c0_17, %c0_18], %34 {strides = array<i32>} : memref<1x1x24xf32, #tpu.memory_space<vmem>>, vector<1x1x24xf32>,
    return
  }
  func.func @transform_0(%arg0: i32) -> (i32, i32, i32, i32) {
    %c0_i32 = arith.constant 0 : i32
    %c0_i32_0 = arith.constant 0 : i32
    %c0_i32_1 = arith.constant 0 : i32
    %c0_i32_2 = arith.constant 0 : i32
    return %arg0, %c0_i32, %c0_i32_0, %c0_i32_1 : i32, i32, i32, i32
  }
  func.func @transform_1(%arg0: i32) -> (i32, i32) {
    %c0_i32 = arith.constant 0 : i32
    %c0_i32_0 = arith.constant 0 : i32
    %c0_i32_1 = arith.constant 0 : i32
    return %c0_i32, %c0_i32_0 : i32, i32
  }
  func.func @transform_2(%arg0: i32) -> (i32, i32) {
    %c0_i32 = arith.constant 0 : i32
    %c0_i32_0 = arith.constant 0 : i32
    %c0_i32_1 = arith.constant 0 : i32
    return %c0_i32, %c0_i32_0 : i32, i32
  }
  func.func @transform_3(%arg0: i32) -> (i32, i32, i32) {
    %c0_i32 = arith.constant 0 : i32
    %c0_i32_0 = arith.constant 0 : i32
    %c0_i32_1 = arith.constant 0 : i32
    return %arg0, %c0_i32, %c0_i32_0 : i32, i32, i32
  }
  func.func @transform_4(%arg0: i32) -> (i32, i32, i32) {
    %c0_i32 = arith.constant 0 : i32
    %c0_i32_0 = arith.constant 0 : i32
    %c0_i32_1 = arith.constant 0 : i32
    return %arg0, %c0_i32, %c0_i32_0 : i32, i32, i32
  }
  func.func @transform_5(%arg0: i32) -> (i32, i32, i32) {
    %c0_i32 = arith.constant 0 : i32
    %c0_i32_0 = arith.constant 0 : i32
    %c0_i32_1 = arith.constant 0 : i32
    return %arg0, %c0_i32, %c0_i32_0 : i32, i32, i32
  }
}

module attributes {stable_mosaic.version = 11 : i64} {
  func.func @conv3_kernel(%arg0: i32, %arg1: memref<1x18x18x4xbf16, #tpu.memory_space<vmem>>, %arg2: memref<1x4xf32, #tpu.memory_space<vmem>>, %arg3: memref<1x4xf32, #tpu.memory_space<vmem>>, %arg4: memref<3x12x8xbf16, #tpu.memory_space<vmem>>, %arg5: memref<1x256x8xbf16, #tpu.memory_space<vmem>>, %arg6: memref<1x1x8xf32, #tpu.memory_space<vmem>>, %arg7: memref<1x1x8xf32, #tpu.memory_space<vmem>>) attributes {dimension_semantics = [#tpu.dimension_semantics<parallel>], iteration_bounds = array<i64: 2>, scalar_prefetch = 0 : i64, scratch_operands = 0 : i64, tpu.core_type = #tpu.core_type<tc>, window_params = [{transform_indices = @transform_0, window_bounds = array<i64: 1, 18, 18, 4>}, {pipeline_mode = #tpu.pipeline_mode<synchronous>, transform_indices = @transform_1, window_bounds = array<i64: 1, 4>}, {pipeline_mode = #tpu.pipeline_mode<synchronous>, transform_indices = @transform_2, window_bounds = array<i64: 1, 4>}, {pipeline_mode = #tpu.pipeline_mode<synchronous>, transform_indices = @transform_3, window_bounds = array<i64: 3, 12, 8>}, {transform_indices = @transform_4, window_bounds = array<i64: 1, 256, 8>}, {transform_indices = @transform_5, window_bounds = array<i64: 1, 1, 8>}, {transform_indices = @transform_6, window_bounds = array<i64: 1, 1, 8>}]} {
    %c0 = arith.constant 0 : index
    %c0_0 = arith.constant 0 : index
    %c0_1 = arith.constant 0 : index
    %c0_2 = arith.constant 0 : index
    %0 = vector.load %arg1[%c0, %c0_0, %c0_1, %c0_2] : memref<1x18x18x4xbf16, #tpu.memory_space<vmem>>, vector<1x18x18x4xbf16>
    %1 = vector.shape_cast %0 : vector<1x18x18x4xbf16> to vector<18x18x4xbf16>
    %2 = arith.extf %1 : vector<18x18x4xbf16> to vector<18x18x4xf32>
    %c0_3 = arith.constant 0 : index
    %c0_4 = arith.constant 0 : index
    %3 = vector.load %arg2[%c0_3, %c0_4] : memref<1x4xf32, #tpu.memory_space<vmem>>, vector<1x4xf32>
    %4 = vector.shape_cast %3 : vector<1x4xf32> to vector<1x1x4xf32>
    %5 = vector.broadcast %4 : vector<1x1x4xf32> to vector<18x18x4xf32>
    %6 = arith.mulf %2, %5 : vector<18x18x4xf32>
    %c0_5 = arith.constant 0 : index
    %c0_6 = arith.constant 0 : index
    %7 = vector.load %arg3[%c0_5, %c0_6] : memref<1x4xf32, #tpu.memory_space<vmem>>, vector<1x4xf32>
    %8 = vector.shape_cast %7 : vector<1x4xf32> to vector<1x1x4xf32>
    %9 = vector.broadcast %8 : vector<1x1x4xf32> to vector<18x18x4xf32>
    %10 = arith.addf %6, %9 : vector<18x18x4xf32>
    %cst = arith.constant 0.000000e+00 : f32
    %11 = vector.broadcast %cst : f32 to vector<18x18x4xf32>
    %12 = arith.maximumf %10, %11 : vector<18x18x4xf32>
    %13 = tpu.iota {dimensions = array<i32: 0>} : vector<18x18x4xi32>
    %14 = tpu.iota {dimensions = array<i32: 1>} : vector<18x18x4xi32>
    %c1_i32 = arith.constant 1 : i32
    %15 = vector.broadcast %c1_i32 : i32 to vector<18x18x4xi32>
    %16 = arith.cmpi sge, %13, %15 : vector<18x18x4xi32>
    %c16_i32 = arith.constant 16 : i32
    %17 = vector.broadcast %c16_i32 : i32 to vector<18x18x4xi32>
    %18 = arith.cmpi sle, %13, %17 : vector<18x18x4xi32>
    %19 = arith.andi %16, %18 : vector<18x18x4xi1>
    %c1_i32_7 = arith.constant 1 : i32
    %20 = vector.broadcast %c1_i32_7 : i32 to vector<18x18x4xi32>
    %21 = arith.cmpi sge, %14, %20 : vector<18x18x4xi32>
    %22 = arith.andi %19, %21 : vector<18x18x4xi1>
    %c16_i32_8 = arith.constant 16 : i32
    %23 = vector.broadcast %c16_i32_8 : i32 to vector<18x18x4xi32>
    %24 = arith.cmpi sle, %14, %23 : vector<18x18x4xi32>
    %25 = arith.andi %22, %24 : vector<18x18x4xi1>
    %cst_9 = arith.constant 0.000000e+00 : f32
    %26 = vector.broadcast %cst_9 : f32 to vector<18x18x4xf32>
    %27 = arith.select %25, %12, %26 : vector<18x18x4xi1>, vector<18x18x4xf32>
    %28 = arith.truncf %27 : vector<18x18x4xf32> to vector<18x18x4xbf16>
    %cst_10 = arith.constant 0.000000e+00 : f32
    %29 = vector.broadcast %cst_10 : f32 to vector<256x8xf32>
    %30 = vector.extract_strided_slice %28 {offsets = [0, 0, 0], sizes = [16, 18, 4], strides = [1, 1, 1]} : vector<18x18x4xbf16> to vector<16x18x4xbf16>
    %31 = vector.extract_strided_slice %30 {offsets = [0, 0, 0], sizes = [16, 16, 4], strides = [1, 1, 1]} : vector<16x18x4xbf16> to vector<16x16x4xbf16>
    %32 = vector.extract_strided_slice %30 {offsets = [0, 1, 0], sizes = [16, 16, 4], strides = [1, 1, 1]} : vector<16x18x4xbf16> to vector<16x16x4xbf16>
    %33 = vector.extract_strided_slice %30 {offsets = [0, 2, 0], sizes = [16, 16, 4], strides = [1, 1, 1]} : vector<16x18x4xbf16> to vector<16x16x4xbf16>
    %34 = tpu.concatenate %31, %32, %33 in 2 : vector<16x16x4xbf16>, vector<16x16x4xbf16>, vector<16x16x4xbf16> -> vector<16x16x12xbf16>
    %35 = vector.shape_cast %34 : vector<16x16x12xbf16> to vector<256x12xbf16>
    %c0_11 = arith.constant 0 : index
    %c0_12 = arith.constant 0 : index
    %c0_13 = arith.constant 0 : index
    %36 = vector.load %arg4[%c0_11, %c0_12, %c0_13] : memref<3x12x8xbf16, #tpu.memory_space<vmem>>, vector<1x12x8xbf16>
    %37 = vector.shape_cast %36 : vector<1x12x8xbf16> to vector<12x8xbf16>
    %cst_14 = arith.constant dense<0.000000e+00> : vector<256x8xf32>
    %38 = tpu.matmul %35, %37, %cst_14 {dimension_numbers = #tpu.dot_dimension_numbers<[1], [0], [0], [1], [0, 0, 1, 1], [], []>} : vector<256x12xbf16>, vector<12x8xbf16>, vector<256x8xf32> -> vector<256x8xf32>
    %39 = arith.addf %29, %38 : vector<256x8xf32>
    %40 = vector.extract_strided_slice %28 {offsets = [1, 0, 0], sizes = [16, 18, 4], strides = [1, 1, 1]} : vector<18x18x4xbf16> to vector<16x18x4xbf16>
    %41 = vector.extract_strided_slice %40 {offsets = [0, 0, 0], sizes = [16, 16, 4], strides = [1, 1, 1]} : vector<16x18x4xbf16> to vector<16x16x4xbf16>
    %42 = vector.extract_strided_slice %40 {offsets = [0, 1, 0], sizes = [16, 16, 4], strides = [1, 1, 1]} : vector<16x18x4xbf16> to vector<16x16x4xbf16>
    %43 = vector.extract_strided_slice %40 {offsets = [0, 2, 0], sizes = [16, 16, 4], strides = [1, 1, 1]} : vector<16x18x4xbf16> to vector<16x16x4xbf16>
    %44 = tpu.concatenate %41, %42, %43 in 2 : vector<16x16x4xbf16>, vector<16x16x4xbf16>, vector<16x16x4xbf16> -> vector<16x16x12xbf16>
    %45 = vector.shape_cast %44 : vector<16x16x12xbf16> to vector<256x12xbf16>
    %c1 = arith.constant 1 : index
    %c0_15 = arith.constant 0 : index
    %c0_16 = arith.constant 0 : index
    %46 = vector.load %arg4[%c1, %c0_15, %c0_16] : memref<3x12x8xbf16, #tpu.memory_space<vmem>>, vector<1x12x8xbf16>
    %47 = vector.shape_cast %46 : vector<1x12x8xbf16> to vector<12x8xbf16>
    %cst_17 = arith.constant dense<0.000000e+00> : vector<256x8xf32>
    %48 = tpu.matmul %45, %47, %cst_17 {dimension_numbers = #tpu.dot_dimension_numbers<[1], [0], [0], [1], [0, 0, 1, 1], [], []>} : vector<256x12xbf16>, vector<12x8xbf16>, vector<256x8xf32> -> vector<256x8xf32>
    %49 = arith.addf %39, %48 : vector<256x8xf32>
    %50 = vector.extract_strided_slice %28 {offsets = [2, 0, 0], sizes = [16, 18, 4], strides = [1, 1, 1]} : vector<18x18x4xbf16> to vector<16x18x4xbf16>
    %51 = vector.extract_strided_slice %50 {offsets = [0, 0, 0], sizes = [16, 16, 4], strides = [1, 1, 1]} : vector<16x18x4xbf16> to vector<16x16x4xbf16>
    %52 = vector.extract_strided_slice %50 {offsets = [0, 1, 0], sizes = [16, 16, 4], strides = [1, 1, 1]} : vector<16x18x4xbf16> to vector<16x16x4xbf16>
    %53 = vector.extract_strided_slice %50 {offsets = [0, 2, 0], sizes = [16, 16, 4], strides = [1, 1, 1]} : vector<16x18x4xbf16> to vector<16x16x4xbf16>
    %54 = tpu.concatenate %51, %52, %53 in 2 : vector<16x16x4xbf16>, vector<16x16x4xbf16>, vector<16x16x4xbf16> -> vector<16x16x12xbf16>
    %55 = vector.shape_cast %54 : vector<16x16x12xbf16> to vector<256x12xbf16>
    %c2 = arith.constant 2 : index
    %c0_18 = arith.constant 0 : index
    %c0_19 = arith.constant 0 : index
    %56 = vector.load %arg4[%c2, %c0_18, %c0_19] : memref<3x12x8xbf16, #tpu.memory_space<vmem>>, vector<1x12x8xbf16>
    %57 = vector.shape_cast %56 : vector<1x12x8xbf16> to vector<12x8xbf16>
    %cst_20 = arith.constant dense<0.000000e+00> : vector<256x8xf32>
    %58 = tpu.matmul %55, %57, %cst_20 {dimension_numbers = #tpu.dot_dimension_numbers<[1], [0], [0], [1], [0, 0, 1, 1], [], []>} : vector<256x12xbf16>, vector<12x8xbf16>, vector<256x8xf32> -> vector<256x8xf32>
    %59 = arith.addf %49, %58 : vector<256x8xf32>
    %60 = arith.truncf %59 : vector<256x8xf32> to vector<256x8xbf16>
    %c0_21 = arith.constant 0 : index
    %c0_22 = arith.constant 0 : index
    %c0_23 = arith.constant 0 : index
    %61 = vector.load %arg5[%c0_21, %c0_22, %c0_23] : memref<1x256x8xbf16, #tpu.memory_space<vmem>>, vector<1x256x8xbf16>
    %62 = vector.shape_cast %61 : vector<1x256x8xbf16> to vector<256x8xbf16>
    %63 = vector.shape_cast %60 : vector<256x8xbf16> to vector<1x256x8xbf16>
    tpu.vector_store %arg5[%c0_21, %c0_22, %c0_23], %63 {strides = array<i32>} : memref<1x256x8xbf16, #tpu.memory_space<vmem>>, vector<1x256x8xbf16>,
    %cst_24 = arith.constant dense<0.000000e+00> : vector<8xf32>
    %64 = vector.multi_reduction <add>, %59, %cst_24 [0] : vector<256x8xf32> to vector<8xf32>
    %65 = vector.shape_cast %64 : vector<8xf32> to vector<1x8xf32>
    %c0_25 = arith.constant 0 : index
    %c0_26 = arith.constant 0 : index
    %c0_27 = arith.constant 0 : index
    %66 = vector.load %arg6[%c0_25, %c0_26, %c0_27] : memref<1x1x8xf32, #tpu.memory_space<vmem>>, vector<1x1x8xf32>
    %67 = vector.shape_cast %66 : vector<1x1x8xf32> to vector<1x8xf32>
    %68 = vector.shape_cast %65 : vector<1x8xf32> to vector<1x1x8xf32>
    tpu.vector_store %arg6[%c0_25, %c0_26, %c0_27], %68 {strides = array<i32>} : memref<1x1x8xf32, #tpu.memory_space<vmem>>, vector<1x1x8xf32>,
    %69 = arith.mulf %59, %59 : vector<256x8xf32>
    %cst_28 = arith.constant dense<0.000000e+00> : vector<8xf32>
    %70 = vector.multi_reduction <add>, %69, %cst_28 [0] : vector<256x8xf32> to vector<8xf32>
    %71 = vector.shape_cast %70 : vector<8xf32> to vector<1x8xf32>
    %c0_29 = arith.constant 0 : index
    %c0_30 = arith.constant 0 : index
    %c0_31 = arith.constant 0 : index
    %72 = vector.load %arg7[%c0_29, %c0_30, %c0_31] : memref<1x1x8xf32, #tpu.memory_space<vmem>>, vector<1x1x8xf32>
    %73 = vector.shape_cast %72 : vector<1x1x8xf32> to vector<1x8xf32>
    %74 = vector.shape_cast %71 : vector<1x8xf32> to vector<1x1x8xf32>
    tpu.vector_store %arg7[%c0_29, %c0_30, %c0_31], %74 {strides = array<i32>} : memref<1x1x8xf32, #tpu.memory_space<vmem>>, vector<1x1x8xf32>,
    return
  }
  func.func @transform_0(%arg0: i32) -> (i32, i32, i32, i32) {
    %c0_i32 = arith.constant 0 : i32
    %c0_i32_0 = arith.constant 0 : i32
    %c0_i32_1 = arith.constant 0 : i32
    %c0_i32_2 = arith.constant 0 : i32
    return %arg0, %c0_i32, %c0_i32_0, %c0_i32_1 : i32, i32, i32, i32
  }
  func.func @transform_1(%arg0: i32) -> (i32, i32) {
    %c0_i32 = arith.constant 0 : i32
    %c0_i32_0 = arith.constant 0 : i32
    %c0_i32_1 = arith.constant 0 : i32
    return %c0_i32, %c0_i32_0 : i32, i32
  }
  func.func @transform_2(%arg0: i32) -> (i32, i32) {
    %c0_i32 = arith.constant 0 : i32
    %c0_i32_0 = arith.constant 0 : i32
    %c0_i32_1 = arith.constant 0 : i32
    return %c0_i32, %c0_i32_0 : i32, i32
  }
  func.func @transform_3(%arg0: i32) -> (i32, i32, i32) {
    %c0_i32 = arith.constant 0 : i32
    %c0_i32_0 = arith.constant 0 : i32
    %c0_i32_1 = arith.constant 0 : i32
    %c0_i32_2 = arith.constant 0 : i32
    return %c0_i32, %c0_i32_0, %c0_i32_1 : i32, i32, i32
  }
  func.func @transform_4(%arg0: i32) -> (i32, i32, i32) {
    %c0_i32 = arith.constant 0 : i32
    %c0_i32_0 = arith.constant 0 : i32
    %c0_i32_1 = arith.constant 0 : i32
    return %arg0, %c0_i32, %c0_i32_0 : i32, i32, i32
  }
  func.func @transform_5(%arg0: i32) -> (i32, i32, i32) {
    %c0_i32 = arith.constant 0 : i32
    %c0_i32_0 = arith.constant 0 : i32
    %c0_i32_1 = arith.constant 0 : i32
    return %arg0, %c0_i32, %c0_i32_0 : i32, i32, i32
  }
  func.func @transform_6(%arg0: i32) -> (i32, i32, i32) {
    %c0_i32 = arith.constant 0 : i32
    %c0_i32_0 = arith.constant 0 : i32
    %c0_i32_1 = arith.constant 0 : i32
    return %arg0, %c0_i32, %c0_i32_0 : i32, i32, i32
  }
}

module attributes {stable_mosaic.version = 11 : i64} {
  func.func @conv3_kernel(%arg0: i32, %arg1: memref<1x18x18x8xbf16, #tpu.memory_space<vmem>>, %arg2: memref<1x8xf32, #tpu.memory_space<vmem>>, %arg3: memref<1x8xf32, #tpu.memory_space<vmem>>, %arg4: memref<3x24x8xbf16, #tpu.memory_space<vmem>>, %arg5: memref<1x256x8xbf16, #tpu.memory_space<vmem>>, %arg6: memref<1x1x8xf32, #tpu.memory_space<vmem>>, %arg7: memref<1x1x8xf32, #tpu.memory_space<vmem>>) attributes {dimension_semantics = [#tpu.dimension_semantics<parallel>], iteration_bounds = array<i64: 2>, scalar_prefetch = 0 : i64, scratch_operands = 0 : i64, tpu.core_type = #tpu.core_type<tc>, window_params = [{transform_indices = @transform_0, window_bounds = array<i64: 1, 18, 18, 8>}, {pipeline_mode = #tpu.pipeline_mode<synchronous>, transform_indices = @transform_1, window_bounds = array<i64: 1, 8>}, {pipeline_mode = #tpu.pipeline_mode<synchronous>, transform_indices = @transform_2, window_bounds = array<i64: 1, 8>}, {pipeline_mode = #tpu.pipeline_mode<synchronous>, transform_indices = @transform_3, window_bounds = array<i64: 3, 24, 8>}, {transform_indices = @transform_4, window_bounds = array<i64: 1, 256, 8>}, {transform_indices = @transform_5, window_bounds = array<i64: 1, 1, 8>}, {transform_indices = @transform_6, window_bounds = array<i64: 1, 1, 8>}]} {
    %c0 = arith.constant 0 : index
    %c0_0 = arith.constant 0 : index
    %c0_1 = arith.constant 0 : index
    %c0_2 = arith.constant 0 : index
    %0 = vector.load %arg1[%c0, %c0_0, %c0_1, %c0_2] : memref<1x18x18x8xbf16, #tpu.memory_space<vmem>>, vector<1x18x18x8xbf16>
    %1 = vector.shape_cast %0 : vector<1x18x18x8xbf16> to vector<18x18x8xbf16>
    %2 = arith.extf %1 : vector<18x18x8xbf16> to vector<18x18x8xf32>
    %c0_3 = arith.constant 0 : index
    %c0_4 = arith.constant 0 : index
    %3 = vector.load %arg2[%c0_3, %c0_4] : memref<1x8xf32, #tpu.memory_space<vmem>>, vector<1x8xf32>
    %4 = vector.shape_cast %3 : vector<1x8xf32> to vector<1x1x8xf32>
    %5 = vector.broadcast %4 : vector<1x1x8xf32> to vector<18x18x8xf32>
    %6 = arith.mulf %2, %5 : vector<18x18x8xf32>
    %c0_5 = arith.constant 0 : index
    %c0_6 = arith.constant 0 : index
    %7 = vector.load %arg3[%c0_5, %c0_6] : memref<1x8xf32, #tpu.memory_space<vmem>>, vector<1x8xf32>
    %8 = vector.shape_cast %7 : vector<1x8xf32> to vector<1x1x8xf32>
    %9 = vector.broadcast %8 : vector<1x1x8xf32> to vector<18x18x8xf32>
    %10 = arith.addf %6, %9 : vector<18x18x8xf32>
    %cst = arith.constant 0.000000e+00 : f32
    %11 = vector.broadcast %cst : f32 to vector<18x18x8xf32>
    %12 = arith.maximumf %10, %11 : vector<18x18x8xf32>
    %13 = tpu.iota {dimensions = array<i32: 0>} : vector<18x18x8xi32>
    %14 = tpu.iota {dimensions = array<i32: 1>} : vector<18x18x8xi32>
    %c1_i32 = arith.constant 1 : i32
    %15 = vector.broadcast %c1_i32 : i32 to vector<18x18x8xi32>
    %16 = arith.cmpi sge, %13, %15 : vector<18x18x8xi32>
    %c16_i32 = arith.constant 16 : i32
    %17 = vector.broadcast %c16_i32 : i32 to vector<18x18x8xi32>
    %18 = arith.cmpi sle, %13, %17 : vector<18x18x8xi32>
    %19 = arith.andi %16, %18 : vector<18x18x8xi1>
    %c1_i32_7 = arith.constant 1 : i32
    %20 = vector.broadcast %c1_i32_7 : i32 to vector<18x18x8xi32>
    %21 = arith.cmpi sge, %14, %20 : vector<18x18x8xi32>
    %22 = arith.andi %19, %21 : vector<18x18x8xi1>
    %c16_i32_8 = arith.constant 16 : i32
    %23 = vector.broadcast %c16_i32_8 : i32 to vector<18x18x8xi32>
    %24 = arith.cmpi sle, %14, %23 : vector<18x18x8xi32>
    %25 = arith.andi %22, %24 : vector<18x18x8xi1>
    %cst_9 = arith.constant 0.000000e+00 : f32
    %26 = vector.broadcast %cst_9 : f32 to vector<18x18x8xf32>
    %27 = arith.select %25, %12, %26 : vector<18x18x8xi1>, vector<18x18x8xf32>
    %28 = arith.truncf %27 : vector<18x18x8xf32> to vector<18x18x8xbf16>
    %cst_10 = arith.constant 0.000000e+00 : f32
    %29 = vector.broadcast %cst_10 : f32 to vector<256x8xf32>
    %30 = vector.extract_strided_slice %28 {offsets = [0, 0, 0], sizes = [16, 18, 8], strides = [1, 1, 1]} : vector<18x18x8xbf16> to vector<16x18x8xbf16>
    %31 = vector.extract_strided_slice %30 {offsets = [0, 0, 0], sizes = [16, 16, 8], strides = [1, 1, 1]} : vector<16x18x8xbf16> to vector<16x16x8xbf16>
    %32 = vector.extract_strided_slice %30 {offsets = [0, 1, 0], sizes = [16, 16, 8], strides = [1, 1, 1]} : vector<16x18x8xbf16> to vector<16x16x8xbf16>
    %33 = vector.extract_strided_slice %30 {offsets = [0, 2, 0], sizes = [16, 16, 8], strides = [1, 1, 1]} : vector<16x18x8xbf16> to vector<16x16x8xbf16>
    %34 = tpu.concatenate %31, %32, %33 in 2 : vector<16x16x8xbf16>, vector<16x16x8xbf16>, vector<16x16x8xbf16> -> vector<16x16x24xbf16>
    %35 = vector.shape_cast %34 : vector<16x16x24xbf16> to vector<256x24xbf16>
    %c0_11 = arith.constant 0 : index
    %c0_12 = arith.constant 0 : index
    %c0_13 = arith.constant 0 : index
    %36 = vector.load %arg4[%c0_11, %c0_12, %c0_13] : memref<3x24x8xbf16, #tpu.memory_space<vmem>>, vector<1x24x8xbf16>
    %37 = vector.shape_cast %36 : vector<1x24x8xbf16> to vector<24x8xbf16>
    %cst_14 = arith.constant dense<0.000000e+00> : vector<256x8xf32>
    %38 = tpu.matmul %35, %37, %cst_14 {dimension_numbers = #tpu.dot_dimension_numbers<[1], [0], [0], [1], [0, 0, 1, 1], [], []>} : vector<256x24xbf16>, vector<24x8xbf16>, vector<256x8xf32> -> vector<256x8xf32>
    %39 = arith.addf %29, %38 : vector<256x8xf32>
    %40 = vector.extract_strided_slice %28 {offsets = [1, 0, 0], sizes = [16, 18, 8], strides = [1, 1, 1]} : vector<18x18x8xbf16> to vector<16x18x8xbf16>
    %41 = vector.extract_strided_slice %40 {offsets = [0, 0, 0], sizes = [16, 16, 8], strides = [1, 1, 1]} : vector<16x18x8xbf16> to vector<16x16x8xbf16>
    %42 = vector.extract_strided_slice %40 {offsets = [0, 1, 0], sizes = [16, 16, 8], strides = [1, 1, 1]} : vector<16x18x8xbf16> to vector<16x16x8xbf16>
    %43 = vector.extract_strided_slice %40 {offsets = [0, 2, 0], sizes = [16, 16, 8], strides = [1, 1, 1]} : vector<16x18x8xbf16> to vector<16x16x8xbf16>
    %44 = tpu.concatenate %41, %42, %43 in 2 : vector<16x16x8xbf16>, vector<16x16x8xbf16>, vector<16x16x8xbf16> -> vector<16x16x24xbf16>
    %45 = vector.shape_cast %44 : vector<16x16x24xbf16> to vector<256x24xbf16>
    %c1 = arith.constant 1 : index
    %c0_15 = arith.constant 0 : index
    %c0_16 = arith.constant 0 : index
    %46 = vector.load %arg4[%c1, %c0_15, %c0_16] : memref<3x24x8xbf16, #tpu.memory_space<vmem>>, vector<1x24x8xbf16>
    %47 = vector.shape_cast %46 : vector<1x24x8xbf16> to vector<24x8xbf16>
    %cst_17 = arith.constant dense<0.000000e+00> : vector<256x8xf32>
    %48 = tpu.matmul %45, %47, %cst_17 {dimension_numbers = #tpu.dot_dimension_numbers<[1], [0], [0], [1], [0, 0, 1, 1], [], []>} : vector<256x24xbf16>, vector<24x8xbf16>, vector<256x8xf32> -> vector<256x8xf32>
    %49 = arith.addf %39, %48 : vector<256x8xf32>
    %50 = vector.extract_strided_slice %28 {offsets = [2, 0, 0], sizes = [16, 18, 8], strides = [1, 1, 1]} : vector<18x18x8xbf16> to vector<16x18x8xbf16>
    %51 = vector.extract_strided_slice %50 {offsets = [0, 0, 0], sizes = [16, 16, 8], strides = [1, 1, 1]} : vector<16x18x8xbf16> to vector<16x16x8xbf16>
    %52 = vector.extract_strided_slice %50 {offsets = [0, 1, 0], sizes = [16, 16, 8], strides = [1, 1, 1]} : vector<16x18x8xbf16> to vector<16x16x8xbf16>
    %53 = vector.extract_strided_slice %50 {offsets = [0, 2, 0], sizes = [16, 16, 8], strides = [1, 1, 1]} : vector<16x18x8xbf16> to vector<16x16x8xbf16>
    %54 = tpu.concatenate %51, %52, %53 in 2 : vector<16x16x8xbf16>, vector<16x16x8xbf16>, vector<16x16x8xbf16> -> vector<16x16x24xbf16>
    %55 = vector.shape_cast %54 : vector<16x16x24xbf16> to vector<256x24xbf16>
    %c2 = arith.constant 2 : index
    %c0_18 = arith.constant 0 : index
    %c0_19 = arith.constant 0 : index
    %56 = vector.load %arg4[%c2, %c0_18, %c0_19] : memref<3x24x8xbf16, #tpu.memory_space<vmem>>, vector<1x24x8xbf16>
    %57 = vector.shape_cast %56 : vector<1x24x8xbf16> to vector<24x8xbf16>
    %cst_20 = arith.constant dense<0.000000e+00> : vector<256x8xf32>
    %58 = tpu.matmul %55, %57, %cst_20 {dimension_numbers = #tpu.dot_dimension_numbers<[1], [0], [0], [1], [0, 0, 1, 1], [], []>} : vector<256x24xbf16>, vector<24x8xbf16>, vector<256x8xf32> -> vector<256x8xf32>
    %59 = arith.addf %49, %58 : vector<256x8xf32>
    %60 = arith.truncf %59 : vector<256x8xf32> to vector<256x8xbf16>
    %c0_21 = arith.constant 0 : index
    %c0_22 = arith.constant 0 : index
    %c0_23 = arith.constant 0 : index
    %61 = vector.load %arg5[%c0_21, %c0_22, %c0_23] : memref<1x256x8xbf16, #tpu.memory_space<vmem>>, vector<1x256x8xbf16>
    %62 = vector.shape_cast %61 : vector<1x256x8xbf16> to vector<256x8xbf16>
    %63 = vector.shape_cast %60 : vector<256x8xbf16> to vector<1x256x8xbf16>
    tpu.vector_store %arg5[%c0_21, %c0_22, %c0_23], %63 {strides = array<i32>} : memref<1x256x8xbf16, #tpu.memory_space<vmem>>, vector<1x256x8xbf16>,
    %cst_24 = arith.constant dense<0.000000e+00> : vector<8xf32>
    %64 = vector.multi_reduction <add>, %59, %cst_24 [0] : vector<256x8xf32> to vector<8xf32>
    %65 = vector.shape_cast %64 : vector<8xf32> to vector<1x8xf32>
    %c0_25 = arith.constant 0 : index
    %c0_26 = arith.constant 0 : index
    %c0_27 = arith.constant 0 : index
    %66 = vector.load %arg6[%c0_25, %c0_26, %c0_27] : memref<1x1x8xf32, #tpu.memory_space<vmem>>, vector<1x1x8xf32>
    %67 = vector.shape_cast %66 : vector<1x1x8xf32> to vector<1x8xf32>
    %68 = vector.shape_cast %65 : vector<1x8xf32> to vector<1x1x8xf32>
    tpu.vector_store %arg6[%c0_25, %c0_26, %c0_27], %68 {strides = array<i32>} : memref<1x1x8xf32, #tpu.memory_space<vmem>>, vector<1x1x8xf32>,
    %69 = arith.mulf %59, %59 : vector<256x8xf32>
    %cst_28 = arith.constant dense<0.000000e+00> : vector<8xf32>
    %70 = vector.multi_reduction <add>, %69, %cst_28 [0] : vector<256x8xf32> to vector<8xf32>
    %71 = vector.shape_cast %70 : vector<8xf32> to vector<1x8xf32>
    %c0_29 = arith.constant 0 : index
    %c0_30 = arith.constant 0 : index
    %c0_31 = arith.constant 0 : index
    %72 = vector.load %arg7[%c0_29, %c0_30, %c0_31] : memref<1x1x8xf32, #tpu.memory_space<vmem>>, vector<1x1x8xf32>
    %73 = vector.shape_cast %72 : vector<1x1x8xf32> to vector<1x8xf32>
    %74 = vector.shape_cast %71 : vector<1x8xf32> to vector<1x1x8xf32>
    tpu.vector_store %arg7[%c0_29, %c0_30, %c0_31], %74 {strides = array<i32>} : memref<1x1x8xf32, #tpu.memory_space<vmem>>, vector<1x1x8xf32>,
    return
  }
  func.func @transform_0(%arg0: i32) -> (i32, i32, i32, i32) {
    %c0_i32 = arith.constant 0 : i32
    %c0_i32_0 = arith.constant 0 : i32
    %c0_i32_1 = arith.constant 0 : i32
    %c0_i32_2 = arith.constant 0 : i32
    return %arg0, %c0_i32, %c0_i32_0, %c0_i32_1 : i32, i32, i32, i32
  }
  func.func @transform_1(%arg0: i32) -> (i32, i32) {
    %c0_i32 = arith.constant 0 : i32
    %c0_i32_0 = arith.constant 0 : i32
    %c0_i32_1 = arith.constant 0 : i32
    return %c0_i32, %c0_i32_0 : i32, i32
  }
  func.func @transform_2(%arg0: i32) -> (i32, i32) {
    %c0_i32 = arith.constant 0 : i32
    %c0_i32_0 = arith.constant 0 : i32
    %c0_i32_1 = arith.constant 0 : i32
    return %c0_i32, %c0_i32_0 : i32, i32
  }
  func.func @transform_3(%arg0: i32) -> (i32, i32, i32) {
    %c0_i32 = arith.constant 0 : i32
    %c0_i32_0 = arith.constant 0 : i32
    %c0_i32_1 = arith.constant 0 : i32
    %c0_i32_2 = arith.constant 0 : i32
    return %c0_i32, %c0_i32_0, %c0_i32_1 : i32, i32, i32
  }
  func.func @transform_4(%arg0: i32) -> (i32, i32, i32) {
    %c0_i32 = arith.constant 0 : i32
    %c0_i32_0 = arith.constant 0 : i32
    %c0_i32_1 = arith.constant 0 : i32
    return %arg0, %c0_i32, %c0_i32_0 : i32, i32, i32
  }
  func.func @transform_5(%arg0: i32) -> (i32, i32, i32) {
    %c0_i32 = arith.constant 0 : i32
    %c0_i32_0 = arith.constant 0 : i32
    %c0_i32_1 = arith.constant 0 : i32
    return %arg0, %c0_i32, %c0_i32_0 : i32, i32, i32
  }
  func.func @transform_6(%arg0: i32) -> (i32, i32, i32) {
    %c0_i32 = arith.constant 0 : i32
    %c0_i32_0 = arith.constant 0 : i32
    %c0_i32_1 = arith.constant 0 : i32
    return %arg0, %c0_i32, %c0_i32_0 : i32, i32, i32
  }
}

module attributes {stable_mosaic.version = 11 : i64} {
  func.func @finalize_kernel(%arg0: i32, %arg1: memref<512x24xbf16, #tpu.memory_space<vmem>>, %arg2: memref<512x8xbf16, #tpu.memory_space<vmem>>, %arg3: memref<512x8xbf16, #tpu.memory_space<vmem>>, %arg4: memref<1x32xf32, #tpu.memory_space<vmem>>, %arg5: memref<1x32xf32, #tpu.memory_space<vmem>>, %arg6: memref<512x32xf32, #tpu.memory_space<vmem>>) attributes {dimension_semantics = [#tpu.dimension_semantics<parallel>], iteration_bounds = array<i64: 1>, scalar_prefetch = 0 : i64, scratch_operands = 0 : i64, tpu.core_type = #tpu.core_type<tc>, window_params = [{transform_indices = @transform_0, window_bounds = array<i64: 512, 24>}, {transform_indices = @transform_1, window_bounds = array<i64: 512, 8>}, {transform_indices = @transform_2, window_bounds = array<i64: 512, 8>}, {pipeline_mode = #tpu.pipeline_mode<synchronous>, transform_indices = @transform_3, window_bounds = array<i64: 1, 32>}, {pipeline_mode = #tpu.pipeline_mode<synchronous>, transform_indices = @transform_4, window_bounds = array<i64: 1, 32>}, {transform_indices = @transform_5, window_bounds = array<i64: 512, 32>}]} {
    %c0 = arith.constant 0 : index
    %c0_0 = arith.constant 0 : index
    %0 = vector.load %arg1[%c0, %c0_0] : memref<512x24xbf16, #tpu.memory_space<vmem>>, vector<512x24xbf16>
    %1 = arith.extf %0 : vector<512x24xbf16> to vector<512x24xf32>
    %2 = vector.extract_strided_slice %1 {offsets = [0, 8], sizes = [512, 8], strides = [1, 1]} : vector<512x24xf32> to vector<512x8xf32>
    %3 = vector.extract_strided_slice %1 {offsets = [0, 16], sizes = [512, 8], strides = [1, 1]} : vector<512x24xf32> to vector<512x8xf32>
    %c0_1 = arith.constant 0 : index
    %c0_2 = arith.constant 0 : index
    %4 = vector.load %arg2[%c0_1, %c0_2] : memref<512x8xbf16, #tpu.memory_space<vmem>>, vector<512x8xbf16>
    %5 = arith.extf %4 : vector<512x8xbf16> to vector<512x8xf32>
    %c0_3 = arith.constant 0 : index
    %c0_4 = arith.constant 0 : index
    %6 = vector.load %arg3[%c0_3, %c0_4] : memref<512x8xbf16, #tpu.memory_space<vmem>>, vector<512x8xbf16>
    %7 = arith.extf %6 : vector<512x8xbf16> to vector<512x8xf32>
    %8 = tpu.concatenate %2, %5, %7, %3 in 1 : vector<512x8xf32>, vector<512x8xf32>, vector<512x8xf32>, vector<512x8xf32> -> vector<512x32xf32>
    %c0_5 = arith.constant 0 : index
    %c0_6 = arith.constant 0 : index
    %9 = vector.load %arg4[%c0_5, %c0_6] : memref<1x32xf32, #tpu.memory_space<vmem>>, vector<1x32xf32>
    %10 = vector.broadcast %9 : vector<1x32xf32> to vector<512x32xf32>
    %11 = arith.mulf %8, %10 : vector<512x32xf32>
    %c0_7 = arith.constant 0 : index
    %c0_8 = arith.constant 0 : index
    %12 = vector.load %arg5[%c0_7, %c0_8] : memref<1x32xf32, #tpu.memory_space<vmem>>, vector<1x32xf32>
    %13 = vector.broadcast %12 : vector<1x32xf32> to vector<512x32xf32>
    %14 = arith.addf %11, %13 : vector<512x32xf32>
    %cst = arith.constant 0.000000e+00 : f32
    %15 = vector.broadcast %cst : f32 to vector<512x32xf32>
    %16 = arith.maximumf %14, %15 : vector<512x32xf32>
    %c0_9 = arith.constant 0 : index
    %c0_10 = arith.constant 0 : index
    %17 = vector.load %arg6[%c0_9, %c0_10] : memref<512x32xf32, #tpu.memory_space<vmem>>, vector<512x32xf32>
    tpu.vector_store %arg6[%c0_9, %c0_10], %16 {strides = array<i32>} : memref<512x32xf32, #tpu.memory_space<vmem>>, vector<512x32xf32>,
    return
  }
  func.func @transform_0(%arg0: i32) -> (i32, i32) {
    %c0_i32 = arith.constant 0 : i32
    %c0_i32_0 = arith.constant 0 : i32
    return %arg0, %c0_i32 : i32, i32
  }
  func.func @transform_1(%arg0: i32) -> (i32, i32) {
    %c0_i32 = arith.constant 0 : i32
    %c0_i32_0 = arith.constant 0 : i32
    return %arg0, %c0_i32 : i32, i32
  }
  func.func @transform_2(%arg0: i32) -> (i32, i32) {
    %c0_i32 = arith.constant 0 : i32
    %c0_i32_0 = arith.constant 0 : i32
    return %arg0, %c0_i32 : i32, i32
  }
  func.func @transform_3(%arg0: i32) -> (i32, i32) {
    %c0_i32 = arith.constant 0 : i32
    %c0_i32_0 = arith.constant 0 : i32
    %c0_i32_1 = arith.constant 0 : i32
    return %c0_i32, %c0_i32_0 : i32, i32
  }
  func.func @transform_4(%arg0: i32) -> (i32, i32) {
    %c0_i32 = arith.constant 0 : i32
    %c0_i32_0 = arith.constant 0 : i32
    %c0_i32_1 = arith.constant 0 : i32
    return %c0_i32, %c0_i32_0 : i32, i32
  }
  func.func @transform_5(%arg0: i32) -> (i32, i32) {
    %c0_i32 = arith.constant 0 : i32
    %c0_i32_0 = arith.constant 0 : i32
    return %arg0, %c0_i32 : i32, i32
  }
}

</mosaic_0001>

<bundles_post_ra>
// kernel: inception_forward.5
= control target key start
LH: loop header
LB: loop body
LE: loop exit
PB: predicated region body
PF: predicated region fallthrough
CT: control target
= control target key end

     0   :  { %s2590_s18 = smov 0   ;;  %s3595_s0 = inlined_call_operand.vmem [shape: bf16[2,18,18,4], index: 0, kind: input, shape index: {}]   ;;  %s3596_s1 = inlined_call_operand.vmem [shape: bf16[4,16], index: 1, kind: input, shape index: {}]   ;;  %s3597_s2 = inlined_call_operand.vmem [shape: bf16[4,8], index: 2, kind: input, shape index: {}]   ;;  %s3598_s3 = inlined_call_operand.vmem [shape: bf16[2,256,24], index: 3, kind: output, shape index: {0}]   ;;  %s3599_s4 = inlined_call_operand.vmem [shape: f32[2,1,24], index: 4, kind: output, shape index: {1}]   ;;  %s3600_s5 = inlined_call_operand.vmem [shape: f32[2,1,24], index: 5, kind: output, shape index: {2}]  }
   0x1 LB: > { %s2280_s19 = sadd.s32 4294967295, %s2557_s18   ;;  %p2284_p0 = scmp.ge.s32.totalorder %s2557_s18, 1  ;;  %s2557_s18 = sphi %s2590_s18, %s16_s18  }
   0x2   : > { %p192_p1 = scmp.lt.s32.totalorder %s2557_s18, 3 }
   0x4   : > { %p193_p2 = pnand %p2284_p0, %p192_p1 }
   0x6   : > { %196 = sbr.rel (%p193_p2) target bundleno = 520 (0x208), region = 32 }
   0xd   : > { %vm782_vm0 = vcmask 1041408   ;;  %v1386_v0 = vld [vmem:[%s3597_s2] sm:$0x3]  ;;  %p226_p3 = scmp.lt.s32.totalorder %s2280_s19, 1  ;;  %vm297_vm1 = vsmask.f32 3328 }
   0xe   : > { %2540 = vmatprep.subr.msk.bf16.mxu1 %vm782_vm0, %v1386_v0  ;;  %v1516_v1 = vsel %vm782_vm0, %v1386_v0, 0  ;;  %vm298_vm2 = vsmask.f32 7440  ;;  %vm1121_vm3 = vcmask 1042432   ;;  %vm1122_vm4 = vcmask 1046532   ;;  %s2559_s28 = smov 16  }
   0xf   : > { %2506 = vmatpush3.bf16.msra.mxu1 %v1516_v1  ;;  %s3615_s19 = smov (!%p226_p3, %s2280_s19), 1  ;;  %vm2647_vm5 = vmor %vm297_vm1, %vm298_vm2  ;;  %vm733_vm7 = vcmask 31744   ;;  %vm1807_vm8 = vcmask 130048   ;;  %vm1968_vm9 = vcmask 191488   ;;  %vm2001_vm10 = vcmask 195584  }
  0x10   : > { %s2541_s22 = smul.u32 216, %s3615_s19  ;;  %vm2676_vm6 = vmor %vm1121_vm3, %vm1122_vm4  ;;  %s2404_s29 = sshll.u32 %s3615_s19, 7  ;;  %vm2071_vm11 = vcmask 188416  }
  0x11   : > { %s3348_s7 = scalar_lea.vmem %s3598_s3, %s2404_s29  ;;  %s238_s10 = scalar_lea.vmem %s3599_s4, %s3615_s19 }
  0x12   : > { %s2609_s25 = scalar_lea.vmem %s3595_s0, %s2541_s22  ;;  %s241_s13 = scalar_lea.vmem %s3600_s5, %s3615_s19 }
  0x13   : > { %v2612_v2 = vld [vmem:[%s2609_s25 + $0xc] sm:$0xf]  ;;  %v2615_v3 = vld [vmem:[%s2609_s25 + $0x10] sm:$0xf]  ;;  %v2618_v4 = vld [vmem:[%s2609_s25 + $0x14] sm:$0x1] }
  0x14   : > { %v2621_v5 = vld [vmem:[%s2609_s25 + $0x18] sm:$0xf]  ;;  %v2624_v6 = vld [vmem:[%s2609_s25 + $0x1c] sm:$0xf]  ;;  %v2627_v7 = vld [vmem:[%s2609_s25] sm:$0xf] }
  0x15   : > { %v301_v8 = vshrl.u32 %v2612_v2, 16  ;;  %v304_v9 = vshll.u32 %v2612_v2, 16  ;;  %v310_v10 = vshll.u32 %v2615_v3, 16  ;;  %v314_v11 = vshrl.u32 %v2615_v3, 16  ;;  %v2634_v12 = vld [vmem:[%s2609_s25 + $0x20] sm:$0x1] }
  0x16   : > { %v320_v13 = vshll.u32 %v2618_v4, 16  ;;  %v325_v14 = vshrl.u32 %v2621_v5, 16  ;;  %v328_v15 = vshll.u32 %v2621_v5, 16  ;;  %v334_v16 = vshll.u32 %v2624_v6, 16  ;;  %v2641_v17 = vld [vmem:[%s2609_s25 + $0x4] sm:$0xf] }
  0x17   : > { %v303_v18 = vrot.slane %v301_v8, 4  ;;  %v306_v19 = vrot.slane %v304_v9, 5  ;;  %v312_v20 = vrot.slane %v310_v10, 5  ;;  %v316_v21 = vrot.slane %v314_v11, 4  ;;  %v245_v35 = vld [vmem:[%s2609_s25 + $0x8] sm:$0x1] }
  0x18   : > { %v322_v22 = vrot.slane %v320_v13, 5  ;;  %v327_v23 = vrot.slane %v325_v14, 4  ;;  %v330_v24 = vrot.slane %v328_v15, 5  ;;  %v336_v25 = vrot.slane %v334_v16, 5 }
  0x19   : > { %v307_v26 = vor.u32 %v306_v19, %v303_v18  ;;  %v317_v27 = vor.u32 %v316_v21, %v312_v20  ;;  %v338_v28 = vshrl.u32 %v2624_v6, 16  ;;  %v344_v29 = vshll.u32 %v2634_v12, 16 }
  0x1a   : > { %v331_v31 = vor.u32 %v330_v24, %v327_v23  ;;  %v948_v32 = vshrl.u32 %v2627_v7, 16  ;;  %v951_v33 = vshll.u32 %v2627_v7, 16  ;;  %v957_v34 = vshll.u32 %v2641_v17, 16 }
  0x1b   : > { %v308_v36 = vrot.slane %v307_v26, 4  ;;  %v318_v37 = vrot.slane %v317_v27, 4  ;;  %v340_v38 = vrot.slane %v338_v28, 4  ;;  %v346_v39 = vrot.slane %v344_v29, 5 }
  0x1c   : > { %v332_v40 = vrot.slane %v331_v31, 4  ;;  %v950_v41 = vrot.slane %v948_v32, 4  ;;  %v953_v42 = vrot.slane %v951_v33, 5  ;;  %v959_v43 = vrot.slane %v957_v34, 5  ;;  %v254_v32 = vld [vmem:[%s2609_s25 + $0x2c] sm:$0x1] }
  0x1d   : > { %v2657_v44 = vsel %vm2647_vm5, %v308_v36, %v312_v20  ;;  %v2661_v45 = vsel %vm2647_vm5, %v318_v37, %v322_v22  ;;  %v341_v46 = vor.u32 %v340_v38, %v336_v25  ;;  %v961_v47 = vshrl.u32 %v2641_v17, 16  ;;  %v252_v20 = vld [vmem:[%s2609_s25 + $0x24] sm:$0xf] }
  0x1e   : > { %v2666_v48 = vsel %vm2647_vm5, %v332_v40, %v336_v25  ;;  %v954_v49 = vor.u32 %v953_v42, %v950_v41  ;;  %v967_v50 = vshll.u32 %v245_v35, 16  ;;  %v1033_v51 = vmax.bf16 %v2657_v44, %v2612_v2  ;;  %v2716_v25 = vld [vmem:[%s2609_s25 + $0x28] sm:$0xf]  ;;  %v2733_v41 = vld [vmem:[%s2609_s25 + $0x30] sm:$0xf] }
  0x1f   : > { %v342_v52 = vrot.slane %v341_v46, 4  ;;  %v963_v53 = vrot.slane %v961_v47, 4  ;;  %v1034_v54 = vmax.bf16 %v2661_v45, %v2615_v3  ;;  %v1035_v55 = vmax.bf16 %v2666_v48, %v2621_v5 }
  0x20   : > { %v955_v57 = vrot.slane %v954_v49, 4  ;;  %v969_v58 = vrot.slane %v967_v50, 5  ;;  %v2320_v59 = vrot.slane %v2627_v7, 9  ;;  %v1126_v60 = vrot.slane %v2641_v17, 5 }
  0x21   : > { %v2684_v61 = vsel %vm2647_vm5, %v342_v52, %v346_v39  ;;  %v964_v62 = vor.u32 %v963_v53, %v959_v43  ;;  %v1129_v63 = vrot.slane %v245_v35, 5  ;;  %v2321_v0 = vrot.slane %v2612_v2, 9  ;;  %v2740_v53 = vld [vmem:[%s2609_s25 + $0x34] sm:$0xf] }
  0x22   : > { %v960_v1 = vsel %vm2647_vm5, %v955_v57, %v959_v43  ;;  %v1036_v8 = vmax.bf16 %v2684_v61, %v2624_v6  ;;  %v1127_v9 = vsel %vm2676_vm6, %v2320_v59, %v1126_v60  ;;  %v1128_v10 = vrot.slane %v1126_v60, 4 }
  0x23   : > { %v965_v11 = vrot.slane %v964_v62, 4  ;;  %v1031_v13 = vmax.bf16 %v960_v1, %v2627_v7  ;;  %v1133_v14 = vrot.slane %v2615_v3, 5  ;;  %v1136_v15 = vrot.slane %v2618_v4, 5 }
  0x24   : > { %v1130_v2 = vsel %vm2676_vm6, %v1128_v10, %v1129_v63  ;;  %v2322_v16 = vrot.slane %v2621_v5, 9  ;;  %v1140_v18 = vrot.slane %v2624_v6, 5  ;;  %v1143_v19 = vrot.slane %v2634_v12, 5 }
  0x25   : > { %v970_v21 = vsel %vm2647_vm5, %v965_v11, %v969_v58  ;;  %v1134_v3 = vsel %vm2676_vm6, %v2321_v0, %v1133_v14  ;;  %v1135_v4 = vrot.slane %v1133_v14, 4  ;;  %v1286_v7 = vmax.bf16 %v1127_v9, %v1031_v13  ;;  %v257_v0 = vld [vmem:[%s2609_s25 + $0x38] sm:$0x1] }
  0x26   : > { %v1032_v22 = vmax.bf16 %v970_v21, %v2641_v17  ;;  %v1141_v5 = vsel %vm2676_vm6, %v2322_v16, %v1140_v18  ;;  %v1142_v23 = vrot.slane %v1140_v18, 4  ;;  %v2709_v6 = vmax.bf16 %v1134_v3, %v1033_v51 }
  0x27   : > { %v1137_v12 = vsel %vm2676_vm6, %v1135_v4, %v1136_v15  ;;  %v2713_v24 = vmax.bf16 %v1141_v5, %v1035_v55  ;;  %v349_v26 = vshrl.u32 %v252_v20, 16  ;;  %v352_v27 = vshll.u32 %v252_v20, 16 }
  0x28   : > { %v1144_v28 = vsel %vm2676_vm6, %v1142_v23, %v1143_v19  ;;  %v1287_v17 = vmax.bf16 %v1130_v2, %v1032_v22  ;;  %v2720_v29 = vmax.bf16 %v1137_v12, %v1034_v54  ;;  %v1322_v31 = vmax.bf16 %v2709_v6, %v1286_v7  ;;  %v2766_v7 = vld [vmem:[%s2609_s25 + $0x3c] sm:$0xf]  ;;  %v2771_v22 = vld [vmem:[%s3596_s1] sm:$0x3] }
  0x29   : > { %v2724_v33 = vmax.bf16 %v1144_v28, %v1036_v8  ;;  %v1324_v34 = vmax.bf16 %v2713_v24, %v2709_v6  ;;  %v351_v35 = vrot.slane %v349_v26, 4  ;;  %v354_v36 = vrot.slane %v352_v27, 5  ;;  %v2776_v26 = vld [vmem:[%s2609_s25 + $0x40] sm:$0xf]  ;;  %2539 = vmatprep.subr.msk.bf16.mxu0 %vm782_vm0, %v2771_v22 }
  0x2a   : > { %v1323_v37 = vmax.bf16 %v2720_v29, %v1287_v17  ;;  %v1354_v38 = vmax.bf16 %v1322_v31, %v2713_v24  ;;  %v358_v39 = vshll.u32 %v2716_v25, 16  ;;  %v362_v40 = vshrl.u32 %v2716_v25, 16 }
  0x2b   : > { %v1325_v42 = vmax.bf16 %v2724_v33, %v2720_v29  ;;  %v355_v43 = vor.u32 %v354_v36, %v351_v35  ;;  %v368_v46 = vshll.u32 %v254_v32, 16  ;;  %v2323_v47 = vrot.slane %v252_v20, 9 }
  0x2c   : > { %v1355_v49 = vmax.bf16 %v1323_v37, %v2724_v33  ;;  %v360_v50 = vrot.slane %v358_v39, 5  ;;  %v364_v51 = vrot.slane %v362_v40, 4  ;;  %v1147_v52 = vrot.slane %v2716_v25, 5 }
  0x2d   : > { %v356_v54 = vrot.slane %v355_v43, 4  ;;  %v370_v55 = vrot.slane %v368_v46, 5  ;;  %v1150_v57 = vrot.slane %v254_v32, 5  ;;  %v373_v58 = vshrl.u32 %v2733_v41, 16 }
  0x2e   : > { %v2338_v59 = vcombine.low %v1354_v38, %v1355_v49  ;;  %v365_v60 = vor.u32 %v364_v51, %v360_v50  ;;  %v1148_v62 = vsel %vm2676_vm6, %v2323_v47, %v1147_v52  ;;  %v1149_v63 = vrot.slane %v1147_v52, 4  ;;  %v260_v38 = vld [vmem:[%s2609_s25 + $0x44] sm:$0x1] }
  0x2f   : > { %v2748_v1 = vsel %vm2647_vm5, %v356_v54, %v360_v50  ;;  %v375_v8 = vrot.slane %v373_v58, 4  ;;  %v376_v9 = vshll.u32 %v2733_v41, 16  ;;  %v382_v10 = vshll.u32 %v2740_v53, 16 }
  0x30   : > { %2507 = vmatprep.mubr.msk.bf16.mxu1 %vm733_vm7, %v2338_v59  ;;  %v366_v11 = vrot.slane %v365_v60, 4  ;;  %v1037_v13 = vmax.bf16 %v2748_v1, %v252_v20  ;;  %v1151_v14 = vsel %vm2676_vm6, %v1149_v63, %v1150_v57  ;;  %v386_v15 = vshrl.u32 %v2740_v53, 16 }
  0x31   : > { %v378_v2 = vrot.slane %v376_v9, 5  ;;  %v384_v16 = vrot.slane %v382_v10, 5  ;;  %v392_v18 = vshll.u32 %v257_v0, 16  ;;  %v2324_v19 = vrot.slane %v2733_v41, 9 }
  0x32   : > { %v2760_v21 = vsel %vm2647_vm5, %v366_v11, %v370_v55  ;;  %v2762_v3 = vmax.bf16 %v1148_v62, %v1037_v13  ;;  %v388_v4 = vrot.slane %v386_v15, 4  ;;  %v1154_v20 = vrot.slane %v2740_v53, 5  ;;  %v2821_v11 = vld [vmem:[%s2609_s25 + $0x4c] sm:$0xf] }
  0x33   : > { %v1038_v5 = vmax.bf16 %v2760_v21, %v2716_v25  ;;  %v379_v23 = vor.u32 %v378_v2, %v375_v8  ;;  %v394_v6 = vrot.slane %v392_v18, 5  ;;  %v1157_v12 = vrot.slane %v257_v0, 5 }
  0x34   : > { %v1356_v27 = vmax.bf16 %v1324_v34, %v2762_v3  ;;  %v389_v28 = vor.u32 %v388_v4, %v384_v16  ;;  %v1155_v17 = vsel %vm2676_vm6, %v2324_v19, %v1154_v20  ;;  %v1156_v29 = vrot.slane %v1154_v20, 4 }
  0x35   : > { %v2783_v31 = vmax.bf16 %v1151_v14, %v1038_v5  ;;  %v380_v32 = vrot.slane %v379_v23, 4  ;;  %v1326_v25 = vmax.bf16 %v2762_v3, %v2713_v24  ;;  %v397_v35 = vshrl.u32 %v2766_v7, 16 }
  0x36   : > { %v390_v36 = vrot.slane %v389_v28, 4  ;;  %v1158_v37 = vsel %vm2676_vm6, %v1156_v29, %v1157_v12  ;;  %v400_v34 = vshll.u32 %v2766_v7, 16  ;;  %v406_v39 = vshll.u32 %v2776_v26, 16 }
  0x37   : > { %v1357_v40 = vmax.bf16 %v1325_v42, %v2783_v31  ;;  %v2796_v43 = vsel %vm2647_vm5, %v380_v32, %v384_v16  ;;  %v1327_v24 = vmax.bf16 %v2783_v31, %v2724_v33  ;;  %v399_v46 = vrot.slane %v397_v35, 4  ;;  %v263_v16 = vld [vmem:[%s2609_s25 + $0x50] sm:$0x1]  ;;  %v2847_v35 = vld [vmem:[%s2609_s25 + $0x54] sm:$0xf] }
  0x38   : > { %v2802_v47 = vsel %vm2647_vm5, %v390_v36, %v394_v6  ;;  %v1039_v49 = vmax.bf16 %v2796_v43, %v2733_v41  ;;  %v402_v50 = vrot.slane %v400_v34, 5  ;;  %v408_v51 = vrot.slane %v406_v39, 5  ;;  %v2852_v34 = vld [vmem:[%s2609_s25 + $0x58] sm:$0xf] }
  0x39   : > { %v2339_v52 = vcombine.low %v1356_v27, %v1357_v40  ;;  %v1040_v42 = vmax.bf16 %v2802_v47, %v2740_v53  ;;  %v410_v54 = vshrl.u32 %v2776_v26, 16  ;;  %v416_v55 = vshll.u32 %v260_v38, 16  ;;  %v261_v53 = vld [vmem:[%s2609_s25 + $0x48] sm:$0xf] }
  0x3a   : > { %v2809_v33 = vmax.bf16 %v1155_v17, %v1039_v49  ;;  %v403_v57 = vor.u32 %v402_v50, %v399_v46  ;;  %v2325_v58 = vrot.slane %v2766_v7, 9  ;;  %v1161_v59 = vrot.slane %v2776_v26, 5 }
  0x3b   : > { %2508 = vmatmul.mubr.msk.bf16.vlgmr.msra.gmra.mrb[0].mxu1 %vm733_vm7, %v2339_v52  ;;  %v2814_v41 = vmax.bf16 %v1158_v37, %v1040_v42  ;;  %v412_v60 = vrot.slane %v410_v54, 4  ;;  %v418_v62 = vrot.slane %v416_v55, 5  ;;  %v1164_v63 = vrot.slane %v260_v38, 5 }
  0x3c   : > { %v1358_v0 = vmax.bf16 %v1326_v25, %v2809_v33  ;;  %v404_v8 = vrot.slane %v403_v57, 4  ;;  %v1162_v9 = vsel %vm2676_vm6, %v2325_v58, %v1161_v59  ;;  %v1163_v10 = vrot.slane %v1161_v59, 4 }
  0x3d   : > { %v1359_v13 = vmax.bf16 %v1327_v24, %v2814_v41  ;;  %v413_v14 = vor.u32 %v412_v60, %v408_v51  ;;  %v1328_v15 = vmax.bf16 %v2809_v33, %v2762_v3  ;;  %v1329_v2 = vmax.bf16 %v2814_v41, %v2783_v31  ;;  %v266_v60 = vld [vmem:[%s2609_s25 + $0x5c] sm:$0x1] }
  0x3e   : > { %v2831_v18 = vsel %vm2647_vm5, %v404_v8, %v408_v51  ;;  %v1165_v19 = vsel %vm2676_vm6, %v1163_v10, %v1164_v63  ;;  %v421_v4 = vshrl.u32 %v261_v53, 16  ;;  %v424_v20 = vshll.u32 %v261_v53, 16 }
  0x3f   : > { %v2340_v5 = vcombine.low %v1358_v0, %v1359_v13  ;;  %v414_v23 = vrot.slane %v413_v14, 4  ;;  %v1041_v6 = vmax.bf16 %v2831_v18, %v2766_v7  ;;  %v430_v3 = vshll.u32 %v2821_v11, 16 }
  0x40   : > { %v423_v12 = vrot.slane %v421_v4, 4  ;;  %v426_v27 = vrot.slane %v424_v20, 5  ;;  %v434_v28 = vshrl.u32 %v2821_v11, 16  ;;  %v440_v17 = vshll.u32 %v263_v16, 16 }
  0x41   : > { %2511 = vmatprep.mubr.msk.bf16.mxu1 %vm733_vm7, %v2340_v5  ;;  %v2842_v29 = vsel %vm2647_vm5, %v414_v23, %v418_v62  ;;  %v2844_v31 = vmax.bf16 %v1162_v9, %v1041_v6  ;;  %v432_v32 = vrot.slane %v430_v3, 5  ;;  %v2326_v25 = vrot.slane %v261_v53, 9  ;;  %v2889_v5 = vld [vmem:[%s2609_s25 + $0x60] sm:$0xf] }
  0x42   : > { %v1042_v7 = vmax.bf16 %v2842_v29, %v2776_v26  ;;  %v427_v36 = vor.u32 %v426_v27, %v423_v12  ;;  %v436_v37 = vrot.slane %v434_v28, 4  ;;  %v442_v38 = vrot.slane %v440_v17, 5 }
  0x43   : > { %v1360_v39 = vmax.bf16 %v1328_v15, %v2844_v31  ;;  %v1168_v40 = vrot.slane %v2821_v11, 5  ;;  %v1171_v24 = vrot.slane %v263_v16, 5  ;;  %v1330_v46 = vmax.bf16 %v2844_v31, %v2809_v33 }
  0x44   : > { %v2858_v49 = vmax.bf16 %v1165_v19, %v1042_v7  ;;  %v428_v50 = vrot.slane %v427_v36, 4  ;;  %v437_v51 = vor.u32 %v436_v37, %v432_v32  ;;  %v445_v26 = vshrl.u32 %v2847_v35, 16  ;;  %v269_v37 = vld [vmem:[%s2609_s25 + $0x68] sm:$0x1] }
  0x45   : > { %v1169_v52 = vsel %vm2676_vm6, %v2326_v25, %v1168_v40  ;;  %v1170_v42 = vrot.slane %v1168_v40, 4  ;;  %v448_v54 = vshll.u32 %v2847_v35, 16  ;;  %v454_v55 = vshll.u32 %v2852_v34, 16 }
  0x46   : > { %v1361_v57 = vmax.bf16 %v1329_v2, %v2858_v49  ;;  %v2868_v58 = vsel %vm2647_vm5, %v428_v50, %v432_v32  ;;  %v438_v33 = vrot.slane %v437_v51, 4  ;;  %v1331_v59 = vmax.bf16 %v2858_v49, %v2814_v41  ;;  %v268_v32 = vld [vmem:[%s2609_s25 + $0x64] sm:$0xf] }
  0x47   : > { %v1043_v62 = vmax.bf16 %v2868_v58, %v261_v53  ;;  %v1172_v63 = vsel %vm2676_vm6, %v1170_v42, %v1171_v24  ;;  %v447_v0 = vrot.slane %v445_v26, 4  ;;  %v450_v8 = vrot.slane %v448_v54, 5 }
  0x48   : > { %v2341_v9 = vcombine.low %v1360_v39, %v1361_v57  ;;  %v2878_v10 = vsel %vm2647_vm5, %v438_v33, %v442_v38  ;;  %v456_v13 = vrot.slane %v454_v55, 5  ;;  %v458_v14 = vshrl.u32 %v2852_v34, 16 }
  0x49   : > { %v1044_v41 = vmax.bf16 %v2878_v10, %v2821_v11  ;;  %v2883_v15 = vmax.bf16 %v1169_v52, %v1043_v62  ;;  %v451_v53 = vor.u32 %v450_v8, %v447_v0  ;;  %v464_v2 = vshll.u32 %v266_v60, 16 }
  0x4a   : > { %2512 = vmatmul.mubr.msk.bf16.gmra.mrb[4].mxu1 %vm733_vm7, %v2341_v9  ;;  %v460_v16 = vrot.slane %v458_v14, 4  ;;  %v2327_v19 = vrot.slane %v2847_v35, 9  ;;  %v1175_v4 = vrot.slane %v2852_v34, 5  ;;  %v1178_v20 = vrot.slane %v266_v60, 5 }
  0x4b   : > { %v2891_v23 = vmax.bf16 %v1172_v63, %v1044_v41  ;;  %v1362_v11 = vmax.bf16 %v1330_v46, %v2883_v15  ;;  %v452_v6 = vrot.slane %v451_v53, 4  ;;  %v466_v3 = vrot.slane %v464_v2, 5 }
  0x4c   : > { %v461_v12 = vor.u32 %v460_v16, %v456_v13  ;;  %v1176_v27 = vsel %vm2676_vm6, %v2327_v19, %v1175_v4  ;;  %v1177_v28 = vrot.slane %v1175_v4, 4  ;;  %v1332_v17 = vmax.bf16 %v2883_v15, %v2844_v31 }
  0x4d   : > { %v1363_v25 = vmax.bf16 %v1331_v59, %v2891_v23  ;;  %v2902_v7 = vsel %vm2647_vm5, %v452_v6, %v456_v13  ;;  %v1333_v36 = vmax.bf16 %v2891_v23, %v2858_v49  ;;  %v469_v38 = vshrl.u32 %v2889_v5, 16  ;;  %v2924_v59 = vld [vmem:[%s2609_s25 + $0x6c] sm:$0xf] }
  0x4e   : > { %v462_v39 = vrot.slane %v461_v12, 4  ;;  %v1045_v40 = vmax.bf16 %v2902_v7, %v2847_v35  ;;  %v1179_v31 = vsel %vm2676_vm6, %v1177_v28, %v1178_v20  ;;  %v472_v24 = vshll.u32 %v2889_v5, 16 }
  0x4f   : > { %v2342_v46 = vcombine.low %v1362_v11, %v1363_v25  ;;  %v471_v50 = vrot.slane %v469_v38, 4  ;;  %v478_v51 = vshll.u32 %v268_v32, 16  ;;  %v482_v26 = vshrl.u32 %v268_v32, 16  ;;  %v272_v11 = vld [vmem:[%s2609_s25 + $0x74] sm:$0x1] }
  0x50   : > { %v2915_v49 = vsel %vm2647_vm5, %v462_v39, %v466_v3  ;;  %v2917_v52 = vmax.bf16 %v1176_v27, %v1045_v40  ;;  %v474_v42 = vrot.slane %v472_v24, 5  ;;  %v488_v54 = vshll.u32 %v269_v37, 16 }
  0x51   : > { %2515 = vmatprep.mubr.msk.bf16.mxu1 %vm733_vm7, %v2342_v46  ;;  %v1046_v35 = vmax.bf16 %v2915_v49, %v2852_v34  ;;  %v480_v55 = vrot.slane %v478_v51, 5  ;;  %v484_v57 = vrot.slane %v482_v26, 4  ;;  %v2328_v33 = vrot.slane %v2889_v5, 9  ;;  %v2932_v34 = vld [vmem:[%s2609_s25 + $0x70] sm:$0xf] }
  0x52   : > { %v1364_v60 = vmax.bf16 %v1332_v17, %v2917_v52  ;;  %v475_v62 = vor.u32 %v474_v42, %v471_v50  ;;  %v490_v63 = vrot.slane %v488_v54, 5  ;;  %v1182_v0 = vrot.slane %v268_v32, 5  ;;  %v273_v26 = vld [vmem:[%s2609_s25 + $0x78] sm:$0xf] }
  0x53   : > { %v2927_v8 = vmax.bf16 %v1179_v31, %v1046_v35  ;;  %v485_v9 = vor.u32 %v484_v57, %v480_v55  ;;  %v1185_v13 = vrot.slane %v269_v37, 5  ;;  %v1334_v14 = vmax.bf16 %v2917_v52, %v2883_v15  ;;  %v2969_v57 = vld [vmem:[%s2609_s25 + $0x7c] sm:$0xf] }
  0x54   : > { %v476_v41 = vrot.slane %v475_v62, 4  ;;  %v1183_v53 = vsel %vm2676_vm6, %v2328_v33, %v1182_v0  ;;  %v1184_v2 = vrot.slane %v1182_v0, 4  ;;  %v493_v16 = vshrl.u32 %v2924_v59, 16  ;;  %v275_v0 = vld [vmem:[%s2609_s25 + $0x80] sm:$0x1] }
  0x55   : > { %v1365_v19 = vmax.bf16 %v1333_v36, %v2927_v8  ;;  %v486_v4 = vrot.slane %v485_v9, 4  ;;  %v1335_v20 = vmax.bf16 %v2927_v8, %v2891_v23  ;;  %v496_v6 = vshll.u32 %v2924_v59, 16 }
  0x56   : > { %v2944_v15 = vsel %vm2647_vm5, %v476_v41, %v480_v55  ;;  %v1186_v3 = vsel %vm2676_vm6, %v1184_v2, %v1185_v13  ;;  %v495_v12 = vrot.slane %v493_v16, 4  ;;  %v502_v27 = vshll.u32 %v2932_v34, 16 }
  0x57   : > { %v2343_v28 = vcombine.low %v1364_v60, %v1365_v19  ;;  %v2951_v17 = vsel %vm2647_vm5, %v486_v4, %v490_v63  ;;  %v1047_v23 = vmax.bf16 %v2944_v15, %v2889_v5  ;;  %v498_v25 = vrot.slane %v496_v6, 5 }
  0x58   : > { %v1048_v36 = vmax.bf16 %v2951_v17, %v268_v32  ;;  %v504_v37 = vrot.slane %v502_v27, 5  ;;  %v506_v38 = vshrl.u32 %v2932_v34, 16  ;;  %v512_v39 = vshll.u32 %v272_v11, 16  ;;  %v2995_v27 = vld [vmem:[%s2609_s25 + $0x84] sm:$0xf] }
  0x59   : > { %2516 = vmatmul.mubr.msk.bf16.gmra.mrb[8].mxu1 %vm733_vm7, %v2343_v28  ;;  %v2958_v40 = vmax.bf16 %v1183_v53, %v1047_v23  ;;  %v499_v31 = vor.u32 %v498_v25, %v495_v12  ;;  %v2329_v24 = vrot.slane %v2924_v59, 9  ;;  %v1189_v46 = vrot.slane %v2932_v34, 5 }
  0x5a   : > { %v2962_v50 = vmax.bf16 %v1186_v3, %v1048_v36  ;;  %v508_v5 = vrot.slane %v506_v38, 4  ;;  %v514_v51 = vrot.slane %v512_v39, 5  ;;  %v1192_v32 = vrot.slane %v272_v11, 5  ;;  %v3000_v36 = vld [vmem:[%s2609_s25 + $0x88] sm:$0xf] }
  0x5b   : > { %v1366_v42 = vmax.bf16 %v1334_v14, %v2958_v40  ;;  %v500_v54 = vrot.slane %v499_v31, 4  ;;  %v1190_v35 = vsel %vm2676_vm6, %v2329_v24, %v1189_v46  ;;  %v1191_v55 = vrot.slane %v1189_v46, 4 }
  0x5c   : > { %v1367_v33 = vmax.bf16 %v1335_v20, %v2962_v50  ;;  %v509_v60 = vor.u32 %v508_v5, %v504_v37  ;;  %v1336_v62 = vmax.bf16 %v2958_v40, %v2917_v52  ;;  %v1337_v63 = vmax.bf16 %v2962_v50, %v2927_v8 }
  0x5d   : > { %v2979_v9 = vsel %vm2647_vm5, %v500_v54, %v504_v37  ;;  %v1193_v13 = vsel %vm2676_vm6, %v1191_v55, %v1192_v32  ;;  %v517_v14 = vshrl.u32 %v273_v26, 16  ;;  %v520_v41 = vshll.u32 %v273_v26, 16 }
  0x5e   : > { %3608 = vst [vmem:[#allocation2_spill] sm:$0xff] %v2979_v9  ;;  %v2344_v53 = vcombine.low %v1366_v42, %v1367_v33  ;;  %v510_v2 = vrot.slane %v509_v60, 4  ;;  %v1049_v16 = vmax.bf16 %v2979_v9, %v2924_v59  ;;  %v526_v52 = vshll.u32 %v2969_v57, 16  ;;  %v278_v60 = vld [vmem:[%s2609_s25 + $0x8c] sm:$0x1] }
  0x5f   : > { %v519_v8 = vrot.slane %v517_v14, 4  ;;  %v522_v19 = vrot.slane %v520_v41, 5  ;;  %v530_v4 = vshrl.u32 %v2969_v57, 16  ;;  %v536_v20 = vshll.u32 %v275_v0, 16 }
  0x60   : > { %2519 = vmatprep.mubr.msk.bf16.mxu1 %vm733_vm7, %v2344_v53  ;;  %v2990_v11 = vsel %vm2647_vm5, %v510_v2, %v514_v51  ;;  %v2992_v6 = vmax.bf16 %v1190_v35, %v1049_v16  ;;  %v528_v3 = vrot.slane %v526_v52, 5  ;;  %v2330_v12 = vrot.slane %v273_v26, 9 }
  0x61   : > { %v1050_v59 = vmax.bf16 %v2990_v11, %v2932_v34  ;;  %v523_v28 = vor.u32 %v522_v19, %v519_v8  ;;  %v532_v23 = vrot.slane %v530_v4, 4  ;;  %v538_v25 = vrot.slane %v536_v20, 5 }
  0x62   : > { %v1368_v37 = vmax.bf16 %v1336_v62, %v2992_v6  ;;  %v1196_v38 = vrot.slane %v2969_v57, 5  ;;  %v1199_v39 = vrot.slane %v275_v0, 5  ;;  %v1338_v31 = vmax.bf16 %v2992_v6, %v2958_v40 }
  0x63   : > { %v3006_v24 = vmax.bf16 %v1193_v13, %v1050_v59  ;;  %v524_v46 = vrot.slane %v523_v28, 4  ;;  %v533_v5 = vor.u32 %v532_v23, %v528_v3  ;;  %v541_v34 = vshrl.u32 %v2995_v27, 16 }
  0x64   : > { %v1197_v51 = vsel %vm2676_vm6, %v2330_v12, %v1196_v38  ;;  %v1198_v32 = vrot.slane %v1196_v38, 4  ;;  %v544_v42 = vshll.u32 %v2995_v27, 16  ;;  %v550_v54 = vshll.u32 %v3000_v36, 16 }
  0x65   : > { %v1369_v35 = vmax.bf16 %v1337_v63, %v3006_v24  ;;  %v3016_v55 = vsel %vm2647_vm5, %v524_v46, %v528_v3  ;;  %v534_v40 = vrot.slane %v533_v5, 4  ;;  %v1339_v33 = vmax.bf16 %v3006_v24, %v2962_v50  ;;  %v3037_v3 = vld [vmem:[%s2609_s25 + $0x90] sm:$0xf] }
  0x66   : > { %v1051_v62 = vmax.bf16 %v3016_v55, %v273_v26  ;;  %v1200_v0 = vsel %vm2676_vm6, %v1198_v32, %v1199_v39  ;;  %v543_v13 = vrot.slane %v541_v34, 4  ;;  %v546_v14 = vrot.slane %v544_v42, 5  ;;  %v280_v39 = vld [vmem:[%s2609_s25 + $0x94] sm:$0xf]  ;;  %v281_v34 = vld [vmem:[%s2609_s25 + $0x98] sm:$0x1] }
  0x67   : > { %v2345_v41 = vcombine.low %v1368_v37, %v1369_v35  ;;  %v3026_v63 = vsel %vm2647_vm5, %v534_v40, %v538_v25  ;;  %v552_v53 = vrot.slane %v550_v54, 5  ;;  %v554_v2 = vshrl.u32 %v3000_v36, 16 }
  0x68   : > { %v1052_v50 = vmax.bf16 %v3026_v63, %v2969_v57  ;;  %v3031_v16 = vmax.bf16 %v1197_v51, %v1051_v62  ;;  %v547_v26 = vor.u32 %v546_v14, %v543_v13  ;;  %v560_v52 = vshll.u32 %v278_v60, 16 }
  0x69   : > { %2520 = vmatmul.mubr.msk.bf16.gmra.mrb[12].mxu1 %vm733_vm7, %v2345_v41  ;;  %v556_v8 = vrot.slane %v554_v2, 4  ;;  %v2331_v19 = vrot.slane %v2995_v27, 9  ;;  %v1203_v4 = vrot.slane %v3000_v36, 5  ;;  %v1206_v20 = vrot.slane %v278_v60, 5  ;;  %v3072_v2 = vld [vmem:[%s2609_s25 + $0x9c] sm:$0xf] }
  0x6a   : > { %v3039_v12 = vmax.bf16 %v1200_v0, %v1052_v50  ;;  %v1370_v57 = vmax.bf16 %v1338_v31, %v3031_v16  ;;  %v548_v59 = vrot.slane %v547_v26, 4  ;;  %v562_v28 = vrot.slane %v560_v52, 5 }
  0x6b   : > { %v557_v23 = vor.u32 %v556_v8, %v552_v53  ;;  %v1204_v25 = vsel %vm2676_vm6, %v2331_v19, %v1203_v4  ;;  %v1205_v37 = vrot.slane %v1203_v4, 4  ;;  %v1340_v38 = vmax.bf16 %v3031_v16, %v2992_v6 }
  0x6c   : > { %v1371_v46 = vmax.bf16 %v1339_v33, %v3039_v12  ;;  %v3050_v5 = vsel %vm2647_vm5, %v548_v59, %v552_v53  ;;  %v1341_v31 = vmax.bf16 %v3039_v12, %v3006_v24  ;;  %v565_v51 = vshrl.u32 %v3037_v3, 16 }
  0x6d   : > { %v558_v32 = vrot.slane %v557_v23, 4  ;;  %v1053_v42 = vmax.bf16 %v3050_v5, %v2995_v27  ;;  %v1207_v6 = vsel %vm2676_vm6, %v1205_v37, %v1206_v20  ;;  %v568_v54 = vshll.u32 %v3037_v3, 16 }
  0x6e   : > { %v2346_v35 = vcombine.low %v1370_v57, %v1371_v46  ;;  %v567_v40 = vrot.slane %v565_v51, 4  ;;  %v574_v33 = vshll.u32 %v280_v39, 16  ;;  %v578_v60 = vshrl.u32 %v280_v39, 16  ;;  %v284_v51 = vld [vmem:[%s2609_s25 + $0xa4] sm:$0x1] }
  0x6f   : > { %v3063_v24 = vsel %vm2647_vm5, %v558_v32, %v562_v28  ;;  %v3065_v62 = vmax.bf16 %v1204_v25, %v1053_v42  ;;  %v570_v0 = vrot.slane %v568_v54, 5  ;;  %v584_v13 = vshll.u32 %v281_v34, 16 }
  0x70   : > { %2523 = vmatprep.mubr.msk.bf16.mxu1 %vm733_vm7, %v2346_v35  ;;  %v1054_v27 = vmax.bf16 %v3063_v24, %v3000_v36  ;;  %v576_v14 = vrot.slane %v574_v33, 5  ;;  %v580_v41 = vrot.slane %v578_v60, 4  ;;  %v2332_v53 = vrot.slane %v3037_v3, 9  ;;  %v3080_v36 = vld [vmem:[%s2609_s25 + $0xa0] sm:$0xf] }
  0x71   : > { %v1372_v50 = vmax.bf16 %v1340_v38, %v3065_v62  ;;  %v571_v26 = vor.u32 %v570_v0, %v567_v40  ;;  %v586_v52 = vrot.slane %v584_v13, 5  ;;  %v1210_v8 = vrot.slane %v280_v39, 5 }
  0x72   : > { %v3075_v19 = vmax.bf16 %v1207_v6, %v1054_v27  ;;  %v581_v4 = vor.u32 %v580_v41, %v576_v14  ;;  %v1213_v20 = vrot.slane %v281_v34, 5  ;;  %v1342_v57 = vmax.bf16 %v3065_v62, %v3031_v16 }
  0x73   : > { %v572_v59 = vrot.slane %v571_v26, 4  ;;  %v1211_v28 = vsel %vm2676_vm6, %v2332_v53, %v1210_v8  ;;  %v1212_v23 = vrot.slane %v1210_v8, 4  ;;  %v589_v25 = vshrl.u32 %v3072_v2, 16  ;;  %v285_v26 = vld [vmem:[%s2609_s25 + $0xa8] sm:$0xf] }
  0x74   : > { %v1373_v37 = vmax.bf16 %v1341_v31, %v3075_v19  ;;  %v582_v38 = vrot.slane %v581_v4, 4  ;;  %v1343_v46 = vmax.bf16 %v3075_v19, %v3039_v12  ;;  %v592_v34 = vshll.u32 %v3072_v2, 16 }
  0x75   : > { %v3092_v16 = vsel %vm2647_vm5, %v572_v59, %v576_v14  ;;  %v1214_v32 = vsel %vm2676_vm6, %v1212_v23, %v1213_v20  ;;  %v591_v42 = vrot.slane %v589_v25, 4  ;;  %v598_v6 = vshll.u32 %v3080_v36, 16  ;;  %v3117_v59 = vld [vmem:[%s2609_s25 + $0xac] sm:$0xf] }
  0x76   : > { %v2347_v54 = vcombine.low %v1372_v50, %v1373_v37  ;;  %v3099_v31 = vsel %vm2647_vm5, %v582_v38, %v586_v52  ;;  %v1055_v12 = vmax.bf16 %v3092_v16, %v3037_v3  ;;  %v594_v35 = vrot.slane %v592_v34, 5  ;;  %v287_v38 = vld [vmem:[%s2609_s25 + $0xb0] sm:$0x1] }
  0x77   : > { %v1056_v40 = vmax.bf16 %v3099_v31, %v280_v39  ;;  %v600_v33 = vrot.slane %v598_v6, 5  ;;  %v602_v60 = vshrl.u32 %v3080_v36, 16  ;;  %v608_v0 = vshll.u32 %v284_v51, 16 }
  0x78   : > { %2524 = vmatmul.mubr.msk.bf16.gmra.mrb[16].mxu1 %vm733_vm7, %v2347_v54  ;;  %v3106_v13 = vmax.bf16 %v1211_v28, %v1055_v12  ;;  %v595_v27 = vor.u32 %v594_v35, %v591_v42  ;;  %v2333_v14 = vrot.slane %v3072_v2, 9  ;;  %v1217_v41 = vrot.slane %v3080_v36, 5 }
  0x79   : > { %v3110_v53 = vmax.bf16 %v1214_v32, %v1056_v40  ;;  %v604_v3 = vrot.slane %v602_v60, 4  ;;  %v610_v50 = vrot.slane %v608_v0, 5  ;;  %v1220_v39 = vrot.slane %v284_v51, 5 }
  0x7a   : > { %v1374_v52 = vmax.bf16 %v1342_v57, %v3106_v13  ;;  %v596_v8 = vrot.slane %v595_v27, 4  ;;  %v1218_v4 = vsel %vm2676_vm6, %v2333_v14, %v1217_v41  ;;  %v1219_v20 = vrot.slane %v1217_v41, 4  ;;  %v3143_v27 = vld [vmem:[%s2609_s25 + $0xb4] sm:$0xf] }
  0x7b   : > { %v1375_v28 = vmax.bf16 %v1343_v46, %v3110_v53  ;;  %v605_v23 = vor.u32 %v604_v3, %v600_v33  ;;  %v1344_v25 = vmax.bf16 %v3106_v13, %v3065_v62  ;;  %v1345_v37 = vmax.bf16 %v3110_v53, %v3075_v19 }
  0x7c   : > { %v3127_v57 = vsel %vm2647_vm5, %v596_v8, %v600_v33  ;;  %v1221_v51 = vsel %vm2676_vm6, %v1219_v20, %v1220_v39  ;;  %v613_v34 = vshrl.u32 %v285_v26, 16  ;;  %v616_v32 = vshll.u32 %v285_v26, 16  ;;  %v3148_v39 = vld [vmem:[%s2609_s25 + $0xb8] sm:$0xf] }
  0x7d   : > { %v2348_v42 = vcombine.low %v1374_v52, %v1375_v28  ;;  %v606_v46 = vrot.slane %v605_v23, 4  ;;  %v1057_v6 = vmax.bf16 %v3127_v57, %v3072_v2  ;;  %v622_v62 = vshll.u32 %v3117_v59, 16 }
  0x7e   : > { %v615_v19 = vrot.slane %v613_v34, 4  ;;  %v618_v54 = vrot.slane %v616_v32, 5  ;;  %v626_v12 = vshrl.u32 %v3117_v59, 16  ;;  %v632_v35 = vshll.u32 %v287_v38, 16 }
  0x7f   : > { %2527 = vmatprep.mubr.msk.bf16.mxu1 %vm733_vm7, %v2348_v42  ;;  %v3138_v40 = vsel %vm2647_vm5, %v606_v46, %v610_v50  ;;  %v3140_v33 = vmax.bf16 %v1218_v4, %v1057_v6  ;;  %v624_v60 = vrot.slane %v622_v62, 5  ;;  %v2334_v0 = vrot.slane %v285_v26, 9  ;;  %v290_v6 = vld [vmem:[%s2609_s25 + $0xbc] sm:$0x1] }
  0x80   : > { %v1058_v2 = vmax.bf16 %v3138_v40, %v3080_v36  ;;  %v619_v14 = vor.u32 %v618_v54, %v615_v19  ;;  %v628_v41 = vrot.slane %v626_v12, 4  ;;  %v634_v3 = vrot.slane %v632_v35, 5 }
  0x81   : > { %v1376_v52 = vmax.bf16 %v1344_v25, %v3140_v33  ;;  %v1224_v50 = vrot.slane %v3117_v59, 5  ;;  %v1227_v8 = vrot.slane %v287_v38, 5  ;;  %v1346_v4 = vmax.bf16 %v3140_v33, %v3106_v13 }
  0x82   : > { %v3154_v20 = vmax.bf16 %v1221_v51, %v1058_v2  ;;  %v620_v28 = vrot.slane %v619_v14, 4  ;;  %v629_v23 = vor.u32 %v628_v41, %v624_v60  ;;  %v637_v36 = vshrl.u32 %v3143_v27, 16 }
  0x83   : > { %v1225_v34 = vsel %vm2676_vm6, %v2334_v0, %v1224_v50  ;;  %v1226_v32 = vrot.slane %v1224_v50, 4  ;;  %v640_v42 = vshll.u32 %v3143_v27, 16  ;;  %v646_v25 = vshll.u32 %v3148_v39, 16 }
  0x84   : > { %v1377_v46 = vmax.bf16 %v1345_v37, %v3154_v20  ;;  %v3164_v38 = vsel %vm2647_vm5, %v620_v28, %v624_v60  ;;  %v630_v13 = vrot.slane %v629_v23, 4  ;;  %v1347_v51 = vmax.bf16 %v3154_v20, %v3110_v53 }
  0x85   : > { %v1059_v62 = vmax.bf16 %v3164_v38, %v285_v26  ;;  %v1228_v19 = vsel %vm2676_vm6, %v1226_v32, %v1227_v8  ;;  %v639_v54 = vrot.slane %v637_v36, 4  ;;  %v642_v12 = vrot.slane %v640_v42, 5  ;;  %v3185_v8 = vld [vmem:[%s2609_s25 + $0xc0] sm:$0xf] }
  0x86   : > { %v2349_v35 = vcombine.low %v1376_v52, %v1377_v46  ;;  %v3174_v37 = vsel %vm2647_vm5, %v630_v13, %v634_v3  ;;  %v648_v60 = vrot.slane %v646_v25, 5  ;;  %v650_v0 = vshrl.u32 %v3148_v39, 16  ;;  %v292_v46 = vld [vmem:[%s2609_s25 + $0xc4] sm:$0xf] }
  0x87   : > { %v1060_v53 = vmax.bf16 %v3174_v37, %v3117_v59  ;;  %v3179_v2 = vmax.bf16 %v1225_v34, %v1059_v62  ;;  %v643_v26 = vor.u32 %v642_v12, %v639_v54  ;;  %v656_v14 = vshll.u32 %v290_v6, 16  ;;  %v293_v62 = vld [vmem:[%s2609_s25 + $0xc8] sm:$0x1] }
  0x88   : > { %2528 = vmatmul.mubr.msk.bf16.gmra.mrb[20].mxu1 %vm733_vm7, %v2349_v35  ;;  %v652_v41 = vrot.slane %v650_v0, 4  ;;  %v2335_v52 = vrot.slane %v3143_v27, 9  ;;  %v1231_v3 = vrot.slane %v3148_v39, 5  ;;  %v1234_v50 = vrot.slane %v290_v6, 5 }
  0x89   : > { %v3187_v28 = vmax.bf16 %v1228_v19, %v1060_v53  ;;  %v1378_v59 = vmax.bf16 %v1346_v4, %v3179_v2  ;;  %v644_v23 = vrot.slane %v643_v26, 4  ;;  %v658_v36 = vrot.slane %v656_v14, 5 }
  0x8a   : > { %v653_v34 = vor.u32 %v652_v41, %v648_v60  ;;  %v1232_v32 = vsel %vm2676_vm6, %v2335_v52, %v1231_v3  ;;  %v1233_v42 = vrot.slane %v1231_v3, 4  ;;  %v1348_v25 = vmax.bf16 %v3179_v2, %v3140_v33 }
  0x8b   : > { %v1379_v13 = vmax.bf16 %v1347_v51, %v3187_v28  ;;  %v3198_v6 = vsel %vm2647_vm5, %v644_v23, %v648_v60  ;;  %v1349_v4 = vmax.bf16 %v3187_v28, %v3154_v20  ;;  %v661_v19 = vshrl.u32 %v3185_v8, 16 }
  0x8c   : > { %3609 = vst [vmem:[#allocation3_spill] sm:$0xff] %v3198_v6  ;;  %v654_v54 = vrot.slane %v653_v34, 4  ;;  %v1061_v12 = vmax.bf16 %v3198_v6, %v3143_v27  ;;  %v1235_v33 = vsel %vm2676_vm6, %v1233_v42, %v1234_v50  ;;  %v664_v51 = vshll.u32 %v3185_v8, 16 }
  0x8d   : > { %v2350_v35 = vcombine.low %v1378_v59, %v1379_v13  ;;  %v663_v0 = vrot.slane %v661_v19, 4  ;;  %v670_v60 = vshll.u32 %v292_v46, 16  ;;  %v674_v53 = vshrl.u32 %v292_v46, 16  ;;  %v294_v59 = vld [vmem:[%s2609_s25 + $0xcc] sm:$0xf] }
  0x8e   : > { %v3211_v20 = vsel %vm2647_vm5, %v654_v54, %v658_v36  ;;  %v3213_v26 = vmax.bf16 %v1232_v32, %v1061_v12  ;;  %v666_v14 = vrot.slane %v664_v51, 5  ;;  %v680_v41 = vshll.u32 %v293_v62, 16  ;;  %v295_v12 = vld [vmem:[%s2609_s25 + $0xd0] sm:$0xf] }
  0x8f   : > { %3610 = vst [vmem:[#allocation4_spill] sm:$0xff] %v3211_v20  ;;  %2531 = vmatprep.mubr.msk.bf16.mxu1 %vm733_vm7, %v2350_v35  ;;  %v1062_v27 = vmax.bf16 %v3211_v20, %v3148_v39  ;;  %v672_v52 = vrot.slane %v670_v60, 5  ;;  %v676_v3 = vrot.slane %v674_v53, 4  ;;  %v2336_v50 = vrot.slane %v3185_v8, 9 }
  0x90   : > { %v1380_v23 = vmax.bf16 %v1348_v25, %v3213_v26  ;;  %v667_v36 = vor.u32 %v666_v14, %v663_v0  ;;  %v682_v34 = vrot.slane %v680_v41, 5  ;;  %v1238_v32 = vrot.slane %v292_v46, 5 }
  0x91   : > { %v3221_v42 = vmax.bf16 %v1235_v33, %v1062_v27  ;;  %v677_v13 = vor.u32 %v676_v3, %v672_v52  ;;  %v1241_v19 = vrot.slane %v293_v62, 5  ;;  %v1350_v54 = vmax.bf16 %v3213_v26, %v3179_v2  ;;  %v296_v33 = vld [vmem:[%s2609_s25 + $0xd4] sm:$0x1] }
  0x92   : > { %v668_v39 = vrot.slane %v667_v36, 4  ;;  %v1239_v51 = vsel %vm2676_vm6, %v2336_v50, %v1238_v32  ;;  %v1240_v35 = vrot.slane %v1238_v32, 4  ;;  %v972_v60 = vshrl.u32 %v294_v59, 16 }
  0x93   : > { %v1381_v25 = vmax.bf16 %v1349_v4, %v3221_v42  ;;  %v678_v53 = vrot.slane %v677_v13, 4  ;;  %v1351_v0 = vmax.bf16 %v3221_v42, %v3187_v28  ;;  %v975_v14 = vshll.u32 %v294_v59, 16 }
  0x94   : > { %v3234_v62 = vsel %vm2647_vm5, %v668_v39, %v672_v52  ;;  %v1242_v2 = vsel %vm2676_vm6, %v1240_v35, %v1241_v19  ;;  %v974_v41 = vrot.slane %v972_v60, 4  ;;  %v981_v27 = vshll.u32 %v295_v12, 16 }
  0x95   : > { %v2351_v3 = vcombine.low %v1380_v23, %v1381_v25  ;;  %v3240_v50 = vsel %vm2647_vm5, %v678_v53, %v682_v34  ;;  %v1063_v4 = vmax.bf16 %v3234_v62, %v3185_v8  ;;  %v977_v28 = vrot.slane %v975_v14, 5 }
  0x96   : > { %v1064_v36 = vmax.bf16 %v3240_v50, %v292_v46  ;;  %v983_v32 = vrot.slane %v981_v27, 5  ;;  %v985_v13 = vshrl.u32 %v295_v12, 16  ;;  %v991_v52 = vshll.u32 %v296_v33, 16 }
  0x97   : > { %2532 = vmatmul.mubr.msk.bf16.gmra.mrb[24].mxu1 %vm733_vm7, %v2351_v3  ;;  %v1318_v39 = vmax.bf16 %v1239_v51, %v1063_v4  ;;  %v978_v19 = vor.u32 %v977_v28, %v974_v41  ;;  %v2337_v35 = vrot.slane %v294_v59, 9  ;;  %v1245_v60 = vrot.slane %v295_v12, 5 }
  0x98   : > { %v1319_v23 = vmax.bf16 %v1242_v2, %v1064_v36  ;;  %v987_v25 = vrot.slane %v985_v13, 4  ;;  %v993_v53 = vrot.slane %v991_v52, 5  ;;  %v1248_v14 = vrot.slane %v296_v33, 5 }
  0x99   : > { %v1382_v6 = vmax.bf16 %v1350_v54, %v1318_v39  ;;  %v979_v34 = vrot.slane %v978_v19, 4  ;;  %v1247_v8 = vrot.slane %v1245_v60, 4  ;;  %v1246_v27 = vsel %vm2676_vm6, %v2337_v35, %v1245_v60 }
  0x9a   : > { %v1383_v20 = vmax.bf16 %v1351_v0, %v1319_v23  ;;  %v988_v9 = vor.u32 %v987_v25, %v983_v32  ;;  %v784_v51 = vsel %vm782_vm0, %v2771_v22, 0  ;;  %v2288_v2 = vcombine.low %v2657_v44, %v2661_v45 }
  0x9b   : > { %v984_v46 = vsel %vm2647_vm5, %v979_v34, %v983_v32  ;;  %2472 = vmatpush3.bf16.msra.mxu0 %v784_v51  ;;  %v2289_v0 = vcombine.low %v2666_v48, %v2684_v61  ;;  %v1352_v33 = vmax.bf16 %v1318_v39, %v3213_v26  ;;  %v2290_v4 = vcombine.low %v2748_v1, %v2760_v21 }
  0x9c   : > { %v2352_v41 = vcombine.low %v1382_v6, %v1383_v20  ;;  %v989_v54 = vrot.slane %v988_v9, 4  ;;  %v1065_v3 = vmax.bf16 %v984_v46, %v294_v59  ;;  %2473 = vmatprep.mubr.msk.bf16.mxu0 %vm733_vm7, %v2288_v2  ;;  %v1249_v44 = vsel %vm2676_vm6, %v1247_v8, %v1248_v14 }
  0x9d   : > { %v1353_v6 = vmax.bf16 %v1319_v23, %v3221_v42  ;;  %v2297_v48 = vcombine.low %v3016_v55, %v3026_v63  ;;  %v2298_v61 = vcombine.low %v3050_v5, %v3063_v24  ;;  %v2299_v30 = vcombine.low %v3092_v16, %v3099_v31 }
  0x9e   : > { %2535 = vmatprep.mubr.msk.bf16.mxu1 %vm733_vm7, %v2352_v41  ;;  %v994_v22 = vsel %vm2647_vm5, %v989_v54, %v993_v53  ;;  %v1320_v45 = vmax.bf16 %v1246_v27, %v1065_v3  ;;  %2474 = vmatmul.mubr.msk.bf16.vlgmr.msra.gmra.mrb[0].mxu0 %vm733_vm7, %v2289_v0  ;;  %v2300_v56 = vcombine.low %v3127_v57, %v3138_v40 }
  0x9f   : > { %v1066_v9 = vmax.bf16 %v994_v22, %v295_v12  ;;  %2477 = vmatprep.mubr.msk.bf16.mxu0 %vm733_vm7, %v2290_v4  ;;  %v2301_v1 = vcombine.low %v3164_v38, %v3174_v37  ;;  %v2291_v55 = vcombine.low %v2796_v43, %v2802_v47  ;;  %v2292_v63 = vcombine.low %v2831_v18, %v2842_v29  ;;  %v3611_v47 = vld [vmem:[#allocation2_spill] sm:$0xff]  ;;  %v3612_v29 = vld [vmem:[#allocation4_spill] sm:$0xff] }
  0xa0   : > { %v1384_v20 = vmax.bf16 %v1352_v33, %v1320_v45  ;;  %v2293_v24 = vcombine.low %v2868_v58, %v2878_v10  ;;  %v2294_v16 = vcombine.low %v2902_v7, %v2915_v49  ;;  %v2295_v43 = vcombine.low %v2944_v15, %v2951_v17  ;;  %v3613_v58 = vld [vmem:[#allocation3_spill] sm:$0xff] }
  0xa1   : > { %v1321_v21 = vmax.bf16 %v1249_v44, %v1066_v9  ;;  %v2296_v18 = vcombine.low %v3611_v47, %v2990_v11  ;;  %v2302_v10 = vcombine.low %v3613_v58, %v3612_v29  ;;  %v2303_v7 = vcombine.low %v3234_v62, %v3240_v50 }
  0xa3   : > { %v1385_v26 = vmax.bf16 %v1353_v6, %v1321_v21 }
  0xa5   : > { %v2353_v5 = vcombine.low %v1384_v20, %v1385_v26 }
  0xa6   : > { %2478 = vmatmul.mubr.msk.bf16.gmra.mrb[4].mxu0 %vm733_vm7, %v2291_v55 }
  0xa7   : > { %2536 = vmatmul.mubr.msk.bf16.gmra.mrb[28].mxu1 %vm733_vm7, %v2353_v5  ;;  %2481 = vmatprep.mubr.msk.bf16.mxu0 %vm733_vm7, %v2292_v63 }
  0xae   : > { %2482 = vmatmul.mubr.msk.bf16.gmra.mrb[8].mxu0 %vm733_vm7, %v2293_v24 }
  0xaf   : > { %2485 = vmatprep.mubr.msk.bf16.mxu0 %vm733_vm7, %v2294_v16 }
  0xb6   : > { %2486 = vmatmul.mubr.msk.bf16.gmra.mrb[12].mxu0 %vm733_vm7, %v2295_v43 }
  0xb7   : > { %2489 = vmatprep.mubr.msk.bf16.mxu0 %vm733_vm7, %v2296_v18 }
  0xbe   : > { %2490 = vmatmul.mubr.msk.bf16.gmra.mrb[16].mxu0 %vm733_vm7, %v2297_v48 }
  0xbf   : > { %2493 = vmatprep.mubr.msk.bf16.mxu0 %vm733_vm7, %v2298_v61 }
  0xc6   : > { %2494 = vmatmul.mubr.msk.bf16.gmra.mrb[20].mxu0 %vm733_vm7, %v2299_v30 }
  0xc7   : > { %2497 = vmatprep.mubr.msk.bf16.mxu0 %vm733_vm7, %v2300_v56 }
  0xce   : > { %2498 = vmatmul.mubr.msk.bf16.gmra.mrb[24].mxu0 %vm733_vm7, %v2301_v1 }
  0xcf   : > { %2501 = vmatprep.mubr.msk.bf16.mxu0 %vm733_vm7, %v2302_v10 }
  0xd6   : > { %2502 = vmatmul.mubr.msk.bf16.gmra.mrb[28].mxu0 %vm733_vm7, %v2303_v7 }
 0x10e   : > { %v2509_v49 = vpop.f32.mrb[0].mxu1 }
 0x10f   : > { %1715 = vrot.lane.b32.xlu1 %v2509_v49, %s2559_s28  ;;  %v1552_v15 = vpop.f32.mrb[1].mxu1 }
 0x110   : > { %1711 = vrot.lane.b32.xlu0 %v1552_v15, %s2559_s28  ;;  %v2510_v17 = vpop.f32.mrb[2].mxu1 }
 0x111   : > { %v1555_v11 = vpop.f32.mrb[3].mxu1 }
 0x113   : > { %1717 = vrot.lane.b32.xlu1 %v2510_v17, %s2559_s28 }
 0x114   : > { %1713 = vrot.lane.b32.xlu0 %v1555_v11, %s2559_s28 }
 0x11d   : > { %v2513_v31 = vpop.f32.mrb[4].mxu1 }
 0x11e   : > { %v1568_v57 = vpop.f32.mrb[5].mxu1 }
 0x11f   : > { %1719 = vrot.lane.b32.xlu0 %v1568_v57, %s2559_s28  ;;  %v2514_v40 = vpop.f32.mrb[6].mxu1 }
 0x120   : > { %v1571_v38 = vpop.f32.mrb[7].mxu1 }
 0x121   : > { %1721 = vrot.lane.b32.xlu1 %v1571_v38, %s2559_s28 }
 0x123   : > { %1723 = vrot.lane.b32.xlu0 %v2513_v31, %s2559_s28 }
 0x125   : > { %1725 = vrot.lane.b32.xlu1 %v2514_v40, %s2559_s28 }
 0x12c   : > { %v2517_v37 = vpop.f32.mrb[8].mxu1 }
 0x12d   : > { %v1584_v59 = vpop.f32.mrb[9].mxu1 }
 0x12e   : > { %1727 = vrot.lane.b32.xlu0 %v1584_v59, %s2559_s28  ;;  %v2518_v42 = vpop.f32.mrb[10].mxu1 }
 0x12f   : > { %v1587_v12 = vpop.f32.mrb[11].mxu1 }
 0x130   : > { %1729 = vrot.lane.b32.xlu1 %v1587_v12, %s2559_s28 }
 0x132   : > { %1731 = vrot.lane.b32.xlu0 %v2517_v37, %s2559_s28 }
 0x134   : > { %1733 = vrot.lane.b32.xlu1 %v2518_v42, %s2559_s28 }
 0x13c   : > { %v2521_v62 = vpop.f32.mrb[12].mxu1 }
 0x13d   : > { %v1600_v50 = vpop.f32.mrb[13].mxu1 }
 0x13e   : > { %1735 = vrot.lane.b32.xlu0 %v1600_v50, %s2559_s28  ;;  %v2522_v28 = vpop.f32.mrb[14].mxu1 }
 0x13f   : > { %v1603_v36 = vpop.f32.mrb[15].mxu1 }
 0x140   : > { %1737 = vrot.lane.b32.xlu1 %v1603_v36, %s2559_s28 }
 0x142   : > { %1739 = vrot.lane.b32.xlu0 %v2521_v62, %s2559_s28 }
 0x144   : > { %1741 = vrot.lane.b32.xlu1 %v2522_v28, %s2559_s28 }
 0x14b   : > { %v2525_v32 = vpop.f32.mrb[16].mxu1 }
 0x14c   : > { %v1616_v13 = vpop.f32.mrb[17].mxu1 }
 0x14d   : > { %1743 = vrot.lane.b32.xlu0 %v1616_v13, %s2559_s28  ;;  %v2526_v52 = vpop.f32.mrb[18].mxu1 }
 0x14e   : > { %v1619_v39 = vpop.f32.mrb[19].mxu1 }
 0x14f   : > { %1745 = vrot.lane.b32.xlu1 %v1619_v39, %s2559_s28 }
 0x151   : > { %1747 = vrot.lane.b32.xlu0 %v2525_v32, %s2559_s28 }
 0x153   : > { %1749 = vrot.lane.b32.xlu1 %v2526_v52, %s2559_s28 }
 0x15b   : > { %v2529_v19 = vpop.f32.mrb[20].mxu1 }
 0x15c   : > { %v1632_v35 = vpop.f32.mrb[21].mxu1 }
 0x15d   : > { %1751 = vrot.lane.b32.xlu0 %v1632_v35, %s2559_s28  ;;  %v2530_v60 = vpop.f32.mrb[22].mxu1 }
 0x15e   : > { %v1635_v23 = vpop.f32.mrb[23].mxu1 }
 0x15f   : > { %1753 = vrot.lane.b32.xlu1 %v1635_v23, %s2559_s28 }
 0x161   : > { %1755 = vrot.lane.b32.xlu0 %v2529_v19, %s2559_s28 }
 0x163   : > { %1757 = vrot.lane.b32.xlu1 %v2530_v60, %s2559_s28 }
 0x16a   : > { %v2533_v25 = vpop.f32.mrb[24].mxu1 }
 0x16b   : > { %v1648_v34 = vpop.f32.mrb[25].mxu1 }
 0x16c   : > { %1759 = vrot.lane.b32.xlu0 %v1648_v34, %s2559_s28  ;;  %v2534_v53 = vpop.f32.mrb[26].mxu1 }
 0x16d   : > { %v1651_v8 = vpop.f32.mrb[27].mxu1 }
 0x16e   : > { %1761 = vrot.lane.b32.xlu1 %v1651_v8, %s2559_s28 }
 0x170   : > { %1763 = vrot.lane.b32.xlu0 %v2533_v25, %s2559_s28 }
 0x171   : > { %v2475_v14 = vpop.f32.mrb[0].mxu0 }
 0x172   : > { %1765 = vrot.lane.b32.xlu1 %v2534_v53, %s2559_s28  ;;  %v820_v46 = vpop.f32.mrb[1].mxu0 }
 0x173   : > { %v2476_v27 = vpop.f32.mrb[2].mxu0 }
 0x174   : > { %v823_v51 = vpop.f32.mrb[3].mxu0 }
 0x179   : > { %v3336_v41 = vpop.f32.mrb[4].mxu0 }
 0x17a   : > { %v2537_v2 = vpop.f32.mrb[28].mxu1  ;;  %v836_v3 = vpop.f32.mrb[5].mxu0 }
 0x17b   : > { %v1664_v54 = vpop.f32.mrb[29].mxu1  ;;  %v3339_v33 = vpop.f32.mrb[6].mxu0 }
 0x17c   : > { %1767 = vrot.lane.b32.xlu0 %v1664_v54, %s2559_s28  ;;  %v2538_v0 = vpop.f32.mrb[30].mxu1  ;;  %v839_v22 = vpop.f32.mrb[7].mxu0 }
 0x17d   : > { %v1667_v4 = vpop.f32.mrb[31].mxu1 }
 0x17e   : > { %1769 = vrot.lane.b32.xlu1 %v1667_v4, %s2559_s28 }
 0x180   : > { %1771 = vrot.lane.b32.xlu0 %v2537_v2, %s2559_s28 }
 0x181   : > { %v1716_v44 = vpop.permute.xlu1 %1715  ;;  %v3351_v6 = vpop.f32.mrb[8].mxu0 }
 0x182   : > { %1773 = vrot.lane.b32.xlu1 %v2538_v0, %s2559_s28  ;;  %v1810_v45 = vsel %vm1807_vm8, %v2475_v14, %v1716_v44  ;;  %v1712_v9 = vpop.permute.xlu0 %1711  ;;  %v3354_v30 = vpop.f32.mrb[9].mxu0 }
 0x183   : > { %v2407_v48 = vpack.c.bf16 %v1810_v45, %v1810_v45  ;;  %v1808_v61 = vsel %vm1807_vm8, %v820_v46, %v1712_v9  ;;  %v3356_v1 = vpop.f32.mrb[10].mxu0  ;;  %v2075_v5 = vmul.f32 %v1810_v45, %v1810_v45  ;;  %v2005_v10 = vsel %vm2001_vm10, %v1810_v45, 0.0 }
 0x184   : > { %v2405_v56 = vpack.c.bf16 %v1808_v61, %v1808_v61  ;;  %v3360_v20 = vpop.f32.mrb[11].mxu0  ;;  %v2073_v26 = vmul.f32 %v1808_v61, %v1808_v61  ;;  %v2002_v43 = vsel %vm2001_vm10, %v1808_v61, 0.0 }
 0x185   : > { %1971 = vst.msk [vmem:[%s3348_s7 + $0x8] sm:$0xf] %vm1968_vm9, %v2407_v48  ;;  %v1718_v21 = vpop.permute.xlu1 %1717  ;;  %v2108_v40 = vsel %vm2001_vm10, %v2075_v5, 0.0 }
 0x186   : > { %1969 = vst.msk [vmem:[%s3348_s7] sm:$0xf] %vm1968_vm9, %v2405_v56  ;;  %v1811_v55 = vsel %vm1807_vm8, %v2476_v27, %v1718_v21  ;;  %v1714_v63 = vpop.permute.xlu0 %1713  ;;  %v2105_v7 = vsel %vm2001_vm10, %v2073_v26, 0.0 }
 0x187   : > { %v2408_v24 = vpack.c.bf16 %v1811_v55, %v1811_v55  ;;  %v1809_v16 = vsel %vm1807_vm8, %v823_v51, %v1714_v63  ;;  %v2076_v49 = vmul.f32 %v1811_v55, %v1811_v55  ;;  %v2007_v38 = vsel %vm2001_vm10, %v1811_v55, 0.0 }
 0x188   : > { %v2406_v47 = vpack.c.bf16 %v1809_v16, %v1809_v16  ;;  %v2003_v18 = vsel %vm2001_vm10, %v1809_v16, 0.0  ;;  %v2074_v29 = vmul.f32 %v1809_v16, %v1809_v16 }
 0x189   : > { %1972 = vst.msk [vmem:[%s3348_s7 + $0xc] sm:$0xf] %vm1968_vm9, %v2408_v24  ;;  %v2004_v58 = vadd.f32 %v2003_v18, %v2002_v43  ;;  %v3375_v17 = vpop.f32.mrb[12].mxu0  ;;  %v2110_v62 = vsel %vm2001_vm10, %v2076_v49, 0.0 }
 0x18a   : > { %1970 = vst.msk [vmem:[%s3348_s7 + $0x4] sm:$0xf] %vm1968_vm9, %v2406_v47  ;;  %v2106_v15 = vsel %vm2001_vm10, %v2074_v29, 0.0  ;;  %v3377_v57 = vpop.f32.mrb[13].mxu0 }
 0x18b   : > { %v2006_v11 = vadd.f32 %v2005_v10, %v2004_v58  ;;  %v2107_v31 = vadd.f32 %v2106_v15, %v2105_v7  ;;  %v3381_v37 = vpop.f32.mrb[14].mxu0 }
 0x18c   : > { %v3383_v12 = vpop.f32.mrb[15].mxu0 }
 0x18d   : > { %v2109_v59 = vadd.f32 %v2108_v40, %v2107_v31  ;;  %v2008_v42 = vadd.f32 %v2007_v38, %v2006_v11 }
 0x18f   : > { %v2111_v50 = vadd.f32 %v2110_v62, %v2109_v59 }
 0x191   : > { %v1720_v28 = vpop.permute.xlu0 %1719  ;;  %v3387_v32 = vpop.f32.mrb[16].mxu0 }
 0x192   : > { %v1812_v36 = vsel %vm1807_vm8, %v836_v3, %v1720_v28  ;;  %v3390_v35 = vpop.f32.mrb[17].mxu0 }
 0x193   : > { %v2409_v13 = vpack.c.bf16 %v1812_v36, %v1812_v36  ;;  %v2009_v52 = vsel %vm2001_vm10, %v1812_v36, 0.0  ;;  %v2077_v39 = vmul.f32 %v1812_v36, %v1812_v36  ;;  %v1722_v19 = vpop.permute.xlu1 %1721  ;;  %v3393_v25 = vpop.f32.mrb[18].mxu0 }
 0x194   : > { %v2010_v60 = vadd.f32 %v2009_v52, %v2008_v42  ;;  %v1813_v23 = vsel %vm1807_vm8, %v839_v22, %v1722_v19  ;;  %v3399_v27 = vpop.f32.mrb[19].mxu0 }
 0x195   : > { %1973 = vst.msk [vmem:[%s3348_s7 + $0x10] sm:$0xf] %vm1968_vm9, %v2409_v13  ;;  %v2112_v34 = vsel %vm2001_vm10, %v2077_v39, 0.0  ;;  %v2410_v53 = vpack.c.bf16 %v1813_v23, %v1813_v23  ;;  %v2011_v8 = vsel %vm2001_vm10, %v1813_v23, 0.0  ;;  %v2078_v14 = vmul.f32 %v1813_v23, %v1813_v23  ;;  %v1724_v46 = vpop.permute.xlu0 %1723 }
 0x196   : > { %v2113_v51 = vadd.f32 %v2112_v34, %v2111_v50  ;;  %v2012_v2 = vadd.f32 %v2011_v8, %v2010_v60  ;;  %v1814_v54 = vsel %vm1807_vm8, %v3336_v41, %v1724_v46 }
 0x197   : > { %1974 = vst.msk [vmem:[%s3348_s7 + $0x14] sm:$0xf] %vm1968_vm9, %v2410_v53  ;;  %v2114_v3 = vsel %vm2001_vm10, %v2078_v14, 0.0  ;;  %v2411_v0 = vpack.c.bf16 %v1814_v54, %v1814_v54  ;;  %v2013_v4 = vsel %vm2001_vm10, %v1814_v54, 0.0  ;;  %v2079_v22 = vmul.f32 %v1814_v54, %v1814_v54  ;;  %v1726_v44 = vpop.permute.xlu1 %1725 }
 0x198   : > { %v2115_v45 = vadd.f32 %v2114_v3, %v2113_v51  ;;  %v2014_v9 = vadd.f32 %v2013_v4, %v2012_v2  ;;  %v1815_v48 = vsel %vm1807_vm8, %v3339_v33, %v1726_v44 }
 0x199   : > { %1975 = vst.msk [vmem:[%s3348_s7 + $0x18] sm:$0xf] %vm1968_vm9, %v2411_v0  ;;  %v2116_v61 = vsel %vm2001_vm10, %v2079_v22, 0.0  ;;  %v2412_v41 = vpack.c.bf16 %v1815_v48, %v1815_v48  ;;  %v2015_v56 = vsel %vm2001_vm10, %v1815_v48, 0.0  ;;  %v2080_v21 = vmul.f32 %v1815_v48, %v1815_v48  ;;  %v3413_v63 = vpop.f32.mrb[20].mxu0 }
 0x19a   : > { %v2117_v26 = vadd.f32 %v2116_v61, %v2115_v45  ;;  %v2016_v55 = vadd.f32 %v2015_v56, %v2014_v9  ;;  %v3418_v24 = vpop.f32.mrb[21].mxu0 }
 0x19b   : > { %1976 = vst.msk [vmem:[%s3348_s7 + $0x1c] sm:$0xf] %vm1968_vm9, %v2412_v41  ;;  %v2118_v5 = vsel %vm2001_vm10, %v2080_v21, 0.0  ;;  %v3420_v16 = vpop.f32.mrb[22].mxu0 }
 0x19c   : > { %v2119_v33 = vadd.f32 %v2118_v5, %v2117_v26  ;;  %v3422_v43 = vpop.f32.mrb[23].mxu0 }
 0x1a0   : > { %v1728_v47 = vpop.permute.xlu0 %1727 }
 0x1a1   : > { %v1816_v18 = vsel %vm1807_vm8, %v3354_v30, %v1728_v47  ;;  %v3427_v49 = vpop.f32.mrb[24].mxu0 }
 0x1a2   : > { %v2413_v29 = vpack.c.bf16 %v1816_v18, %v1816_v18  ;;  %v2017_v58 = vsel %vm2001_vm10, %v1816_v18, 0.0  ;;  %v2081_v10 = vmul.f32 %v1816_v18, %v1816_v18  ;;  %v1730_v7 = vpop.permute.xlu1 %1729  ;;  %v3431_v31 = vpop.f32.mrb[25].mxu0 }
 0x1a3   : > { %v2018_v15 = vadd.f32 %v2017_v58, %v2016_v55  ;;  %v1817_v11 = vsel %vm1807_vm8, %v3360_v20, %v1730_v7  ;;  %v3437_v62 = vpop.f32.mrb[26].mxu0 }
 0x1a4   : > { %1977 = vst.msk [vmem:[%s3348_s7 + $0x20] sm:$0xf] %vm1968_vm9, %v2413_v29  ;;  %v2120_v40 = vsel %vm2001_vm10, %v2081_v10, 0.0  ;;  %v2414_v38 = vpack.c.bf16 %v1817_v11, %v1817_v11  ;;  %v2019_v30 = vsel %vm2001_vm10, %v1817_v11, 0.0  ;;  %v2082_v59 = vmul.f32 %v1817_v11, %v1817_v11  ;;  %v1732_v42 = vpop.permute.xlu0 %1731  ;;  %v3441_v20 = vpop.f32.mrb[27].mxu0 }
 0x1a5   : > { %v2121_v50 = vadd.f32 %v2120_v40, %v2119_v33  ;;  %v2020_v28 = vadd.f32 %v2019_v30, %v2018_v15  ;;  %v1818_v36 = vsel %vm1807_vm8, %v3351_v6, %v1732_v42 }
 0x1a6   : > { %1978 = vst.msk [vmem:[%s3348_s7 + $0x24] sm:$0xf] %vm1968_vm9, %v2414_v38  ;;  %v2122_v13 = vsel %vm2001_vm10, %v2082_v59, 0.0  ;;  %v2415_v52 = vpack.c.bf16 %v1818_v36, %v1818_v36  ;;  %v2021_v39 = vsel %vm2001_vm10, %v1818_v36, 0.0  ;;  %v2083_v19 = vmul.f32 %v1818_v36, %v1818_v36  ;;  %v1734_v60 = vpop.permute.xlu1 %1733 }
 0x1a7   : > { %v2123_v23 = vadd.f32 %v2122_v13, %v2121_v50  ;;  %v2022_v34 = vadd.f32 %v2021_v39, %v2020_v28  ;;  %v1819_v53 = vsel %vm1807_vm8, %v3356_v1, %v1734_v60 }
 0x1a8   : > { %1979 = vst.msk [vmem:[%s3348_s7 + $0x28] sm:$0xf] %vm1968_vm9, %v2415_v52  ;;  %v2124_v6 = vsel %vm2001_vm10, %v2083_v19, 0.0  ;;  %v2416_v8 = vpack.c.bf16 %v1819_v53, %v1819_v53  ;;  %v2023_v14 = vsel %vm2001_vm10, %v1819_v53, 0.0  ;;  %v2084_v46 = vmul.f32 %v1819_v53, %v1819_v53 }
 0x1a9   : > { %v2125_v51 = vadd.f32 %v2124_v6, %v2123_v23  ;;  %v2024_v2 = vadd.f32 %v2023_v14, %v2022_v34  ;;  %v3456_v3 = vpop.f32.mrb[28].mxu0 }
 0x1aa   : > { %1980 = vst.msk [vmem:[%s3348_s7 + $0x2c] sm:$0xf] %vm1968_vm9, %v2416_v8  ;;  %v2126_v54 = vsel %vm2001_vm10, %v2084_v46, 0.0  ;;  %v3458_v4 = vpop.f32.mrb[29].mxu0 }
 0x1ab   : > { %v2127_v0 = vadd.f32 %v2126_v54, %v2125_v51  ;;  %v3460_v1 = vpop.f32.mrb[30].mxu0 }
 0x1ac   : > { %v3462_v22 = vpop.f32.mrb[31].mxu0 }
 0x1b0   : > { %v1736_v44 = vpop.permute.xlu0 %1735 }
 0x1b1   : > { %v1820_v45 = vsel %vm1807_vm8, %v3377_v57, %v1736_v44 }
 0x1b2   : > { %v2417_v9 = vpack.c.bf16 %v1820_v45, %v1820_v45  ;;  %v2025_v48 = vsel %vm2001_vm10, %v1820_v45, 0.0  ;;  %v2085_v61 = vmul.f32 %v1820_v45, %v1820_v45  ;;  %v1738_v41 = vpop.permute.xlu1 %1737 }
 0x1b3   : > { %v2026_v56 = vadd.f32 %v2025_v48, %v2024_v2  ;;  %v1821_v21 = vsel %vm1807_vm8, %v3383_v12, %v1738_v41 }
 0x1b4   : > { %1981 = vst.msk [vmem:[%s3348_s7 + $0x30] sm:$0xf] %vm1968_vm9, %v2417_v9  ;;  %v2128_v26 = vsel %vm2001_vm10, %v2085_v61, 0.0  ;;  %v2418_v55 = vpack.c.bf16 %v1821_v21, %v1821_v21  ;;  %v2027_v5 = vsel %vm2001_vm10, %v1821_v21, 0.0  ;;  %v2086_v33 = vmul.f32 %v1821_v21, %v1821_v21  ;;  %v1740_v57 = vpop.permute.xlu0 %1739 }
 0x1b5   : > { %v2129_v47 = vadd.f32 %v2128_v26, %v2127_v0  ;;  %v2028_v18 = vadd.f32 %v2027_v5, %v2026_v56  ;;  %v1822_v29 = vsel %vm1807_vm8, %v3375_v17, %v1740_v57 }
 0x1b6   : > { %1982 = vst.msk [vmem:[%s3348_s7 + $0x34] sm:$0xf] %vm1968_vm9, %v2418_v55  ;;  %v2130_v12 = vsel %vm2001_vm10, %v2086_v33, 0.0  ;;  %v2419_v58 = vpack.c.bf16 %v1822_v29, %v1822_v29  ;;  %v2029_v10 = vsel %vm2001_vm10, %v1822_v29, 0.0  ;;  %v2087_v7 = vmul.f32 %v1822_v29, %v1822_v29  ;;  %v1742_v15 = vpop.permute.xlu1 %1741 }
 0x1b7   : > { %v2131_v11 = vadd.f32 %v2130_v12, %v2129_v47  ;;  %v2030_v40 = vadd.f32 %v2029_v10, %v2028_v18  ;;  %v1823_v38 = vsel %vm1807_vm8, %v3381_v37, %v1742_v15 }
 0x1b8   : > { %1983 = vst.msk [vmem:[%s3348_s7 + $0x38] sm:$0xf] %vm1968_vm9, %v2419_v58  ;;  %v2132_v30 = vsel %vm2001_vm10, %v2087_v7, 0.0  ;;  %v2420_v17 = vpack.c.bf16 %v1823_v38, %v1823_v38  ;;  %v2031_v59 = vsel %vm2001_vm10, %v1823_v38, 0.0  ;;  %v2088_v42 = vmul.f32 %v1823_v38, %v1823_v38 }
 0x1b9   : > { %v2133_v50 = vadd.f32 %v2132_v30, %v2131_v11  ;;  %v2032_v28 = vadd.f32 %v2031_v59, %v2030_v40 }
 0x1ba   : > { %1984 = vst.msk [vmem:[%s3348_s7 + $0x3c] sm:$0xf] %vm1968_vm9, %v2420_v17  ;;  %v2134_v36 = vsel %vm2001_vm10, %v2088_v42, 0.0 }
 0x1bb   : > { %v2135_v13 = vadd.f32 %v2134_v36, %v2133_v50 }
 0x1bf   : > { %v1744_v52 = vpop.permute.xlu0 %1743 }
 0x1c0   : > { %v1824_v37 = vsel %vm1807_vm8, %v3390_v35, %v1744_v52 }
 0x1c1   : > { %v2421_v39 = vpack.c.bf16 %v1824_v37, %v1824_v37  ;;  %v2033_v19 = vsel %vm2001_vm10, %v1824_v37, 0.0  ;;  %v2089_v60 = vmul.f32 %v1824_v37, %v1824_v37  ;;  %v1746_v23 = vpop.permute.xlu1 %1745 }
 0x1c2   : > { %v2034_v34 = vadd.f32 %v2033_v19, %v2032_v28  ;;  %v1825_v53 = vsel %vm1807_vm8, %v3399_v27, %v1746_v23 }
 0x1c3   : > { %1985 = vst.msk [vmem:[%s3348_s7 + $0x40] sm:$0xf] %vm1968_vm9, %v2421_v39  ;;  %v2136_v6 = vsel %vm2001_vm10, %v2089_v60, 0.0  ;;  %v2422_v8 = vpack.c.bf16 %v1825_v53, %v1825_v53  ;;  %v2035_v14 = vsel %vm2001_vm10, %v1825_v53, 0.0  ;;  %v2090_v46 = vmul.f32 %v1825_v53, %v1825_v53  ;;  %v1748_v35 = vpop.permute.xlu0 %1747 }
 0x1c4   : > { %v2137_v51 = vadd.f32 %v2136_v6, %v2135_v13  ;;  %v2036_v2 = vadd.f32 %v2035_v14, %v2034_v34  ;;  %v1826_v54 = vsel %vm1807_vm8, %v3387_v32, %v1748_v35 }
 0x1c5   : > { %1986 = vst.msk [vmem:[%s3348_s7 + $0x44] sm:$0xf] %vm1968_vm9, %v2422_v8  ;;  %v2138_v27 = vsel %vm2001_vm10, %v2090_v46, 0.0  ;;  %v2423_v0 = vpack.c.bf16 %v1826_v54, %v1826_v54  ;;  %v2037_v44 = vsel %vm2001_vm10, %v1826_v54, 0.0  ;;  %v2091_v45 = vmul.f32 %v1826_v54, %v1826_v54  ;;  %v1750_v9 = vpop.permute.xlu1 %1749 }
 0x1c6   : > { %v2139_v48 = vadd.f32 %v2138_v27, %v2137_v51  ;;  %v2038_v61 = vadd.f32 %v2037_v44, %v2036_v2  ;;  %v1827_v41 = vsel %vm1807_vm8, %v3393_v25, %v1750_v9 }
 0x1c7   : > { %1987 = vst.msk [vmem:[%s3348_s7 + $0x48] sm:$0xf] %vm1968_vm9, %v2423_v0  ;;  %v2140_v56 = vsel %vm2001_vm10, %v2091_v45, 0.0  ;;  %v2424_v32 = vpack.c.bf16 %v1827_v41, %v1827_v41  ;;  %v2039_v21 = vsel %vm2001_vm10, %v1827_v41, 0.0  ;;  %v2092_v26 = vmul.f32 %v1827_v41, %v1827_v41 }
 0x1c8   : > { %v2141_v55 = vadd.f32 %v2140_v56, %v2139_v48  ;;  %v2040_v5 = vadd.f32 %v2039_v21, %v2038_v61 }
 0x1c9   : > { %1988 = vst.msk [vmem:[%s3348_s7 + $0x4c] sm:$0xf] %vm1968_vm9, %v2424_v32  ;;  %v2142_v33 = vsel %vm2001_vm10, %v2092_v26, 0.0 }
 0x1ca   : > { %v2143_v57 = vadd.f32 %v2142_v33, %v2141_v55 }
 0x1cf   : > { %v1752_v47 = vpop.permute.xlu0 %1751 }
 0x1d0   : > { %v1828_v25 = vsel %vm1807_vm8, %v3418_v24, %v1752_v47 }
 0x1d1   : > { %v2425_v18 = vpack.c.bf16 %v1828_v25, %v1828_v25  ;;  %v2041_v29 = vsel %vm2001_vm10, %v1828_v25, 0.0  ;;  %v2093_v12 = vmul.f32 %v1828_v25, %v1828_v25  ;;  %v1754_v58 = vpop.permute.xlu1 %1753 }
 0x1d2   : > { %v2042_v10 = vadd.f32 %v2041_v29, %v2040_v5  ;;  %v1829_v7 = vsel %vm1807_vm8, %v3422_v43, %v1754_v58 }
 0x1d3   : > { %1989 = vst.msk [vmem:[%s3348_s7 + $0x50] sm:$0xf] %vm1968_vm9, %v2425_v18  ;;  %v2144_v15 = vsel %vm2001_vm10, %v2093_v12, 0.0  ;;  %v2426_v11 = vpack.c.bf16 %v1829_v7, %v1829_v7  ;;  %v2043_v40 = vsel %vm2001_vm10, %v1829_v7, 0.0  ;;  %v2094_v38 = vmul.f32 %v1829_v7, %v1829_v7  ;;  %v1756_v24 = vpop.permute.xlu0 %1755 }
 0x1d4   : > { %v2145_v30 = vadd.f32 %v2144_v15, %v2143_v57  ;;  %v2044_v17 = vadd.f32 %v2043_v40, %v2042_v10  ;;  %v1830_v59 = vsel %vm1807_vm8, %v3413_v63, %v1756_v24 }
 0x1d5   : > { %1990 = vst.msk [vmem:[%s3348_s7 + $0x54] sm:$0xf] %vm1968_vm9, %v2426_v11  ;;  %v2146_v43 = vsel %vm2001_vm10, %v2094_v38, 0.0  ;;  %v2427_v42 = vpack.c.bf16 %v1830_v59, %v1830_v59  ;;  %v2045_v50 = vsel %vm2001_vm10, %v1830_v59, 0.0  ;;  %v2095_v28 = vmul.f32 %v1830_v59, %v1830_v59  ;;  %v1758_v36 = vpop.permute.xlu1 %1757 }
 0x1d6   : > { %v2147_v13 = vadd.f32 %v2146_v43, %v2145_v30  ;;  %v2046_v52 = vadd.f32 %v2045_v50, %v2044_v17  ;;  %v1831_v37 = vsel %vm1807_vm8, %v3420_v16, %v1758_v36 }
 0x1d7   : > { %1991 = vst.msk [vmem:[%s3348_s7 + $0x58] sm:$0xf] %vm1968_vm9, %v2427_v42  ;;  %v2148_v39 = vsel %vm2001_vm10, %v2095_v28, 0.0  ;;  %v2428_v63 = vpack.c.bf16 %v1831_v37, %v1831_v37  ;;  %v2047_v19 = vsel %vm2001_vm10, %v1831_v37, 0.0  ;;  %v2096_v60 = vmul.f32 %v1831_v37, %v1831_v37 }
 0x1d8   : > { %v2149_v23 = vadd.f32 %v2148_v39, %v2147_v13  ;;  %v2048_v34 = vadd.f32 %v2047_v19, %v2046_v52 }
 0x1d9   : > { %1992 = vst.msk [vmem:[%s3348_s7 + $0x5c] sm:$0xf] %vm1968_vm9, %v2428_v63  ;;  %v2150_v53 = vsel %vm2001_vm10, %v2096_v60, 0.0 }
 0x1da   : > { %v2151_v6 = vadd.f32 %v2150_v53, %v2149_v23 }
 0x1de   : > { %v1760_v8 = vpop.permute.xlu0 %1759 }
 0x1df   : > { %v1832_v16 = vsel %vm1807_vm8, %v3431_v31, %v1760_v8 }
 0x1e0   : > { %v2429_v14 = vpack.c.bf16 %v1832_v16, %v1832_v16  ;;  %v2049_v46 = vsel %vm2001_vm10, %v1832_v16, 0.0  ;;  %v2097_v35 = vmul.f32 %v1832_v16, %v1832_v16  ;;  %v1762_v51 = vpop.permute.xlu1 %1761 }
 0x1e1   : > { %v2050_v2 = vadd.f32 %v2049_v46, %v2048_v34  ;;  %v1833_v54 = vsel %vm1807_vm8, %v3441_v20, %v1762_v51 }
 0x1e2   : > { %1993 = vst.msk [vmem:[%s3348_s7 + $0x60] sm:$0xf] %vm1968_vm9, %v2429_v14  ;;  %v2152_v27 = vsel %vm2001_vm10, %v2097_v35, 0.0  ;;  %v2430_v0 = vpack.c.bf16 %v1833_v54, %v1833_v54  ;;  %v2051_v44 = vsel %vm2001_vm10, %v1833_v54, 0.0  ;;  %v2098_v45 = vmul.f32 %v1833_v54, %v1833_v54  ;;  %v1764_v31 = vpop.permute.xlu0 %1763 }
 0x1e3   : > { %v2153_v9 = vadd.f32 %v2152_v27, %v2151_v6  ;;  %v2052_v48 = vadd.f32 %v2051_v44, %v2050_v2  ;;  %v1834_v61 = vsel %vm1807_vm8, %v3427_v49, %v1764_v31 }
 0x1e4   : > { %1994 = vst.msk [vmem:[%s3348_s7 + $0x64] sm:$0xf] %vm1968_vm9, %v2430_v0  ;;  %v2154_v20 = vsel %vm2001_vm10, %v2098_v45, 0.0  ;;  %v2431_v41 = vpack.c.bf16 %v1834_v61, %v1834_v61  ;;  %v2053_v56 = vsel %vm2001_vm10, %v1834_v61, 0.0  ;;  %v2099_v32 = vmul.f32 %v1834_v61, %v1834_v61  ;;  %v1766_v21 = vpop.permute.xlu1 %1765 }
 0x1e5   : > { %v2155_v26 = vadd.f32 %v2154_v20, %v2153_v9  ;;  %v2054_v55 = vadd.f32 %v2053_v56, %v2052_v48  ;;  %v1835_v5 = vsel %vm1807_vm8, %v3437_v62, %v1766_v21 }
 0x1e6   : > { %1995 = vst.msk [vmem:[%s3348_s7 + $0x68] sm:$0xf] %vm1968_vm9, %v2431_v41  ;;  %v2156_v33 = vsel %vm2001_vm10, %v2099_v32, 0.0  ;;  %v2432_v49 = vpack.c.bf16 %v1835_v5, %v1835_v5  ;;  %v2055_v57 = vsel %vm2001_vm10, %v1835_v5, 0.0  ;;  %v2100_v47 = vmul.f32 %v1835_v5, %v1835_v5 }
 0x1e7   : > { %v2157_v25 = vadd.f32 %v2156_v33, %v2155_v26  ;;  %v2056_v18 = vadd.f32 %v2055_v57, %v2054_v55 }
 0x1e8   : > { %1996 = vst.msk [vmem:[%s3348_s7 + $0x6c] sm:$0xf] %vm1968_vm9, %v2432_v49  ;;  %v2158_v29 = vsel %vm2001_vm10, %v2100_v47, 0.0 }
 0x1e9   : > { %v2159_v12 = vadd.f32 %v2158_v29, %v2157_v25 }
 0x1ee   : > { %v1768_v58 = vpop.permute.xlu0 %1767 }
 0x1ef   : > { %v1836_v62 = vsel %vm1807_vm8, %v3458_v4, %v1768_v58 }
 0x1f0   : > { %v2433_v10 = vpack.c.bf16 %v1836_v62, %v1836_v62  ;;  %v2057_v7 = vsel %vm2001_vm10, %v1836_v62, 0.0  ;;  %v2101_v15 = vmul.f32 %v1836_v62, %v1836_v62  ;;  %v1770_v11 = vpop.permute.xlu1 %1769 }
 0x1f1   : > { %v2058_v40 = vadd.f32 %v2057_v7, %v2056_v18  ;;  %v1837_v38 = vsel %vm1807_vm8, %v3462_v22, %v1770_v11 }
 0x1f2   : > { %1997 = vst.msk [vmem:[%s3348_s7 + $0x70] sm:$0xf] %vm1968_vm9, %v2433_v10  ;;  %v2160_v24 = vsel %vm2001_vm10, %v2101_v15, 0.0  ;;  %v2434_v30 = vpack.c.bf16 %v1837_v38, %v1837_v38  ;;  %v2059_v17 = vsel %vm2001_vm10, %v1837_v38, 0.0  ;;  %v2102_v59 = vmul.f32 %v1837_v38, %v1837_v38  ;;  %v1772_v4 = vpop.permute.xlu0 %1771 }
 0x1f3   : > { %v2161_v43 = vadd.f32 %v2160_v24, %v2159_v12  ;;  %v2060_v42 = vadd.f32 %v2059_v17, %v2058_v40  ;;  %v1838_v50 = vsel %vm1807_vm8, %v3456_v3, %v1772_v4 }
 0x1f4   : > { %1998 = vst.msk [vmem:[%s3348_s7 + $0x74] sm:$0xf] %vm1968_vm9, %v2434_v30  ;;  %v2162_v22 = vsel %vm2001_vm10, %v2102_v59, 0.0  ;;  %v2435_v28 = vpack.c.bf16 %v1838_v50, %v1838_v50  ;;  %v2061_v36 = vsel %vm2001_vm10, %v1838_v50, 0.0  ;;  %v2103_v13 = vmul.f32 %v1838_v50, %v1838_v50  ;;  %v1774_v52 = vpop.permute.xlu1 %1773 }
 0x1f5   : > { %v2163_v37 = vadd.f32 %v2162_v22, %v2161_v43  ;;  %v2062_v39 = vadd.f32 %v2061_v36, %v2060_v42  ;;  %v1839_v63 = vsel %vm1807_vm8, %v3460_v1, %v1774_v52 }
 0x1f6   : > { %1999 = vst.msk [vmem:[%s3348_s7 + $0x78] sm:$0xf] %vm1968_vm9, %v2435_v28  ;;  %v2164_v19 = vsel %vm2001_vm10, %v2103_v13, 0.0  ;;  %v2436_v3 = vpack.c.bf16 %v1839_v63, %v1839_v63  ;;  %v2063_v60 = vsel %vm2001_vm10, %v1839_v63, 0.0  ;;  %v2104_v23 = vmul.f32 %v1839_v63, %v1839_v63 }
 0x1f7   : > { %v2165_v34 = vadd.f32 %v2164_v19, %v2163_v37  ;;  %v2064_v53 = vadd.f32 %v2063_v60, %v2062_v39 }
 0x1f8   : > { %2000 = vst.msk [vmem:[%s3348_s7 + $0x7c] sm:$0xf] %vm1968_vm9, %v2436_v3  ;;  %v2166_v6 = vsel %vm2001_vm10, %v2104_v23, 0.0 }
 0x1f9   : > { %v2065_v8 = vrot.slane %v2064_v53, 4  ;;  %v2167_v16 = vadd.f32 %v2166_v6, %v2165_v34 }
 0x1fb   : > { %v2066_v14 = vadd.f32 %v2065_v8, %v2064_v53  ;;  %v2168_v1 = vrot.slane %v2167_v16, 4 }
 0x1fd   : > { %v2067_v46 = vrot.slane %v2066_v14, 2  ;;  %v2169_v35 = vadd.f32 %v2168_v1, %v2167_v16 }
 0x1ff   : > { %v2068_v51 = vadd.f32 %v2067_v46, %v2066_v14  ;;  %v2170_v2 = vrot.slane %v2169_v35, 2 }
 0x201   : > { %v2069_v54 = vrot.slane %v2068_v51, 1  ;;  %v2171_v27 = vadd.f32 %v2170_v2, %v2169_v35 }
 0x203   : > { %v2070_v0 = vadd.f32 %v2069_v54, %v2068_v51  ;;  %v2172_v44 = vrot.slane %v2171_v27, 1 }
 0x205   : > { %2072 = vst.msk [vmem:[%s238_s10] sm:$0x1] %vm2071_vm11, %v2070_v0  ;;  %v2173_v45 = vadd.f32 %v2172_v44, %v2171_v27 }
 0x207   : > { %2174 = vst.msk [vmem:[%s241_s13] sm:$0x1] %vm2071_vm11, %v2173_v45 }
 0x208 PF: > { %s16_s18 = sadd.s32 1, %s2557_s18  }
 0x209   : > { %p13_p4 = scmp.ge.s32.totalorder %s16_s18, 4  }
 0x20b   :  { %15 = sbr.rel (!%p13_p4) target bundleno = 1 (0x1), region = 86 }

// kernel: inception_forward.7
= control target key start
LH: loop header
LB: loop body
LE: loop exit
PB: predicated region body
PF: predicated region fallthrough
CT: control target
= control target key end

     0   :  { %s2602_s21 = smov 0   ;;  %s3292_s0 = inlined_call_operand.vmem [shape: bf16[2,18,18,4], index: 0, kind: input, shape index: {}]   ;;  %s3293_s1 = inlined_call_operand.vmem [shape: f32[1,4], index: 1, kind: input, shape index: {}]   ;;  %s3294_s2 = inlined_call_operand.vmem [shape: f32[1,4], index: 2, kind: input, shape index: {}]   ;;  %s3295_s3 = inlined_call_operand.vmem [shape: bf16[3,12,8], index: 3, kind: input, shape index: {}]   ;;  %s3296_s4 = inlined_call_operand.vmem [shape: bf16[2,256,8], index: 4, kind: output, shape index: {0}]   ;;  %s3297_s5 = inlined_call_operand.vmem [shape: f32[2,1,8], index: 5, kind: output, shape index: {1}]   ;;  %s3298_s6 = inlined_call_operand.vmem [shape: f32[2,1,8], index: 6, kind: output, shape index: {2}]  }
   0x1 LB: > { %s2144_s22 = sadd.s32 4294967295, %s2561_s21   ;;  %p2148_p0 = scmp.ge.s32.totalorder %s2561_s21, 1  ;;  %s2561_s21 = sphi %s2602_s21, %s17_s21  }
   0x2   : > { %p217_p1 = scmp.lt.s32.totalorder %s2561_s21, 3 }
   0x4   : > { %p218_p2 = pnand %p2148_p0, %p217_p1 }
   0x5   : > { %v554_v0 = vlaneseq (!%p218_p2)  ;;  %v2563_v1 = vmov (!%p218_p2), 0.0|0.0   ;;  %v2564_v3 = vmov (!%p218_p2), 0   ;;  %p253_p3 = scmp.lt.s32.totalorder (!%p218_p2), %s2144_s22, 1  ;;  %s2565_s23 = smov (!%p218_p2), 8   ;;  %v2634_v7 = vld [vmem:[%s3293_s1] ss:$0 sm:$0xff] (!%p218_p2) }
   0x6   : > { %221 = sbr.rel (%p218_p2) target bundleno = 517 (0x205), region = 36  ;;  %v2610_v2 = vrot.slane (!%p218_p2), %v2563_v1, 1  ;;  %v2612_v4 = vrot.slane (!%p218_p2), %v2564_v3, 1  ;;  %s2566_s24 = smov (!%p218_p2), 4   ;;  %v2647_v18 = vld [vmem:[%s3294_s2] ss:$0 sm:$0xff] (!%p218_p2) }
   0x7   : > { %v2614_v5 = vshrl.u32 (!%p218_p2), %v554_v0, 7  ;;  %vm923_vm2 = vcmask (!%p218_p2), 1046528   ;;  %vm666_vm3 = vsmask.f32 (!%p218_p2), 7424  ;;  %vm1138_vm4 = vcmask (!%p218_p2), 1045504  }
   0x8   : > { %972 = vrot.lane.b32.xlu1 (!%p218_p2), %v2610_v2, %s2565_s23  ;;  %859 = vrot.lane.b32.xlu0 (!%p218_p2), %v2612_v4, %s2566_s24  ;;  %vm1004_vm5 = vcmask (!%p218_p2), 31744   ;;  %vm1037_vm6 = vcmask (!%p218_p2), 64512   ;;  %vm1105_vm7 = vcmask (!%p218_p2), 97280   ;;  %vm1833_vm8 = vcmask (!%p218_p2), 60416  }
   0x9   : > { %v2623_v6 = vadd.s32 (!%p218_p2), 16, %v2614_v5  ;;  %vm558_vm0 = vcmp.ge.s32.totalorder (!%p218_p2), %v2614_v5, 1  ;;  %vm1935_vm9 = vcmask (!%p218_p2), 57344  }
   0xb   : > { %vm569_vm1 = vcmp.le.s32.totalorder (!%p218_p2), %v2623_v6, 16 }
   0xd   : > { %s3300_s22 = smov (!%p253_p3, %s2144_s22), 1 }
   0xe   : > { %s2539_s25 = smul.u32 216, %s3300_s22  ;;  %s2243_s15 = sshll.u32 %s3300_s22, 7 }
   0xf   : > { %s3119_s18 = scalar_lea.vmem %s3296_s4, %s2243_s15  ;;  %s268_s26 = scalar_lea.vmem %s3298_s6, %s3300_s22 }
  0x10   : > { %s2629_s28 = scalar_lea.vmem %s3292_s0, %s2539_s25 }
  0x11   : > { %v2308_v8 = vld [vmem:[%s2629_s28 + $0x18] sm:$0xff]   ;;  %v278_v9 = vld [vmem:[%s2629_s28 + $0x20] sm:$0x1]  ;;  %v273_v10 = vld [vmem:[%s2629_s28 + $0xc] sm:$0xff]  }
  0x12   : > { %v2278_v11 = vunpack.c.l.bf16 %v2308_v8  ;;  %v2279_v12 = vunpack.c.h.bf16 %v2308_v8  ;;  %v332_v13 = vunpack.c.l.bf16 %v278_v9  ;;  %v275_v14 = vld [vmem:[%s2629_s28 + $0x14] sm:$0x1]  ;;  %v327_v15 = vunpack.c.l.bf16 %v273_v10  ;;  %v284_v17 = vld [vmem:[%s2629_s28 + $0x38] sm:$0x1] }
  0x13   : > { %v2309_v16 = vld [vmem:[%s2629_s28 + $0x30] sm:$0xff]   ;;  %v328_v19 = vunpack.c.h.bf16 %v273_v10  ;;  %v329_v20 = vunpack.c.l.bf16 %v275_v14  ;;  %v338_v29 = vunpack.c.l.bf16 %v284_v17  ;;  %v281_v17 = vld [vmem:[%s2629_s28 + $0x2c] sm:$0x1] }
  0x14   : > { %v2282_v21 = vunpack.c.l.bf16 %v2309_v16  ;;  %v2283_v22 = vunpack.c.h.bf16 %v2309_v16  ;;  %v391_v23 = vmul.f32 %v2278_v11, %v2634_v7  ;;  %v392_v24 = vmul.f32 %v2279_v12, %v2634_v7  ;;  %v279_v12 = vld [vmem:[%s2629_s28 + $0x24] sm:$0xff]  }
  0x15   : > { %v393_v25 = vmul.f32 %v2634_v7, %v332_v13  ;;  %v388_v26 = vmul.f32 %v2634_v7, %v327_v15  ;;  %v389_v27 = vmul.f32 %v2634_v7, %v328_v19  ;;  %v390_v28 = vmul.f32 %v2634_v7, %v329_v20 }
  0x16   : > { %v397_v30 = vmul.f32 %v2282_v21, %v2634_v7  ;;  %v452_v31 = vadd.f32 %v2647_v18, %v391_v23  ;;  %v453_v32 = vadd.f32 %v2647_v18, %v392_v24  ;;  %v398_v37 = vmul.f32 %v2283_v22, %v2634_v7 }
  0x17   : > { %v454_v33 = vadd.f32 %v2647_v18, %v393_v25  ;;  %v449_v34 = vadd.f32 %v2647_v18, %v388_v26  ;;  %v450_v35 = vadd.f32 %v2647_v18, %v389_v27  ;;  %v451_v36 = vadd.f32 %v2647_v18, %v390_v28 }
  0x18   : > { %v399_v38 = vmul.f32 %v2634_v7, %v338_v29  ;;  %v506_v39 = vmax.f32 %v452_v31, 0.0  ;;  %v507_v40 = vmax.f32 %v453_v32, 0.0  ;;  %v458_v45 = vadd.f32 %v2647_v18, %v397_v30  ;;  %v2310_v31 = vld [vmem:[%s2629_s28 + $0x48] sm:$0xff]  }
  0x19   : > { %v508_v41 = vmax.f32 %v454_v33, 0.0  ;;  %v503_v42 = vmax.f32 %v449_v34, 0.0  ;;  %v504_v43 = vmax.f32 %v450_v35, 0.0  ;;  %v505_v44 = vmax.f32 %v451_v36, 0.0 }
  0x1a   : > { %v459_v46 = vadd.f32 %v2647_v18, %v398_v37  ;;  %v582_v47 = vsel %vm558_vm0, %v506_v39, 0.0  ;;  %v460_v50 = vadd.f32 %v2647_v18, %v399_v38  ;;  %v512_v56 = vmax.f32 %v458_v45, 0.0  ;;  %v285_v45 = vld [vmem:[%s2629_s28 + $0x3c] sm:$0xff]  }
  0x1b   : > { %v584_v48 = vsel %vm569_vm1, %v508_v41, 0.0  ;;  %v579_v49 = vsel %vm558_vm0, %v503_v42, 0.0  ;;  %v2673_v51 = vpack.c.bf16 %v507_v40, %v582_v47  ;;  %v581_v53 = vsel %vm569_vm1, %v505_v44, 0.0  ;;  %v290_v40 = vld [vmem:[%s2629_s28 + $0x50] sm:$0x1] }
  0x1c   : > { %v635_v52 = vpack.c.bf16 %v584_v48, %v584_v48  ;;  %v2677_v54 = vpack.c.bf16 %v504_v43, %v579_v49  ;;  %v633_v55 = vpack.c.bf16 %v581_v53, %v581_v53  ;;  %v513_v57 = vmax.f32 %v459_v46, 0.0 }
  0x1d   : > { %v514_v58 = vmax.f32 %v460_v50, 0.0  ;;  %v692_v59 = vshrl.u32 %v2673_v51, 16  ;;  %v694_v60 = vshll.u32 %v2673_v51, 16  ;;  %v930_v1 = vrot.slane %v2673_v51, 1 }
  0x1e   : > { %v699_v61 = vshll.u32 %v635_v52, 16  ;;  %v680_v62 = vshrl.u32 %v2677_v54, 16  ;;  %v682_v63 = vshll.u32 %v2677_v54, 16  ;;  %v687_v0 = vshll.u32 %v633_v55, 16 }
  0x1f   : > { %v931_v3 = vrot.slane %v635_v52, 1  ;;  %v696_v8 = vrot.slane %v694_v60, 1  ;;  %v927_v10 = vrot.slane %v2677_v54, 1  ;;  %v928_v11 = vrot.slane %v633_v55, 1 }
  0x20   : > { %v701_v9 = vrot.slane %v699_v61, 1  ;;  %v684_v13 = vrot.slane %v682_v63, 1  ;;  %v689_v14 = vrot.slane %v687_v0, 1  ;;  %v588_v16 = vsel %vm558_vm0, %v512_v56, 0.0  ;;  %v287_v56 = vld [vmem:[%s2629_s28 + $0x44] sm:$0x1] }
  0x21   : > { %v932_v15 = vsel %vm923_vm2, %v930_v1, %v931_v3  ;;  %v697_v19 = vor.u32 %v696_v8, %v692_v59  ;;  %v929_v20 = vsel %vm923_vm2, %v927_v10, %v928_v11  ;;  %v590_v21 = vsel %vm569_vm1, %v514_v58, 0.0 }
  0x22   : > { %v2693_v22 = vpack.c.bf16 %v513_v57, %v588_v16  ;;  %v685_v23 = vor.u32 %v684_v13, %v680_v62  ;;  %v639_v24 = vpack.c.bf16 %v590_v21, %v590_v21  ;;  %v333_v25 = vunpack.c.l.bf16 %v279_v12 }
  0x23   : > { %v334_v26 = vunpack.c.h.bf16 %v279_v12  ;;  %v702_v27 = vsel %vm666_vm3, %v697_v19, %v701_v9  ;;  %v335_v30 = vunpack.c.l.bf16 %v281_v17  ;;  %v2286_v44 = vunpack.c.l.bf16 %v2310_v31 }
  0x24   : > { %v716_v28 = vshrl.u32 %v2693_v22, 16  ;;  %v718_v29 = vshll.u32 %v2693_v22, 16  ;;  %863 = vrot.lane.b32.xlu1 %v702_v27, %s2566_s24  ;;  %v690_v32 = vsel %vm666_vm3, %v685_v23, %v689_v14  ;;  %v723_v33 = vshll.u32 %v639_v24, 16 }
  0x25   : > { %v394_v34 = vmul.f32 %v2634_v7, %v333_v25  ;;  %v395_v35 = vmul.f32 %v2634_v7, %v334_v26  ;;  %861 = vrot.lane.b32.xlu0 %v690_v32, %s2566_s24  ;;  %v396_v37 = vmul.f32 %v2634_v7, %v335_v30  ;;  %v936_v38 = vrot.slane %v2693_v22, 1 }
  0x26   : > { %v720_v36 = vrot.slane %v718_v29, 1  ;;  %v937_v39 = vrot.slane %v639_v24, 1  ;;  %v725_v41 = vrot.slane %v723_v33, 1  ;;  %v2287_v49 = vunpack.c.h.bf16 %v2310_v31 }
  0x27   : > { %v455_v42 = vadd.f32 %v2647_v18, %v394_v34  ;;  %v456_v43 = vadd.f32 %v2647_v18, %v395_v35  ;;  %v457_v47 = vadd.f32 %v2647_v18, %v396_v37  ;;  %v344_v53 = vunpack.c.l.bf16 %v290_v40 }
  0x28   : > { %v721_v46 = vor.u32 %v720_v36, %v716_v28  ;;  %v938_v48 = vsel %vm923_vm2, %v936_v38, %v937_v39  ;;  %976 = vrot.lane.b32.xlu1 %v932_v15, %s2565_s23  ;;  %v403_v55 = vmul.f32 %v2286_v44, %v2634_v7  ;;  %v404_v59 = vmul.f32 %v2287_v49, %v2634_v7  ;;  %v2311_v36 = vld [vmem:[%s2629_s28 + $0x60] sm:$0xff]  }
  0x29   : > { %v509_v50 = vmax.f32 %v455_v42, 0.0  ;;  %v510_v52 = vmax.f32 %v456_v43, 0.0  ;;  %974 = vrot.lane.b32.xlu0 %v929_v20, %s2565_s23  ;;  %v511_v58 = vmax.f32 %v457_v47, 0.0  ;;  %v339_v60 = vunpack.c.l.bf16 %v285_v45 }
  0x2a   : > { %v726_v57 = vsel %vm666_vm3, %v721_v46, %v725_v41  ;;  %v405_v62 = vmul.f32 %v2634_v7, %v344_v53  ;;  %v464_v63 = vadd.f32 %v2647_v18, %v403_v55  ;;  %v340_v0 = vunpack.c.h.bf16 %v285_v45  ;;  %v296_v45 = vld [vmem:[%s2629_s28 + $0x68] sm:$0x1] }
  0x2b   : > { %v585_v61 = vsel %vm558_vm0, %v509_v50, 0.0  ;;  %v587_v1 = vsel %vm569_vm1, %v511_v58, 0.0  ;;  %v465_v8 = vadd.f32 %v2647_v18, %v404_v59  ;;  %v341_v9 = vunpack.c.l.bf16 %v287_v56  ;;  %v291_v50 = vld [vmem:[%s2629_s28 + $0x54] sm:$0xff]  }
  0x2c   : > { %v2724_v3 = vpack.c.bf16 %v510_v52, %v585_v61  ;;  %867 = vrot.lane.b32.xlu1 %v726_v57, %s2566_s24  ;;  %v637_v10 = vpack.c.bf16 %v587_v1, %v587_v1  ;;  %v466_v11 = vadd.f32 %v2647_v18, %v405_v62  ;;  %v518_v12 = vmax.f32 %v464_v63, 0.0 }
  0x2d   : > { %v400_v13 = vmul.f32 %v2634_v7, %v339_v60  ;;  %v519_v17 = vmax.f32 %v465_v8, 0.0  ;;  %v401_v26 = vmul.f32 %v2634_v7, %v340_v0  ;;  %v402_v27 = vmul.f32 %v2634_v7, %v341_v9  ;;  %v293_v0 = vld [vmem:[%s2629_s28 + $0x5c] sm:$0x1] }
  0x2e   : > { %v704_v14 = vshrl.u32 %v2724_v3, 16  ;;  %v706_v15 = vshll.u32 %v2724_v3, 16  ;;  %v933_v16 = vrot.slane %v2724_v3, 1  ;;  %v711_v19 = vshll.u32 %v637_v10, 16 }
  0x2f   : > { %v934_v20 = vrot.slane %v637_v10, 1  ;;  %v520_v21 = vmax.f32 %v466_v11, 0.0  ;;  %v594_v23 = vsel %vm558_vm0, %v518_v12, 0.0  ;;  %v461_v31 = vadd.f32 %v2647_v18, %v400_v13 }
  0x30   : > { %v708_v24 = vrot.slane %v706_v15, 1  ;;  %v2735_v25 = vpack.c.bf16 %v519_v17, %v594_v23  ;;  %v713_v28 = vrot.slane %v711_v19, 1  ;;  %980 = vrot.lane.b32.xlu1 %v938_v48, %s2565_s23  ;;  %v462_v37 = vadd.f32 %v2647_v18, %v401_v26 }
  0x31   : > { %v935_v29 = vsel %vm923_vm2, %v933_v16, %v934_v20  ;;  %v596_v30 = vsel %vm569_vm1, %v520_v21, 0.0  ;;  %v463_v38 = vadd.f32 %v2647_v18, %v402_v27  ;;  %v515_v39 = vmax.f32 %v461_v31, 0.0  ;;  %v2312_v21 = vld [vmem:[%s2629_s28 + $0x78] sm:$0xff]  }
  0x32   : > { %v709_v32 = vor.u32 %v708_v24, %v704_v14  ;;  %v643_v33 = vpack.c.bf16 %v596_v30, %v596_v30  ;;  %v740_v34 = vshrl.u32 %v2735_v25, 16  ;;  %v742_v35 = vshll.u32 %v2735_v25, 16 }
  0x33   : > { %v942_v40 = vrot.slane %v2735_v25, 1  ;;  %v516_v46 = vmax.f32 %v462_v37, 0.0  ;;  %v517_v47 = vmax.f32 %v463_v38, 0.0  ;;  %v591_v48 = vsel %vm558_vm0, %v515_v39, 0.0 }
  0x34   : > { %v714_v41 = vsel %vm666_vm3, %v709_v32, %v713_v28  ;;  %v744_v42 = vrot.slane %v742_v35, 1  ;;  %v747_v43 = vshll.u32 %v643_v33, 16  ;;  %v943_v44 = vrot.slane %v643_v33, 1  ;;  %v302_v32 = vld [vmem:[%s2629_s28 + $0x80] sm:$0x1] }
  0x35   : > { %865 = vrot.lane.b32.xlu0 %v714_v41, %s2566_s24  ;;  %v2290_v49 = vunpack.c.l.bf16 %v2311_v36  ;;  %v2291_v56 = vunpack.c.h.bf16 %v2311_v36  ;;  %v593_v57 = vsel %vm569_vm1, %v517_v47, 0.0  ;;  %v2759_v58 = vpack.c.bf16 %v516_v46, %v591_v48 }
  0x36   : > { %v745_v52 = vor.u32 %v744_v42, %v740_v34  ;;  %v749_v53 = vrot.slane %v747_v43, 1  ;;  %v944_v55 = vsel %vm923_vm2, %v942_v40, %v943_v44  ;;  %v350_v59 = vunpack.c.l.bf16 %v296_v45 }
  0x37   : > { %v409_v60 = vmul.f32 %v2290_v49, %v2634_v7  ;;  %v641_v62 = vpack.c.bf16 %v593_v57, %v593_v57  ;;  %v410_v63 = vmul.f32 %v2291_v56, %v2634_v7  ;;  %v345_v1 = vunpack.c.l.bf16 %v291_v50 }
  0x38   : > { %v750_v61 = vsel %vm666_vm3, %v745_v52, %v749_v53  ;;  %v728_v8 = vshrl.u32 %v2759_v58, 16  ;;  %v730_v9 = vshll.u32 %v2759_v58, 16  ;;  %v939_v10 = vrot.slane %v2759_v58, 1 }
  0x39   : > { %978 = vrot.lane.b32.xlu0 %v935_v29, %s2565_s23  ;;  %871 = vrot.lane.b32.xlu1 %v750_v61, %s2566_s24  ;;  %v411_v11 = vmul.f32 %v2634_v7, %v350_v59  ;;  %v735_v12 = vshll.u32 %v641_v62, 16  ;;  %v940_v13 = vrot.slane %v641_v62, 1  ;;  %v470_v14 = vadd.f32 %v2647_v18, %v409_v60 }
  0x3a   : > { %v471_v15 = vadd.f32 %v2647_v18, %v410_v63  ;;  %v732_v16 = vrot.slane %v730_v9, 1  ;;  %v346_v19 = vunpack.c.h.bf16 %v291_v50  ;;  %v347_v20 = vunpack.c.l.bf16 %v293_v0 }
  0x3b   : > { %v472_v17 = vadd.f32 %v2647_v18, %v411_v11  ;;  %v737_v23 = vrot.slane %v735_v12, 1  ;;  %v941_v24 = vsel %vm923_vm2, %v939_v10, %v940_v13  ;;  %v524_v26 = vmax.f32 %v470_v14, 0.0  ;;  %v297_v10 = vld [vmem:[%s2629_s28 + $0x6c] sm:$0xff]  }
  0x3c   : > { %v525_v27 = vmax.f32 %v471_v15, 0.0  ;;  %v733_v28 = vor.u32 %v732_v16, %v728_v8  ;;  %v406_v30 = vmul.f32 %v2634_v7, %v345_v1  ;;  %v407_v31 = vmul.f32 %v2634_v7, %v346_v19 }
  0x3d   : > { %984 = vrot.lane.b32.xlu1 %v944_v55, %s2565_s23  ;;  %v526_v29 = vmax.f32 %v472_v17, 0.0  ;;  %v600_v33 = vsel %vm558_vm0, %v524_v26, 0.0  ;;  %v408_v34 = vmul.f32 %v2634_v7, %v347_v20  ;;  %v2294_v35 = vunpack.c.l.bf16 %v2312_v21  ;;  %v299_v20 = vld [vmem:[%s2629_s28 + $0x74] sm:$0x1] }
  0x3e   : > { %v2295_v36 = vunpack.c.h.bf16 %v2312_v21  ;;  %v738_v37 = vsel %vm666_vm3, %v733_v28, %v737_v23  ;;  %v2786_v39 = vpack.c.bf16 %v525_v27, %v600_v33  ;;  %v467_v40 = vadd.f32 %v2647_v18, %v406_v30  ;;  %v2313_v27 = vld [vmem:[%s2629_s28 + $0x90] sm:$0xff]  }
  0x3f   : > { %v602_v38 = vsel %vm569_vm1, %v526_v29, 0.0  ;;  %869 = vrot.lane.b32.xlu0 %v738_v37, %s2566_s24  ;;  %v468_v42 = vadd.f32 %v2647_v18, %v407_v31  ;;  %v469_v43 = vadd.f32 %v2647_v18, %v408_v34  ;;  %v356_v44 = vunpack.c.l.bf16 %v302_v32 }
  0x40   : > { %v647_v41 = vpack.c.bf16 %v602_v38, %v602_v38  ;;  %v764_v45 = vshrl.u32 %v2786_v39, 16  ;;  %v766_v46 = vshll.u32 %v2786_v39, 16  ;;  %v521_v47 = vmax.f32 %v467_v40, 0.0 }
  0x41   : > { %v948_v48 = vrot.slane %v2786_v39, 1  ;;  %v522_v50 = vmax.f32 %v468_v42, 0.0  ;;  %v523_v52 = vmax.f32 %v469_v43, 0.0  ;;  %v415_v57 = vmul.f32 %v2294_v35, %v2634_v7 }
  0x42   : > { %v771_v49 = vshll.u32 %v647_v41, 16  ;;  %v949_v53 = vrot.slane %v647_v41, 1  ;;  %v768_v55 = vrot.slane %v766_v46, 1  ;;  %v597_v56 = vsel %vm558_vm0, %v521_v47, 0.0 }
  0x43   : > { %v416_v59 = vmul.f32 %v2295_v36, %v2634_v7  ;;  %982 = vrot.lane.b32.xlu0 %v941_v24, %s2565_s23  ;;  %v599_v61 = vsel %vm569_vm1, %v523_v52, 0.0  ;;  %v2802_v62 = vpack.c.bf16 %v522_v50, %v597_v56  ;;  %v417_v8 = vmul.f32 %v2634_v7, %v356_v44 }
  0x44   : > { %v773_v60 = vrot.slane %v771_v49, 1  ;;  %v950_v63 = vsel %vm923_vm2, %v948_v48, %v949_v53  ;;  %v769_v0 = vor.u32 %v768_v55, %v764_v45  ;;  %v645_v1 = vpack.c.bf16 %v599_v61, %v599_v61  ;;  %v308_v45 = vld [vmem:[%s2629_s28 + $0x98] sm:$0x1]  ;;  %v303_v61 = vld [vmem:[%s2629_s28 + $0x84] sm:$0xff]  }
  0x45   : > { %v476_v9 = vadd.f32 %v2647_v18, %v415_v57  ;;  %v752_v11 = vshrl.u32 %v2802_v62, 16  ;;  %v754_v12 = vshll.u32 %v2802_v62, 16  ;;  %v945_v13 = vrot.slane %v2802_v62, 1 }
  0x46   : > { %v477_v14 = vadd.f32 %v2647_v18, %v416_v59  ;;  %v774_v15 = vsel %vm666_vm3, %v769_v0, %v773_v60  ;;  %v759_v16 = vshll.u32 %v645_v1, 16  ;;  %v946_v17 = vrot.slane %v645_v1, 1 }
  0x47   : > { %v478_v19 = vadd.f32 %v2647_v18, %v417_v8  ;;  %875 = vrot.lane.b32.xlu1 %v774_v15, %s2566_s24  ;;  %v756_v21 = vrot.slane %v754_v12, 1  ;;  %v530_v23 = vmax.f32 %v476_v9, 0.0  ;;  %v351_v26 = vunpack.c.l.bf16 %v297_v10  ;;  %v305_v15 = vld [vmem:[%s2629_s28 + $0x8c] sm:$0x1] }
  0x48   : > { %v531_v24 = vmax.f32 %v477_v14, 0.0  ;;  %v761_v28 = vrot.slane %v759_v16, 1  ;;  %v947_v29 = vsel %vm923_vm2, %v945_v13, %v946_v17  ;;  %v352_v31 = vunpack.c.h.bf16 %v297_v10 }
  0x49   : > { %v532_v30 = vmax.f32 %v478_v19, 0.0  ;;  %v757_v32 = vor.u32 %v756_v21, %v752_v11  ;;  %v606_v33 = vsel %vm558_vm0, %v530_v23, 0.0  ;;  %v353_v34 = vunpack.c.l.bf16 %v299_v20 }
  0x4a   : > { %v412_v35 = vmul.f32 %v2634_v7, %v351_v26  ;;  %v2823_v37 = vpack.c.bf16 %v531_v24, %v606_v33  ;;  %v413_v38 = vmul.f32 %v2634_v7, %v352_v31  ;;  %v2298_v40 = vunpack.c.l.bf16 %v2313_v27 }
  0x4b   : > { %v608_v36 = vsel %vm569_vm1, %v532_v30, 0.0  ;;  %v762_v41 = vsel %vm666_vm3, %v757_v32, %v761_v28  ;;  %988 = vrot.lane.b32.xlu1 %v950_v63, %s2565_s23  ;;  %v414_v43 = vmul.f32 %v2634_v7, %v353_v34  ;;  %v2299_v59 = vunpack.c.h.bf16 %v2313_v27 }
  0x4c   : > { %v651_v42 = vpack.c.bf16 %v608_v36, %v608_v36  ;;  %v473_v44 = vadd.f32 %v2647_v18, %v412_v35  ;;  %873 = vrot.lane.b32.xlu0 %v762_v41, %s2566_s24  ;;  %v788_v46 = vshrl.u32 %v2823_v37, 16  ;;  %v790_v47 = vshll.u32 %v2823_v37, 16 }
  0x4d   : > { %v474_v48 = vadd.f32 %v2647_v18, %v413_v38  ;;  %v954_v49 = vrot.slane %v2823_v37, 1  ;;  %v475_v52 = vadd.f32 %v2647_v18, %v414_v43  ;;  %v362_v60 = vunpack.c.l.bf16 %v308_v45  ;;  %v2314_v43 = vld [vmem:[%s2629_s28 + $0xa8] sm:$0xff]  }
  0x4e   : > { %v795_v50 = vshll.u32 %v651_v42, 16  ;;  %v527_v53 = vmax.f32 %v473_v44, 0.0  ;;  %v955_v55 = vrot.slane %v651_v42, 1  ;;  %v792_v56 = vrot.slane %v790_v47, 1 }
  0x4f   : > { %v528_v57 = vmax.f32 %v474_v48, 0.0  ;;  %v529_v0 = vmax.f32 %v475_v52, 0.0  ;;  %v421_v11 = vmul.f32 %v2298_v40, %v2634_v7  ;;  %v422_v12 = vmul.f32 %v2299_v59, %v2634_v7  ;;  %v314_v59 = vld [vmem:[%s2629_s28 + $0xb0] sm:$0x1] }
  0x50   : > { %v797_v63 = vrot.slane %v795_v50, 1  ;;  %v603_v1 = vsel %vm558_vm0, %v527_v53, 0.0  ;;  %v956_v8 = vsel %vm923_vm2, %v954_v49, %v955_v55  ;;  %986 = vrot.lane.b32.xlu0 %v947_v29, %s2565_s23  ;;  %v793_v9 = vor.u32 %v792_v56, %v788_v46 }
  0x51   : > { %v2842_v10 = vpack.c.bf16 %v528_v57, %v603_v1  ;;  %v605_v13 = vsel %vm569_vm1, %v529_v0, 0.0  ;;  %v423_v14 = vmul.f32 %v2634_v7, %v362_v60  ;;  %v357_v16 = vunpack.c.l.bf16 %v303_v61 }
  0x52   : > { %v358_v17 = vunpack.c.h.bf16 %v303_v61  ;;  %v798_v19 = vsel %vm666_vm3, %v793_v9, %v797_v63  ;;  %v649_v20 = vpack.c.bf16 %v605_v13, %v605_v13  ;;  %v482_v26 = vadd.f32 %v2647_v18, %v421_v11 }
  0x53   : > { %v776_v21 = vshrl.u32 %v2842_v10, 16  ;;  %v778_v23 = vshll.u32 %v2842_v10, 16  ;;  %879 = vrot.lane.b32.xlu1 %v798_v19, %s2566_s24  ;;  %v951_v24 = vrot.slane %v2842_v10, 1  ;;  %v483_v27 = vadd.f32 %v2647_v18, %v422_v12 }
  0x54   : > { %v484_v28 = vadd.f32 %v2647_v18, %v423_v14  ;;  %v783_v30 = vshll.u32 %v649_v20, 16  ;;  %v952_v31 = vrot.slane %v649_v20, 1  ;;  %v359_v32 = vunpack.c.l.bf16 %v305_v15 }
  0x55   : > { %v780_v29 = vrot.slane %v778_v23, 1  ;;  %v536_v33 = vmax.f32 %v482_v26, 0.0  ;;  %v537_v34 = vmax.f32 %v483_v27, 0.0  ;;  %v418_v36 = vmul.f32 %v2634_v7, %v357_v16  ;;  %v309_v27 = vld [vmem:[%s2629_s28 + $0x9c] sm:$0xff]  }
  0x56   : > { %v538_v35 = vmax.f32 %v484_v28, 0.0  ;;  %v785_v40 = vrot.slane %v783_v30, 1  ;;  %v953_v41 = vsel %vm923_vm2, %v951_v24, %v952_v31  ;;  %v419_v42 = vmul.f32 %v2634_v7, %v358_v17 }
  0x57   : > { %v781_v38 = vor.u32 %v780_v29, %v776_v21  ;;  %992 = vrot.lane.b32.xlu1 %v956_v8, %s2565_s23  ;;  %v612_v44 = vsel %vm558_vm0, %v536_v33, 0.0  ;;  %v420_v46 = vmul.f32 %v2634_v7, %v359_v32  ;;  %v479_v47 = vadd.f32 %v2647_v18, %v418_v36  ;;  %v311_v36 = vld [vmem:[%s2629_s28 + $0xa4] sm:$0x1] }
  0x58   : > { %v614_v45 = vsel %vm569_vm1, %v538_v35, 0.0  ;;  %v2870_v49 = vpack.c.bf16 %v537_v34, %v612_v44  ;;  %v480_v52 = vadd.f32 %v2647_v18, %v419_v42  ;;  %v2302_v56 = vunpack.c.l.bf16 %v2314_v43 }
  0x59   : > { %v786_v48 = vsel %vm666_vm3, %v781_v38, %v785_v40  ;;  %v655_v50 = vpack.c.bf16 %v614_v45, %v614_v45  ;;  %v481_v53 = vadd.f32 %v2647_v18, %v420_v46  ;;  %v533_v55 = vmax.f32 %v479_v47, 0.0 }
  0x5a   : > { %877 = vrot.lane.b32.xlu0 %v786_v48, %s2566_s24  ;;  %v2303_v57 = vunpack.c.h.bf16 %v2314_v43  ;;  %v812_v60 = vshrl.u32 %v2870_v49, 16  ;;  %v814_v61 = vshll.u32 %v2870_v49, 16  ;;  %v534_v0 = vmax.f32 %v480_v52, 0.0  ;;  %v315_v43 = vld [vmem:[%s2629_s28 + $0xb4] sm:$0xff]  }
  0x5b   : > { %v819_v63 = vshll.u32 %v655_v50, 16  ;;  %v535_v1 = vmax.f32 %v481_v53, 0.0  ;;  %v609_v8 = vsel %vm558_vm0, %v533_v55, 0.0  ;;  %v960_v9 = vrot.slane %v2870_v49, 1 }
  0x5c   : > { %v961_v11 = vrot.slane %v655_v50, 1  ;;  %v816_v12 = vrot.slane %v814_v61, 1  ;;  %v2881_v14 = vpack.c.bf16 %v534_v0, %v609_v8  ;;  %v368_v15 = vunpack.c.l.bf16 %v314_v59  ;;  %v317_v59 = vld [vmem:[%s2629_s28 + $0xbc] sm:$0x1] }
  0x5d   : > { %v821_v13 = vrot.slane %v819_v63, 1  ;;  %v611_v16 = vsel %vm569_vm1, %v535_v1, 0.0  ;;  %v427_v19 = vmul.f32 %v2302_v56, %v2634_v7  ;;  %v428_v20 = vmul.f32 %v2303_v57, %v2634_v7 }
  0x5e   : > { %990 = vrot.lane.b32.xlu0 %v953_v41, %s2565_s23  ;;  %v962_v17 = vsel %vm923_vm2, %v960_v9, %v961_v11  ;;  %v817_v21 = vor.u32 %v816_v12, %v812_v60  ;;  %v653_v23 = vpack.c.bf16 %v611_v16, %v611_v16  ;;  %v800_v24 = vshrl.u32 %v2881_v14, 16 }
  0x5f   : > { %v802_v26 = vshll.u32 %v2881_v14, 16  ;;  %v957_v28 = vrot.slane %v2881_v14, 1  ;;  %v429_v29 = vmul.f32 %v2634_v7, %v368_v15  ;;  %v488_v30 = vadd.f32 %v2647_v18, %v427_v19 }
  0x60   : > { %v489_v31 = vadd.f32 %v2647_v18, %v428_v20  ;;  %v822_v32 = vsel %vm666_vm3, %v817_v21, %v821_v13  ;;  %v807_v34 = vshll.u32 %v653_v23, 16  ;;  %v958_v35 = vrot.slane %v653_v23, 1 }
  0x61   : > { %v804_v33 = vrot.slane %v802_v26, 1  ;;  %883 = vrot.lane.b32.xlu1 %v822_v32, %s2566_s24  ;;  %v490_v38 = vadd.f32 %v2647_v18, %v429_v29  ;;  %v542_v40 = vmax.f32 %v488_v30, 0.0  ;;  %v363_v42 = vunpack.c.l.bf16 %v309_v27 }
  0x62   : > { %v543_v41 = vmax.f32 %v489_v31, 0.0  ;;  %v809_v45 = vrot.slane %v807_v34, 1  ;;  %v959_v46 = vsel %vm923_vm2, %v957_v28, %v958_v35  ;;  %v364_v47 = vunpack.c.h.bf16 %v309_v27 }
  0x63   : > { %v805_v44 = vor.u32 %v804_v33, %v800_v24  ;;  %v544_v48 = vmax.f32 %v490_v38, 0.0  ;;  %v618_v50 = vsel %vm558_vm0, %v542_v40, 0.0  ;;  %v365_v52 = vunpack.c.l.bf16 %v311_v36  ;;  %v2315_v38 = vld [vmem:[%s2629_s28 + $0xc0] sm:$0xff]  }
  0x64   : > { %v424_v53 = vmul.f32 %v2634_v7, %v363_v42  ;;  %v2906_v56 = vpack.c.bf16 %v543_v41, %v618_v50  ;;  %v425_v57 = vmul.f32 %v2634_v7, %v364_v47  ;;  %v369_v60 = vunpack.c.l.bf16 %v315_v43 }
  0x65   : > { %v810_v55 = vsel %vm666_vm3, %v805_v44, %v809_v45  ;;  %996 = vrot.lane.b32.xlu1 %v962_v17, %s2565_s23  ;;  %v620_v61 = vsel %vm569_vm1, %v544_v48, 0.0  ;;  %v426_v63 = vmul.f32 %v2634_v7, %v365_v52  ;;  %v370_v1 = vunpack.c.h.bf16 %v315_v43  ;;  %v320_v44 = vld [vmem:[%s2629_s28 + $0xc8] sm:$0x1] }
  0x66   : > { %881 = vrot.lane.b32.xlu0 %v810_v55, %s2566_s24  ;;  %v485_v0 = vadd.f32 %v2647_v18, %v424_v53  ;;  %v659_v8 = vpack.c.bf16 %v620_v61, %v620_v61  ;;  %v836_v9 = vshrl.u32 %v2906_v56, 16  ;;  %v838_v11 = vshll.u32 %v2906_v56, 16 }
  0x67   : > { %v486_v12 = vadd.f32 %v2647_v18, %v425_v57  ;;  %v487_v13 = vadd.f32 %v2647_v18, %v426_v63  ;;  %v966_v16 = vrot.slane %v2906_v56, 1  ;;  %v371_v17 = vunpack.c.l.bf16 %v317_v59 }
  0x68   : > { %v539_v15 = vmax.f32 %v485_v0, 0.0  ;;  %v840_v19 = vrot.slane %v838_v11, 1  ;;  %v843_v20 = vshll.u32 %v659_v8, 16  ;;  %v967_v23 = vrot.slane %v659_v8, 1 }
  0x69   : > { %v540_v21 = vmax.f32 %v486_v12, 0.0  ;;  %v541_v24 = vmax.f32 %v487_v13, 0.0  ;;  %v430_v27 = vmul.f32 %v2634_v7, %v369_v60  ;;  %v431_v28 = vmul.f32 %v2634_v7, %v370_v1 }
  0x6a   : > { %994 = vrot.lane.b32.xlu0 %v959_v46, %s2565_s23  ;;  %v615_v26 = vsel %vm558_vm0, %v539_v15, 0.0  ;;  %v841_v29 = vor.u32 %v840_v19, %v836_v9  ;;  %v845_v30 = vrot.slane %v843_v20, 1  ;;  %v968_v32 = vsel %vm923_vm2, %v966_v16, %v967_v23  ;;  %v2552_v15 = vld [vmem:[%s3295_s3 + $0x8] sm:$0x3f]   ;;  %v2553_v16 = vld [vmem:[%s3295_s3] sm:$0x3f]  }
  0x6b   : > { %v2926_v31 = vpack.c.bf16 %v540_v21, %v615_v26  ;;  %v617_v33 = vsel %vm569_vm1, %v541_v24, 0.0  ;;  %v432_v34 = vmul.f32 %v2634_v7, %v371_v17  ;;  %v491_v35 = vadd.f32 %v2647_v18, %v430_v27  ;;  %2535 = vmatprep.subr.msk.bf16.mxu1 %vm1138_vm4, %v2552_v15  ;;  %2536 = vmatprep.subr.msk.bf16.mxu0 %vm1138_vm4, %v2553_v16 }
  0x6c   : > { %v492_v36 = vadd.f32 %v2647_v18, %v431_v28  ;;  %v846_v40 = vsel %vm666_vm3, %v841_v29, %v845_v30  ;;  %v657_v41 = vpack.c.bf16 %v617_v33, %v617_v33  ;;  %v2306_v55 = vunpack.c.l.bf16 %v2315_v38 }
  0x6d   : > { %v824_v42 = vshrl.u32 %v2926_v31, 16  ;;  %v826_v43 = vshll.u32 %v2926_v31, 16  ;;  %887 = vrot.lane.b32.xlu1 %v846_v40, %s2566_s24  ;;  %v963_v45 = vrot.slane %v2926_v31, 1  ;;  %v493_v46 = vadd.f32 %v2647_v18, %v432_v34 }
  0x6e   : > { %v545_v47 = vmax.f32 %v491_v35, 0.0  ;;  %v546_v48 = vmax.f32 %v492_v36, 0.0  ;;  %v831_v52 = vshll.u32 %v657_v41, 16  ;;  %v964_v53 = vrot.slane %v657_v41, 1  ;;  %v2554_v35 = vld [vmem:[%s3295_s3 + $0x10] sm:$0x3f]  }
  0x6f   : > { %v828_v50 = vrot.slane %v826_v43, 1  ;;  %v547_v57 = vmax.f32 %v493_v46, 0.0  ;;  %v2307_v60 = vunpack.c.h.bf16 %v2315_v38  ;;  %v374_v61 = vunpack.c.l.bf16 %v320_v44 }
  0x70   : > { %v621_v59 = vsel %vm558_vm0, %v545_v47, 0.0  ;;  %v833_v0 = vrot.slane %v831_v52, 1  ;;  %v965_v1 = vsel %vm923_vm2, %v963_v45, %v964_v53  ;;  %v433_v11 = vmul.f32 %v2306_v55, %v2634_v7 }
  0x71   : > { %v829_v63 = vor.u32 %v828_v50, %v824_v42  ;;  %v2945_v8 = vpack.c.bf16 %v546_v48, %v621_v59  ;;  %1000 = vrot.lane.b32.xlu1 %v968_v32, %s2565_s23  ;;  %v623_v9 = vsel %vm569_vm1, %v547_v57, 0.0  ;;  %v434_v12 = vmul.f32 %v2307_v60, %v2634_v7 }
  0x72   : > { %v435_v13 = vmul.f32 %v2634_v7, %v374_v61  ;;  %v661_v19 = vpack.c.bf16 %v623_v9, %v623_v9  ;;  %v494_v7 = vadd.f32 %v2647_v18, %v433_v11  ;;  %v1140_v34 = vsel %vm1138_vm4, %v2552_v15, 0 }
  0x73   : > { %v834_v17 = vsel %vm666_vm3, %v829_v63, %v833_v0  ;;  %v848_v20 = vshrl.u32 %v2945_v8, 16  ;;  %v850_v21 = vshll.u32 %v2945_v8, 16  ;;  %v969_v23 = vrot.slane %v2945_v8, 1  ;;  %2368 = vmatpush3.bf16.msra.mxu1 %v1140_v34 }
  0x74   : > { %885 = vrot.lane.b32.xlu0 %v834_v17, %s2566_s24  ;;  %v495_v24 = vadd.f32 %v2647_v18, %v434_v12  ;;  %v496_v26 = vadd.f32 %v2647_v18, %v435_v13  ;;  %v855_v28 = vshll.u32 %v661_v19, 16  ;;  %v970_v29 = vrot.slane %v661_v19, 1  ;;  %2537 = vmatprep.subr.msk.bf16.mxu1 %vm1138_vm4, %v2553_v16 }
  0x75   : > { %v852_v27 = vrot.slane %v850_v21, 1  ;;  %v548_v30 = vmax.f32 %v494_v7, 0.0  ;;  %v1311_v40 = vsel %vm1138_vm4, %v2553_v16, 0  ;;  %v1510_v17 = vsel %vm1138_vm4, %v2554_v35, 0 }
  0x76   : > { %v549_v32 = vmax.f32 %v495_v24, 0.0  ;;  %v550_v33 = vmax.f32 %v496_v26, 0.0  ;;  %v857_v38 = vrot.slane %v855_v28, 1  ;;  %v971_v18 = vsel %vm923_vm2, %v969_v23, %v970_v29  ;;  %2402 = vmatpush3.bf16.msra.mxu0 %v1311_v40 }
  0x77   : > { %v853_v36 = vor.u32 %v852_v27, %v848_v20  ;;  %1002 = vrot.lane.b32.xlu1 %v971_v18, %s2565_s23  ;;  %v624_v41 = vsel %vm558_vm0, %v548_v30, 0.0  ;;  %2538 = vmatprep.subr.msk.bf16.mxu0 %vm1138_vm4, %v2554_v35 }
  0x78   : > { %998 = vrot.lane.b32.xlu0 %v965_v1, %s2565_s23  ;;  %v626_v42 = vsel %vm569_vm1, %v550_v33, 0.0  ;;  %v2982_v44 = vpack.c.bf16 %v549_v32, %v624_v41 }
  0x79   : > { %v858_v43 = vsel %vm666_vm3, %v853_v36, %v857_v38  ;;  %v663_v45 = vpack.c.bf16 %v626_v42, %v626_v42 }
  0x7a   : > { %v1073_v46 = vshrl.u32 %v2982_v44, 16  ;;  %v1075_v47 = vshll.u32 %v2982_v44, 16  ;;  %v1088_v5 = vrot.slane %v2982_v44, 1  ;;  %v973_v57 = vpop.permute.xlu1 %972  ;;  %v860_v59 = vpop.permute.xlu0 %859 }
  0x7b   : > { %v1080_v48 = vshll.u32 %v663_v45, 16  ;;  %v1089_v6 = vrot.slane %v663_v45, 1  ;;  %v1006_v60 = vsel %vm1004_vm5, 0.0|0.0, %v860_v59 }
  0x7c   : > { %889 = vrot.lane.b32.xlu0 %v858_v43, %s2566_s24  ;;  %v1077_v50 = vrot.slane %v1075_v47, 1  ;;  %v1039_v63 = vsel %vm1037_vm6, %v1006_v60, %v973_v57 }
  0x7d   : > { %v1082_v52 = vrot.slane %v1080_v48, 1  ;;  %v1090_v53 = vsel %vm923_vm2, %v1088_v5, %v1089_v6  ;;  %2403 = vmatprep.mubr.msk.bf16.mxu0 %vm1105_vm7, %v1039_v63 }
  0x7e   : > { %v1078_v55 = vor.u32 %v1077_v50, %v1073_v46  ;;  %1091 = vrot.lane.b32.xlu1 %v1090_v53, %s2565_s23 }
  0x80   : > { %v1083_v61 = vsel %vm666_vm3, %v1078_v55, %v1082_v52 }
  0x81   : > { %1084 = vrot.lane.b32.xlu0 %v1083_v61, %s2566_s24 }
  0x82   : > { %1493 = vrot.lane.b32.xlu1 %v2610_v2, %s2565_s23  ;;  %s265_s23 = scalar_lea.vmem %s3297_s5, %s3300_s22 }
  0x85   : > { %1486 = vrot.lane.b32.xlu0 %v2612_v4, %s2566_s24 }
  0x96   : > { %v864_v0 = vpop.permute.xlu1 %863 }
  0x97   : > { %v862_v1 = vpop.permute.xlu0 %861  ;;  %v1010_v9 = vsel %vm1004_vm5, %v2673_v51, %v864_v0 }
  0x98   : > { %v1008_v12 = vsel %vm1004_vm5, %v2677_v54, %v862_v1 }
  0x9a   : > { %v977_v11 = vpop.permute.xlu1 %976 }
  0x9b   : > { %v1043_v13 = vsel %vm1037_vm6, %v1010_v9, %v977_v11  ;;  %v975_v15 = vpop.permute.xlu0 %974 }
  0x9c   : > { %v1041_v16 = vsel %vm1037_vm6, %v1008_v12, %v975_v15 }
  0x9d   : > { %2369 = vmatprep.mubr.msk.bf16.mxu1 %vm1105_vm7, %v1041_v16  ;;  %2404 = vmatmul.mubr.msk.bf16.vlgmr.msra.gmra.mrb[0].mxu0 %vm1105_vm7, %v1041_v16 }
  0x9e   : > { %2370 = vmatmul.mubr.msk.bf16.vlgmr.msra.gmra.mrb[0].mxu1 %vm1105_vm7, %v1043_v13  ;;  %2407 = vmatprep.mubr.msk.bf16.mxu0 %vm1105_vm7, %v1043_v13  ;;  %v868_v2 = vpop.permute.xlu1 %867 }
  0x9f   : > { %2470 = vmatpush3.bf16.msra.mxu1 %v1311_v40  ;;  %2436 = vmatpush3.bf16.msra.mxu0 %v1510_v17  ;;  %v1014_v54 = vsel %vm1004_vm5, %v2693_v22, %v868_v2 }
  0xa2   : > { %v981_v51 = vpop.permute.xlu1 %980 }
  0xa3   : > { %v1047_v20 = vsel %vm1037_vm6, %v1014_v54, %v981_v51 }
  0xa7   : > { %v866_v4 = vpop.permute.xlu0 %865 }
  0xa8   : > { %v1012_v19 = vsel %vm1004_vm5, %v2724_v3, %v866_v4 }
  0xab   : > { %v979_v21 = vpop.permute.xlu0 %978  ;;  %v872_v7 = vpop.permute.xlu1 %871 }
  0xac   : > { %v1045_v23 = vsel %vm1037_vm6, %v1012_v19, %v979_v21  ;;  %v1018_v22 = vsel %vm1004_vm5, %v2735_v25, %v872_v7 }
  0xad   : > { %2373 = vmatprep.mubr.msk.bf16.mxu1 %vm1105_vm7, %v1045_v23  ;;  %2408 = vmatmul.mubr.msk.bf16.gmra.mrb[4].mxu0 %vm1105_vm7, %v1045_v23 }
  0xae   : > { %2374 = vmatmul.mubr.msk.bf16.gmra.mrb[4].mxu1 %vm1105_vm7, %v1047_v20  ;;  %2411 = vmatprep.mubr.msk.bf16.mxu0 %vm1105_vm7, %v1047_v20 }
  0xaf   : > { %v985_v26 = vpop.permute.xlu1 %984 }
  0xb0   : > { %v1051_v27 = vsel %vm1037_vm6, %v1018_v22, %v985_v26 }
  0xb1   : > { %v870_v24 = vpop.permute.xlu0 %869 }
  0xb2   : > { %v1016_v3 = vsel %vm1004_vm5, %v2759_v58, %v870_v24 }
  0xb5   : > { %v983_v28 = vpop.permute.xlu0 %982 }
  0xb6   : > { %v1049_v29 = vsel %vm1037_vm6, %v1016_v3, %v983_v28 }
  0xb7   : > { %2377 = vmatprep.mubr.msk.bf16.mxu1 %vm1105_vm7, %v1049_v29  ;;  %2412 = vmatmul.mubr.msk.bf16.gmra.mrb[8].mxu0 %vm1105_vm7, %v1049_v29 }
  0xb8   : > { %2378 = vmatmul.mubr.msk.bf16.gmra.mrb[8].mxu1 %vm1105_vm7, %v1051_v27  ;;  %2415 = vmatprep.mubr.msk.bf16.mxu0 %vm1105_vm7, %v1051_v27 }
  0xb9   : > { %v876_v30 = vpop.permute.xlu1 %875 }
  0xba   : > { %v1022_v25 = vsel %vm1004_vm5, %v2786_v39, %v876_v30 }
  0xbd   : > { %v989_v33 = vpop.permute.xlu1 %988 }
  0xbe   : > { %v874_v32 = vpop.permute.xlu0 %873  ;;  %v1055_v34 = vsel %vm1037_vm6, %v1022_v25, %v989_v33 }
  0xbf   : > { %v1020_v58 = vsel %vm1004_vm5, %v2802_v62, %v874_v32 }
  0xc2   : > { %v987_v35 = vpop.permute.xlu0 %986 }
  0xc3   : > { %v1053_v36 = vsel %vm1037_vm6, %v1020_v58, %v987_v35 }
  0xc4   : > { %2381 = vmatprep.mubr.msk.bf16.mxu1 %vm1105_vm7, %v1053_v36  ;;  %2416 = vmatmul.mubr.msk.bf16.gmra.mrb[12].mxu0 %vm1105_vm7, %v1053_v36 }
  0xc5   : > { %2382 = vmatmul.mubr.msk.bf16.gmra.mrb[12].mxu1 %vm1105_vm7, %v1055_v34  ;;  %2437 = vmatprep.mubr.msk.bf16.mxu0 %vm1105_vm7, %v1043_v13  ;;  %v880_v38 = vpop.permute.xlu1 %879 }
  0xc6   : > { %v1026_v39 = vsel %vm1004_vm5, %v2823_v37, %v880_v38 }
  0xc9   : > { %v993_v40 = vpop.permute.xlu1 %992 }
  0xca   : > { %v1059_v41 = vsel %vm1037_vm6, %v1026_v39, %v993_v40 }
  0xcc   : > { %v878_v18 = vpop.permute.xlu0 %877  ;;  %2438 = vmatmul.mubr.msk.bf16.vlgmr.msra.gmra.mrb[0].mxu0 %vm1105_vm7, %v1045_v23 }
  0xcd   : > { %2441 = vmatprep.mubr.msk.bf16.mxu0 %vm1105_vm7, %v1047_v20  ;;  %v1024_v62 = vsel %vm1004_vm5, %v2842_v10, %v878_v18 }
  0xd0   : > { %v991_v42 = vpop.permute.xlu0 %990 }
  0xd1   : > { %v1057_v43 = vsel %vm1037_vm6, %v1024_v62, %v991_v42 }
  0xd2   : > { %2385 = vmatprep.mubr.msk.bf16.mxu1 %vm1105_vm7, %v1057_v43 }
  0xd3   : > { %2386 = vmatmul.mubr.msk.bf16.gmra.mrb[16].mxu1 %vm1105_vm7, %v1059_v41  ;;  %v884_v45 = vpop.permute.xlu1 %883 }
  0xd4   : > { %2442 = vmatmul.mubr.msk.bf16.gmra.mrb[4].mxu0 %vm1105_vm7, %v1049_v29  ;;  %v1030_v37 = vsel %vm1004_vm5, %v2870_v49, %v884_v45 }
  0xd5   : > { %2445 = vmatprep.mubr.msk.bf16.mxu0 %vm1105_vm7, %v1051_v27 }
  0xd7   : > { %v997_v47 = vpop.permute.xlu1 %996 }
  0xd8   : > { %v882_v46 = vpop.permute.xlu0 %881  ;;  %v1063_v48 = vsel %vm1037_vm6, %v1030_v37, %v997_v47 }
  0xd9   : > { %v1028_v10 = vsel %vm1004_vm5, %v2881_v14, %v882_v46 }
  0xdc   : > { %v995_v5 = vpop.permute.xlu0 %994  ;;  %2446 = vmatmul.mubr.msk.bf16.gmra.mrb[8].mxu0 %vm1105_vm7, %v1053_v36 }
  0xdd   : > { %v1061_v6 = vsel %vm1037_vm6, %v1028_v10, %v995_v5  ;;  %2449 = vmatprep.mubr.msk.bf16.mxu0 %vm1105_vm7, %v1055_v34 }
  0xde   : > { %2389 = vmatprep.mubr.msk.bf16.mxu1 %vm1105_vm7, %v1061_v6 }
  0xdf   : > { %2390 = vmatmul.mubr.msk.bf16.gmra.mrb[20].mxu1 %vm1105_vm7, %v1063_v48  ;;  %v888_v50 = vpop.permute.xlu1 %887 }
  0xe0   : > { %v1034_v52 = vsel %vm1004_vm5, %v2906_v56, %v888_v50 }
  0xe3   : > { %v1001_v14 = vpop.permute.xlu1 %1000 }
  0xe4   : > { %2450 = vmatmul.mubr.msk.bf16.gmra.mrb[12].mxu0 %vm1105_vm7, %v1057_v43  ;;  %v1067_v55 = vsel %vm1037_vm6, %v1034_v52, %v1001_v14 }
  0xe5   : > { %2453 = vmatprep.mubr.msk.bf16.mxu0 %vm1105_vm7, %v1059_v41 }
  0xe6   : > { %v886_v49 = vpop.permute.xlu0 %885 }
  0xe7   : > { %v1032_v53 = vsel %vm1004_vm5, %v2926_v31, %v886_v49 }
  0xe9   : > { %v1003_v60 = vpop.permute.xlu1 %1002 }
  0xea   : > { %v999_v57 = vpop.permute.xlu0 %998 }
  0xeb   : > { %v1065_v59 = vsel %vm1037_vm6, %v1032_v53, %v999_v57 }
  0xec   : > { %2393 = vmatprep.mubr.msk.bf16.mxu1 %vm1105_vm7, %v1065_v59  ;;  %2454 = vmatmul.mubr.msk.bf16.gmra.mrb[16].mxu0 %vm1105_vm7, %v1061_v6 }
  0xed   : > { %2394 = vmatmul.mubr.msk.bf16.gmra.mrb[24].mxu1 %vm1105_vm7, %v1067_v55  ;;  %2457 = vmatprep.mubr.msk.bf16.mxu0 %vm1105_vm7, %v1063_v48 }
  0xee   : > { %v890_v61 = vpop.permute.xlu0 %889 }
  0xef   : > { %v1036_v56 = vsel %vm1004_vm5, %v2945_v8, %v890_v61 }
  0xf0   : > { %v1069_v31 = vsel %vm1037_vm6, %v1036_v56, %v1003_v60  ;;  %v1092_v63 = vpop.permute.xlu1 %1091 }
  0xf1   : > { %2397 = vmatprep.mubr.msk.bf16.mxu1 %vm1105_vm7, %v1069_v31 }
  0xf3   : > { %v1085_v0 = vpop.permute.xlu0 %1084 }
  0xf4   : > { %v1094_v1 = vsel %vm1004_vm5, %v2982_v44, %v1085_v0  ;;  %2458 = vmatmul.mubr.msk.bf16.gmra.mrb[20].mxu0 %vm1105_vm7, %v1065_v59  ;;  %v1494_v44 = vpop.permute.xlu1 %1493 }
  0xf5   : > { %v1096_v9 = vsel %vm1037_vm6, %v1094_v1, %v1092_v63  ;;  %2461 = vmatprep.mubr.msk.bf16.mxu0 %vm1105_vm7, %v1067_v55 }
  0xf6   : > { %2398 = vmatmul.mubr.msk.bf16.gmra.mrb[28].mxu1 %vm1105_vm7, %v1096_v9 }
  0xf7   : > { %2419 = vmatprep.mubr.msk.bf16.mxu1 %vm1105_vm7, %v1055_v34  ;;  %v1487_v8 = vpop.permute.xlu0 %1486 }
  0xf8   : > { %v1496_v11 = vsel %vm1004_vm5, 0.0|0.0, %v1487_v8 }
  0xf9   : > { %v1498_v12 = vsel %vm1037_vm6, %v1496_v11, %v1494_v44 }
  0xfc   : > { %2462 = vmatmul.mubr.msk.bf16.gmra.mrb[24].mxu0 %vm1105_vm7, %v1069_v31 }
  0xfd   : > { %2465 = vmatprep.mubr.msk.bf16.mxu0 %vm1105_vm7, %v1096_v9 }
  0xfe   : > { %2420 = vmatmul.mubr.msk.bf16.vlgmr.msra.gmra.mrb[16].mxu1 %vm1105_vm7, %v1057_v43 }
  0xff   : > { %2423 = vmatprep.mubr.msk.bf16.mxu1 %vm1105_vm7, %v1059_v41 }
 0x104   : > { %2466 = vmatmul.mubr.msk.bf16.gmra.mrb[28].mxu0 %vm1105_vm7, %v1498_v12 }
 0x106   : > { %2424 = vmatmul.mubr.msk.bf16.gmra.mrb[20].mxu1 %vm1105_vm7, %v1061_v6 }
 0x107   : > { %2427 = vmatprep.mubr.msk.bf16.mxu1 %vm1105_vm7, %v1063_v48 }
 0x10e   : > { %2428 = vmatmul.mubr.msk.bf16.gmra.mrb[24].mxu1 %vm1105_vm7, %v1065_v59 }
 0x10f   : > { %2431 = vmatprep.mubr.msk.bf16.mxu1 %vm1105_vm7, %v1067_v55 }
 0x116   : > { %2432 = vmatmul.mubr.msk.bf16.gmra.mrb[28].mxu1 %vm1105_vm7, %v1069_v31 }
 0x171   : > { %v2371_v13 = vpop.f32.mrb[0].mxu1 }
 0x172   : > { %v1176_v15 = vpop.f32.mrb[1].mxu1 }
 0x173   : > { %v2372_v16 = vpop.f32.mrb[2].mxu1 }
 0x174   : > { %v1179_v17 = vpop.f32.mrb[3].mxu1 }
 0x181   : > { %v2375_v2 = vpop.f32.mrb[4].mxu1 }
 0x182   : > { %v1192_v4 = vpop.f32.mrb[5].mxu1 }
 0x183   : > { %v2376_v51 = vpop.f32.mrb[6].mxu1 }
 0x184   : > { %v1195_v54 = vpop.f32.mrb[7].mxu1 }
 0x18b   : > { %v3099_v19 = vpop.f32.mrb[8].mxu1 }
 0x18c   : > { %v3101_v20 = vpop.f32.mrb[9].mxu1 }
 0x18d   : > { %v3103_v21 = vpop.f32.mrb[10].mxu1 }
 0x18e   : > { %v3105_v23 = vpop.f32.mrb[11].mxu1 }
 0x198   : > { %v3107_v7 = vpop.f32.mrb[12].mxu1 }
 0x199   : > { %v3109_v24 = vpop.f32.mrb[13].mxu1 }
 0x19a   : > { %v3111_v26 = vpop.f32.mrb[14].mxu1 }
 0x19b   : > { %v3113_v22 = vpop.f32.mrb[15].mxu1 }
 0x19f   : > { %v2439_v3 = vpop.f32.mrb[0].mxu0 }
 0x1a0   : > { %v2471_v27 = vadd.f32 %v2439_v3, %v2371_v13  ;;  %v1546_v28 = vpop.f32.mrb[1].mxu0 }
 0x1a1   : > { %v2472_v29 = vadd.f32 %v1546_v28, %v1176_v15  ;;  %v2440_v30 = vpop.f32.mrb[2].mxu0 }
 0x1a2   : > { %v2246_v32 = vpack.c.bf16 %v2471_v27, %v2471_v27  ;;  %v2473_v33 = vadd.f32 %v2440_v30, %v2372_v16  ;;  %v1549_v25 = vpop.f32.mrb[3].mxu0  ;;  %v1939_v36 = vmul.f32 %v2471_v27, %v2471_v27  ;;  %v1869_v43 = vsel %vm1037_vm6, %v2471_v27, 0.0 }
 0x1a3   : > { %v2244_v58 = vpack.c.bf16 %v2472_v29, %v2472_v29  ;;  %v1937_v34 = vmul.f32 %v2472_v29, %v2472_v29  ;;  %v2474_v35 = vadd.f32 %v1549_v25, %v1179_v17  ;;  %v1866_v18 = vsel %vm1037_vm6, %v2472_v29, 0.0 }
 0x1a4   : > { %1836 = vst.msk [vmem:[%s3119_s18 + $0x8] sm:$0xf] %vm1833_vm8, %v2246_v32  ;;  %v2247_v38 = vpack.c.bf16 %v2473_v33, %v2473_v33  ;;  %v1940_v41 = vmul.f32 %v2473_v33, %v2473_v33  ;;  %v1972_v6 = vsel %vm1037_vm6, %v1939_v36, 0.0  ;;  %v1871_v14 = vsel %vm1037_vm6, %v2473_v33, 0.0 }
 0x1a5   : > { %1834 = vst.msk [vmem:[%s3119_s18] sm:$0xf] %vm1833_vm8, %v2244_v58  ;;  %v2245_v40 = vpack.c.bf16 %v2474_v35, %v2474_v35  ;;  %v1867_v39 = vsel %vm1037_vm6, %v2474_v35, 0.0  ;;  %v1938_v62 = vmul.f32 %v2474_v35, %v2474_v35  ;;  %v1969_v45 = vsel %vm1037_vm6, %v1937_v34, 0.0 }
 0x1a6   : > { %1837 = vst.msk [vmem:[%s3119_s18 + $0xc] sm:$0xf] %vm1833_vm8, %v2247_v38  ;;  %v1868_v42 = vadd.f32 %v1867_v39, %v1866_v18  ;;  %v1974_v52 = vsel %vm1037_vm6, %v1940_v41, 0.0 }
 0x1a7   : > { %1835 = vst.msk [vmem:[%s3119_s18 + $0x4] sm:$0xf] %vm1833_vm8, %v2245_v40  ;;  %v1970_v46 = vsel %vm1037_vm6, %v1938_v62, 0.0  ;;  %v2443_v47 = vpop.f32.mrb[4].mxu0 }
 0x1a8   : > { %v1870_v37 = vadd.f32 %v1869_v43, %v1868_v42  ;;  %v1971_v10 = vadd.f32 %v1970_v46, %v1969_v45  ;;  %v2475_v48 = vadd.f32 %v2443_v47, %v2375_v2  ;;  %v1562_v5 = vpop.f32.mrb[5].mxu0 }
 0x1a9   : > { %v2476_v50 = vadd.f32 %v1562_v5, %v1192_v4  ;;  %v2444_v49 = vpop.f32.mrb[6].mxu0 }
 0x1aa   : > { %v1973_v53 = vadd.f32 %v1972_v6, %v1971_v10  ;;  %v2250_v55 = vpack.c.bf16 %v2475_v48, %v2475_v48  ;;  %v1565_v57 = vpop.f32.mrb[7].mxu0  ;;  %v1872_v60 = vadd.f32 %v1871_v14, %v1870_v37  ;;  %v2477_v63 = vadd.f32 %v2444_v49, %v2376_v51 }
 0x1ab   : > { %v2248_v59 = vpack.c.bf16 %v2476_v50, %v2476_v50  ;;  %v1873_v61 = vsel %vm1037_vm6, %v2476_v50, 0.0  ;;  %v1941_v56 = vmul.f32 %v2476_v50, %v2476_v50  ;;  %v2478_v0 = vadd.f32 %v1565_v57, %v1195_v54 }
 0x1ac   : > { %1840 = vst.msk [vmem:[%s3119_s18 + $0x18] sm:$0xf] %vm1833_vm8, %v2250_v55  ;;  %v1975_v31 = vadd.f32 %v1974_v52, %v1973_v53  ;;  %v1874_v1 = vadd.f32 %v1873_v61, %v1872_v60  ;;  %v1943_v8 = vmul.f32 %v2475_v48, %v2475_v48  ;;  %v2251_v44 = vpack.c.bf16 %v2477_v63, %v2477_v63 }
 0x1ad   : > { %1838 = vst.msk [vmem:[%s3119_s18 + $0x10] sm:$0xf] %vm1833_vm8, %v2248_v59  ;;  %v1976_v9 = vsel %vm1037_vm6, %v1941_v56, 0.0  ;;  %v2249_v12 = vpack.c.bf16 %v2478_v0, %v2478_v0  ;;  %v1875_v13 = vsel %vm1037_vm6, %v2478_v0, 0.0  ;;  %v1942_v15 = vmul.f32 %v2478_v0, %v2478_v0 }
 0x1ae   : > { %v1977_v11 = vadd.f32 %v1976_v9, %v1975_v31  ;;  %1841 = vst.msk [vmem:[%s3119_s18 + $0x1c] sm:$0xf] %vm1833_vm8, %v2251_v44  ;;  %v1876_v17 = vadd.f32 %v1875_v13, %v1874_v1  ;;  %v1877_v51 = vsel %vm1037_vm6, %v2475_v48, 0.0  ;;  %v1944_v54 = vmul.f32 %v2477_v63, %v2477_v63 }
 0x1af   : > { %v2447_v16 = vpop.f32.mrb[8].mxu0  ;;  %1839 = vst.msk [vmem:[%s3119_s18 + $0x14] sm:$0xf] %vm1833_vm8, %v2249_v12  ;;  %v1978_v3 = vsel %vm1037_vm6, %v1942_v15, 0.0  ;;  %v1980_v29 = vsel %vm1037_vm6, %v1943_v8, 0.0 }
 0x1b0   : > { %v2479_v2 = vadd.f32 %v2447_v16, %v3099_v19  ;;  %v1578_v4 = vpop.f32.mrb[9].mxu0  ;;  %v1878_v30 = vadd.f32 %v1877_v51, %v1876_v17  ;;  %v1979_v32 = vadd.f32 %v1978_v3, %v1977_v11  ;;  %v1879_v19 = vsel %vm1037_vm6, %v2477_v63, 0.0 }
 0x1b1   : > { %v2480_v27 = vadd.f32 %v1578_v4, %v3101_v20  ;;  %v2448_v28 = vpop.f32.mrb[10].mxu0  ;;  %v1982_v40 = vsel %vm1037_vm6, %v1944_v54, 0.0 }
 0x1b2   : > { %v2254_v33 = vpack.c.bf16 %v2479_v2, %v2479_v2  ;;  %v1581_v25 = vpop.f32.mrb[11].mxu0  ;;  %v1981_v36 = vadd.f32 %v1980_v29, %v1979_v32  ;;  %v1880_v38 = vadd.f32 %v1879_v19, %v1878_v30  ;;  %v2481_v20 = vadd.f32 %v2448_v28, %v3103_v21 }
 0x1b3   : > { %v2252_v58 = vpack.c.bf16 %v2480_v27, %v2480_v27  ;;  %v1881_v34 = vsel %vm1037_vm6, %v2480_v27, 0.0  ;;  %v1945_v35 = vmul.f32 %v2480_v27, %v2480_v27  ;;  %v2482_v18 = vadd.f32 %v1581_v25, %v3105_v23 }
 0x1b4   : > { %1844 = vst.msk [vmem:[%s3119_s18 + $0x28] sm:$0xf] %vm1833_vm8, %v2254_v33  ;;  %v1947_v62 = vmul.f32 %v2479_v2, %v2479_v2  ;;  %v1882_v41 = vadd.f32 %v1881_v34, %v1880_v38  ;;  %v1983_v42 = vadd.f32 %v1982_v40, %v1981_v36  ;;  %v2255_v43 = vpack.c.bf16 %v2481_v20, %v2481_v20 }
 0x1b5   : > { %1842 = vst.msk [vmem:[%s3119_s18 + $0x20] sm:$0xf] %vm1833_vm8, %v2252_v58  ;;  %v1984_v39 = vsel %vm1037_vm6, %v1945_v35, 0.0  ;;  %v2253_v45 = vpack.c.bf16 %v2482_v18, %v2482_v18  ;;  %v1883_v46 = vsel %vm1037_vm6, %v2482_v18, 0.0  ;;  %v1946_v47 = vmul.f32 %v2482_v18, %v2482_v18 }
 0x1b6   : > { %v1985_v10 = vadd.f32 %v1984_v39, %v1983_v42  ;;  %1845 = vst.msk [vmem:[%s3119_s18 + $0x2c] sm:$0xf] %vm1833_vm8, %v2255_v43  ;;  %v1884_v21 = vadd.f32 %v1883_v46, %v1882_v41  ;;  %v1885_v5 = vsel %vm1037_vm6, %v2479_v2, 0.0  ;;  %v1948_v6 = vmul.f32 %v2481_v20, %v2481_v20 }
 0x1b7   : > { %v2451_v37 = vpop.f32.mrb[12].mxu0  ;;  %1843 = vst.msk [vmem:[%s3119_s18 + $0x24] sm:$0xf] %vm1833_vm8, %v2253_v45  ;;  %v1986_v50 = vsel %vm1037_vm6, %v1946_v47, 0.0  ;;  %v1988_v52 = vsel %vm1037_vm6, %v1947_v62, 0.0 }
 0x1b8   : > { %v2483_v23 = vadd.f32 %v2451_v37, %v3107_v7  ;;  %v1594_v48 = vpop.f32.mrb[13].mxu0  ;;  %v1886_v53 = vadd.f32 %v1885_v5, %v1884_v21  ;;  %v1987_v55 = vadd.f32 %v1986_v50, %v1985_v10  ;;  %v1887_v7 = vsel %vm1037_vm6, %v2481_v20, 0.0 }
 0x1b9   : > { %v2484_v49 = vadd.f32 %v1594_v48, %v3109_v24  ;;  %v2452_v14 = vpop.f32.mrb[14].mxu0  ;;  %v1990_v1 = vsel %vm1037_vm6, %v1948_v6, 0.0 }
 0x1ba   : > { %v2258_v57 = vpack.c.bf16 %v2483_v23, %v2483_v23  ;;  %v1597_v59 = vpop.f32.mrb[15].mxu0  ;;  %v1989_v31 = vadd.f32 %v1988_v52, %v1987_v55  ;;  %v1888_v63 = vadd.f32 %v1887_v7, %v1886_v53  ;;  %v2485_v24 = vadd.f32 %v2452_v14, %v3111_v26 }
 0x1bb   : > { %v2256_v60 = vpack.c.bf16 %v2484_v49, %v2484_v49  ;;  %v1889_v61 = vsel %vm1037_vm6, %v2484_v49, 0.0  ;;  %v1949_v56 = vmul.f32 %v2484_v49, %v2484_v49  ;;  %v2486_v0 = vadd.f32 %v1597_v59, %v3113_v22 }
 0x1bc   : > { %1848 = vst.msk [vmem:[%s3119_s18 + $0x38] sm:$0xf] %vm1833_vm8, %v2258_v57  ;;  %v1890_v8 = vadd.f32 %v1889_v61, %v1888_v63  ;;  %v1991_v11 = vadd.f32 %v1990_v1, %v1989_v31  ;;  %v2259_v44 = vpack.c.bf16 %v2485_v24, %v2485_v24  ;;  %v1951_v12 = vmul.f32 %v2483_v23, %v2483_v23 }
 0x1bd   : > { %1846 = vst.msk [vmem:[%s3119_s18 + $0x30] sm:$0xf] %vm1833_vm8, %v2256_v60  ;;  %v1992_v9 = vsel %vm1037_vm6, %v1949_v56, 0.0  ;;  %v2257_v13 = vpack.c.bf16 %v2486_v0, %v2486_v0  ;;  %v1891_v15 = vsel %vm1037_vm6, %v2486_v0, 0.0  ;;  %v1950_v16 = vmul.f32 %v2486_v0, %v2486_v0 }
 0x1be   : > { %v1993_v2 = vadd.f32 %v1992_v9, %v1991_v11  ;;  %1849 = vst.msk [vmem:[%s3119_s18 + $0x3c] sm:$0xf] %vm1833_vm8, %v2259_v44  ;;  %v1892_v26 = vadd.f32 %v1891_v15, %v1890_v8  ;;  %v1893_v4 = vsel %vm1037_vm6, %v2483_v23, 0.0  ;;  %v1952_v51 = vmul.f32 %v2485_v24, %v2485_v24 }
 0x1bf   : > { %v2455_v17 = vpop.f32.mrb[16].mxu0  ;;  %1847 = vst.msk [vmem:[%s3119_s18 + $0x34] sm:$0xf] %vm1833_vm8, %v2257_v13  ;;  %v1994_v54 = vsel %vm1037_vm6, %v1950_v16, 0.0  ;;  %v1996_v30 = vsel %vm1037_vm6, %v1951_v12, 0.0  ;;  %v1895_v32 = vsel %vm1037_vm6, %v2485_v24, 0.0 }
 0x1c0   : > { %v1610_v22 = vpop.f32.mrb[17].mxu0  ;;  %v1894_v27 = vadd.f32 %v1893_v4, %v1892_v26  ;;  %v1995_v28 = vadd.f32 %v1994_v54, %v1993_v2  ;;  %v1998_v19 = vsel %vm1037_vm6, %v1952_v51, 0.0 }
 0x1c1   : > { %v2456_v3 = vpop.f32.mrb[18].mxu0 }
 0x1c2   : > { %v1613_v29 = vpop.f32.mrb[19].mxu0  ;;  %v1997_v33 = vadd.f32 %v1996_v30, %v1995_v28  ;;  %v1896_v25 = vadd.f32 %v1895_v32, %v1894_v27 }
 0x1c4   : > { %v1999_v58 = vadd.f32 %v1998_v19, %v1997_v33 }
 0x1c7   : > { %v2459_v34 = vpop.f32.mrb[20].mxu0 }
 0x1c8   : > { %v1626_v35 = vpop.f32.mrb[21].mxu0 }
 0x1c9   : > { %v2460_v36 = vpop.f32.mrb[22].mxu0 }
 0x1ca   : > { %v1629_v38 = vpop.f32.mrb[23].mxu0 }
 0x1cf   : > { %v3193_v20 = vpop.f32.mrb[24].mxu0 }
 0x1d0   : > { %v3195_v18 = vpop.f32.mrb[25].mxu0 }
 0x1d1   : > { %v2421_v40 = vpop.f32.mrb[16].mxu1  ;;  %v3197_v39 = vpop.f32.mrb[26].mxu0 }
 0x1d2   : > { %v2487_v62 = vadd.f32 %v2455_v17, %v2421_v40  ;;  %v1411_v41 = vpop.f32.mrb[17].mxu1  ;;  %v3199_v42 = vpop.f32.mrb[27].mxu0 }
 0x1d3   : > { %v2488_v43 = vadd.f32 %v1610_v22, %v1411_v41  ;;  %v2422_v45 = vpop.f32.mrb[18].mxu1 }
 0x1d4   : > { %v2262_v46 = vpack.c.bf16 %v2487_v62, %v2487_v62  ;;  %v2489_v47 = vadd.f32 %v2456_v3, %v2422_v45  ;;  %v1414_v37 = vpop.f32.mrb[19].mxu1  ;;  %v1955_v53 = vmul.f32 %v2487_v62, %v2487_v62  ;;  %v1901_v60 = vsel %vm1037_vm6, %v2487_v62, 0.0 }
 0x1d5   : > { %v2260_v10 = vpack.c.bf16 %v2488_v43, %v2488_v43  ;;  %v1897_v21 = vsel %vm1037_vm6, %v2488_v43, 0.0  ;;  %v1953_v23 = vmul.f32 %v2488_v43, %v2488_v43  ;;  %v2490_v48 = vadd.f32 %v1613_v29, %v1414_v37 }
 0x1d6   : > { %1852 = vst.msk [vmem:[%s3119_s18 + $0x48] sm:$0xf] %vm1833_vm8, %v2262_v46  ;;  %v1898_v5 = vadd.f32 %v1897_v21, %v1896_v25  ;;  %v2263_v6 = vpack.c.bf16 %v2489_v47, %v2489_v47  ;;  %v1956_v31 = vmul.f32 %v2489_v47, %v2489_v47  ;;  %v1903_v8 = vsel %vm1037_vm6, %v2489_v47, 0.0 }
 0x1d7   : > { %1850 = vst.msk [vmem:[%s3119_s18 + $0x40] sm:$0xf] %vm1833_vm8, %v2260_v10  ;;  %v2000_v50 = vsel %vm1037_vm6, %v1953_v23, 0.0  ;;  %v2261_v49 = vpack.c.bf16 %v2490_v48, %v2490_v48  ;;  %v1899_v14 = vsel %vm1037_vm6, %v2490_v48, 0.0  ;;  %v3208_v52 = vpop.f32.mrb[28].mxu0  ;;  %v1954_v59 = vmul.f32 %v2490_v48, %v2490_v48 }
 0x1d8   : > { %v2001_v55 = vadd.f32 %v2000_v50, %v1999_v58  ;;  %1853 = vst.msk [vmem:[%s3119_s18 + $0x4c] sm:$0xf] %vm1833_vm8, %v2263_v6  ;;  %v1900_v57 = vadd.f32 %v1899_v14, %v1898_v5  ;;  %v3212_v7 = vpop.f32.mrb[29].mxu0  ;;  %v2004_v13 = vsel %vm1037_vm6, %v1955_v53, 0.0  ;;  %v2006_v51 = vsel %vm1037_vm6, %v1956_v31, 0.0 }
 0x1d9   : > { %1851 = vst.msk [vmem:[%s3119_s18 + $0x44] sm:$0xf] %vm1833_vm8, %v2261_v49  ;;  %v2425_v61 = vpop.f32.mrb[20].mxu1  ;;  %v3217_v56 = vpop.f32.mrb[30].mxu0  ;;  %v2002_v24 = vsel %vm1037_vm6, %v1954_v59, 0.0 }
 0x1da   : > { %v1902_v63 = vadd.f32 %v1901_v60, %v1900_v57  ;;  %v2491_v0 = vadd.f32 %v2459_v34, %v2425_v61  ;;  %v1427_v1 = vpop.f32.mrb[21].mxu1  ;;  %v3220_v9 = vpop.f32.mrb[31].mxu0  ;;  %v2003_v11 = vadd.f32 %v2002_v24, %v2001_v55 }
 0x1db   : > { %v2492_v44 = vadd.f32 %v1626_v35, %v1427_v1  ;;  %v2426_v12 = vpop.f32.mrb[22].mxu1 }
 0x1dc   : > { %v2266_v15 = vpack.c.bf16 %v2491_v0, %v2491_v0  ;;  %v1904_v16 = vadd.f32 %v1903_v8, %v1902_v63  ;;  %v1430_v17 = vpop.f32.mrb[23].mxu1  ;;  %v2005_v2 = vadd.f32 %v2004_v13, %v2003_v11  ;;  %v2493_v3 = vadd.f32 %v2460_v36, %v2426_v12 }
 0x1dd   : > { %v2264_v26 = vpack.c.bf16 %v2492_v44, %v2492_v44  ;;  %v1905_v22 = vsel %vm1037_vm6, %v2492_v44, 0.0  ;;  %v1957_v4 = vmul.f32 %v2492_v44, %v2492_v44  ;;  %v2494_v27 = vadd.f32 %v1629_v38, %v1430_v17 }
 0x1de   : > { %1856 = vst.msk [vmem:[%s3119_s18 + $0x58] sm:$0xf] %vm1833_vm8, %v2266_v15  ;;  %v1906_v54 = vadd.f32 %v1905_v22, %v1904_v16  ;;  %v2007_v28 = vadd.f32 %v2006_v51, %v2005_v2  ;;  %v1959_v30 = vmul.f32 %v2491_v0, %v2491_v0  ;;  %v2267_v32 = vpack.c.bf16 %v2493_v3, %v2493_v3 }
 0x1df   : > { %1854 = vst.msk [vmem:[%s3119_s18 + $0x50] sm:$0xf] %vm1833_vm8, %v2264_v26  ;;  %v2008_v29 = vsel %vm1037_vm6, %v1957_v4, 0.0  ;;  %v2265_v33 = vpack.c.bf16 %v2494_v27, %v2494_v27  ;;  %v1907_v19 = vsel %vm1037_vm6, %v2494_v27, 0.0  ;;  %v1958_v58 = vmul.f32 %v2494_v27, %v2494_v27 }
 0x1e0   : > { %v2009_v25 = vadd.f32 %v2008_v29, %v2007_v28  ;;  %1857 = vst.msk [vmem:[%s3119_s18 + $0x5c] sm:$0xf] %vm1833_vm8, %v2267_v32  ;;  %v1908_v35 = vadd.f32 %v1907_v19, %v1906_v54  ;;  %v1909_v40 = vsel %vm1037_vm6, %v2491_v0, 0.0  ;;  %v1960_v62 = vmul.f32 %v2493_v3, %v2493_v3 }
 0x1e1   : > { %v2429_v34 = vpop.f32.mrb[24].mxu1  ;;  %1855 = vst.msk [vmem:[%s3119_s18 + $0x54] sm:$0xf] %vm1833_vm8, %v2265_v33  ;;  %v2010_v41 = vsel %vm1037_vm6, %v1958_v58, 0.0  ;;  %v2012_v46 = vsel %vm1037_vm6, %v1959_v30, 0.0  ;;  %v1911_v23 = vsel %vm1037_vm6, %v2493_v3, 0.0 }
 0x1e2   : > { %v2495_v36 = vadd.f32 %v3193_v20, %v2429_v34  ;;  %v1443_v38 = vpop.f32.mrb[25].mxu1  ;;  %v1910_v47 = vadd.f32 %v1909_v40, %v1908_v35  ;;  %v2011_v37 = vadd.f32 %v2010_v41, %v2009_v25  ;;  %v2014_v14 = vsel %vm1037_vm6, %v1960_v62, 0.0 }
 0x1e3   : > { %v2496_v43 = vadd.f32 %v3195_v18, %v1443_v38  ;;  %v2430_v45 = vpop.f32.mrb[26].mxu1 }
 0x1e4   : > { %v2270_v10 = vpack.c.bf16 %v2495_v36, %v2495_v36  ;;  %v1446_v21 = vpop.f32.mrb[27].mxu1  ;;  %v2013_v6 = vadd.f32 %v2012_v46, %v2011_v37  ;;  %v1912_v50 = vadd.f32 %v1911_v23, %v1910_v47  ;;  %v2497_v18 = vadd.f32 %v3197_v39, %v2430_v45 }
 0x1e5   : > { %v2268_v20 = vpack.c.bf16 %v2496_v43, %v2496_v43  ;;  %v1913_v48 = vsel %vm1037_vm6, %v2496_v43, 0.0  ;;  %v1961_v5 = vmul.f32 %v2496_v43, %v2496_v43  ;;  %v2498_v49 = vadd.f32 %v3199_v42, %v1446_v21 }
 0x1e6   : > { %1860 = vst.msk [vmem:[%s3119_s18 + $0x68] sm:$0xf] %vm1833_vm8, %v2270_v10  ;;  %v1963_v55 = vmul.f32 %v2495_v36, %v2495_v36  ;;  %v1914_v57 = vadd.f32 %v1913_v48, %v1912_v50  ;;  %v2015_v59 = vadd.f32 %v2014_v14, %v2013_v6  ;;  %v2271_v60 = vpack.c.bf16 %v2497_v18, %v2497_v18 }
 0x1e7   : > { %1858 = vst.msk [vmem:[%s3119_s18 + $0x60] sm:$0xf] %vm1833_vm8, %v2268_v20  ;;  %v2016_v53 = vsel %vm1037_vm6, %v1961_v5, 0.0  ;;  %v2269_v61 = vpack.c.bf16 %v2498_v49, %v2498_v49  ;;  %v1915_v31 = vsel %vm1037_vm6, %v2498_v49, 0.0  ;;  %v1962_v63 = vmul.f32 %v2498_v49, %v2498_v49 }
 0x1e8   : > { %v2017_v0 = vadd.f32 %v2016_v53, %v2015_v59  ;;  %1861 = vst.msk [vmem:[%s3119_s18 + $0x6c] sm:$0xf] %vm1833_vm8, %v2271_v60  ;;  %v1916_v39 = vadd.f32 %v1915_v31, %v1914_v57  ;;  %v1917_v8 = vsel %vm1037_vm6, %v2495_v36, 0.0  ;;  %v1964_v11 = vmul.f32 %v2497_v18, %v2497_v18 }
 0x1e9   : > { %v2433_v24 = vpop.f32.mrb[28].mxu1  ;;  %1859 = vst.msk [vmem:[%s3119_s18 + $0x64] sm:$0xf] %vm1833_vm8, %v2269_v61  ;;  %v2018_v44 = vsel %vm1037_vm6, %v1962_v63, 0.0  ;;  %v2020_v15 = vsel %vm1037_vm6, %v1963_v55, 0.0 }
 0x1ea   : > { %v2499_v42 = vadd.f32 %v3208_v52, %v2433_v24  ;;  %v1459_v1 = vpop.f32.mrb[29].mxu1  ;;  %v1918_v16 = vadd.f32 %v1917_v8, %v1916_v39  ;;  %v2019_v17 = vadd.f32 %v2018_v44, %v2017_v0  ;;  %v1919_v52 = vsel %vm1037_vm6, %v2497_v18, 0.0 }
 0x1eb   : > { %v2500_v12 = vadd.f32 %v3212_v7, %v1459_v1  ;;  %v2434_v13 = vpop.f32.mrb[30].mxu1  ;;  %v2022_v28 = vsel %vm1037_vm6, %v1964_v11, 0.0 }
 0x1ec   : > { %v2274_v2 = vpack.c.bf16 %v2499_v42, %v2499_v42  ;;  %v1462_v26 = vpop.f32.mrb[31].mxu1  ;;  %v2021_v54 = vadd.f32 %v2020_v15, %v2019_v17  ;;  %v1920_v3 = vadd.f32 %v1919_v52, %v1918_v16  ;;  %v2501_v7 = vadd.f32 %v3217_v56, %v2434_v13 }
 0x1ed   : > { %v2272_v22 = vpack.c.bf16 %v2500_v12, %v2500_v12  ;;  %v1921_v4 = vsel %vm1037_vm6, %v2500_v12, 0.0  ;;  %v1965_v51 = vmul.f32 %v2500_v12, %v2500_v12  ;;  %v2502_v27 = vadd.f32 %v3220_v9, %v1462_v26 }
 0x1ee   : > { %1864 = vst.msk [vmem:[%s3119_s18 + $0x78] sm:$0xf] %vm1833_vm8, %v2274_v2  ;;  %v1922_v30 = vadd.f32 %v1921_v4, %v1920_v3  ;;  %v2023_v32 = vadd.f32 %v2022_v28, %v2021_v54  ;;  %v2275_v33 = vpack.c.bf16 %v2501_v7, %v2501_v7  ;;  %v1967_v25 = vmul.f32 %v2499_v42, %v2499_v42 }
 0x1ef   : > { %1862 = vst.msk [vmem:[%s3119_s18 + $0x70] sm:$0xf] %vm1833_vm8, %v2272_v22  ;;  %v2024_v29 = vsel %vm1037_vm6, %v1965_v51, 0.0  ;;  %v2273_v19 = vpack.c.bf16 %v2502_v27, %v2502_v27  ;;  %v1923_v58 = vsel %vm1037_vm6, %v2502_v27, 0.0  ;;  %v1966_v34 = vmul.f32 %v2502_v27, %v2502_v27 }
 0x1f0   : > { %v2025_v35 = vadd.f32 %v2024_v29, %v2023_v32  ;;  %1865 = vst.msk [vmem:[%s3119_s18 + $0x7c] sm:$0xf] %vm1833_vm8, %v2275_v33  ;;  %v1924_v56 = vadd.f32 %v1923_v58, %v1922_v30  ;;  %v1925_v9 = vsel %vm1037_vm6, %v2499_v42, 0.0  ;;  %v1968_v36 = vmul.f32 %v2501_v7, %v2501_v7 }
 0x1f1   : > { %1863 = vst.msk [vmem:[%s3119_s18 + $0x74] sm:$0xf] %vm1833_vm8, %v2273_v19  ;;  %v2026_v38 = vsel %vm1037_vm6, %v1966_v34, 0.0  ;;  %v2028_v41 = vsel %vm1037_vm6, %v1967_v25, 0.0  ;;  %v1927_v43 = vsel %vm1037_vm6, %v2501_v7, 0.0 }
 0x1f2   : > { %v1926_v40 = vadd.f32 %v1925_v9, %v1924_v56  ;;  %v2027_v62 = vadd.f32 %v2026_v38, %v2025_v35  ;;  %v2030_v47 = vsel %vm1037_vm6, %v1968_v36, 0.0 }
 0x1f4   : > { %v1928_v45 = vadd.f32 %v1927_v43, %v1926_v40  ;;  %v2029_v46 = vadd.f32 %v2028_v41, %v2027_v62 }
 0x1f6   : > { %v1929_v37 = vrot.slane %v1928_v45, 4  ;;  %v2031_v10 = vadd.f32 %v2030_v47, %v2029_v46 }
 0x1f8   : > { %v1930_v21 = vadd.f32 %v1929_v37, %v1928_v45  ;;  %v2032_v23 = vrot.slane %v2031_v10, 4 }
 0x1fa   : > { %v1931_v20 = vrot.slane %v1930_v21, 2  ;;  %v2033_v48 = vadd.f32 %v2032_v23, %v2031_v10 }
 0x1fc   : > { %v1932_v5 = vadd.f32 %v1931_v20, %v1930_v21  ;;  %v2034_v6 = vrot.slane %v2033_v48, 2 }
 0x1fe   : > { %v1933_v50 = vrot.slane %v1932_v5, 1  ;;  %v2035_v18 = vadd.f32 %v2034_v6, %v2033_v48 }
 0x200   : > { %v1934_v49 = vadd.f32 %v1933_v50, %v1932_v5  ;;  %v2036_v14 = vrot.slane %v2035_v18, 1 }
 0x202   : > { %1936 = vst.msk [vmem:[%s265_s23] sm:$0x1] %vm1935_vm9, %v1934_v49  ;;  %v2037_v53 = vadd.f32 %v2036_v14, %v2035_v18 }
 0x204   : > { %2038 = vst.msk [vmem:[%s268_s26] sm:$0x1] %vm1935_vm9, %v2037_v53 }
 0x205 PF: > { %s17_s21 = sadd.s32 1, %s2561_s21  }
 0x206   : > { %p14_p4 = scmp.ge.s32.totalorder %s17_s21, 4  }
 0x208   :  { %16 = sbr.rel (!%p14_p4) target bundleno = 1 (0x1), region = 92 }

// kernel: inception_forward.8
= control target key start
LH: loop header
LB: loop body
LE: loop exit
PB: predicated region body
PF: predicated region fallthrough
CT: control target
= control target key end

     0   :  { %s2637_s21 = smov 0   ;;  %s3349_s0 = inlined_call_operand.vmem [shape: bf16[2,18,18,8], index: 0, kind: input, shape index: {}]   ;;  %s3350_s1 = inlined_call_operand.vmem [shape: f32[1,8], index: 1, kind: input, shape index: {}]   ;;  %s3351_s2 = inlined_call_operand.vmem [shape: f32[1,8], index: 2, kind: input, shape index: {}]   ;;  %s3352_s3 = inlined_call_operand.vmem [shape: bf16[3,24,8], index: 3, kind: input, shape index: {}]   ;;  %s3353_s4 = inlined_call_operand.vmem [shape: bf16[2,256,8], index: 4, kind: output, shape index: {0}]   ;;  %s3354_s5 = inlined_call_operand.vmem [shape: f32[2,1,8], index: 5, kind: output, shape index: {1}]   ;;  %s3355_s6 = inlined_call_operand.vmem [shape: f32[2,1,8], index: 6, kind: output, shape index: {2}]  }
   0x1 LB: > { %s2159_s22 = sadd.s32 4294967295, %s2596_s21   ;;  %p2163_p0 = scmp.ge.s32.totalorder %s2596_s21, 1  ;;  %s2596_s21 = sphi %s2637_s21, %s17_s21  }
   0x2   : > { %p217_p1 = scmp.lt.s32.totalorder %s2596_s21, 3 }
   0x4   : > { %p218_p2 = pnand %p2163_p0, %p217_p1 }
   0x5   : > { %v554_v0 = vlaneseq (!%p218_p2)  ;;  %v2598_v1 = vmov (!%p218_p2), 0.0|0.0   ;;  %v2599_v3 = vmov (!%p218_p2), 0   ;;  %p253_p3 = scmp.lt.s32.totalorder (!%p218_p2), %s2159_s22, 1  ;;  %s2600_s23 = smov (!%p218_p2), 16   ;;  %v2583_v6 = vld [vmem:[%s3352_s3 + $0xc] sm:$0xff] (!%p218_p2)   ;;  %v2667_v8 = vld [vmem:[%s3352_s3] sm:$0xff] (!%p218_p2)  }
   0x6   : > { %221 = sbr.rel (%p218_p2) target bundleno = 517 (0x205), region = 36  ;;  %v2645_v2 = vrot.slane (!%p218_p2), %v2598_v1, 1  ;;  %v2647_v4 = vrot.slane (!%p218_p2), %v2599_v3, 1  ;;  %s2601_s24 = smov (!%p218_p2), 8   ;;  %2390 = vmatprep.subr.bf16.mxu1 (!%p218_p2), %v2583_v6  ;;  %v2677_v9 = vld [vmem:[%s3350_s1] ss:$0 sm:$0xff] (!%p218_p2)  ;;  %2426 = vmatprep.subr.bf16.mxu0 (!%p218_p2), %v2667_v8 }
   0x7   : > { %v2649_v5 = vshrl.u32 (!%p218_p2), %v554_v0, 7  ;;  %2391 = vmatpush3.bf16.msra.mxu1 (!%p218_p2), %v2583_v6  ;;  %2427 = vmatpush3.bf16.msra.mxu0 (!%p218_p2), %v2667_v8  ;;  %v2692_v20 = vld [vmem:[%s3351_s2] ss:$0 sm:$0xff] (!%p218_p2)  ;;  %vm923_vm2 = vcmask (!%p218_p2), 1046528   ;;  %vm666_vm3 = vsmask.f32 (!%p218_p2), 7424 }
   0x8   : > { %972 = vrot.lane.b32.xlu1 (!%p218_p2), %v2645_v2, %s2600_s23  ;;  %859 = vrot.lane.b32.xlu0 (!%p218_p2), %v2647_v4, %s2601_s24  ;;  %vm1144_vm4 = vcmask (!%p218_p2), 1043456   ;;  %vm1004_vm5 = vcmask (!%p218_p2), 64512   ;;  %vm1037_vm6 = vcmask (!%p218_p2), 130048   ;;  %vm1111_vm7 = vcmask (!%p218_p2), 195584  }
   0x9   : > { %v2661_v7 = vadd.s32 (!%p218_p2), 16, %v2649_v5  ;;  %vm558_vm0 = vcmp.ge.s32.totalorder (!%p218_p2), %v2649_v5, 1  ;;  %vm1848_vm8 = vcmask (!%p218_p2), 60416   ;;  %vm1950_vm9 = vcmask (!%p218_p2), 57344  }
   0xb   : > { %vm569_vm1 = vcmp.le.s32.totalorder (!%p218_p2), %v2661_v7, 16 }
   0xd   : > { %s3357_s22 = smov (!%p253_p3, %s2159_s22), 1 }
   0xe   : > { %s2570_s27 = smul.u32 216, %s3357_s22  ;;  %s2263_s25 = sshll.u32 %s3357_s22, 7 }
   0xf   : > { %s3176_s28 = scalar_lea.vmem %s3353_s4, %s2263_s25  ;;  %s265_s7 = scalar_lea.vmem %s3354_s5, %s3357_s22 }
  0x10   : > { %s2672_s8 = scalar_lea.vmem %s3349_s0, %s2570_s27  ;;  %s268_s10 = scalar_lea.vmem %s3355_s6, %s3357_s22 }
  0x11   : > { %v2328_v10 = vld [vmem:[%s2672_s8 + $0x18] sm:$0xff]   ;;  %v278_v11 = vld [vmem:[%s2672_s8 + $0x20] sm:$0x1]  ;;  %v273_v12 = vld [vmem:[%s2672_s8 + $0xc] sm:$0xff]  }
  0x12   : > { %v2298_v13 = vunpack.c.l.bf16 %v2328_v10  ;;  %v2299_v14 = vunpack.c.h.bf16 %v2328_v10  ;;  %v332_v15 = vunpack.c.l.bf16 %v278_v11  ;;  %v275_v16 = vld [vmem:[%s2672_s8 + $0x14] sm:$0x1]  ;;  %v327_v17 = vunpack.c.l.bf16 %v273_v12  ;;  %v284_v19 = vld [vmem:[%s2672_s8 + $0x38] sm:$0x1] }
  0x13   : > { %v2329_v18 = vld [vmem:[%s2672_s8 + $0x30] sm:$0xff]   ;;  %v328_v21 = vunpack.c.h.bf16 %v273_v12  ;;  %v329_v22 = vunpack.c.l.bf16 %v275_v16  ;;  %v338_v31 = vunpack.c.l.bf16 %v284_v19 }
  0x14   : > { %v2302_v23 = vunpack.c.l.bf16 %v2329_v18  ;;  %v2303_v24 = vunpack.c.h.bf16 %v2329_v18  ;;  %v391_v25 = vmul.f32 %v2298_v13, %v2677_v9  ;;  %v392_v26 = vmul.f32 %v2299_v14, %v2677_v9 }
  0x15   : > { %v393_v27 = vmul.f32 %v2677_v9, %v332_v15  ;;  %v388_v28 = vmul.f32 %v2677_v9, %v327_v17  ;;  %v389_v29 = vmul.f32 %v2677_v9, %v328_v21  ;;  %v390_v30 = vmul.f32 %v2677_v9, %v329_v22  ;;  %v279_v15 = vld [vmem:[%s2672_s8 + $0x24] sm:$0xff]   ;;  %v281_v21 = vld [vmem:[%s2672_s8 + $0x2c] sm:$0x1] }
  0x16   : > { %v397_v32 = vmul.f32 %v2302_v23, %v2677_v9  ;;  %v452_v33 = vadd.f32 %v2692_v20, %v391_v25  ;;  %v453_v34 = vadd.f32 %v2692_v20, %v392_v26  ;;  %v398_v39 = vmul.f32 %v2303_v24, %v2677_v9 }
  0x17   : > { %v454_v35 = vadd.f32 %v2692_v20, %v393_v27  ;;  %v449_v36 = vadd.f32 %v2692_v20, %v388_v28  ;;  %v450_v37 = vadd.f32 %v2692_v20, %v389_v29  ;;  %v451_v38 = vadd.f32 %v2692_v20, %v390_v30 }
  0x18   : > { %v399_v40 = vmul.f32 %v2677_v9, %v338_v31  ;;  %v506_v41 = vmax.f32 %v452_v33, 0.0  ;;  %v507_v42 = vmax.f32 %v453_v34, 0.0  ;;  %v458_v47 = vadd.f32 %v2692_v20, %v397_v32  ;;  %v2330_v34 = vld [vmem:[%s2672_s8 + $0x48] sm:$0xff]  }
  0x19   : > { %v508_v43 = vmax.f32 %v454_v35, 0.0  ;;  %v503_v44 = vmax.f32 %v449_v36, 0.0  ;;  %v504_v45 = vmax.f32 %v450_v37, 0.0  ;;  %v505_v46 = vmax.f32 %v451_v38, 0.0 }
  0x1a   : > { %v459_v48 = vadd.f32 %v2692_v20, %v398_v39  ;;  %v582_v49 = vsel %vm558_vm0, %v506_v41, 0.0  ;;  %v460_v52 = vadd.f32 %v2692_v20, %v399_v40  ;;  %v512_v58 = vmax.f32 %v458_v47, 0.0 }
  0x1b   : > { %v584_v50 = vsel %vm569_vm1, %v508_v43, 0.0  ;;  %v579_v51 = vsel %vm558_vm0, %v503_v44, 0.0  ;;  %v2718_v53 = vpack.c.bf16 %v507_v42, %v582_v49  ;;  %v581_v55 = vsel %vm569_vm1, %v505_v46, 0.0  ;;  %v290_v43 = vld [vmem:[%s2672_s8 + $0x50] sm:$0x1] }
  0x1c   : > { %v635_v54 = vpack.c.bf16 %v584_v50, %v584_v50  ;;  %v2722_v56 = vpack.c.bf16 %v504_v45, %v579_v51  ;;  %v633_v57 = vpack.c.bf16 %v581_v55, %v581_v55  ;;  %v513_v59 = vmax.f32 %v459_v48, 0.0  ;;  %v285_v48 = vld [vmem:[%s2672_s8 + $0x3c] sm:$0xff]  }
  0x1d   : > { %v514_v60 = vmax.f32 %v460_v52, 0.0  ;;  %v692_v61 = vshrl.u32 %v2718_v53, 16  ;;  %v694_v62 = vshll.u32 %v2718_v53, 16  ;;  %v930_v6 = vrot.slane %v2718_v53, 1 }
  0x1e   : > { %v699_v63 = vshll.u32 %v635_v54, 16  ;;  %v680_v0 = vshrl.u32 %v2722_v56, 16  ;;  %v682_v1 = vshll.u32 %v2722_v56, 16  ;;  %v687_v3 = vshll.u32 %v633_v57, 16 }
  0x1f   : > { %v931_v10 = vrot.slane %v635_v54, 1  ;;  %v696_v11 = vrot.slane %v694_v62, 1  ;;  %v927_v13 = vrot.slane %v2722_v56, 1  ;;  %v928_v14 = vrot.slane %v633_v57, 1 }
  0x20   : > { %v701_v12 = vrot.slane %v699_v63, 1  ;;  %v684_v16 = vrot.slane %v682_v1, 1  ;;  %v689_v17 = vrot.slane %v687_v3, 1  ;;  %v588_v19 = vsel %vm558_vm0, %v512_v58, 0.0 }
  0x21   : > { %v932_v18 = vsel %vm923_vm2, %v930_v6, %v931_v10  ;;  %v697_v22 = vor.u32 %v696_v11, %v692_v61  ;;  %v929_v23 = vsel %vm923_vm2, %v927_v13, %v928_v14  ;;  %v590_v24 = vsel %vm569_vm1, %v514_v60, 0.0 }
  0x22   : > { %v2738_v25 = vpack.c.bf16 %v513_v59, %v588_v19  ;;  %v685_v26 = vor.u32 %v684_v16, %v680_v0  ;;  %v639_v27 = vpack.c.bf16 %v590_v24, %v590_v24  ;;  %v333_v28 = vunpack.c.l.bf16 %v279_v15  ;;  %v287_v59 = vld [vmem:[%s2672_s8 + $0x44] sm:$0x1] }
  0x23   : > { %v334_v29 = vunpack.c.h.bf16 %v279_v15  ;;  %v702_v30 = vsel %vm666_vm3, %v697_v22, %v701_v12  ;;  %v335_v33 = vunpack.c.l.bf16 %v281_v21  ;;  %v2306_v47 = vunpack.c.l.bf16 %v2330_v34 }
  0x24   : > { %v716_v31 = vshrl.u32 %v2738_v25, 16  ;;  %v718_v32 = vshll.u32 %v2738_v25, 16  ;;  %863 = vrot.lane.b32.xlu1 %v702_v30, %s2601_s24  ;;  %v690_v35 = vsel %vm666_vm3, %v685_v26, %v689_v17  ;;  %v723_v36 = vshll.u32 %v639_v27, 16 }
  0x25   : > { %v394_v37 = vmul.f32 %v2677_v9, %v333_v28  ;;  %v395_v38 = vmul.f32 %v2677_v9, %v334_v29  ;;  %861 = vrot.lane.b32.xlu0 %v690_v35, %s2601_s24  ;;  %v396_v40 = vmul.f32 %v2677_v9, %v335_v33  ;;  %v936_v41 = vrot.slane %v2738_v25, 1 }
  0x26   : > { %v720_v39 = vrot.slane %v718_v32, 1  ;;  %v937_v42 = vrot.slane %v639_v27, 1  ;;  %v725_v44 = vrot.slane %v723_v36, 1  ;;  %v2307_v52 = vunpack.c.h.bf16 %v2330_v34 }
  0x27   : > { %v455_v45 = vadd.f32 %v2692_v20, %v394_v37  ;;  %v456_v46 = vadd.f32 %v2692_v20, %v395_v38  ;;  %v457_v50 = vadd.f32 %v2692_v20, %v396_v40  ;;  %v344_v57 = vunpack.c.l.bf16 %v290_v43  ;;  %v2331_v40 = vld [vmem:[%s2672_s8 + $0x60] sm:$0xff]  }
  0x28   : > { %v721_v49 = vor.u32 %v720_v39, %v716_v31  ;;  %v938_v51 = vsel %vm923_vm2, %v936_v41, %v937_v42  ;;  %976 = vrot.lane.b32.xlu1 %v932_v18, %s2600_s23  ;;  %v403_v58 = vmul.f32 %v2306_v47, %v2677_v9  ;;  %v404_v62 = vmul.f32 %v2307_v52, %v2677_v9 }
  0x29   : > { %v509_v54 = vmax.f32 %v455_v45, 0.0  ;;  %v510_v55 = vmax.f32 %v456_v46, 0.0  ;;  %974 = vrot.lane.b32.xlu0 %v929_v23, %s2600_s23  ;;  %v511_v61 = vmax.f32 %v457_v50, 0.0  ;;  %v339_v63 = vunpack.c.l.bf16 %v285_v48 }
  0x2a   : > { %v726_v60 = vsel %vm666_vm3, %v721_v49, %v725_v44  ;;  %v405_v1 = vmul.f32 %v2677_v9, %v344_v57  ;;  %v464_v3 = vadd.f32 %v2692_v20, %v403_v58  ;;  %v340_v6 = vunpack.c.h.bf16 %v285_v48  ;;  %v296_v49 = vld [vmem:[%s2672_s8 + $0x68] sm:$0x1] }
  0x2b   : > { %v585_v0 = vsel %vm558_vm0, %v509_v54, 0.0  ;;  %v587_v10 = vsel %vm569_vm1, %v511_v61, 0.0  ;;  %v465_v12 = vadd.f32 %v2692_v20, %v404_v62  ;;  %v341_v13 = vunpack.c.l.bf16 %v287_v59 }
  0x2c   : > { %v2769_v11 = vpack.c.bf16 %v510_v55, %v585_v0  ;;  %867 = vrot.lane.b32.xlu1 %v726_v60, %s2601_s24  ;;  %v637_v14 = vpack.c.bf16 %v587_v10, %v587_v10  ;;  %v466_v15 = vadd.f32 %v2692_v20, %v405_v1  ;;  %v518_v16 = vmax.f32 %v464_v3, 0.0  ;;  %v291_v55 = vld [vmem:[%s2672_s8 + $0x54] sm:$0xff]   ;;  %v293_v10 = vld [vmem:[%s2672_s8 + $0x5c] sm:$0x1] }
  0x2d   : > { %v400_v17 = vmul.f32 %v2677_v9, %v339_v63  ;;  %v519_v22 = vmax.f32 %v465_v12, 0.0  ;;  %v401_v30 = vmul.f32 %v2677_v9, %v340_v6  ;;  %v402_v31 = vmul.f32 %v2677_v9, %v341_v13 }
  0x2e   : > { %v704_v18 = vshrl.u32 %v2769_v11, 16  ;;  %v706_v19 = vshll.u32 %v2769_v11, 16  ;;  %v933_v21 = vrot.slane %v2769_v11, 1  ;;  %v711_v23 = vshll.u32 %v637_v14, 16 }
  0x2f   : > { %v934_v24 = vrot.slane %v637_v14, 1  ;;  %v520_v26 = vmax.f32 %v466_v15, 0.0  ;;  %v594_v27 = vsel %vm558_vm0, %v518_v16, 0.0  ;;  %v461_v35 = vadd.f32 %v2692_v20, %v400_v17 }
  0x30   : > { %v708_v28 = vrot.slane %v706_v19, 1  ;;  %v2780_v29 = vpack.c.bf16 %v519_v22, %v594_v27  ;;  %v713_v32 = vrot.slane %v711_v23, 1  ;;  %980 = vrot.lane.b32.xlu1 %v938_v51, %s2600_s23  ;;  %v462_v41 = vadd.f32 %v2692_v20, %v401_v30  ;;  %v2332_v27 = vld [vmem:[%s2672_s8 + $0x78] sm:$0xff]  }
  0x31   : > { %v935_v33 = vsel %vm923_vm2, %v933_v21, %v934_v24  ;;  %v596_v34 = vsel %vm569_vm1, %v520_v26, 0.0  ;;  %v463_v42 = vadd.f32 %v2692_v20, %v402_v31  ;;  %v515_v43 = vmax.f32 %v461_v35, 0.0 }
  0x32   : > { %v709_v36 = vor.u32 %v708_v28, %v704_v18  ;;  %v643_v37 = vpack.c.bf16 %v596_v34, %v596_v34  ;;  %v740_v38 = vshrl.u32 %v2780_v29, 16  ;;  %v742_v39 = vshll.u32 %v2780_v29, 16 }
  0x33   : > { %v942_v44 = vrot.slane %v2780_v29, 1  ;;  %v516_v50 = vmax.f32 %v462_v41, 0.0  ;;  %v517_v51 = vmax.f32 %v463_v42, 0.0  ;;  %v591_v52 = vsel %vm558_vm0, %v515_v43, 0.0 }
  0x34   : > { %v714_v45 = vsel %vm666_vm3, %v709_v36, %v713_v32  ;;  %v744_v46 = vrot.slane %v742_v39, 1  ;;  %v747_v47 = vshll.u32 %v643_v37, 16  ;;  %v943_v48 = vrot.slane %v643_v37, 1  ;;  %v302_v37 = vld [vmem:[%s2672_s8 + $0x80] sm:$0x1] }
  0x35   : > { %865 = vrot.lane.b32.xlu0 %v714_v45, %s2601_s24  ;;  %v2310_v54 = vunpack.c.l.bf16 %v2331_v40  ;;  %v2311_v60 = vunpack.c.h.bf16 %v2331_v40  ;;  %v593_v61 = vsel %vm569_vm1, %v517_v51, 0.0  ;;  %v2804_v62 = vpack.c.bf16 %v516_v50, %v591_v52 }
  0x36   : > { %v745_v57 = vor.u32 %v744_v46, %v740_v38  ;;  %v749_v58 = vrot.slane %v747_v47, 1  ;;  %v944_v59 = vsel %vm923_vm2, %v942_v44, %v943_v48  ;;  %v350_v63 = vunpack.c.l.bf16 %v296_v49 }
  0x37   : > { %v409_v0 = vmul.f32 %v2310_v54, %v2677_v9  ;;  %v641_v3 = vpack.c.bf16 %v593_v61, %v593_v61  ;;  %v410_v6 = vmul.f32 %v2311_v60, %v2677_v9  ;;  %v345_v12 = vunpack.c.l.bf16 %v291_v55 }
  0x38   : > { %v750_v1 = vsel %vm666_vm3, %v745_v57, %v749_v58  ;;  %v728_v13 = vshrl.u32 %v2804_v62, 16  ;;  %v730_v14 = vshll.u32 %v2804_v62, 16  ;;  %v939_v15 = vrot.slane %v2804_v62, 1 }
  0x39   : > { %978 = vrot.lane.b32.xlu0 %v935_v33, %s2600_s23  ;;  %871 = vrot.lane.b32.xlu1 %v750_v1, %s2601_s24  ;;  %v411_v16 = vmul.f32 %v2677_v9, %v350_v63  ;;  %v735_v17 = vshll.u32 %v641_v3, 16  ;;  %v940_v18 = vrot.slane %v641_v3, 1  ;;  %v470_v19 = vadd.f32 %v2692_v20, %v409_v0 }
  0x3a   : > { %v471_v21 = vadd.f32 %v2692_v20, %v410_v6  ;;  %v732_v22 = vrot.slane %v730_v14, 1  ;;  %v346_v24 = vunpack.c.h.bf16 %v291_v55  ;;  %v347_v26 = vunpack.c.l.bf16 %v293_v10 }
  0x3b   : > { %v472_v23 = vadd.f32 %v2692_v20, %v411_v16  ;;  %v737_v28 = vrot.slane %v735_v17, 1  ;;  %v941_v30 = vsel %vm923_vm2, %v939_v15, %v940_v18  ;;  %v524_v31 = vmax.f32 %v470_v19, 0.0  ;;  %v297_v16 = vld [vmem:[%s2672_s8 + $0x6c] sm:$0xff]  }
  0x3c   : > { %v525_v32 = vmax.f32 %v471_v21, 0.0  ;;  %v733_v33 = vor.u32 %v732_v22, %v728_v13  ;;  %v406_v35 = vmul.f32 %v2677_v9, %v345_v12  ;;  %v407_v36 = vmul.f32 %v2677_v9, %v346_v24 }
  0x3d   : > { %984 = vrot.lane.b32.xlu1 %v944_v59, %s2600_s23  ;;  %v526_v34 = vmax.f32 %v472_v23, 0.0  ;;  %v600_v38 = vsel %vm558_vm0, %v524_v31, 0.0  ;;  %v408_v39 = vmul.f32 %v2677_v9, %v347_v26  ;;  %v2314_v40 = vunpack.c.l.bf16 %v2332_v27 }
  0x3e   : > { %v2315_v41 = vunpack.c.h.bf16 %v2332_v27  ;;  %v738_v42 = vsel %vm666_vm3, %v733_v33, %v737_v28  ;;  %v2831_v44 = vpack.c.bf16 %v525_v32, %v600_v38  ;;  %v467_v45 = vadd.f32 %v2692_v20, %v406_v35  ;;  %v299_v27 = vld [vmem:[%s2672_s8 + $0x74] sm:$0x1] }
  0x3f   : > { %v602_v43 = vsel %vm569_vm1, %v526_v34, 0.0  ;;  %869 = vrot.lane.b32.xlu0 %v738_v42, %s2601_s24  ;;  %v468_v47 = vadd.f32 %v2692_v20, %v407_v36  ;;  %v469_v48 = vadd.f32 %v2692_v20, %v408_v39  ;;  %v356_v49 = vunpack.c.l.bf16 %v302_v37  ;;  %v2333_v33 = vld [vmem:[%s2672_s8 + $0x90] sm:$0xff]  }
  0x40   : > { %v647_v46 = vpack.c.bf16 %v602_v43, %v602_v43  ;;  %v764_v50 = vshrl.u32 %v2831_v44, 16  ;;  %v766_v51 = vshll.u32 %v2831_v44, 16  ;;  %v521_v52 = vmax.f32 %v467_v45, 0.0 }
  0x41   : > { %v948_v54 = vrot.slane %v2831_v44, 1  ;;  %v522_v57 = vmax.f32 %v468_v47, 0.0  ;;  %v523_v58 = vmax.f32 %v469_v48, 0.0  ;;  %v415_v63 = vmul.f32 %v2314_v40, %v2677_v9 }
  0x42   : > { %v771_v55 = vshll.u32 %v647_v46, 16  ;;  %v949_v59 = vrot.slane %v647_v46, 1  ;;  %v768_v60 = vrot.slane %v766_v51, 1  ;;  %v597_v61 = vsel %vm558_vm0, %v521_v52, 0.0  ;;  %v308_v51 = vld [vmem:[%s2672_s8 + $0x98] sm:$0x1] }
  0x43   : > { %v416_v0 = vmul.f32 %v2315_v41, %v2677_v9  ;;  %982 = vrot.lane.b32.xlu0 %v941_v30, %s2600_s23  ;;  %v599_v3 = vsel %vm569_vm1, %v523_v58, 0.0  ;;  %v2847_v6 = vpack.c.bf16 %v522_v57, %v597_v61  ;;  %v417_v14 = vmul.f32 %v2677_v9, %v356_v49 }
  0x44   : > { %v773_v1 = vrot.slane %v771_v55, 1  ;;  %v950_v10 = vsel %vm923_vm2, %v948_v54, %v949_v59  ;;  %v769_v12 = vor.u32 %v768_v60, %v764_v50  ;;  %v645_v13 = vpack.c.bf16 %v599_v3, %v599_v3 }
  0x45   : > { %v476_v15 = vadd.f32 %v2692_v20, %v415_v63  ;;  %v752_v17 = vshrl.u32 %v2847_v6, 16  ;;  %v754_v18 = vshll.u32 %v2847_v6, 16  ;;  %v945_v19 = vrot.slane %v2847_v6, 1 }
  0x46   : > { %v477_v21 = vadd.f32 %v2692_v20, %v416_v0  ;;  %v774_v22 = vsel %vm666_vm3, %v769_v12, %v773_v1  ;;  %v759_v23 = vshll.u32 %v645_v13, 16  ;;  %v946_v24 = vrot.slane %v645_v13, 1 }
  0x47   : > { %v478_v26 = vadd.f32 %v2692_v20, %v417_v14  ;;  %875 = vrot.lane.b32.xlu1 %v774_v22, %s2601_s24  ;;  %v756_v28 = vrot.slane %v754_v18, 1  ;;  %v530_v30 = vmax.f32 %v476_v15, 0.0  ;;  %v351_v32 = vunpack.c.l.bf16 %v297_v16 }
  0x48   : > { %v531_v31 = vmax.f32 %v477_v21, 0.0  ;;  %v761_v34 = vrot.slane %v759_v23, 1  ;;  %v947_v35 = vsel %vm923_vm2, %v945_v19, %v946_v24  ;;  %v352_v37 = vunpack.c.h.bf16 %v297_v16  ;;  %v305_v23 = vld [vmem:[%s2672_s8 + $0x8c] sm:$0x1] }
  0x49   : > { %v532_v36 = vmax.f32 %v478_v26, 0.0  ;;  %v757_v38 = vor.u32 %v756_v28, %v752_v17  ;;  %v606_v39 = vsel %vm558_vm0, %v530_v30, 0.0  ;;  %v353_v40 = vunpack.c.l.bf16 %v299_v27 }
  0x4a   : > { %v412_v41 = vmul.f32 %v2677_v9, %v351_v32  ;;  %v2868_v43 = vpack.c.bf16 %v531_v31, %v606_v39  ;;  %v413_v45 = vmul.f32 %v2677_v9, %v352_v37  ;;  %v2318_v46 = vunpack.c.l.bf16 %v2333_v33 }
  0x4b   : > { %v608_v42 = vsel %vm569_vm1, %v532_v36, 0.0  ;;  %v762_v47 = vsel %vm666_vm3, %v757_v38, %v761_v34  ;;  %988 = vrot.lane.b32.xlu1 %v950_v10, %s2600_s23  ;;  %v414_v49 = vmul.f32 %v2677_v9, %v353_v40  ;;  %v2319_v1 = vunpack.c.h.bf16 %v2333_v33  ;;  %v303_v10 = vld [vmem:[%s2672_s8 + $0x84] sm:$0xff]  }
  0x4c   : > { %v651_v48 = vpack.c.bf16 %v608_v42, %v608_v42  ;;  %v473_v50 = vadd.f32 %v2692_v20, %v412_v41  ;;  %873 = vrot.lane.b32.xlu0 %v762_v47, %s2601_s24  ;;  %v788_v52 = vshrl.u32 %v2868_v43, 16  ;;  %v790_v54 = vshll.u32 %v2868_v43, 16 }
  0x4d   : > { %v474_v55 = vadd.f32 %v2692_v20, %v413_v45  ;;  %v954_v57 = vrot.slane %v2868_v43, 1  ;;  %v475_v59 = vadd.f32 %v2692_v20, %v414_v49  ;;  %v362_v3 = vunpack.c.l.bf16 %v308_v51 }
  0x4e   : > { %v795_v58 = vshll.u32 %v651_v48, 16  ;;  %v527_v60 = vmax.f32 %v473_v50, 0.0  ;;  %v955_v61 = vrot.slane %v651_v48, 1  ;;  %v792_v63 = vrot.slane %v790_v54, 1  ;;  %v2334_v50 = vld [vmem:[%s2672_s8 + $0xa8] sm:$0xff]  }
  0x4f   : > { %v528_v0 = vmax.f32 %v474_v55, 0.0  ;;  %v529_v13 = vmax.f32 %v475_v59, 0.0  ;;  %v421_v18 = vmul.f32 %v2318_v46, %v2677_v9  ;;  %v422_v19 = vmul.f32 %v2319_v1, %v2677_v9 }
  0x50   : > { %v797_v12 = vrot.slane %v795_v58, 1  ;;  %v603_v14 = vsel %vm558_vm0, %v527_v60, 0.0  ;;  %v956_v15 = vsel %vm923_vm2, %v954_v57, %v955_v61  ;;  %986 = vrot.lane.b32.xlu0 %v947_v35, %s2600_s23  ;;  %v793_v16 = vor.u32 %v792_v63, %v788_v52 }
  0x51   : > { %v2887_v17 = vpack.c.bf16 %v528_v0, %v603_v14  ;;  %v605_v21 = vsel %vm569_vm1, %v529_v13, 0.0  ;;  %v423_v22 = vmul.f32 %v2677_v9, %v362_v3  ;;  %v357_v24 = vunpack.c.l.bf16 %v303_v10  ;;  %v314_v3 = vld [vmem:[%s2672_s8 + $0xb0] sm:$0x1] }
  0x52   : > { %v358_v26 = vunpack.c.h.bf16 %v303_v10  ;;  %v798_v27 = vsel %vm666_vm3, %v793_v16, %v797_v12  ;;  %v649_v28 = vpack.c.bf16 %v605_v21, %v605_v21  ;;  %v482_v33 = vadd.f32 %v2692_v20, %v421_v18 }
  0x53   : > { %v776_v30 = vshrl.u32 %v2887_v17, 16  ;;  %v778_v31 = vshll.u32 %v2887_v17, 16  ;;  %879 = vrot.lane.b32.xlu1 %v798_v27, %s2601_s24  ;;  %v951_v32 = vrot.slane %v2887_v17, 1  ;;  %v483_v34 = vadd.f32 %v2692_v20, %v422_v19 }
  0x54   : > { %v484_v35 = vadd.f32 %v2692_v20, %v423_v22  ;;  %v783_v37 = vshll.u32 %v649_v28, 16  ;;  %v952_v38 = vrot.slane %v649_v28, 1  ;;  %v359_v39 = vunpack.c.l.bf16 %v305_v23 }
  0x55   : > { %v780_v36 = vrot.slane %v778_v31, 1  ;;  %v536_v40 = vmax.f32 %v482_v33, 0.0  ;;  %v537_v41 = vmax.f32 %v483_v34, 0.0  ;;  %v418_v45 = vmul.f32 %v2677_v9, %v357_v24 }
  0x56   : > { %v538_v42 = vmax.f32 %v484_v35, 0.0  ;;  %v785_v47 = vrot.slane %v783_v37, 1  ;;  %v953_v48 = vsel %vm923_vm2, %v951_v32, %v952_v38  ;;  %v419_v49 = vmul.f32 %v2677_v9, %v358_v26  ;;  %v309_v35 = vld [vmem:[%s2672_s8 + $0x9c] sm:$0xff]  }
  0x57   : > { %v781_v46 = vor.u32 %v780_v36, %v776_v30  ;;  %992 = vrot.lane.b32.xlu1 %v956_v15, %s2600_s23  ;;  %v612_v51 = vsel %vm558_vm0, %v536_v40, 0.0  ;;  %v420_v54 = vmul.f32 %v2677_v9, %v359_v39  ;;  %v479_v55 = vadd.f32 %v2692_v20, %v418_v45 }
  0x58   : > { %v614_v52 = vsel %vm569_vm1, %v538_v42, 0.0  ;;  %v2915_v58 = vpack.c.bf16 %v537_v41, %v612_v51  ;;  %v480_v60 = vadd.f32 %v2692_v20, %v419_v49  ;;  %v2322_v0 = vunpack.c.l.bf16 %v2334_v50  ;;  %v315_v51 = vld [vmem:[%s2672_s8 + $0xb4] sm:$0xff]  }
  0x59   : > { %v786_v57 = vsel %vm666_vm3, %v781_v46, %v785_v47  ;;  %v655_v59 = vpack.c.bf16 %v614_v52, %v614_v52  ;;  %v481_v61 = vadd.f32 %v2692_v20, %v420_v54  ;;  %v533_v63 = vmax.f32 %v479_v55, 0.0  ;;  %v311_v46 = vld [vmem:[%s2672_s8 + $0xa4] sm:$0x1] }
  0x5a   : > { %877 = vrot.lane.b32.xlu0 %v786_v57, %s2601_s24  ;;  %v2323_v1 = vunpack.c.h.bf16 %v2334_v50  ;;  %v812_v10 = vshrl.u32 %v2915_v58, 16  ;;  %v814_v12 = vshll.u32 %v2915_v58, 16  ;;  %v534_v14 = vmax.f32 %v480_v60, 0.0 }
  0x5b   : > { %v819_v13 = vshll.u32 %v655_v59, 16  ;;  %v535_v15 = vmax.f32 %v481_v61, 0.0  ;;  %v609_v16 = vsel %vm558_vm0, %v533_v63, 0.0  ;;  %v960_v18 = vrot.slane %v2915_v58, 1 }
  0x5c   : > { %v961_v19 = vrot.slane %v655_v59, 1  ;;  %v816_v21 = vrot.slane %v814_v12, 1  ;;  %v2926_v23 = vpack.c.bf16 %v534_v14, %v609_v16  ;;  %v368_v24 = vunpack.c.l.bf16 %v314_v3 }
  0x5d   : > { %v821_v22 = vrot.slane %v819_v13, 1  ;;  %v611_v26 = vsel %vm569_vm1, %v535_v15, 0.0  ;;  %v427_v28 = vmul.f32 %v2322_v0, %v2677_v9  ;;  %v428_v30 = vmul.f32 %v2323_v1, %v2677_v9 }
  0x5e   : > { %990 = vrot.lane.b32.xlu0 %v953_v48, %s2600_s23  ;;  %v962_v27 = vsel %vm923_vm2, %v960_v18, %v961_v19  ;;  %v817_v31 = vor.u32 %v816_v21, %v812_v10  ;;  %v653_v32 = vpack.c.bf16 %v611_v26, %v611_v26  ;;  %v800_v33 = vshrl.u32 %v2926_v23, 16  ;;  %v317_v10 = vld [vmem:[%s2672_s8 + $0xbc] sm:$0x1] }
  0x5f   : > { %v802_v34 = vshll.u32 %v2926_v23, 16  ;;  %v957_v36 = vrot.slane %v2926_v23, 1  ;;  %v429_v37 = vmul.f32 %v2677_v9, %v368_v24  ;;  %v488_v38 = vadd.f32 %v2692_v20, %v427_v28 }
  0x60   : > { %v489_v39 = vadd.f32 %v2692_v20, %v428_v30  ;;  %v822_v40 = vsel %vm666_vm3, %v817_v31, %v821_v22  ;;  %v807_v42 = vshll.u32 %v653_v32, 16  ;;  %v958_v45 = vrot.slane %v653_v32, 1 }
  0x61   : > { %v804_v41 = vrot.slane %v802_v34, 1  ;;  %883 = vrot.lane.b32.xlu1 %v822_v40, %s2601_s24  ;;  %v490_v47 = vadd.f32 %v2692_v20, %v429_v37  ;;  %v542_v48 = vmax.f32 %v488_v38, 0.0  ;;  %v363_v50 = vunpack.c.l.bf16 %v309_v35 }
  0x62   : > { %v543_v49 = vmax.f32 %v489_v39, 0.0  ;;  %v809_v54 = vrot.slane %v807_v42, 1  ;;  %v959_v55 = vsel %vm923_vm2, %v957_v36, %v958_v45  ;;  %v364_v57 = vunpack.c.h.bf16 %v309_v35 }
  0x63   : > { %v805_v52 = vor.u32 %v804_v41, %v800_v33  ;;  %v544_v59 = vmax.f32 %v490_v47, 0.0  ;;  %v618_v60 = vsel %vm558_vm0, %v542_v48, 0.0  ;;  %v365_v61 = vunpack.c.l.bf16 %v311_v46  ;;  %v2335_v48 = vld [vmem:[%s2672_s8 + $0xc0] sm:$0xff]  }
  0x64   : > { %v424_v63 = vmul.f32 %v2677_v9, %v363_v50  ;;  %v2951_v1 = vpack.c.bf16 %v543_v49, %v618_v60  ;;  %v425_v3 = vmul.f32 %v2677_v9, %v364_v57  ;;  %v369_v12 = vunpack.c.l.bf16 %v315_v51 }
  0x65   : > { %v810_v0 = vsel %vm666_vm3, %v805_v52, %v809_v54  ;;  %996 = vrot.lane.b32.xlu1 %v962_v27, %s2600_s23  ;;  %v620_v13 = vsel %vm569_vm1, %v544_v59, 0.0  ;;  %v426_v14 = vmul.f32 %v2677_v9, %v365_v61  ;;  %v370_v16 = vunpack.c.h.bf16 %v315_v51  ;;  %v320_v54 = vld [vmem:[%s2672_s8 + $0xc8] sm:$0x1] }
  0x66   : > { %881 = vrot.lane.b32.xlu0 %v810_v0, %s2601_s24  ;;  %v485_v15 = vadd.f32 %v2692_v20, %v424_v63  ;;  %v659_v18 = vpack.c.bf16 %v620_v13, %v620_v13  ;;  %v836_v19 = vshrl.u32 %v2951_v1, 16  ;;  %v838_v21 = vshll.u32 %v2951_v1, 16 }
  0x67   : > { %v486_v22 = vadd.f32 %v2692_v20, %v425_v3  ;;  %v487_v24 = vadd.f32 %v2692_v20, %v426_v14  ;;  %v966_v27 = vrot.slane %v2951_v1, 1  ;;  %v371_v28 = vunpack.c.l.bf16 %v317_v10 }
  0x68   : > { %v539_v26 = vmax.f32 %v485_v15, 0.0  ;;  %v840_v30 = vrot.slane %v838_v21, 1  ;;  %v843_v31 = vshll.u32 %v659_v18, 16  ;;  %v967_v33 = vrot.slane %v659_v18, 1 }
  0x69   : > { %v540_v32 = vmax.f32 %v486_v22, 0.0  ;;  %v541_v34 = vmax.f32 %v487_v24, 0.0  ;;  %v430_v36 = vmul.f32 %v2677_v9, %v369_v12  ;;  %v431_v37 = vmul.f32 %v2677_v9, %v370_v16 }
  0x6a   : > { %994 = vrot.lane.b32.xlu0 %v959_v55, %s2600_s23  ;;  %v615_v35 = vsel %vm558_vm0, %v539_v26, 0.0  ;;  %v841_v38 = vor.u32 %v840_v30, %v836_v19  ;;  %v845_v39 = vrot.slane %v843_v31, 1  ;;  %v968_v41 = vsel %vm923_vm2, %v966_v27, %v967_v33  ;;  %v2585_v27 = vld [vmem:[%s3352_s3 + $0x14] ss:$0 sps:$4 sm:$0xff]  }
  0x6b   : > { %v2971_v40 = vpack.c.bf16 %v540_v32, %v615_v35  ;;  %v617_v42 = vsel %vm569_vm1, %v541_v34, 0.0  ;;  %v432_v45 = vmul.f32 %v2677_v9, %v371_v28  ;;  %v491_v46 = vadd.f32 %v2692_v20, %v430_v36  ;;  %v3004_v28 = vld [vmem:[%s3352_s3 + $0x8] ss:$0 sps:$4 sm:$0xff]   ;;  %2566 = vmatprep.subr.msk.bf16.mxu1 %vm1144_vm4, %v2585_v27 }
  0x6c   : > { %v492_v47 = vadd.f32 %v2692_v20, %v431_v37  ;;  %v846_v49 = vsel %vm666_vm3, %v841_v38, %v845_v39  ;;  %v657_v50 = vpack.c.bf16 %v617_v42, %v617_v42  ;;  %v2326_v3 = vunpack.c.l.bf16 %v2335_v48  ;;  %2567 = vmatprep.subr.msk.bf16.mxu0 %vm1144_vm4, %v3004_v28 }
  0x6d   : > { %v824_v51 = vshrl.u32 %v2971_v40, 16  ;;  %v826_v52 = vshll.u32 %v2971_v40, 16  ;;  %887 = vrot.lane.b32.xlu1 %v846_v49, %s2601_s24  ;;  %v963_v55 = vrot.slane %v2971_v40, 1  ;;  %v493_v57 = vadd.f32 %v2692_v20, %v432_v45 }
  0x6e   : > { %v545_v59 = vmax.f32 %v491_v46, 0.0  ;;  %v546_v60 = vmax.f32 %v492_v47, 0.0  ;;  %v831_v63 = vshll.u32 %v657_v50, 16  ;;  %v964_v0 = vrot.slane %v657_v50, 1  ;;  %v2587_v47 = vld [vmem:[%s3352_s3 + $0x18] sm:$0xff]  }
  0x6f   : > { %v828_v61 = vrot.slane %v826_v52, 1  ;;  %v547_v10 = vmax.f32 %v493_v57, 0.0  ;;  %v2327_v13 = vunpack.c.h.bf16 %v2335_v48  ;;  %v374_v14 = vunpack.c.l.bf16 %v320_v54 }
  0x70   : > { %v621_v12 = vsel %vm558_vm0, %v545_v59, 0.0  ;;  %v833_v16 = vrot.slane %v831_v63, 1  ;;  %v965_v18 = vsel %vm923_vm2, %v963_v55, %v964_v0  ;;  %v433_v22 = vmul.f32 %v2326_v3, %v2677_v9 }
  0x71   : > { %v829_v15 = vor.u32 %v828_v61, %v824_v51  ;;  %v2990_v19 = vpack.c.bf16 %v546_v60, %v621_v12  ;;  %1000 = vrot.lane.b32.xlu1 %v968_v41, %s2600_s23  ;;  %v623_v21 = vsel %vm569_vm1, %v547_v10, 0.0  ;;  %v434_v24 = vmul.f32 %v2327_v13, %v2677_v9 }
  0x72   : > { %v435_v26 = vmul.f32 %v2677_v9, %v374_v14  ;;  %v661_v31 = vpack.c.bf16 %v623_v21, %v623_v21  ;;  %v494_v34 = vadd.f32 %v2692_v20, %v433_v22  ;;  %v1146_v46 = vsel %vm1144_vm4, %v2585_v27, 0 }
  0x73   : > { %v834_v30 = vsel %vm666_vm3, %v829_v15, %v833_v16  ;;  %v848_v32 = vshrl.u32 %v2990_v19, 16  ;;  %v850_v33 = vshll.u32 %v2990_v19, 16  ;;  %v969_v9 = vrot.slane %v2990_v19, 1  ;;  %2393 = vmatpush3.bf16.msra.mxu1 %v1146_v46 }
  0x74   : > { %885 = vrot.lane.b32.xlu0 %v834_v30, %s2601_s24  ;;  %v495_v35 = vadd.f32 %v2692_v20, %v434_v24  ;;  %v496_v36 = vadd.f32 %v2692_v20, %v435_v26  ;;  %v855_v38 = vshll.u32 %v661_v31, 16  ;;  %v970_v39 = vrot.slane %v661_v31, 1  ;;  %2498 = vmatprep.subr.bf16.mxu1 %v2667_v8 }
  0x75   : > { %v852_v37 = vrot.slane %v850_v33, 1  ;;  %v548_v41 = vmax.f32 %v494_v34, 0.0  ;;  %v1321_v50 = vsel %vm1144_vm4, %v3004_v28, 0 }
  0x76   : > { %v549_v42 = vmax.f32 %v495_v35, 0.0  ;;  %v550_v45 = vmax.f32 %v496_v36, 0.0  ;;  %v857_v20 = vrot.slane %v855_v38, 1  ;;  %v971_v49 = vsel %vm923_vm2, %v969_v9, %v970_v39  ;;  %2429 = vmatpush3.bf16.msra.mxu0 %v1321_v50 }
  0x77   : > { %v853_v48 = vor.u32 %v852_v37, %v848_v32  ;;  %1002 = vrot.lane.b32.xlu1 %v971_v49, %s2600_s23  ;;  %v624_v51 = vsel %vm558_vm0, %v548_v41, 0.0  ;;  %2462 = vmatprep.subr.bf16.mxu0 %v2587_v47 }
  0x78   : > { %998 = vrot.lane.b32.xlu0 %v965_v18, %s2600_s23  ;;  %v626_v52 = vsel %vm569_vm1, %v550_v45, 0.0  ;;  %v3031_v55 = vpack.c.bf16 %v549_v42, %v624_v51 }
  0x79   : > { %v858_v54 = vsel %vm666_vm3, %v853_v48, %v857_v20  ;;  %v663_v57 = vpack.c.bf16 %v626_v52, %v626_v52 }
  0x7a   : > { %v1074_v59 = vshrl.u32 %v3031_v55, 16  ;;  %v1076_v60 = vshll.u32 %v3031_v55, 16  ;;  %v1089_v5 = vrot.slane %v3031_v55, 1  ;;  %v973_v8 = vpop.permute.xlu1 %972  ;;  %v860_v12 = vpop.permute.xlu0 %859 }
  0x7b   : > { %v1081_v61 = vshll.u32 %v663_v57, 16  ;;  %v1090_v7 = vrot.slane %v663_v57, 1  ;;  %v1006_v13 = vsel %vm1004_vm5, 0.0|0.0, %v860_v12 }
  0x7c   : > { %889 = vrot.lane.b32.xlu0 %v858_v54, %s2601_s24  ;;  %v1078_v63 = vrot.slane %v1076_v60, 1  ;;  %v1039_v15 = vsel %vm1037_vm6, %v1006_v13, %v973_v8 }
  0x7d   : > { %v1083_v0 = vrot.slane %v1081_v61, 1  ;;  %v1091_v3 = vsel %vm923_vm2, %v1089_v5, %v1090_v7  ;;  %2430 = vmatprep.mubr.msk.bf16.mxu0 %vm1111_vm7, %v1039_v15 }
  0x7e   : > { %v1079_v10 = vor.u32 %v1078_v63, %v1074_v59  ;;  %1092 = vrot.lane.b32.xlu1 %v1091_v3, %s2600_s23 }
  0x80   : > { %v1084_v14 = vsel %vm666_vm3, %v1079_v10, %v1083_v0 }
  0x81   : > { %1085 = vrot.lane.b32.xlu0 %v1084_v14, %s2601_s24 }
  0x82   : > { %1503 = vrot.lane.b32.xlu1 %v2645_v2, %s2600_s23  ;;  %v2588_v2 = vld [vmem:[%s3352_s3 + $0x20] ss:$0 sps:$4 sm:$0xff]  }
  0x85   : > { %1496 = vrot.lane.b32.xlu0 %v2647_v4, %s2601_s24  ;;  %v2589_v4 = vld [vmem:[%s3352_s3] sm:$0xff]  }
  0x96   : > { %v864_v16 = vpop.permute.xlu1 %863 }
  0x97   : > { %v862_v18 = vpop.permute.xlu0 %861  ;;  %v1010_v21 = vsel %vm1004_vm5, %v2718_v53, %v864_v16 }
  0x98   : > { %v1008_v24 = vsel %vm1004_vm5, %v2722_v56, %v862_v18  ;;  %v1525_v56 = vsel %vm1144_vm4, %v2588_v2, 0 }
  0x9a   : > { %v977_v22 = vpop.permute.xlu1 %976 }
  0x9b   : > { %v1043_v26 = vsel %vm1037_vm6, %v1010_v21, %v977_v22  ;;  %v975_v27 = vpop.permute.xlu0 %974 }
  0x9c   : > { %v1041_v30 = vsel %vm1037_vm6, %v1008_v24, %v975_v27 }
  0x9d   : > { %2394 = vmatprep.mubr.msk.bf16.mxu1 %vm1111_vm7, %v1041_v30  ;;  %2431 = vmatmul.mubr.msk.bf16.vlgmr.msra.gmra.mrb[0].mxu0 %vm1111_vm7, %v1041_v30 }
  0x9e   : > { %2395 = vmatmul.mubr.msk.bf16.vlgmr.msra.gmra.mrb[0].mxu1 %vm1111_vm7, %v1043_v26  ;;  %2434 = vmatprep.mubr.msk.bf16.mxu0 %vm1111_vm7, %v1043_v26  ;;  %v868_v53 = vpop.permute.xlu1 %867 }
  0x9f   : > { %2500 = vmatpush3.bf16.msra.mxu1 %v2589_v4  ;;  %2463 = vmatpush3.bf16.msra.mxu0 %v2587_v47  ;;  %v1014_v33 = vsel %vm1004_vm5, %v2738_v25, %v868_v53 }
  0xa0   : > { %2569 = vmatprep.subr.msk.bf16.mxu0 %vm1144_vm4, %v2588_v2  ;;  %2568 = vmatprep.subr.msk.bf16.mxu1 %vm1144_vm4, %v3004_v28 }
  0xa2   : > { %v981_v32 = vpop.permute.xlu1 %980 }
  0xa3   : > { %2465 = vmatpush3.bf16.msra.mxu0 %v1525_v56  ;;  %2501 = vmatpush3.bf16.msra.mxu1 %v1321_v50  ;;  %v1047_v34 = vsel %vm1037_vm6, %v1014_v33, %v981_v32 }
  0xa7   : > { %v866_v31 = vpop.permute.xlu0 %865 }
  0xa8   : > { %v1012_v9 = vsel %vm1004_vm5, %v2769_v11, %v866_v31 }
  0xab   : > { %v979_v35 = vpop.permute.xlu0 %978  ;;  %v872_v28 = vpop.permute.xlu1 %871 }
  0xac   : > { %v1045_v36 = vsel %vm1037_vm6, %v1012_v9, %v979_v35  ;;  %v1018_v25 = vsel %vm1004_vm5, %v2780_v29, %v872_v28 }
  0xad   : > { %2398 = vmatprep.mubr.msk.bf16.mxu1 %vm1111_vm7, %v1045_v36  ;;  %2435 = vmatmul.mubr.msk.bf16.gmra.mrb[4].mxu0 %vm1111_vm7, %v1045_v36 }
  0xae   : > { %2399 = vmatmul.mubr.msk.bf16.gmra.mrb[4].mxu1 %vm1111_vm7, %v1047_v34  ;;  %2438 = vmatprep.mubr.msk.bf16.mxu0 %vm1111_vm7, %v1047_v34 }
  0xaf   : > { %v985_v38 = vpop.permute.xlu1 %984 }
  0xb0   : > { %v1051_v39 = vsel %vm1037_vm6, %v1018_v25, %v985_v38 }
  0xb1   : > { %v870_v37 = vpop.permute.xlu0 %869 }
  0xb2   : > { %v1016_v11 = vsel %vm1004_vm5, %v2804_v62, %v870_v37 }
  0xb5   : > { %v983_v41 = vpop.permute.xlu0 %982 }
  0xb6   : > { %v1049_v42 = vsel %vm1037_vm6, %v1016_v11, %v983_v41 }
  0xb7   : > { %2402 = vmatprep.mubr.msk.bf16.mxu1 %vm1111_vm7, %v1049_v42  ;;  %2439 = vmatmul.mubr.msk.bf16.gmra.mrb[8].mxu0 %vm1111_vm7, %v1049_v42 }
  0xb8   : > { %2403 = vmatmul.mubr.msk.bf16.gmra.mrb[8].mxu1 %vm1111_vm7, %v1051_v39  ;;  %2442 = vmatprep.mubr.msk.bf16.mxu0 %vm1111_vm7, %v1051_v39 }
  0xb9   : > { %v876_v45 = vpop.permute.xlu1 %875 }
  0xba   : > { %v1022_v29 = vsel %vm1004_vm5, %v2831_v44, %v876_v45 }
  0xbd   : > { %v989_v47 = vpop.permute.xlu1 %988 }
  0xbe   : > { %v874_v46 = vpop.permute.xlu0 %873  ;;  %v1055_v48 = vsel %vm1037_vm6, %v1022_v29, %v989_v47 }
  0xbf   : > { %v1020_v62 = vsel %vm1004_vm5, %v2847_v6, %v874_v46 }
  0xc2   : > { %v987_v20 = vpop.permute.xlu0 %986 }
  0xc3   : > { %v1053_v49 = vsel %vm1037_vm6, %v1020_v62, %v987_v20 }
  0xc4   : > { %2406 = vmatprep.mubr.msk.bf16.mxu1 %vm1111_vm7, %v1053_v49  ;;  %2443 = vmatmul.mubr.msk.bf16.gmra.mrb[12].mxu0 %vm1111_vm7, %v1053_v49 }
  0xc5   : > { %2407 = vmatmul.mubr.msk.bf16.gmra.mrb[12].mxu1 %vm1111_vm7, %v1055_v48  ;;  %2466 = vmatprep.mubr.msk.bf16.mxu0 %vm1111_vm7, %v1043_v26  ;;  %v880_v50 = vpop.permute.xlu1 %879 }
  0xc6   : > { %v1026_v44 = vsel %vm1004_vm5, %v2868_v43, %v880_v50 }
  0xc9   : > { %v993_v52 = vpop.permute.xlu1 %992 }
  0xca   : > { %v1059_v54 = vsel %vm1037_vm6, %v1026_v44, %v993_v52 }
  0xcc   : > { %v878_v51 = vpop.permute.xlu0 %877  ;;  %2467 = vmatmul.mubr.msk.bf16.vlgmr.msra.gmra.mrb[0].mxu0 %vm1111_vm7, %v1045_v36 }
  0xcd   : > { %2470 = vmatprep.mubr.msk.bf16.mxu0 %vm1111_vm7, %v1047_v34  ;;  %v1024_v6 = vsel %vm1004_vm5, %v2887_v17, %v878_v51 }
  0xd0   : > { %v991_v57 = vpop.permute.xlu0 %990 }
  0xd1   : > { %v1057_v59 = vsel %vm1037_vm6, %v1024_v6, %v991_v57 }
  0xd2   : > { %2410 = vmatprep.mubr.msk.bf16.mxu1 %vm1111_vm7, %v1057_v59 }
  0xd3   : > { %2411 = vmatmul.mubr.msk.bf16.gmra.mrb[16].mxu1 %vm1111_vm7, %v1059_v54  ;;  %v884_v60 = vpop.permute.xlu1 %883 }
  0xd4   : > { %2471 = vmatmul.mubr.msk.bf16.gmra.mrb[4].mxu0 %vm1111_vm7, %v1049_v42  ;;  %v1030_v43 = vsel %vm1004_vm5, %v2915_v58, %v884_v60 }
  0xd5   : > { %2474 = vmatprep.mubr.msk.bf16.mxu0 %vm1111_vm7, %v1051_v39 }
  0xd7   : > { %v997_v5 = vpop.permute.xlu1 %996 }
  0xd8   : > { %v882_v61 = vpop.permute.xlu0 %881  ;;  %v1063_v7 = vsel %vm1037_vm6, %v1030_v43, %v997_v5 }
  0xd9   : > { %v1028_v17 = vsel %vm1004_vm5, %v2926_v23, %v882_v61 }
  0xdc   : > { %v995_v63 = vpop.permute.xlu0 %994  ;;  %2475 = vmatmul.mubr.msk.bf16.gmra.mrb[8].mxu0 %vm1111_vm7, %v1053_v49 }
  0xdd   : > { %v1061_v0 = vsel %vm1037_vm6, %v1028_v17, %v995_v63  ;;  %2478 = vmatprep.mubr.msk.bf16.mxu0 %vm1111_vm7, %v1055_v48 }
  0xde   : > { %2414 = vmatprep.mubr.msk.bf16.mxu1 %vm1111_vm7, %v1061_v0 }
  0xdf   : > { %2415 = vmatmul.mubr.msk.bf16.gmra.mrb[20].mxu1 %vm1111_vm7, %v1063_v7  ;;  %v888_v3 = vpop.permute.xlu1 %887 }
  0xe0   : > { %v1034_v10 = vsel %vm1004_vm5, %v2951_v1, %v888_v3 }
  0xe3   : > { %v1001_v23 = vpop.permute.xlu1 %1000 }
  0xe4   : > { %2479 = vmatmul.mubr.msk.bf16.gmra.mrb[12].mxu0 %vm1111_vm7, %v1057_v59  ;;  %v1067_v12 = vsel %vm1037_vm6, %v1034_v10, %v1001_v23 }
  0xe5   : > { %2482 = vmatprep.mubr.msk.bf16.mxu0 %vm1111_vm7, %v1059_v54 }
  0xe6   : > { %v886_v58 = vpop.permute.xlu0 %885 }
  0xe7   : > { %v1032_v8 = vsel %vm1004_vm5, %v2971_v40, %v886_v58 }
  0xe9   : > { %v1003_v15 = vpop.permute.xlu1 %1002 }
  0xea   : > { %v999_v13 = vpop.permute.xlu0 %998 }
  0xeb   : > { %v1065_v14 = vsel %vm1037_vm6, %v1032_v8, %v999_v13 }
  0xec   : > { %2418 = vmatprep.mubr.msk.bf16.mxu1 %vm1111_vm7, %v1065_v14  ;;  %2483 = vmatmul.mubr.msk.bf16.gmra.mrb[16].mxu0 %vm1111_vm7, %v1061_v0 }
  0xed   : > { %2419 = vmatmul.mubr.msk.bf16.gmra.mrb[24].mxu1 %vm1111_vm7, %v1067_v12  ;;  %2486 = vmatprep.mubr.msk.bf16.mxu0 %vm1111_vm7, %v1063_v7 }
  0xee   : > { %v890_v16 = vpop.permute.xlu0 %889 }
  0xef   : > { %v1036_v1 = vsel %vm1004_vm5, %v2990_v19, %v890_v16 }
  0xf0   : > { %v1069_v40 = vsel %vm1037_vm6, %v1036_v1, %v1003_v15  ;;  %v1093_v18 = vpop.permute.xlu1 %1092 }
  0xf1   : > { %2422 = vmatprep.mubr.msk.bf16.mxu1 %vm1111_vm7, %v1069_v40 }
  0xf3   : > { %v1086_v21 = vpop.permute.xlu0 %1085 }
  0xf4   : > { %v1095_v22 = vsel %vm1004_vm5, %v3031_v55, %v1086_v21  ;;  %2487 = vmatmul.mubr.msk.bf16.gmra.mrb[20].mxu0 %vm1111_vm7, %v1065_v14  ;;  %v1504_v55 = vpop.permute.xlu1 %1503 }
  0xf5   : > { %v1097_v24 = vsel %vm1037_vm6, %v1095_v22, %v1093_v18  ;;  %2490 = vmatprep.mubr.msk.bf16.mxu0 %vm1111_vm7, %v1067_v12 }
  0xf6   : > { %2423 = vmatmul.mubr.msk.bf16.gmra.mrb[28].mxu1 %vm1111_vm7, %v1097_v24 }
  0xf7   : > { %2446 = vmatprep.mubr.msk.bf16.mxu1 %vm1111_vm7, %v1055_v48  ;;  %v1497_v19 = vpop.permute.xlu0 %1496 }
  0xf8   : > { %v1506_v26 = vsel %vm1004_vm5, 0.0|0.0, %v1497_v19 }
  0xf9   : > { %v1508_v27 = vsel %vm1037_vm6, %v1506_v26, %v1504_v55 }
  0xfc   : > { %2491 = vmatmul.mubr.msk.bf16.gmra.mrb[24].mxu0 %vm1111_vm7, %v1069_v40 }
  0xfd   : > { %2494 = vmatprep.mubr.msk.bf16.mxu0 %vm1111_vm7, %v1097_v24 }
  0xfe   : > { %2447 = vmatmul.mubr.msk.bf16.vlgmr.msra.gmra.mrb[16].mxu1 %vm1111_vm7, %v1057_v59 }
  0xff   : > { %2450 = vmatprep.mubr.msk.bf16.mxu1 %vm1111_vm7, %v1059_v54 }
 0x104   : > { %2495 = vmatmul.mubr.msk.bf16.gmra.mrb[28].mxu0 %vm1111_vm7, %v1508_v27 }
 0x106   : > { %2451 = vmatmul.mubr.msk.bf16.gmra.mrb[20].mxu1 %vm1111_vm7, %v1061_v0 }
 0x107   : > { %2454 = vmatprep.mubr.msk.bf16.mxu1 %vm1111_vm7, %v1063_v7 }
 0x10e   : > { %2455 = vmatmul.mubr.msk.bf16.gmra.mrb[24].mxu1 %vm1111_vm7, %v1065_v14 }
 0x10f   : > { %2458 = vmatprep.mubr.msk.bf16.mxu1 %vm1111_vm7, %v1067_v12 }
 0x116   : > { %2459 = vmatmul.mubr.msk.bf16.gmra.mrb[28].mxu1 %vm1111_vm7, %v1069_v40 }
 0x171   : > { %v2396_v30 = vpop.f32.mrb[0].mxu1 }
 0x172   : > { %v1182_v2 = vpop.f32.mrb[1].mxu1 }
 0x173   : > { %v2397_v4 = vpop.f32.mrb[2].mxu1 }
 0x174   : > { %v1185_v53 = vpop.f32.mrb[3].mxu1 }
 0x181   : > { %v2400_v56 = vpop.f32.mrb[4].mxu1 }
 0x182   : > { %v1198_v31 = vpop.f32.mrb[5].mxu1 }
 0x183   : > { %v2401_v32 = vpop.f32.mrb[6].mxu1 }
 0x184   : > { %v1201_v33 = vpop.f32.mrb[7].mxu1 }
 0x18b   : > { %v3156_v9 = vpop.f32.mrb[8].mxu1 }
 0x18c   : > { %v3158_v34 = vpop.f32.mrb[9].mxu1 }
 0x18d   : > { %v3160_v35 = vpop.f32.mrb[10].mxu1 }
 0x18e   : > { %v3162_v36 = vpop.f32.mrb[11].mxu1 }
 0x198   : > { %v3164_v28 = vpop.f32.mrb[12].mxu1 }
 0x199   : > { %v3166_v37 = vpop.f32.mrb[13].mxu1 }
 0x19a   : > { %v3168_v38 = vpop.f32.mrb[14].mxu1 }
 0x19b   : > { %v3170_v25 = vpop.f32.mrb[15].mxu1 }
 0x19f   : > { %v2468_v11 = vpop.f32.mrb[0].mxu0 }
 0x1a0   : > { %v2502_v39 = vadd.f32 %v2468_v11, %v2396_v30  ;;  %v1561_v41 = vpop.f32.mrb[1].mxu0 }
 0x1a1   : > { %v2503_v42 = vadd.f32 %v1561_v41, %v1182_v2  ;;  %v2469_v45 = vpop.f32.mrb[2].mxu0 }
 0x1a2   : > { %v2266_v46 = vpack.c.bf16 %v2502_v39, %v2502_v39  ;;  %v2504_v47 = vadd.f32 %v2469_v45, %v2397_v4  ;;  %v1564_v29 = vpop.f32.mrb[3].mxu0  ;;  %v1954_v49 = vmul.f32 %v2502_v39, %v2502_v39  ;;  %v1884_v59 = vsel %vm1004_vm5, %v2502_v39, 0.0 }
 0x1a3   : > { %v2264_v62 = vpack.c.bf16 %v2503_v42, %v2503_v42  ;;  %v1952_v48 = vmul.f32 %v2503_v42, %v2503_v42  ;;  %v2505_v20 = vadd.f32 %v1564_v29, %v1185_v53  ;;  %v1881_v51 = vsel %vm1004_vm5, %v2503_v42, 0.0 }
 0x1a4   : > { %1851 = vst.msk [vmem:[%s3176_s28 + $0x8] sm:$0xf] %vm1848_vm8, %v2266_v46  ;;  %v2267_v50 = vpack.c.bf16 %v2504_v47, %v2504_v47  ;;  %v1955_v54 = vmul.f32 %v2504_v47, %v2504_v47  ;;  %v1987_v0 = vsel %vm1004_vm5, %v1954_v49, 0.0  ;;  %v1886_v23 = vsel %vm1004_vm5, %v2504_v47, 0.0 }
 0x1a5   : > { %1849 = vst.msk [vmem:[%s3176_s28] sm:$0xf] %vm1848_vm8, %v2264_v62  ;;  %v2265_v52 = vpack.c.bf16 %v2505_v20, %v2505_v20  ;;  %v1882_v44 = vsel %vm1004_vm5, %v2505_v20, 0.0  ;;  %v1953_v6 = vmul.f32 %v2505_v20, %v2505_v20  ;;  %v1984_v60 = vsel %vm1004_vm5, %v1952_v48, 0.0 }
 0x1a6   : > { %1852 = vst.msk [vmem:[%s3176_s28 + $0xc] sm:$0xf] %vm1848_vm8, %v2267_v50  ;;  %v1883_v57 = vadd.f32 %v1882_v44, %v1881_v51  ;;  %v1989_v10 = vsel %vm1004_vm5, %v1955_v54, 0.0 }
 0x1a7   : > { %1850 = vst.msk [vmem:[%s3176_s28 + $0x4] sm:$0xf] %vm1848_vm8, %v2265_v52  ;;  %v1985_v61 = vsel %vm1004_vm5, %v1953_v6, 0.0  ;;  %v2472_v5 = vpop.f32.mrb[4].mxu0 }
 0x1a8   : > { %v1885_v43 = vadd.f32 %v1884_v59, %v1883_v57  ;;  %v1986_v17 = vadd.f32 %v1985_v61, %v1984_v60  ;;  %v2506_v7 = vadd.f32 %v2472_v5, %v2400_v56  ;;  %v1577_v63 = vpop.f32.mrb[5].mxu0 }
 0x1a9   : > { %v2507_v3 = vadd.f32 %v1577_v63, %v1198_v31  ;;  %v2473_v58 = vpop.f32.mrb[6].mxu0 }
 0x1aa   : > { %v1988_v8 = vadd.f32 %v1987_v0, %v1986_v17  ;;  %v2270_v12 = vpack.c.bf16 %v2506_v7, %v2506_v7  ;;  %v1580_v13 = vpop.f32.mrb[7].mxu0  ;;  %v1887_v15 = vadd.f32 %v1886_v23, %v1885_v43  ;;  %v2508_v18 = vadd.f32 %v2473_v58, %v2401_v32 }
 0x1ab   : > { %v2268_v14 = vpack.c.bf16 %v2507_v3, %v2507_v3  ;;  %v1888_v16 = vsel %vm1004_vm5, %v2507_v3, 0.0  ;;  %v1956_v1 = vmul.f32 %v2507_v3, %v2507_v3  ;;  %v2509_v21 = vadd.f32 %v1580_v13, %v1201_v33 }
 0x1ac   : > { %1855 = vst.msk [vmem:[%s3176_s28 + $0x18] sm:$0xf] %vm1848_vm8, %v2270_v12  ;;  %v1990_v40 = vadd.f32 %v1989_v10, %v1988_v8  ;;  %v1889_v22 = vadd.f32 %v1888_v16, %v1887_v15  ;;  %v1958_v19 = vmul.f32 %v2506_v7, %v2506_v7  ;;  %v2271_v55 = vpack.c.bf16 %v2508_v18, %v2508_v18 }
 0x1ad   : > { %1853 = vst.msk [vmem:[%s3176_s28 + $0x10] sm:$0xf] %vm1848_vm8, %v2268_v14  ;;  %v1991_v24 = vsel %vm1004_vm5, %v1956_v1, 0.0  ;;  %v2269_v27 = vpack.c.bf16 %v2509_v21, %v2509_v21  ;;  %v1890_v30 = vsel %vm1004_vm5, %v2509_v21, 0.0  ;;  %v1957_v2 = vmul.f32 %v2509_v21, %v2509_v21 }
 0x1ae   : > { %v1992_v26 = vadd.f32 %v1991_v24, %v1990_v40  ;;  %1856 = vst.msk [vmem:[%s3176_s28 + $0x1c] sm:$0xf] %vm1848_vm8, %v2271_v55  ;;  %v1891_v53 = vadd.f32 %v1890_v30, %v1889_v22  ;;  %v1892_v32 = vsel %vm1004_vm5, %v2506_v7, 0.0  ;;  %v1959_v33 = vmul.f32 %v2508_v18, %v2508_v18 }
 0x1af   : > { %v2476_v4 = vpop.f32.mrb[8].mxu0  ;;  %1854 = vst.msk [vmem:[%s3176_s28 + $0x14] sm:$0xf] %vm1848_vm8, %v2269_v27  ;;  %v1993_v11 = vsel %vm1004_vm5, %v1957_v2, 0.0  ;;  %v1995_v42 = vsel %vm1004_vm5, %v1958_v19, 0.0 }
 0x1b0   : > { %v2510_v56 = vadd.f32 %v2476_v4, %v3156_v9  ;;  %v1593_v31 = vpop.f32.mrb[9].mxu0  ;;  %v1893_v45 = vadd.f32 %v1892_v32, %v1891_v53  ;;  %v1994_v46 = vadd.f32 %v1993_v11, %v1992_v26  ;;  %v1894_v9 = vsel %vm1004_vm5, %v2508_v18, 0.0 }
 0x1b1   : > { %v2511_v39 = vadd.f32 %v1593_v31, %v3158_v34  ;;  %v2477_v41 = vpop.f32.mrb[10].mxu0  ;;  %v1997_v52 = vsel %vm1004_vm5, %v1959_v33, 0.0 }
 0x1b2   : > { %v2274_v47 = vpack.c.bf16 %v2510_v56, %v2510_v56  ;;  %v1596_v29 = vpop.f32.mrb[11].mxu0  ;;  %v1996_v49 = vadd.f32 %v1995_v42, %v1994_v46  ;;  %v1895_v50 = vadd.f32 %v1894_v9, %v1893_v45  ;;  %v2512_v34 = vadd.f32 %v2477_v41, %v3160_v35 }
 0x1b3   : > { %v2272_v62 = vpack.c.bf16 %v2511_v39, %v2511_v39  ;;  %v1896_v48 = vsel %vm1004_vm5, %v2511_v39, 0.0  ;;  %v1960_v20 = vmul.f32 %v2511_v39, %v2511_v39  ;;  %v2513_v51 = vadd.f32 %v1596_v29, %v3162_v36 }
 0x1b4   : > { %1859 = vst.msk [vmem:[%s3176_s28 + $0x28] sm:$0xf] %vm1848_vm8, %v2274_v47  ;;  %v1962_v6 = vmul.f32 %v2510_v56, %v2510_v56  ;;  %v1897_v54 = vadd.f32 %v1896_v48, %v1895_v50  ;;  %v1998_v57 = vadd.f32 %v1997_v52, %v1996_v49  ;;  %v2275_v59 = vpack.c.bf16 %v2512_v34, %v2512_v34 }
 0x1b5   : > { %1857 = vst.msk [vmem:[%s3176_s28 + $0x20] sm:$0xf] %vm1848_vm8, %v2272_v62  ;;  %v1999_v44 = vsel %vm1004_vm5, %v1960_v20, 0.0  ;;  %v2273_v60 = vpack.c.bf16 %v2513_v51, %v2513_v51  ;;  %v1898_v61 = vsel %vm1004_vm5, %v2513_v51, 0.0  ;;  %v1961_v5 = vmul.f32 %v2513_v51, %v2513_v51 }
 0x1b6   : > { %v2000_v17 = vadd.f32 %v1999_v44, %v1998_v57  ;;  %1860 = vst.msk [vmem:[%s3176_s28 + $0x2c] sm:$0xf] %vm1848_vm8, %v2275_v59  ;;  %v1899_v35 = vadd.f32 %v1898_v61, %v1897_v54  ;;  %v1900_v63 = vsel %vm1004_vm5, %v2510_v56, 0.0  ;;  %v1963_v0 = vmul.f32 %v2512_v34, %v2512_v34 }
 0x1b7   : > { %v2480_v43 = vpop.f32.mrb[12].mxu0  ;;  %1858 = vst.msk [vmem:[%s3176_s28 + $0x24] sm:$0xf] %vm1848_vm8, %v2273_v60  ;;  %v2001_v3 = vsel %vm1004_vm5, %v1961_v5, 0.0  ;;  %v2003_v10 = vsel %vm1004_vm5, %v1962_v6, 0.0 }
 0x1b8   : > { %v2514_v36 = vadd.f32 %v2480_v43, %v3164_v28  ;;  %v1609_v7 = vpop.f32.mrb[13].mxu0  ;;  %v1901_v8 = vadd.f32 %v1900_v63, %v1899_v35  ;;  %v2002_v12 = vadd.f32 %v2001_v3, %v2000_v17  ;;  %v1902_v28 = vsel %vm1004_vm5, %v2512_v34, 0.0 }
 0x1b9   : > { %v2515_v58 = vadd.f32 %v1609_v7, %v3166_v37  ;;  %v2481_v23 = vpop.f32.mrb[14].mxu0  ;;  %v2005_v22 = vsel %vm1004_vm5, %v1963_v0, 0.0 }
 0x1ba   : > { %v2278_v13 = vpack.c.bf16 %v2514_v36, %v2514_v36  ;;  %v1612_v14 = vpop.f32.mrb[15].mxu0  ;;  %v2004_v40 = vadd.f32 %v2003_v10, %v2002_v12  ;;  %v1903_v18 = vadd.f32 %v1902_v28, %v1901_v8  ;;  %v2516_v37 = vadd.f32 %v2481_v23, %v3168_v38 }
 0x1bb   : > { %v2276_v15 = vpack.c.bf16 %v2515_v58, %v2515_v58  ;;  %v1904_v16 = vsel %vm1004_vm5, %v2515_v58, 0.0  ;;  %v1964_v1 = vmul.f32 %v2515_v58, %v2515_v58  ;;  %v2517_v21 = vadd.f32 %v1612_v14, %v3170_v25 }
 0x1bc   : > { %1863 = vst.msk [vmem:[%s3176_s28 + $0x38] sm:$0xf] %vm1848_vm8, %v2278_v13  ;;  %v1905_v19 = vadd.f32 %v1904_v16, %v1903_v18  ;;  %v2006_v26 = vadd.f32 %v2005_v22, %v2004_v40  ;;  %v2279_v55 = vpack.c.bf16 %v2516_v37, %v2516_v37  ;;  %v1966_v27 = vmul.f32 %v2514_v36, %v2514_v36 }
 0x1bd   : > { %1861 = vst.msk [vmem:[%s3176_s28 + $0x30] sm:$0xf] %vm1848_vm8, %v2276_v15  ;;  %v2007_v24 = vsel %vm1004_vm5, %v1964_v1, 0.0  ;;  %v2277_v30 = vpack.c.bf16 %v2517_v21, %v2517_v21  ;;  %v1906_v2 = vsel %vm1004_vm5, %v2517_v21, 0.0  ;;  %v1965_v4 = vmul.f32 %v2517_v21, %v2517_v21 }
 0x1be   : > { %v2008_v56 = vadd.f32 %v2007_v24, %v2006_v26  ;;  %1864 = vst.msk [vmem:[%s3176_s28 + $0x3c] sm:$0xf] %vm1848_vm8, %v2279_v55  ;;  %v1907_v38 = vadd.f32 %v1906_v2, %v1905_v19  ;;  %v1908_v31 = vsel %vm1004_vm5, %v2514_v36, 0.0  ;;  %v1967_v32 = vmul.f32 %v2516_v37, %v2516_v37 }
 0x1bf   : > { %v2484_v53 = vpop.f32.mrb[16].mxu0  ;;  %1862 = vst.msk [vmem:[%s3176_s28 + $0x34] sm:$0xf] %vm1848_vm8, %v2277_v30  ;;  %v2009_v33 = vsel %vm1004_vm5, %v1965_v4, 0.0  ;;  %v2011_v45 = vsel %vm1004_vm5, %v1966_v27, 0.0  ;;  %v1910_v46 = vsel %vm1004_vm5, %v2516_v37, 0.0 }
 0x1c0   : > { %v1625_v25 = vpop.f32.mrb[17].mxu0  ;;  %v1909_v39 = vadd.f32 %v1908_v31, %v1907_v38  ;;  %v2010_v41 = vadd.f32 %v2009_v33, %v2008_v56  ;;  %v2013_v9 = vsel %vm1004_vm5, %v1967_v32, 0.0 }
 0x1c1   : > { %v2485_v11 = vpop.f32.mrb[18].mxu0 }
 0x1c2   : > { %v1628_v42 = vpop.f32.mrb[19].mxu0  ;;  %v2012_v47 = vadd.f32 %v2011_v45, %v2010_v41  ;;  %v1911_v29 = vadd.f32 %v1910_v46, %v1909_v39 }
 0x1c4   : > { %v2014_v62 = vadd.f32 %v2013_v9, %v2012_v47 }
 0x1c7   : > { %v2488_v48 = vpop.f32.mrb[20].mxu0 }
 0x1c8   : > { %v1641_v20 = vpop.f32.mrb[21].mxu0 }
 0x1c9   : > { %v2489_v49 = vpop.f32.mrb[22].mxu0 }
 0x1ca   : > { %v1644_v50 = vpop.f32.mrb[23].mxu0 }
 0x1cf   : > { %v3250_v34 = vpop.f32.mrb[24].mxu0 }
 0x1d0   : > { %v3252_v51 = vpop.f32.mrb[25].mxu0 }
 0x1d1   : > { %v2448_v52 = vpop.f32.mrb[16].mxu1  ;;  %v3254_v44 = vpop.f32.mrb[26].mxu0 }
 0x1d2   : > { %v2518_v6 = vadd.f32 %v2484_v53, %v2448_v52  ;;  %v1421_v54 = vpop.f32.mrb[17].mxu1  ;;  %v3256_v57 = vpop.f32.mrb[27].mxu0 }
 0x1d3   : > { %v2519_v59 = vadd.f32 %v1625_v25, %v1421_v54  ;;  %v2449_v60 = vpop.f32.mrb[18].mxu1 }
 0x1d4   : > { %v2282_v61 = vpack.c.bf16 %v2518_v6, %v2518_v6  ;;  %v2520_v5 = vadd.f32 %v2485_v11, %v2449_v60  ;;  %v1424_v43 = vpop.f32.mrb[19].mxu1  ;;  %v1970_v8 = vmul.f32 %v2518_v6, %v2518_v6  ;;  %v1916_v15 = vsel %vm1004_vm5, %v2518_v6, 0.0 }
 0x1d5   : > { %v2280_v17 = vpack.c.bf16 %v2519_v59, %v2519_v59  ;;  %v1912_v35 = vsel %vm1004_vm5, %v2519_v59, 0.0  ;;  %v1968_v36 = vmul.f32 %v2519_v59, %v2519_v59  ;;  %v2521_v7 = vadd.f32 %v1628_v42, %v1424_v43 }
 0x1d6   : > { %1867 = vst.msk [vmem:[%s3176_s28 + $0x48] sm:$0xf] %vm1848_vm8, %v2282_v61  ;;  %v1913_v63 = vadd.f32 %v1912_v35, %v1911_v29  ;;  %v2283_v0 = vpack.c.bf16 %v2520_v5, %v2520_v5  ;;  %v1971_v40 = vmul.f32 %v2520_v5, %v2520_v5  ;;  %v1918_v19 = vsel %vm1004_vm5, %v2520_v5, 0.0 }
 0x1d7   : > { %1865 = vst.msk [vmem:[%s3176_s28 + $0x40] sm:$0xf] %vm1848_vm8, %v2280_v17  ;;  %v2015_v3 = vsel %vm1004_vm5, %v1968_v36, 0.0  ;;  %v2281_v58 = vpack.c.bf16 %v2521_v7, %v2521_v7  ;;  %v1914_v23 = vsel %vm1004_vm5, %v2521_v7, 0.0  ;;  %v3265_v10 = vpop.f32.mrb[28].mxu0  ;;  %v1969_v14 = vmul.f32 %v2521_v7, %v2521_v7 }
 0x1d8   : > { %v2016_v12 = vadd.f32 %v2015_v3, %v2014_v62  ;;  %1868 = vst.msk [vmem:[%s3176_s28 + $0x4c] sm:$0xf] %vm1848_vm8, %v2283_v0  ;;  %v1915_v13 = vadd.f32 %v1914_v23, %v1913_v63  ;;  %v3269_v28 = vpop.f32.mrb[29].mxu0  ;;  %v2019_v30 = vsel %vm1004_vm5, %v1970_v8, 0.0  ;;  %v2021_v32 = vsel %vm1004_vm5, %v1971_v40, 0.0 }
 0x1d9   : > { %1866 = vst.msk [vmem:[%s3176_s28 + $0x44] sm:$0xf] %vm1848_vm8, %v2281_v58  ;;  %v2452_v16 = vpop.f32.mrb[20].mxu1  ;;  %v3274_v1 = vpop.f32.mrb[30].mxu0  ;;  %v2017_v37 = vsel %vm1004_vm5, %v1969_v14, 0.0 }
 0x1da   : > { %v1917_v18 = vadd.f32 %v1916_v15, %v1915_v13  ;;  %v2522_v21 = vadd.f32 %v2488_v48, %v2452_v16  ;;  %v1437_v22 = vpop.f32.mrb[21].mxu1  ;;  %v3277_v24 = vpop.f32.mrb[31].mxu0  ;;  %v2018_v26 = vadd.f32 %v2017_v37, %v2016_v12 }
 0x1db   : > { %v2523_v55 = vadd.f32 %v1641_v20, %v1437_v22  ;;  %v2453_v27 = vpop.f32.mrb[22].mxu1 }
 0x1dc   : > { %v2286_v2 = vpack.c.bf16 %v2522_v21, %v2522_v21  ;;  %v1919_v4 = vadd.f32 %v1918_v19, %v1917_v18  ;;  %v1440_v53 = vpop.f32.mrb[23].mxu1  ;;  %v2020_v56 = vadd.f32 %v2019_v30, %v2018_v26  ;;  %v2524_v11 = vadd.f32 %v2489_v49, %v2453_v27 }
 0x1dd   : > { %v2284_v38 = vpack.c.bf16 %v2523_v55, %v2523_v55  ;;  %v1920_v25 = vsel %vm1004_vm5, %v2523_v55, 0.0  ;;  %v1972_v31 = vmul.f32 %v2523_v55, %v2523_v55  ;;  %v2525_v39 = vadd.f32 %v1644_v50, %v1440_v53 }
 0x1de   : > { %1871 = vst.msk [vmem:[%s3176_s28 + $0x58] sm:$0xf] %vm1848_vm8, %v2286_v2  ;;  %v1921_v33 = vadd.f32 %v1920_v25, %v1919_v4  ;;  %v2022_v41 = vadd.f32 %v2021_v32, %v2020_v56  ;;  %v1974_v45 = vmul.f32 %v2522_v21, %v2522_v21  ;;  %v2287_v46 = vpack.c.bf16 %v2524_v11, %v2524_v11 }
 0x1df   : > { %1869 = vst.msk [vmem:[%s3176_s28 + $0x50] sm:$0xf] %vm1848_vm8, %v2284_v38  ;;  %v2023_v42 = vsel %vm1004_vm5, %v1972_v31, 0.0  ;;  %v2285_v47 = vpack.c.bf16 %v2525_v39, %v2525_v39  ;;  %v1922_v9 = vsel %vm1004_vm5, %v2525_v39, 0.0  ;;  %v1973_v62 = vmul.f32 %v2525_v39, %v2525_v39 }
 0x1e0   : > { %v2024_v29 = vadd.f32 %v2023_v42, %v2022_v41  ;;  %1872 = vst.msk [vmem:[%s3176_s28 + $0x5c] sm:$0xf] %vm1848_vm8, %v2287_v46  ;;  %v1923_v20 = vadd.f32 %v1922_v9, %v1921_v33  ;;  %v1924_v52 = vsel %vm1004_vm5, %v2522_v21, 0.0  ;;  %v1975_v6 = vmul.f32 %v2524_v11, %v2524_v11 }
 0x1e1   : > { %v2456_v48 = vpop.f32.mrb[24].mxu1  ;;  %1870 = vst.msk [vmem:[%s3176_s28 + $0x54] sm:$0xf] %vm1848_vm8, %v2285_v47  ;;  %v2025_v54 = vsel %vm1004_vm5, %v1973_v62, 0.0  ;;  %v2027_v61 = vsel %vm1004_vm5, %v1974_v45, 0.0  ;;  %v1926_v36 = vsel %vm1004_vm5, %v2524_v11, 0.0 }
 0x1e2   : > { %v2526_v49 = vadd.f32 %v3250_v34, %v2456_v48  ;;  %v1453_v50 = vpop.f32.mrb[25].mxu1  ;;  %v1925_v5 = vadd.f32 %v1924_v52, %v1923_v20  ;;  %v2026_v43 = vadd.f32 %v2025_v54, %v2024_v29  ;;  %v2029_v23 = vsel %vm1004_vm5, %v1975_v6, 0.0 }
 0x1e3   : > { %v2527_v59 = vadd.f32 %v3252_v51, %v1453_v50  ;;  %v2457_v60 = vpop.f32.mrb[26].mxu1 }
 0x1e4   : > { %v2290_v17 = vpack.c.bf16 %v2526_v49, %v2526_v49  ;;  %v1456_v35 = vpop.f32.mrb[27].mxu1  ;;  %v2028_v0 = vadd.f32 %v2027_v61, %v2026_v43  ;;  %v1927_v3 = vadd.f32 %v1926_v36, %v1925_v5  ;;  %v2528_v51 = vadd.f32 %v3254_v44, %v2457_v60 }
 0x1e5   : > { %v2288_v34 = vpack.c.bf16 %v2527_v59, %v2527_v59  ;;  %v1928_v7 = vsel %vm1004_vm5, %v2527_v59, 0.0  ;;  %v1976_v63 = vmul.f32 %v2527_v59, %v2527_v59  ;;  %v2529_v58 = vadd.f32 %v3256_v57, %v1456_v35 }
 0x1e6   : > { %1875 = vst.msk [vmem:[%s3176_s28 + $0x68] sm:$0xf] %vm1848_vm8, %v2290_v17  ;;  %v1978_v12 = vmul.f32 %v2526_v49, %v2526_v49  ;;  %v1929_v13 = vadd.f32 %v1928_v7, %v1927_v3  ;;  %v2030_v14 = vadd.f32 %v2029_v23, %v2028_v0  ;;  %v2291_v15 = vpack.c.bf16 %v2528_v51, %v2528_v51 }
 0x1e7   : > { %1873 = vst.msk [vmem:[%s3176_s28 + $0x60] sm:$0xf] %vm1848_vm8, %v2288_v34  ;;  %v2031_v8 = vsel %vm1004_vm5, %v1976_v63, 0.0  ;;  %v2289_v16 = vpack.c.bf16 %v2529_v58, %v2529_v58  ;;  %v1930_v40 = vsel %vm1004_vm5, %v2529_v58, 0.0  ;;  %v1977_v18 = vmul.f32 %v2529_v58, %v2529_v58 }
 0x1e8   : > { %v2032_v21 = vadd.f32 %v2031_v8, %v2030_v14  ;;  %1876 = vst.msk [vmem:[%s3176_s28 + $0x6c] sm:$0xf] %vm1848_vm8, %v2291_v15  ;;  %v1931_v44 = vadd.f32 %v1930_v40, %v1929_v13  ;;  %v1932_v19 = vsel %vm1004_vm5, %v2526_v49, 0.0  ;;  %v1979_v26 = vmul.f32 %v2528_v51, %v2528_v51 }
 0x1e9   : > { %v2460_v37 = vpop.f32.mrb[28].mxu1  ;;  %1874 = vst.msk [vmem:[%s3176_s28 + $0x64] sm:$0xf] %vm1848_vm8, %v2289_v16  ;;  %v2033_v55 = vsel %vm1004_vm5, %v1977_v18, 0.0  ;;  %v2035_v2 = vsel %vm1004_vm5, %v1978_v12, 0.0 }
 0x1ea   : > { %v2530_v57 = vadd.f32 %v3265_v10, %v2460_v37  ;;  %v1469_v22 = vpop.f32.mrb[29].mxu1  ;;  %v1933_v4 = vadd.f32 %v1932_v19, %v1931_v44  ;;  %v2034_v53 = vadd.f32 %v2033_v55, %v2032_v21  ;;  %v1934_v10 = vsel %vm1004_vm5, %v2528_v51, 0.0 }
 0x1eb   : > { %v2531_v27 = vadd.f32 %v3269_v28, %v1469_v22  ;;  %v2461_v30 = vpop.f32.mrb[30].mxu1  ;;  %v2037_v41 = vsel %vm1004_vm5, %v1979_v26, 0.0 }
 0x1ec   : > { %v2294_v56 = vpack.c.bf16 %v2530_v57, %v2530_v57  ;;  %v1472_v38 = vpop.f32.mrb[31].mxu1  ;;  %v2036_v33 = vadd.f32 %v2035_v2, %v2034_v53  ;;  %v1935_v11 = vadd.f32 %v1934_v10, %v1933_v4  ;;  %v2532_v28 = vadd.f32 %v3274_v1, %v2461_v30 }
 0x1ed   : > { %v2292_v25 = vpack.c.bf16 %v2531_v27, %v2531_v27  ;;  %v1936_v31 = vsel %vm1004_vm5, %v2531_v27, 0.0  ;;  %v1980_v32 = vmul.f32 %v2531_v27, %v2531_v27  ;;  %v2533_v39 = vadd.f32 %v3277_v24, %v1472_v38 }
 0x1ee   : > { %1879 = vst.msk [vmem:[%s3176_s28 + $0x78] sm:$0xf] %vm1848_vm8, %v2294_v56  ;;  %v1937_v45 = vadd.f32 %v1936_v31, %v1935_v11  ;;  %v2038_v46 = vadd.f32 %v2037_v41, %v2036_v33  ;;  %v2295_v47 = vpack.c.bf16 %v2532_v28, %v2532_v28  ;;  %v1982_v29 = vmul.f32 %v2530_v57, %v2530_v57 }
 0x1ef   : > { %1877 = vst.msk [vmem:[%s3176_s28 + $0x70] sm:$0xf] %vm1848_vm8, %v2292_v25  ;;  %v2039_v42 = vsel %vm1004_vm5, %v1980_v32, 0.0  ;;  %v2293_v9 = vpack.c.bf16 %v2533_v39, %v2533_v39  ;;  %v1938_v62 = vsel %vm1004_vm5, %v2533_v39, 0.0  ;;  %v1981_v48 = vmul.f32 %v2533_v39, %v2533_v39 }
 0x1f0   : > { %v2040_v20 = vadd.f32 %v2039_v42, %v2038_v46  ;;  %1880 = vst.msk [vmem:[%s3176_s28 + $0x7c] sm:$0xf] %vm1848_vm8, %v2295_v47  ;;  %v1939_v1 = vadd.f32 %v1938_v62, %v1937_v45  ;;  %v1940_v24 = vsel %vm1004_vm5, %v2530_v57, 0.0  ;;  %v1983_v49 = vmul.f32 %v2532_v28, %v2532_v28 }
 0x1f1   : > { %1878 = vst.msk [vmem:[%s3176_s28 + $0x74] sm:$0xf] %vm1848_vm8, %v2293_v9  ;;  %v2041_v50 = vsel %vm1004_vm5, %v1981_v48, 0.0  ;;  %v2043_v54 = vsel %vm1004_vm5, %v1982_v29, 0.0  ;;  %v1942_v59 = vsel %vm1004_vm5, %v2532_v28, 0.0 }
 0x1f2   : > { %v1941_v52 = vadd.f32 %v1940_v24, %v1939_v1  ;;  %v2042_v6 = vadd.f32 %v2041_v50, %v2040_v20  ;;  %v2045_v5 = vsel %vm1004_vm5, %v1983_v49, 0.0 }
 0x1f4   : > { %v1943_v60 = vadd.f32 %v1942_v59, %v1941_v52  ;;  %v2044_v61 = vadd.f32 %v2043_v54, %v2042_v6 }
 0x1f6   : > { %v1944_v43 = vrot.slane %v1943_v60, 4  ;;  %v2046_v17 = vadd.f32 %v2045_v5, %v2044_v61 }
 0x1f8   : > { %v1945_v35 = vadd.f32 %v1944_v43, %v1943_v60  ;;  %v2047_v36 = vrot.slane %v2046_v17, 4 }
 0x1fa   : > { %v1946_v34 = vrot.slane %v1945_v35, 2  ;;  %v2048_v7 = vadd.f32 %v2047_v36, %v2046_v17 }
 0x1fc   : > { %v1947_v63 = vadd.f32 %v1946_v34, %v1945_v35  ;;  %v2049_v0 = vrot.slane %v2048_v7, 2 }
 0x1fe   : > { %v1948_v3 = vrot.slane %v1947_v63, 1  ;;  %v2050_v51 = vadd.f32 %v2049_v0, %v2048_v7 }
 0x200   : > { %v1949_v58 = vadd.f32 %v1948_v3, %v1947_v63  ;;  %v2051_v23 = vrot.slane %v2050_v51, 1 }
 0x202   : > { %1951 = vst.msk [vmem:[%s265_s7] sm:$0x1] %vm1950_vm9, %v1949_v58  ;;  %v2052_v8 = vadd.f32 %v2051_v23, %v2050_v51 }
 0x204   : > { %2053 = vst.msk [vmem:[%s268_s10] sm:$0x1] %vm1950_vm9, %v2052_v8 }
 0x205 PF: > { %s17_s21 = sadd.s32 1, %s2596_s21  }
 0x206   : > { %p14_p4 = scmp.ge.s32.totalorder %s17_s21, 4  }
 0x208   :  { %16 = sbr.rel (!%p14_p4) target bundleno = 1 (0x1), region = 92 }

// kernel: inception_forward.9
= control target key start
LH: loop header
LB: loop body
LE: loop exit
PB: predicated region body
PF: predicated region fallthrough
CT: control target
= control target key end

     0   :  { %s2995_s30 = smov 120   ;;  %s4525_s0 = inlined_call_operand.vmem [shape: bf16[512,24], index: 0, kind: input, shape index: {}]   ;;  %s4526_s1 = inlined_call_operand.vmem [shape: bf16[512,8], index: 1, kind: input, shape index: {}]   ;;  %s4527_s2 = inlined_call_operand.vmem [shape: bf16[512,8], index: 2, kind: input, shape index: {}]   ;;  %s4528_s3 = inlined_call_operand.vmem [shape: f32[1,32], index: 3, kind: input, shape index: {}]   ;;  %s4529_s4 = inlined_call_operand.vmem [shape: f32[1,32], index: 4, kind: input, shape index: {}]   ;;  %s4530_s5 = inlined_call_operand.hbm [shape: f32[512,32], index: 5, kind: output, shape index: {}]  }
   0x1   :  { %v2234_v0 = vld [vmem:[%s4525_s0 + $0x10] sm:$0xff]   ;;  %v1850_v1 = vld [vmem:[%s4525_s0] sm:$0xff]   ;;  %v2235_v2 = vld [vmem:[%s4525_s0 + $0x18] sm:$0xff]  }
   0x2   :  { %v1859_v3 = vunpack.c.l.bf16 %v2234_v0  ;;  %v1860_v4 = vunpack.c.h.bf16 %v2234_v0  ;;  %v1851_v5 = vunpack.c.l.bf16 %v1850_v1  ;;  %v1852_v6 = vunpack.c.h.bf16 %v1850_v1  ;;  %v2233_v7 = vld [vmem:[%s4525_s0 + $0x8] sm:$0xff]   ;;  %v2236_v13 = vld [vmem:[%s4525_s0 + $0x20] sm:$0xff]   ;;  %v2239_v22 = vld [vmem:[%s4525_s0 + $0x38] sm:$0xff]  }
   0x3   :  { %v2237_v8 = vld [vmem:[%s4525_s0 + $0x28] sm:$0xff]   ;;  %v1863_v9 = vunpack.c.l.bf16 %v2235_v2  ;;  %v1864_v10 = vunpack.c.h.bf16 %v2235_v2  ;;  %v1855_v11 = vunpack.c.l.bf16 %v2233_v7  ;;  %v1856_v12 = vunpack.c.h.bf16 %v2233_v7  ;;  %v2238_v23 = vld [vmem:[%s4525_s0 + $0x30] sm:$0xff]   ;;  %v2240_v31 = vld [vmem:[%s4525_s0 + $0x40] sm:$0xff]  }
   0x4   :  { %v3048_v14 = vpack.i.bf16 %v1860_v4, %v1859_v3  ;;  %v3050_v15 = vpack.i.bf16 %v1852_v6, %v1851_v5  ;;  %v1871_v17 = vunpack.c.l.bf16 %v2237_v8  ;;  %v1872_v19 = vunpack.c.h.bf16 %v2237_v8  ;;  %v2241_v30 = vld [vmem:[%s4525_s0 + $0x48] sm:$0xff]   ;;  %v2243_v38 = vld [vmem:[%s4525_s0 + $0x58] sm:$0xff]   ;;  %v2242_v39 = vld [vmem:[%s4525_s0 + $0x50] sm:$0xff]  }
   0x5   :  { %v3052_v16 = vpack.i.bf16 %v1864_v10, %v1863_v9  ;;  %v3058_v18 = vpack.i.bf16 %v1856_v12, %v1855_v11  ;;  %v1867_v20 = vunpack.c.l.bf16 %v2236_v13  ;;  %v1868_v21 = vunpack.c.h.bf16 %v2236_v13  ;;  %v2245_v46 = vld [vmem:[%s4525_s0 + $0x68] sm:$0xff]   ;;  %v2244_v47 = vld [vmem:[%s4525_s0 + $0x60] sm:$0xff]   ;;  %v2247_v54 = vld [vmem:[%s4525_s0 + $0x78] sm:$0xff]  }
   0x6   :  { %2342 = vrot.lane.b32.xlu1 %v3048_v14, %s2995_s30  ;;  %2332 = vrot.lane.b32.xlu0 %v3050_v15, %s2995_s30  ;;  %v1879_v24 = vunpack.c.l.bf16 %v2239_v22  ;;  %v1880_v25 = vunpack.c.h.bf16 %v2239_v22  ;;  %v3070_v26 = vpack.i.bf16 %v1872_v19, %v1871_v17  ;;  %v1875_v28 = vunpack.c.l.bf16 %v2238_v23  ;;  %v2246_v55 = vld [vmem:[%s4525_s0 + $0x70] sm:$0xff]   ;;  %v2249_v62 = vld [vmem:[%s4525_s0 + $0x88] sm:$0xff]  }
   0x7   :  { %v3072_v27 = vpack.i.bf16 %v1868_v21, %v1867_v20  ;;  %v1876_v29 = vunpack.c.h.bf16 %v2238_v23  ;;  %v1887_v32 = vunpack.c.l.bf16 %v2241_v30  ;;  %v1888_v33 = vunpack.c.h.bf16 %v2241_v30  ;;  %v2248_v63 = vld [vmem:[%s4525_s0 + $0x80] sm:$0xff]  }
   0x8   :  { %v3084_v34 = vpack.i.bf16 %v1880_v25, %v1879_v24  ;;  %v1883_v36 = vunpack.c.l.bf16 %v2240_v31  ;;  %v1884_v37 = vunpack.c.h.bf16 %v2240_v31  ;;  %v1895_v40 = vunpack.c.l.bf16 %v2243_v38 }
   0x9   :  { %v3086_v35 = vpack.i.bf16 %v1876_v29, %v1875_v28  ;;  %v1896_v41 = vunpack.c.h.bf16 %v2243_v38  ;;  %v3098_v42 = vpack.i.bf16 %v1888_v33, %v1887_v32  ;;  %v1891_v44 = vunpack.c.l.bf16 %v2242_v39 }
   0xa   :  { %2347 = vrot.lane.b32.xlu1 %v3052_v16, %s2995_s30  ;;  %2337 = vrot.lane.b32.xlu0 %v3058_v18, %s2995_s30  ;;  %v3100_v43 = vpack.i.bf16 %v1884_v37, %v1883_v36  ;;  %v1892_v45 = vunpack.c.h.bf16 %v2242_v39  ;;  %v1903_v49 = vunpack.c.l.bf16 %v2245_v46  ;;  %v1904_v51 = vunpack.c.h.bf16 %v2245_v46 }
   0xb   :  { %v3108_v48 = vpack.i.bf16 %v1896_v41, %v1895_v40  ;;  %v1899_v52 = vunpack.c.l.bf16 %v2244_v47  ;;  %v1900_v53 = vunpack.c.h.bf16 %v2244_v47  ;;  %v1911_v56 = vunpack.c.l.bf16 %v2247_v54 }
   0xc   :  { %v3114_v50 = vpack.i.bf16 %v1892_v45, %v1891_v44  ;;  %v1912_v57 = vunpack.c.h.bf16 %v2247_v54  ;;  %v3126_v58 = vpack.i.bf16 %v1904_v51, %v1903_v49  ;;  %v1907_v60 = vunpack.c.l.bf16 %v2246_v55 }
   0xd   :  { %v3128_v59 = vpack.i.bf16 %v1900_v53, %v1899_v52  ;;  %v1908_v61 = vunpack.c.h.bf16 %v2246_v55  ;;  %v1919_v1 = vunpack.c.l.bf16 %v2249_v62 }
   0xe   :  { %2357 = vrot.lane.b32.xlu1 %v3070_v26, %s2995_s30  ;;  %2352 = vrot.lane.b32.xlu0 %v3072_v27, %s2995_s30  ;;  %v3136_v0 = vpack.i.bf16 %v1912_v57, %v1911_v56 }
  0x12   :  { %2367 = vrot.lane.b32.xlu1 %v3084_v34, %s2995_s30  ;;  %2362 = vrot.lane.b32.xlu0 %v3086_v35, %s2995_s30 }
  0x16   :  { %2377 = vrot.lane.b32.xlu1 %v3098_v42, %s2995_s30  ;;  %2372 = vrot.lane.b32.xlu0 %v3100_v43, %s2995_s30 }
  0x1a   :  { %2387 = vrot.lane.b32.xlu1 %v3108_v48, %s2995_s30  ;;  %2382 = vrot.lane.b32.xlu0 %v3114_v50, %s2995_s30 }
  0x1b   :  { %10 = vsyncpa [#allocation3], 0  ;;  %v3142_v2 = vpack.i.bf16 %v1908_v61, %v1907_v60  ;;  %v1920_v3 = vunpack.c.h.bf16 %v2249_v62  ;;  %v1915_v4 = vunpack.c.l.bf16 %v2248_v63  ;;  %v1916_v5 = vunpack.c.h.bf16 %v2248_v63  ;;  %v2251_v6 = vld [vmem:[%s4525_s0 + $0x98] sm:$0xff]   ;;  %v2250_v7 = vld [vmem:[%s4525_s0 + $0x90] sm:$0xff]   ;;  %s2996_s21 = smov 8   ;;  %s2997_s10 = smov 16  }
  0x1c   :  { %v1927_v8 = vunpack.c.l.bf16 %v2251_v6  ;;  %v1928_v9 = vunpack.c.h.bf16 %v2251_v6  ;;  %v1923_v12 = vunpack.c.l.bf16 %v2250_v7  ;;  %v1924_v13 = vunpack.c.h.bf16 %v2250_v7  ;;  %v2253_v17 = vld [vmem:[%s4525_s0 + $0xa8] sm:$0xff]   ;;  %v2252_v19 = vld [vmem:[%s4525_s0 + $0xa0] sm:$0xff]   ;;  %v2255_v28 = vld [vmem:[%s4525_s0 + $0xb8] sm:$0xff]  }
  0x1d   :  { %v3154_v10 = vpack.i.bf16 %v1920_v3, %v1919_v1  ;;  %v3156_v11 = vpack.i.bf16 %v1916_v5, %v1915_v4  ;;  %v1935_v21 = vunpack.c.l.bf16 %v2253_v17  ;;  %v1936_v23 = vunpack.c.h.bf16 %v2253_v17  ;;  %v2254_v29 = vld [vmem:[%s4525_s0 + $0xb0] sm:$0xff]   ;;  %v2257_v38 = vld [vmem:[%s4525_s0 + $0xc8] sm:$0xff]   ;;  %v2256_v39 = vld [vmem:[%s4525_s0 + $0xc0] sm:$0xff]  }
  0x1e   :  { %2397 = vrot.lane.b32.xlu1 %v3126_v58, %s2995_s30  ;;  %2392 = vrot.lane.b32.xlu0 %v3128_v59, %s2995_s30  ;;  %v3164_v20 = vpack.i.bf16 %v1928_v9, %v1927_v8  ;;  %v3170_v22 = vpack.i.bf16 %v1924_v13, %v1923_v12  ;;  %v1931_v24 = vunpack.c.l.bf16 %v2252_v19  ;;  %v1932_v25 = vunpack.c.h.bf16 %v2252_v19  ;;  %v2259_v49 = vld [vmem:[%s4525_s0 + $0xd8] sm:$0xff]   ;;  %v2258_v51 = vld [vmem:[%s4525_s0 + $0xd0] sm:$0xff]  }
  0x1f   :  { %v1943_v30 = vunpack.c.l.bf16 %v2255_v28  ;;  %v1944_v31 = vunpack.c.h.bf16 %v2255_v28  ;;  %v3182_v32 = vpack.i.bf16 %v1936_v23, %v1935_v21  ;;  %v1939_v36 = vunpack.c.l.bf16 %v2254_v29  ;;  %v2261_v60 = vld [vmem:[%s4525_s0 + $0xe8] sm:$0xff]   ;;  %v2260_v61 = vld [vmem:[%s4525_s0 + $0xe0] sm:$0xff]   ;;  %v2263_v6 = vld [vmem:[%s4525_s0 + $0xf8] sm:$0xff]  }
  0x20   :  { %v3184_v33 = vpack.i.bf16 %v1932_v25, %v1931_v24  ;;  %v1940_v37 = vunpack.c.h.bf16 %v2254_v29  ;;  %v1951_v41 = vunpack.c.l.bf16 %v2257_v38  ;;  %v1952_v45 = vunpack.c.h.bf16 %v2257_v38  ;;  %v2262_v7 = vld [vmem:[%s4525_s0 + $0xf0] sm:$0xff]   ;;  %v2264_v21 = vld [vmem:[%s4526_s1 + $0x8] sm:$0xff]   ;;  %v1978_v23 = vld [vmem:[%s4526_s1] sm:$0xff]  }
  0x21   :  { %v3192_v40 = vpack.i.bf16 %v1944_v31, %v1943_v30  ;;  %v1947_v46 = vunpack.c.l.bf16 %v2256_v39  ;;  %v1948_v47 = vunpack.c.h.bf16 %v2256_v39  ;;  %v1959_v52 = vunpack.c.l.bf16 %v2259_v49 }
  0x22   :  { %2407 = vrot.lane.b32.xlu1 %v3136_v0, %s2995_s30  ;;  %2402 = vrot.lane.b32.xlu0 %v3142_v2, %s2995_s30  ;;  %v3198_v44 = vpack.i.bf16 %v1940_v37, %v1939_v36  ;;  %v1960_v53 = vunpack.c.h.bf16 %v2259_v49  ;;  %v3210_v54 = vpack.i.bf16 %v1952_v45, %v1951_v41  ;;  %v1955_v56 = vunpack.c.l.bf16 %v2258_v51  ;;  %v2266_v36 = vld [vmem:[%s4526_s1 + $0x18] sm:$0xff]   ;;  %v2265_v37 = vld [vmem:[%s4526_s1 + $0x10] sm:$0xff]  }
  0x23   :  { %v3212_v55 = vpack.i.bf16 %v1948_v47, %v1947_v46  ;;  %v1956_v57 = vunpack.c.h.bf16 %v2258_v51  ;;  %v1967_v63 = vunpack.c.l.bf16 %v2261_v60  ;;  %v1968_v3 = vunpack.c.h.bf16 %v2261_v60  ;;  %v2268_v49 = vld [vmem:[%s4526_s1 + $0x28] sm:$0xff]   ;;  %v2267_v51 = vld [vmem:[%s4526_s1 + $0x20] sm:$0xff]  }
  0x24   :  { %4554 = vst [vmem:[#allocation5_spill] sm:$0xff] %v3210_v54  ;;  %v3220_v62 = vpack.i.bf16 %v1960_v53, %v1959_v52  ;;  %v1963_v4 = vunpack.c.l.bf16 %v2260_v61  ;;  %v1964_v5 = vunpack.c.h.bf16 %v2260_v61  ;;  %v1975_v8 = vunpack.c.l.bf16 %v2263_v6 }
  0x25   :  { %4555 = vst [vmem:[#allocation6_spill] sm:$0xff] %v3212_v55  ;;  %v3226_v1 = vpack.i.bf16 %v1956_v57, %v1955_v56  ;;  %v1976_v9 = vunpack.c.h.bf16 %v2263_v6  ;;  %v3238_v12 = vpack.i.bf16 %v1968_v3, %v1967_v63  ;;  %v1971_v17 = vunpack.c.l.bf16 %v2262_v7  ;;  %v2270_v63 = vld [vmem:[%s4526_s1 + $0x38] sm:$0xff]   ;;  %v2269_v3 = vld [vmem:[%s4526_s1 + $0x30] sm:$0xff]  }
  0x26   :  { %2417 = vrot.lane.b32.xlu1 %v3154_v10, %s2995_s30  ;;  %2412 = vrot.lane.b32.xlu0 %v3156_v11, %s2995_s30  ;;  %4556 = vst [vmem:[#allocation7_spill] sm:$0xff] %v3220_v62  ;;  %v3240_v13 = vpack.i.bf16 %v1964_v5, %v1963_v4  ;;  %v1972_v19 = vunpack.c.h.bf16 %v2262_v7  ;;  %v1983_v25 = vunpack.c.l.bf16 %v2264_v21  ;;  %v1984_v29 = vunpack.c.h.bf16 %v2264_v21 }
  0x27   :  { %4557 = vst [vmem:[#allocation8_spill] sm:$0xff] %v3226_v1  ;;  %4558 = vst [vmem:[#allocation9_spill] sm:$0xff] %v3238_v12  ;;  %v3248_v24 = vpack.i.bf16 %v1976_v9, %v1975_v8  ;;  %v1979_v30 = vunpack.c.l.bf16 %v1978_v23  ;;  %v1980_v31 = vunpack.c.h.bf16 %v1978_v23  ;;  %v1991_v38 = vunpack.c.l.bf16 %v2266_v36 }
  0x28   :  { %4559 = vst [vmem:[#allocation10_spill] sm:$0xff] %v3240_v13  ;;  %v3254_v28 = vpack.i.bf16 %v1972_v19, %v1971_v17  ;;  %v1992_v39 = vunpack.c.h.bf16 %v2266_v36  ;;  %v2496_v41 = vpack.i.bf16 %v1984_v29, %v1983_v25  ;;  %v1987_v46 = vunpack.c.l.bf16 %v2265_v37  ;;  %v2272_v17 = vld [vmem:[%s4526_s1 + $0x48] sm:$0xff]   ;;  %v2271_v19 = vld [vmem:[%s4526_s1 + $0x40] sm:$0xff]   ;;  %v2274_v36 = vld [vmem:[%s4526_s1 + $0x58] sm:$0xff]  }
  0x29   :  { %4560 = vst [vmem:[#allocation11_spill] sm:$0xff] %v3248_v24  ;;  %v2491_v45 = vpack.i.bf16 %v1980_v31, %v1979_v30  ;;  %v1988_v47 = vunpack.c.h.bf16 %v2265_v37  ;;  %v1999_v53 = vunpack.c.l.bf16 %v2268_v49  ;;  %v2000_v57 = vunpack.c.h.bf16 %v2268_v49  ;;  %v2273_v37 = vld [vmem:[%s4526_s1 + $0x50] sm:$0xff]   ;;  %v2276_v49 = vld [vmem:[%s4526_s1 + $0x68] sm:$0xff]  }
  0x2a   :  { %2427 = vrot.lane.b32.xlu1 %v3164_v20, %s2995_s30  ;;  %2422 = vrot.lane.b32.xlu0 %v3170_v22, %s2995_s30  ;;  %4561 = vst [vmem:[#allocation12_spill] sm:$0xff] %v3254_v28  ;;  %v2506_v52 = vpack.i.bf16 %v1992_v39, %v1991_v38  ;;  %v1995_v60 = vunpack.c.l.bf16 %v2267_v51  ;;  %v1996_v61 = vunpack.c.h.bf16 %v2267_v51  ;;  %v2007_v4 = vunpack.c.l.bf16 %v2270_v63  ;;  %v2275_v51 = vld [vmem:[%s4526_s1 + $0x60] sm:$0xff]  }
  0x2b   :  { %v2501_v56 = vpack.i.bf16 %v1988_v47, %v1987_v46  ;;  %v2008_v5 = vunpack.c.h.bf16 %v2270_v63  ;;  %v2516_v6 = vpack.i.bf16 %v2000_v57, %v1999_v53  ;;  %v2003_v8 = vunpack.c.l.bf16 %v2269_v3  ;;  %v2278_v63 = vld [vmem:[%s4526_s1 + $0x78] sm:$0xff]  }
  0x2c   :  { %v2511_v7 = vpack.i.bf16 %v1996_v61, %v1995_v60  ;;  %v2004_v9 = vunpack.c.h.bf16 %v2269_v3  ;;  %v2015_v23 = vunpack.c.l.bf16 %v2272_v17  ;;  %v2016_v29 = vunpack.c.h.bf16 %v2272_v17  ;;  %v2277_v3 = vld [vmem:[%s4526_s1 + $0x70] sm:$0xff]   ;;  %v2280_v17 = vld [vmem:[%s4526_s1 + $0x88] sm:$0xff]  }
  0x2d   :  { %v2526_v21 = vpack.i.bf16 %v2008_v5, %v2007_v4  ;;  %v2011_v30 = vunpack.c.l.bf16 %v2271_v19  ;;  %v2012_v31 = vunpack.c.h.bf16 %v2271_v19  ;;  %v2023_v38 = vunpack.c.l.bf16 %v2274_v36  ;;  %v2279_v19 = vld [vmem:[%s4526_s1 + $0x80] sm:$0xff]  }
  0x2e   :  { %2437 = vrot.lane.b32.xlu1 %v3182_v32, %s2995_s30  ;;  %2432 = vrot.lane.b32.xlu0 %v3184_v33, %s2995_s30  ;;  %v2521_v25 = vpack.i.bf16 %v2004_v9, %v2003_v8  ;;  %v2024_v39 = vunpack.c.h.bf16 %v2274_v36  ;;  %v2019_v46 = vunpack.c.l.bf16 %v2273_v37  ;;  %v2020_v47 = vunpack.c.h.bf16 %v2273_v37  ;;  %v2282_v36 = vld [vmem:[%s4526_s1 + $0x98] sm:$0xff]   ;;  %v2281_v37 = vld [vmem:[%s4526_s1 + $0x90] sm:$0xff]  }
  0x2f   :  { %v2031_v53 = vunpack.c.l.bf16 %v2276_v49  ;;  %v2032_v57 = vunpack.c.h.bf16 %v2276_v49  ;;  %v2027_v60 = vunpack.c.l.bf16 %v2275_v51  ;;  %v2028_v61 = vunpack.c.h.bf16 %v2275_v51  ;;  %v2284_v49 = vld [vmem:[%s4526_s1 + $0xa8] sm:$0xff]   ;;  %v2283_v51 = vld [vmem:[%s4526_s1 + $0xa0] sm:$0xff]  }
  0x30   :  { %v2039_v4 = vunpack.c.l.bf16 %v2278_v63  ;;  %v2040_v5 = vunpack.c.h.bf16 %v2278_v63  ;;  %v2035_v8 = vunpack.c.l.bf16 %v2277_v3  ;;  %v2036_v9 = vunpack.c.h.bf16 %v2277_v3  ;;  %v2286_v63 = vld [vmem:[%s4526_s1 + $0xb8] sm:$0xff]   ;;  %v2285_v3 = vld [vmem:[%s4526_s1 + $0xb0] sm:$0xff]  }
  0x31   :  { %vm1365_vm0 = vcmask 64512   ;;  %vm1430_vm1 = vcmask 130048   ;;  %vm1495_vm2 = vcmask 195584   ;;  %vm1766_vm3 = vcmask 261120  }
  0x32   :  { %2447 = vrot.lane.b32.xlu1 %v3192_v40, %s2995_s30  ;;  %2442 = vrot.lane.b32.xlu0 %v3198_v44, %s2995_s30 }
  0x36   :  { %2457 = vrot.lane.b32.xlu1 %v3210_v54, %s2995_s30  ;;  %2452 = vrot.lane.b32.xlu0 %v3212_v55, %s2995_s30 }
  0x3a   :  { %2467 = vrot.lane.b32.xlu1 %v3220_v62, %s2995_s30  ;;  %2462 = vrot.lane.b32.xlu0 %v3226_v1, %s2995_s30 }
  0x3e   :  { %2477 = vrot.lane.b32.xlu1 %v3238_v12, %s2995_s30  ;;  %2472 = vrot.lane.b32.xlu0 %v3240_v13, %s2995_s30  ;;  %v2314_v12 = vld [vmem:[%s4527_s2 + $0xa0] sm:$0xff]  }
  0x42   :  { %2487 = vrot.lane.b32.xlu1 %v3248_v24, %s2995_s30  ;;  %2482 = vrot.lane.b32.xlu0 %v3254_v28, %s2995_s30 }
  0x46   :  { %2497 = vrot.lane.b32.xlu1 %v2496_v41, %s2996_s21  ;;  %2492 = vrot.lane.b32.xlu0 %v2491_v45, %s2996_s21  ;;  %v2536_v41 = vpack.i.bf16 %v2016_v29, %v2015_v23  ;;  %v2531_v45 = vpack.i.bf16 %v2012_v31, %v2011_v30  ;;  %v2047_v23 = vunpack.c.l.bf16 %v2280_v17  ;;  %v2048_v29 = vunpack.c.h.bf16 %v2280_v17  ;;  %v2288_v17 = vld [vmem:[%s4526_s1 + $0xc8] sm:$0xff]  }
  0x47   :  { %v2043_v30 = vunpack.c.l.bf16 %v2279_v19  ;;  %v2044_v31 = vunpack.c.h.bf16 %v2279_v19  ;;  %v2287_v19 = vld [vmem:[%s4526_s1 + $0xc0] sm:$0xff]  }
  0x4a   :  { %2507 = vrot.lane.b32.xlu1 %v2506_v52, %s2996_s21  ;;  %2502 = vrot.lane.b32.xlu0 %v2501_v56, %s2996_s21  ;;  %v2546_v52 = vpack.i.bf16 %v2024_v39, %v2023_v38  ;;  %v2541_v56 = vpack.i.bf16 %v2020_v47, %v2019_v46  ;;  %v2055_v38 = vunpack.c.l.bf16 %v2282_v36  ;;  %v2056_v39 = vunpack.c.h.bf16 %v2282_v36  ;;  %v2290_v36 = vld [vmem:[%s4526_s1 + $0xd8] sm:$0xff]  }
  0x4b   :  { %v2051_v46 = vunpack.c.l.bf16 %v2281_v37  ;;  %v2052_v47 = vunpack.c.h.bf16 %v2281_v37  ;;  %v2289_v37 = vld [vmem:[%s4526_s1 + $0xd0] sm:$0xff]  }
  0x4e   :  { %2517 = vrot.lane.b32.xlu1 %v2516_v6, %s2996_s21  ;;  %2512 = vrot.lane.b32.xlu0 %v2511_v7, %s2996_s21  ;;  %v2556_v6 = vpack.i.bf16 %v2032_v57, %v2031_v53  ;;  %v2551_v7 = vpack.i.bf16 %v2028_v61, %v2027_v60  ;;  %v2063_v53 = vunpack.c.l.bf16 %v2284_v49  ;;  %v2064_v57 = vunpack.c.h.bf16 %v2284_v49  ;;  %v2292_v49 = vld [vmem:[%s4526_s1 + $0xe8] sm:$0xff]  }
  0x4f   :  { %v2059_v60 = vunpack.c.l.bf16 %v2283_v51  ;;  %v2060_v61 = vunpack.c.h.bf16 %v2283_v51  ;;  %v2291_v51 = vld [vmem:[%s4526_s1 + $0xe0] sm:$0xff]  }
  0x52   :  { %2527 = vrot.lane.b32.xlu1 %v2526_v21, %s2996_s21  ;;  %2522 = vrot.lane.b32.xlu0 %v2521_v25, %s2996_s21  ;;  %v2566_v21 = vpack.i.bf16 %v2040_v5, %v2039_v4  ;;  %v2561_v25 = vpack.i.bf16 %v2036_v9, %v2035_v8  ;;  %v2071_v4 = vunpack.c.l.bf16 %v2286_v63  ;;  %v2072_v5 = vunpack.c.h.bf16 %v2286_v63  ;;  %v2294_v63 = vld [vmem:[%s4526_s1 + $0xf8] sm:$0xff]  }
  0x53   :  { %v2067_v8 = vunpack.c.l.bf16 %v2285_v3  ;;  %v2068_v9 = vunpack.c.h.bf16 %v2285_v3  ;;  %v2293_v3 = vld [vmem:[%s4526_s1 + $0xf0] sm:$0xff]  }
  0x56   :  { %2537 = vrot.lane.b32.xlu1 %v2536_v41, %s2996_s21  ;;  %2532 = vrot.lane.b32.xlu0 %v2531_v45, %s2996_s21  ;;  %v2576_v41 = vpack.i.bf16 %v2048_v29, %v2047_v23  ;;  %v2571_v45 = vpack.i.bf16 %v2044_v31, %v2043_v30  ;;  %v2079_v23 = vunpack.c.l.bf16 %v2288_v17  ;;  %v2080_v29 = vunpack.c.h.bf16 %v2288_v17 }
  0x57   :  { %v2075_v30 = vunpack.c.l.bf16 %v2287_v19  ;;  %v2076_v31 = vunpack.c.h.bf16 %v2287_v19  ;;  %v2099_v17 = vunpack.c.l.bf16 %v2293_v3  ;;  %v2100_v19 = vunpack.c.h.bf16 %v2293_v3 }
  0x5a   :  { %2547 = vrot.lane.b32.xlu1 %v2546_v52, %s2996_s21  ;;  %2542 = vrot.lane.b32.xlu0 %v2541_v56, %s2996_s21  ;;  %v2586_v52 = vpack.i.bf16 %v2056_v39, %v2055_v38  ;;  %v2581_v56 = vpack.i.bf16 %v2052_v47, %v2051_v46  ;;  %v2087_v38 = vunpack.c.l.bf16 %v2290_v36  ;;  %v2088_v39 = vunpack.c.h.bf16 %v2290_v36 }
  0x5b   :  { %v2083_v46 = vunpack.c.l.bf16 %v2289_v37  ;;  %v2084_v47 = vunpack.c.h.bf16 %v2289_v37  ;;  %v2641_v36 = vpack.i.bf16 %v2100_v19, %v2099_v17 }
  0x5e   :  { %2557 = vrot.lane.b32.xlu1 %v2556_v6, %s2996_s21  ;;  %2552 = vrot.lane.b32.xlu0 %v2551_v7, %s2996_s21  ;;  %v2596_v6 = vpack.i.bf16 %v2064_v57, %v2063_v53  ;;  %v2591_v7 = vpack.i.bf16 %v2060_v61, %v2059_v60  ;;  %v2095_v53 = vunpack.c.l.bf16 %v2292_v49  ;;  %v2096_v57 = vunpack.c.h.bf16 %v2292_v49 }
  0x5f   :  { %v2091_v60 = vunpack.c.l.bf16 %v2291_v51  ;;  %v2092_v61 = vunpack.c.h.bf16 %v2291_v51 }
  0x62   :  { %2567 = vrot.lane.b32.xlu1 %v2566_v21, %s2996_s21  ;;  %2562 = vrot.lane.b32.xlu0 %v2561_v25, %s2996_s21  ;;  %v2606_v21 = vpack.i.bf16 %v2072_v5, %v2071_v4  ;;  %v2601_v25 = vpack.i.bf16 %v2068_v9, %v2067_v8  ;;  %v2636_v8 = vpack.i.bf16 %v2096_v57, %v2095_v53 }
  0x63   :  { %v2631_v9 = vpack.i.bf16 %v2092_v61, %v2091_v60  ;;  %v2299_v60 = vld [vmem:[%s4527_s2 + $0x28] sm:$0xff]   ;;  %v2298_v61 = vld [vmem:[%s4527_s2 + $0x20] sm:$0xff]  }
  0x64   :  { %v2123_v17 = vunpack.c.l.bf16 %v2298_v61  ;;  %v2124_v19 = vunpack.c.h.bf16 %v2298_v61 }
  0x66   :  { %2577 = vrot.lane.b32.xlu1 %v2576_v41, %s2996_s21  ;;  %2572 = vrot.lane.b32.xlu0 %v2571_v45, %s2996_s21  ;;  %v2616_v41 = vpack.i.bf16 %v2080_v29, %v2079_v23  ;;  %v2611_v45 = vpack.i.bf16 %v2076_v31, %v2075_v30  ;;  %v2106_v23 = vld [vmem:[%s4527_s2] sm:$0xff]  }
  0x6a   :  { %2587 = vrot.lane.b32.xlu1 %v2586_v52, %s2996_s21  ;;  %2582 = vrot.lane.b32.xlu0 %v2581_v56, %s2996_s21  ;;  %v2626_v52 = vpack.i.bf16 %v2088_v39, %v2087_v38  ;;  %v2621_v56 = vpack.i.bf16 %v2084_v47, %v2083_v46  ;;  %v2107_v38 = vunpack.c.l.bf16 %v2106_v23  ;;  %v2108_v39 = vunpack.c.h.bf16 %v2106_v23  ;;  %v2300_v23 = vld [vmem:[%s4527_s2 + $0x30] sm:$0xff]  }
  0x6c   :  { %v2651_v53 = vpack.i.bf16 %v2108_v39, %v2107_v38  ;;  %v2671_v39 = vpack.i.bf16 %v2124_v19, %v2123_v17 }
  0x6e   :  { %2597 = vrot.lane.b32.xlu1 %v2596_v6, %s2996_s21  ;;  %2592 = vrot.lane.b32.xlu0 %v2591_v7, %s2996_s21  ;;  %v2103_v6 = vunpack.c.l.bf16 %v2294_v63  ;;  %v2104_v7 = vunpack.c.h.bf16 %v2294_v63 }
  0x70   :  { %v2646_v30 = vpack.i.bf16 %v2104_v7, %v2103_v6  ;;  %v2127_v7 = vunpack.c.l.bf16 %v2299_v60 }
  0x72   :  { %2607 = vrot.lane.b32.xlu1 %v2606_v21, %s2996_s21  ;;  %2602 = vrot.lane.b32.xlu0 %v2601_v25, %s2996_s21  ;;  %v2295_v21 = vld [vmem:[%s4527_s2 + $0x8] sm:$0xff]  }
  0x73   :  { %v2111_v31 = vunpack.c.l.bf16 %v2295_v21  ;;  %v2112_v37 = vunpack.c.h.bf16 %v2295_v21  ;;  %v2301_v21 = vld [vmem:[%s4527_s2 + $0x38] sm:$0xff]  }
  0x76   :  { %2617 = vrot.lane.b32.xlu1 %v2616_v41, %s2996_s21  ;;  %2612 = vrot.lane.b32.xlu0 %v2611_v45, %s2996_s21  ;;  %v2297_v41 = vld [vmem:[%s4527_s2 + $0x18] sm:$0xff]   ;;  %v2296_v45 = vld [vmem:[%s4527_s2 + $0x10] sm:$0xff]  }
  0x77   :  { %v2119_v49 = vunpack.c.l.bf16 %v2297_v41  ;;  %v2120_v51 = vunpack.c.h.bf16 %v2297_v41  ;;  %v2116_v57 = vunpack.c.h.bf16 %v2296_v45  ;;  %v2131_v41 = vunpack.c.l.bf16 %v2300_v23 }
  0x78   :  { %v3376_v4 = vpop.permute.xlu1 %2342  ;;  %v3378_v5 = vpop.permute.xlu0 %2332 }
  0x79   :  { %4562 = vst [vmem:[#allocation13_spill] sm:$0xff] %v3378_v5  ;;  %v2666_v6 = vpack.i.bf16 %v2120_v51, %v2119_v49  ;;  %v2303_v49 = vld [vmem:[%s4527_s2 + $0x48] sm:$0xff]   ;;  %v2302_v51 = vld [vmem:[%s4527_s2 + $0x40] sm:$0xff]  }
  0x7a   :  { %2627 = vrot.lane.b32.xlu1 %v2626_v52, %s2996_s21  ;;  %2622 = vrot.lane.b32.xlu0 %v2621_v56, %s2996_s21  ;;  %v2656_v52 = vpack.i.bf16 %v2112_v37, %v2111_v31  ;;  %v2115_v56 = vunpack.c.l.bf16 %v2296_v45  ;;  %v2136_v37 = vunpack.c.h.bf16 %v2301_v21  ;;  %v2132_v45 = vunpack.c.h.bf16 %v2300_v23  ;;  %v2310_v5 = vld [vmem:[%s4527_s2 + $0x80] sm:$0xff]  }
  0x7b   :  { %v2144_v61 = vunpack.c.h.bf16 %v2303_v49 }
  0x7c   :  { %v3388_v25 = vpop.permute.xlu1 %2347  ;;  %v3390_v29 = vpop.permute.xlu0 %2337 }
  0x7d   :  { %4563 = vst [vmem:[#allocation14_spill] sm:$0xff] %v3390_v29 }
  0x7e   :  { %2637 = vrot.lane.b32.xlu1 %v2636_v8, %s2996_s21  ;;  %2632 = vrot.lane.b32.xlu0 %v2631_v9, %s2996_s21  ;;  %v2661_v8 = vpack.i.bf16 %v2116_v57, %v2115_v56  ;;  %v2128_v9 = vunpack.c.h.bf16 %v2299_v60  ;;  %v2143_v57 = vunpack.c.l.bf16 %v2303_v49  ;;  %v2681_v60 = vpack.i.bf16 %v2132_v45, %v2131_v41  ;;  %v2307_v41 = vld [vmem:[%s4527_s2 + $0x68] sm:$0xff]   ;;  %v2306_v45 = vld [vmem:[%s4527_s2 + $0x60] sm:$0xff]  }
  0x80   :  { %v3400_v46 = vpop.permute.xlu1 %2357  ;;  %v3402_v47 = vpop.permute.xlu0 %2352  ;;  %v2676_v38 = vpack.i.bf16 %v2128_v9, %v2127_v7  ;;  %v2140_v7 = vunpack.c.h.bf16 %v2302_v51  ;;  %v2304_v9 = vld [vmem:[%s4527_s2 + $0x50] sm:$0xff]  }
  0x82   :  { %2647 = vrot.lane.b32.xlu1 %v2646_v30, %s2996_s21  ;;  %2642 = vrot.lane.b32.xlu0 %v2641_v36, %s2996_s21  ;;  %v2135_v36 = vunpack.c.l.bf16 %v2301_v21 }
  0x84   :  { %v3412_v63 = vpop.permute.xlu1 %2367  ;;  %v3414_v3 = vpop.permute.xlu0 %2362  ;;  %v2686_v56 = vpack.i.bf16 %v2136_v37, %v2135_v36  ;;  %v2696_v36 = vpack.i.bf16 %v2144_v61, %v2143_v57  ;;  %v2155_v61 = vunpack.c.l.bf16 %v2306_v45 }
  0x86   :  { %2657 = vrot.lane.b32.xlu1 %v2656_v52, %s2997_s10  ;;  %2652 = vrot.lane.b32.xlu0 %v2651_v53, %s2997_s10 }
  0x88   :  { %v3424_v30 = vpop.permute.xlu1 %2377  ;;  %v3426_v31 = vpop.permute.xlu0 %2372 }
  0x8a   :  { %2667 = vrot.lane.b32.xlu1 %v2666_v6, %s2997_s10  ;;  %2662 = vrot.lane.b32.xlu0 %v2661_v8, %s2997_s10  ;;  %v2139_v6 = vunpack.c.l.bf16 %v2302_v51  ;;  %v2305_v8 = vld [vmem:[%s4527_s2 + $0x58] sm:$0xff]  }
  0x8b   :  { %v2151_v21 = vunpack.c.l.bf16 %v2305_v8  ;;  %v2152_v23 = vunpack.c.h.bf16 %v2305_v8 }
  0x8c   :  { %v3436_v52 = vpop.permute.xlu1 %2387  ;;  %v3438_v53 = vpop.permute.xlu0 %2382  ;;  %v2691_v37 = vpack.i.bf16 %v2140_v7, %v2139_v6  ;;  %v2156_v6 = vunpack.c.h.bf16 %v2306_v45  ;;  %v2309_v7 = vld [vmem:[%s4527_s2 + $0x78] sm:$0xff]   ;;  %v2311_v45 = vld [vmem:[%s4527_s2 + $0x88] sm:$0xff]  }
  0x8d   :  { %v2706_v8 = vpack.i.bf16 %v2152_v23, %v2151_v21  ;;  %v2167_v23 = vunpack.c.l.bf16 %v2309_v7 }
  0x8e   :  { %2677 = vrot.lane.b32.xlu1 %v2676_v38, %s2997_s10  ;;  %2672 = vrot.lane.b32.xlu0 %v2671_v39, %s2997_s10  ;;  %v2147_v38 = vunpack.c.l.bf16 %v2304_v9  ;;  %v2148_v39 = vunpack.c.h.bf16 %v2304_v9  ;;  %v2308_v9 = vld [vmem:[%s4527_s2 + $0x70] sm:$0xff]  }
  0x90   :  { %v3448_v17 = vpop.permute.xlu1 %2397  ;;  %v3450_v19 = vpop.permute.xlu0 %2392  ;;  %v2701_v57 = vpack.i.bf16 %v2148_v39, %v2147_v38  ;;  %v2711_v38 = vpack.i.bf16 %v2156_v6, %v2155_v61  ;;  %v2163_v39 = vunpack.c.l.bf16 %v2308_v9  ;;  %v2172_v61 = vunpack.c.h.bf16 %v2310_v5  ;;  %v2313_v6 = vld [vmem:[%s4527_s2 + $0x98] sm:$0xff]  }
  0x92   :  { %2687 = vrot.lane.b32.xlu1 %v2686_v56, %s2997_s10  ;;  %2682 = vrot.lane.b32.xlu0 %v2681_v60, %s2997_s10  ;;  %v2159_v56 = vunpack.c.l.bf16 %v2307_v41  ;;  %v2160_v60 = vunpack.c.h.bf16 %v2307_v41  ;;  %v2164_v41 = vunpack.c.h.bf16 %v2308_v9  ;;  %v2312_v9 = vld [vmem:[%s4527_s2 + $0x90] sm:$0xff]  }
  0x94   :  { %v3460_v49 = vpop.permute.xlu1 %2407  ;;  %v3462_v51 = vpop.permute.xlu0 %2402 }
  0x96   :  { %2697 = vrot.lane.b32.xlu1 %v2696_v36, %s2997_s10  ;;  %2692 = vrot.lane.b32.xlu0 %v2691_v37, %s2997_s10  ;;  %v2168_v36 = vunpack.c.h.bf16 %v2309_v7  ;;  %v2716_v37 = vpack.i.bf16 %v2160_v60, %v2159_v56  ;;  %v2721_v56 = vpack.i.bf16 %v2164_v41, %v2163_v39  ;;  %v2171_v60 = vunpack.c.l.bf16 %v2310_v5 }
  0x97   :  { %v2179_v39 = vunpack.c.l.bf16 %v2312_v9  ;;  %v2180_v41 = vunpack.c.h.bf16 %v2312_v9  ;;  %v2316_v9 = vld [vmem:[%s4527_s2 + $0xb0] sm:$0xff]  }
  0x98   :  { %v3472_v29 = vpop.permute.xlu1 %2417  ;;  %v3474_v21 = vpop.permute.xlu0 %2412  ;;  %v2726_v7 = vpack.i.bf16 %v2168_v36, %v2167_v23  ;;  %v2183_v36 = vunpack.c.l.bf16 %v2313_v6  ;;  %v2731_v5 = vpack.i.bf16 %v2172_v61, %v2171_v60  ;;  %v2188_v60 = vunpack.c.h.bf16 %v2314_v12  ;;  %v2317_v61 = vld [vmem:[%s4527_s2 + $0xb8] sm:$0xff]  }
  0x99   :  { %4564 = vst [vmem:[#allocation15_spill] sm:$0xff] %v3474_v21 }
  0x9a   :  { %2707 = vrot.lane.b32.xlu1 %v2706_v8, %s2997_s10  ;;  %2702 = vrot.lane.b32.xlu0 %v2701_v57, %s2997_s10  ;;  %v2175_v8 = vunpack.c.l.bf16 %v2311_v45  ;;  %v2176_v57 = vunpack.c.h.bf16 %v2311_v45  ;;  %v2315_v45 = vld [vmem:[%s4527_s2 + $0xa8] sm:$0xff]  }
  0x9c   :  { %v3484_v28 = vpop.permute.xlu1 %2427  ;;  %v3486_v24 = vpop.permute.xlu0 %2422 }
  0x9d   :  { %4565 = vst [vmem:[#allocation16_spill] sm:$0xff] %v3484_v28  ;;  %4566 = vst [vmem:[#allocation17_spill] sm:$0xff] %v3486_v24 }
  0x9e   :  { %2717 = vrot.lane.b32.xlu1 %v2716_v37, %s2997_s10  ;;  %2712 = vrot.lane.b32.xlu0 %v2711_v38, %s2997_s10  ;;  %v2184_v37 = vunpack.c.h.bf16 %v2313_v6  ;;  %v2736_v38 = vpack.i.bf16 %v2176_v57, %v2175_v8  ;;  %v2741_v8 = vpack.i.bf16 %v2180_v41, %v2179_v39  ;;  %v2187_v57 = vunpack.c.l.bf16 %v2314_v12 }
  0x9f   :  { %v2195_v39 = vunpack.c.l.bf16 %v2316_v9  ;;  %v2196_v41 = vunpack.c.h.bf16 %v2316_v9  ;;  %v2320_v9 = vld [vmem:[%s4527_s2 + $0xd0] sm:$0xff]  }
  0xa0   :  { %v3496_v13 = vpop.permute.xlu1 %2437  ;;  %v3498_v23 = vpop.permute.xlu0 %2432  ;;  %v2746_v6 = vpack.i.bf16 %v2184_v37, %v2183_v36  ;;  %v2199_v37 = vunpack.c.l.bf16 %v2317_v61  ;;  %v2751_v12 = vpack.i.bf16 %v2188_v60, %v2187_v57  ;;  %v2321_v60 = vld [vmem:[%s4527_s2 + $0xd8] sm:$0xff]  }
  0xa1   :  { %4567 = vst [vmem:[#allocation18_spill] sm:$0xff] %v3496_v13  ;;  %4568 = vst [vmem:[#allocation19_spill] sm:$0xff] %v3498_v23  ;;  %v2322_v13 = vld [vmem:[%s4527_s2 + $0xe0] sm:$0xff]  }
  0xa2   :  { %2727 = vrot.lane.b32.xlu1 %v2726_v7, %s2997_s10  ;;  %2722 = vrot.lane.b32.xlu0 %v2721_v56, %s2997_s10  ;;  %v2191_v7 = vunpack.c.l.bf16 %v2315_v45  ;;  %v2192_v56 = vunpack.c.h.bf16 %v2315_v45  ;;  %v2319_v45 = vld [vmem:[%s4527_s2 + $0xc8] sm:$0xff]  }
  0xa4   :  { %v3508_v1 = vpop.permute.xlu1 %2447  ;;  %v3510_v62 = vpop.permute.xlu0 %2442 }
  0xa5   :  { %4569 = vst [vmem:[#allocation20_spill] sm:$0xff] %v3508_v1  ;;  %4570 = vst [vmem:[#allocation21_spill] sm:$0xff] %v3510_v62 }
  0xa6   :  { %2737 = vrot.lane.b32.xlu1 %v2736_v38, %s2997_s10  ;;  %2732 = vrot.lane.b32.xlu0 %v2731_v5, %s2997_s10  ;;  %v2200_v38 = vunpack.c.h.bf16 %v2317_v61  ;;  %v2756_v5 = vpack.i.bf16 %v2192_v56, %v2191_v7  ;;  %v2761_v7 = vpack.i.bf16 %v2196_v41, %v2195_v39  ;;  %v2211_v39 = vunpack.c.l.bf16 %v2320_v9 }
  0xa7   :  { %v2212_v41 = vunpack.c.h.bf16 %v2320_v9  ;;  %v2324_v9 = vld [vmem:[%s4527_s2 + $0xf0] sm:$0xff]  }
  0xa8   :  { %v3520_v1 = vpop.permute.xlu1 %2457  ;;  %v3522_v36 = vpop.permute.xlu0 %2452  ;;  %v2766_v61 = vpack.i.bf16 %v2200_v38, %v2199_v37  ;;  %v2215_v38 = vunpack.c.l.bf16 %v2321_v60 }
  0xa9   :  { %4571 = vst [vmem:[#allocation22_spill] sm:$0xff] %v3520_v1  ;;  %4572 = vst [vmem:[#allocation23_spill] sm:$0xff] %v3522_v36  ;;  %v2318_v1 = vld [vmem:[%s4527_s2 + $0xc0] sm:$0xff]  }
  0xaa   :  { %2747 = vrot.lane.b32.xlu1 %v2746_v6, %s2997_s10  ;;  %2742 = vrot.lane.b32.xlu0 %v2741_v8, %s2997_s10  ;;  %v2207_v6 = vunpack.c.l.bf16 %v2319_v45  ;;  %v2208_v8 = vunpack.c.h.bf16 %v2319_v45  ;;  %v2203_v56 = vunpack.c.l.bf16 %v2318_v1  ;;  %v2204_v57 = vunpack.c.h.bf16 %v2318_v1  ;;  %v2323_v45 = vld [vmem:[%s4527_s2 + $0xe8] sm:$0xff]  }
  0xac   :  { %v3532_v62 = vpop.permute.xlu1 %2467  ;;  %v3534_v36 = vpop.permute.xlu0 %2462  ;;  %v2771_v1 = vpack.i.bf16 %v2204_v57, %v2203_v56  ;;  %v2220_v56 = vunpack.c.h.bf16 %v2322_v13  ;;  %v2325_v57 = vld [vmem:[%s4527_s2 + $0xf8] sm:$0xff]  }
  0xae   :  { %2757 = vrot.lane.b32.xlu1 %v2756_v5, %s2997_s10  ;;  %2752 = vrot.lane.b32.xlu0 %v2751_v12, %s2997_s10  ;;  %v2216_v5 = vunpack.c.h.bf16 %v2321_v60  ;;  %v2776_v12 = vpack.i.bf16 %v2208_v8, %v2207_v6  ;;  %v2781_v6 = vpack.i.bf16 %v2212_v41, %v2211_v39  ;;  %v2219_v8 = vunpack.c.l.bf16 %v2322_v13 }
  0xaf   :  { %v2227_v39 = vunpack.c.l.bf16 %v2324_v9  ;;  %v2228_v41 = vunpack.c.h.bf16 %v2324_v9 }
  0xb0   :  { %v3544_v23 = vpop.permute.xlu1 %2477  ;;  %v3546_v37 = vpop.permute.xlu0 %2472  ;;  %v2786_v60 = vpack.i.bf16 %v2216_v5, %v2215_v38  ;;  %v2231_v5 = vunpack.c.l.bf16 %v2325_v57  ;;  %v2791_v13 = vpack.i.bf16 %v2220_v56, %v2219_v8 }
  0xb2   :  { %2767 = vrot.lane.b32.xlu1 %v2766_v61, %s2997_s10  ;;  %2762 = vrot.lane.b32.xlu0 %v2761_v7, %s2997_s10  ;;  %v2223_v61 = vunpack.c.l.bf16 %v2323_v45  ;;  %v2224_v7 = vunpack.c.h.bf16 %v2323_v45 }
  0xb4   :  { %v3556_v24 = vpop.permute.xlu1 %2487  ;;  %v3558_v28 = vpop.permute.xlu0 %2482 }
  0xb6   :  { %2777 = vrot.lane.b32.xlu1 %v2776_v12, %s2997_s10  ;;  %2772 = vrot.lane.b32.xlu0 %v2771_v1, %s2997_s10  ;;  %v2232_v12 = vunpack.c.h.bf16 %v2325_v57  ;;  %v2796_v1 = vpack.i.bf16 %v2224_v7, %v2223_v61 }
  0xb8   :  { %v3568_v55 = vpop.permute.xlu1 %2497  ;;  %v3570_v38 = vpop.permute.xlu0 %2492 }
  0xb9   :  { %4573 = vst [vmem:[#allocation24_spill] sm:$0xff] %v3568_v55  ;;  %4574 = vst [vmem:[#allocation25_spill] sm:$0xff] %v3570_v38  ;;  %v2806_v55 = vpack.i.bf16 %v2232_v12, %v2231_v5  ;;  %v2801_v38 = vpack.i.bf16 %v2228_v41, %v2227_v39  ;;  %v2465_v5 = vunpack.i.h.bf16 %v3534_v36  ;;  %v2480_v41 = vunpack.i.h.bf16 %v3544_v23 }
  0xba   :  { %2787 = vrot.lane.b32.xlu1 %v2786_v60, %s2997_s10  ;;  %2782 = vrot.lane.b32.xlu0 %v2781_v6, %s2997_s10 }
  0xbc   :  { %v3574_v45 = vpop.permute.xlu1 %2507  ;;  %v3576_v54 = vpop.permute.xlu0 %2502 }
  0xbe   :  { %2797 = vrot.lane.b32.xlu1 %v2796_v1, %s2997_s10  ;;  %2792 = vrot.lane.b32.xlu0 %v2791_v13, %s2997_s10 }
  0xc0   :  { %v3580_v21 = vpop.permute.xlu1 %2517  ;;  %v3582_v57 = vpop.permute.xlu0 %2512 }
  0xc2   :  { %2807 = vrot.lane.b32.xlu1 %v2806_v55, %s2997_s10  ;;  %2802 = vrot.lane.b32.xlu0 %v2801_v38, %s2997_s10  ;;  %v2469_v38 = vunpack.i.l.bf16 %v3532_v62 }
  0xc4   :  { %v3586_v60 = vpop.permute.xlu1 %2527  ;;  %v3588_v61 = vpop.permute.xlu0 %2522 }
  0xc6   :  { %2817 = vrot.lane.b32.xlu1 %v3058_v18, %s2996_s21  ;;  %2812 = vrot.lane.b32.xlu0 %v3050_v15, %s2996_s21 }
  0xc8   :  { %v3594_v6 = vpop.permute.xlu1 %2537  ;;  %v3596_v7 = vpop.permute.xlu0 %2532 }
  0xca   :  { %2827 = vrot.lane.b32.xlu1 %v3052_v16, %s2996_s21  ;;  %2822 = vrot.lane.b32.xlu0 %v3048_v14, %s2996_s21 }
  0xcc   :  { %v3602_v55 = vpop.permute.xlu1 %2547  ;;  %v3604_v8 = vpop.permute.xlu0 %2542 }
  0xce   :  { %2837 = vrot.lane.b32.xlu1 %v3070_v26, %s2996_s21  ;;  %2832 = vrot.lane.b32.xlu0 %v3072_v27, %s2996_s21 }
  0xd0   :  { %v3610_v15 = vpop.permute.xlu1 %2557  ;;  %v3612_v18 = vpop.permute.xlu0 %2552 }
  0xd2   :  { %2847 = vrot.lane.b32.xlu1 %v3084_v34, %s2996_s21  ;;  %2842 = vrot.lane.b32.xlu0 %v3086_v35, %s2996_s21 }
  0xd4   :  { %v3618_v14 = vpop.permute.xlu1 %2567  ;;  %v3620_v16 = vpop.permute.xlu0 %2562 }
  0xd6   :  { %2857 = vrot.lane.b32.xlu1 %v3098_v42, %s2996_s21  ;;  %2852 = vrot.lane.b32.xlu0 %v3100_v43, %s2996_s21 }
  0xd8   :  { %v3626_v26 = vpop.permute.xlu1 %2577  ;;  %v3628_v27 = vpop.permute.xlu0 %2572 }
  0xda   :  { %2867 = vrot.lane.b32.xlu1 %v3108_v48, %s2996_s21  ;;  %2862 = vrot.lane.b32.xlu0 %v3114_v50, %s2996_s21 }
  0xdc   :  { %v3634_v34 = vpop.permute.xlu1 %2587  ;;  %v3636_v35 = vpop.permute.xlu0 %2582 }
  0xde   :  { %2877 = vrot.lane.b32.xlu1 %v3126_v58, %s2996_s21  ;;  %2872 = vrot.lane.b32.xlu0 %v3128_v59, %s2996_s21  ;;  %v2479_v59 = vunpack.i.l.bf16 %v3544_v23 }
  0xe0   :  { %v3642_v42 = vpop.permute.xlu1 %2597  ;;  %v3644_v43 = vpop.permute.xlu0 %2592 }
  0xe2   :  { %2887 = vrot.lane.b32.xlu1 %v3136_v0, %s2996_s21  ;;  %2882 = vrot.lane.b32.xlu0 %v3142_v2, %s2996_s21  ;;  %v2470_v2 = vunpack.i.h.bf16 %v3532_v62  ;;  %v2510_v0 = vunpack.i.h.bf16 %v3574_v45 }
  0xe4   :  { %v3650_v48 = vpop.permute.xlu1 %2607  ;;  %v3652_v50 = vpop.permute.xlu0 %2602 }
  0xe6   :  { %2897 = vrot.lane.b32.xlu1 %v3154_v10, %s2996_s21  ;;  %2892 = vrot.lane.b32.xlu0 %v3156_v11, %s2996_s21  ;;  %v2464_v11 = vunpack.i.l.bf16 %v3534_v36 }
  0xe8   :  { %v3666_v12 = vpop.permute.xlu1 %2617  ;;  %v3668_v1 = vpop.permute.xlu0 %2612 }
  0xea   :  { %2907 = vrot.lane.b32.xlu1 %v3164_v20, %s2996_s21  ;;  %2902 = vrot.lane.b32.xlu0 %v3170_v22, %s2996_s21 }
  0xec   :  { %v2628_v20 = vpop.permute.xlu1 %2627  ;;  %v2623_v9 = vpop.permute.xlu0 %2622 }
  0xed   :  { %v2630_v58 = vunpack.i.h.bf16 %v2628_v20  ;;  %v2629_v22 = vunpack.i.l.bf16 %v2628_v20  ;;  %v2625_v56 = vunpack.i.h.bf16 %v2623_v9  ;;  %v2624_v10 = vunpack.i.l.bf16 %v2623_v9 }
  0xee   :  { %2917 = vrot.lane.b32.xlu1 %v3182_v32, %s2996_s21  ;;  %2912 = vrot.lane.b32.xlu0 %v3184_v33, %s2996_s21  ;;  %v2475_v32 = vunpack.i.h.bf16 %v3546_v37  ;;  %v2474_v33 = vunpack.i.l.bf16 %v3546_v37 }
  0xef   :  { %v3699_v62 = vsel %vm1365_vm0, %v2469_v38, %v2629_v22  ;;  %v3702_v36 = vsel %vm1365_vm0, %v2470_v2, %v2630_v58  ;;  %v3705_v9 = vsel %vm1365_vm0, %v2464_v11, %v2624_v10  ;;  %v3708_v20 = vsel %vm1365_vm0, %v2465_v5, %v2625_v56 }
  0xf0   :  { %4575 = vst [vmem:[#allocation26_spill] sm:$0xff] %v3702_v36  ;;  %4576 = vst [vmem:[#allocation27_spill] sm:$0xff] %v3705_v9  ;;  %v2638_v13 = vpop.permute.xlu1 %2637  ;;  %v2633_v38 = vpop.permute.xlu0 %2632  ;;  %v2490_v56 = vunpack.i.h.bf16 %v3556_v24  ;;  %v2489_v5 = vunpack.i.l.bf16 %v3556_v24  ;;  %v4583_v24 = vld [vmem:[#allocation5_spill] sm:$0xff] }
  0xf1   :  { %4577 = vst [vmem:[#allocation28_spill] sm:$0xff] %v3708_v20  ;;  %v2640_v22 = vunpack.i.h.bf16 %v2638_v13  ;;  %v2639_v39 = vunpack.i.l.bf16 %v2638_v13  ;;  %v2635_v58 = vunpack.i.h.bf16 %v2633_v38  ;;  %v2634_v2 = vunpack.i.l.bf16 %v2633_v38 }
  0xf2   :  { %2927 = vrot.lane.b32.xlu1 %v3192_v40, %s2996_s21  ;;  %2922 = vrot.lane.b32.xlu0 %v3198_v44, %s2996_s21  ;;  %v2485_v40 = vunpack.i.h.bf16 %v3558_v28  ;;  %v2484_v44 = vunpack.i.l.bf16 %v3558_v28 }
  0xf3   :  { %v3723_v23 = vsel %vm1365_vm0, %v2479_v59, %v2639_v39  ;;  %v3726_v37 = vsel %vm1365_vm0, %v2480_v41, %v2640_v22  ;;  %v3729_v13 = vsel %vm1365_vm0, %v2474_v33, %v2634_v2  ;;  %v3732_v38 = vsel %vm1365_vm0, %v2475_v32, %v2635_v58  ;;  %v4582_v32 = vld [vmem:[#allocation15_spill] sm:$0xff] }
  0xf4   :  { %4578 = vst [vmem:[#allocation29_spill] sm:$0xff] %v3723_v23  ;;  %4579 = vst [vmem:[#allocation30_spill] sm:$0xff] %v3726_v37  ;;  %v2648_v10 = vpop.permute.xlu1 %2647  ;;  %v2643_v59 = vpop.permute.xlu0 %2642  ;;  %v2505_v33 = vunpack.i.h.bf16 %v3576_v54 }
  0xf5   :  { %4580 = vst [vmem:[#allocation31_spill] sm:$0xff] %v3729_v13  ;;  %4581 = vst [vmem:[#allocation32_spill] sm:$0xff] %v3732_v38  ;;  %v2650_v39 = vunpack.i.h.bf16 %v2648_v10  ;;  %v2649_v11 = vunpack.i.l.bf16 %v2648_v10  ;;  %v2645_v41 = vunpack.i.h.bf16 %v2643_v59  ;;  %v2644_v22 = vunpack.i.l.bf16 %v2643_v59  ;;  %v4584_v38 = vld [vmem:[#allocation6_spill] sm:$0xff] }
  0xf6   :  { %2937 = vrot.lane.b32.xlu1 %v4583_v24, %s2996_s21  ;;  %2932 = vrot.lane.b32.xlu0 %v4584_v38, %s2996_s21  ;;  %v2509_v24 = vunpack.i.l.bf16 %v3574_v45  ;;  %v2504_v38 = vunpack.i.l.bf16 %v3576_v54  ;;  %v2519_v54 = vunpack.i.l.bf16 %v3580_v21  ;;  %v4599_v45 = vunpack.i.l.bf16 %v3388_v25 }
  0xf7   :  { %v3747_v28 = vsel %vm1365_vm0, %v2489_v5, %v2649_v11  ;;  %v3750_v10 = vsel %vm1365_vm0, %v2490_v56, %v2650_v39  ;;  %v3753_v59 = vsel %vm1365_vm0, %v2484_v44, %v2644_v22  ;;  %v3756_v58 = vsel %vm1365_vm0, %v2485_v40, %v2645_v41  ;;  %v4591_v56 = vld [vmem:[#allocation16_spill] sm:$0xff]  ;;  %v4592_v39 = vld [vmem:[#allocation17_spill] sm:$0xff]  ;;  %v4593_v41 = vld [vmem:[#allocation18_spill] sm:$0xff] }
  0xf8   :  { %4585 = vst [vmem:[#allocation15_spill] sm:$0xff] %v3747_v28  ;;  %4586 = vst [vmem:[#allocation5_spill] sm:$0xff] %v3750_v10  ;;  %v3762_v2 = vpop.permute.xlu1 %2657  ;;  %v3764_v11 = vpop.permute.xlu0 %2652  ;;  %v4595_v28 = vld [vmem:[#allocation7_spill] sm:$0xff]  ;;  %v4597_v44 = vld [vmem:[#allocation20_spill] sm:$0xff]  ;;  %v1372_v10 = vsel %vm1365_vm0, %v4599_v45, %v2509_v24  ;;  %v4600_v13 = vunpack.i.h.bf16 %v3388_v25  ;;  %v4602_v5 = vunpack.i.l.bf16 %v3376_v4  ;;  %v2520_v24 = vunpack.i.h.bf16 %v3580_v21 }
  0xf9   :  { %4587 = vst [vmem:[#allocation6_spill] sm:$0xff] %v3753_v59  ;;  %4588 = vst [vmem:[#allocation33_spill] sm:$0xff] %v3756_v58  ;;  %v4594_v59 = vld [vmem:[#allocation19_spill] sm:$0xff]  ;;  %v4603_v25 = vunpack.i.l.bf16 %v3400_v46  ;;  %v2529_v45 = vunpack.i.l.bf16 %v3586_v60 }
  0xfa   :  { %4589 = vst [vmem:[#allocation34_spill] sm:$0xff] %v3762_v2  ;;  %4590 = vst [vmem:[#allocation35_spill] sm:$0xff] %v3764_v11  ;;  %2947 = vrot.lane.b32.xlu1 %v4595_v28, %s2996_s21  ;;  %v4596_v11 = vld [vmem:[#allocation8_spill] sm:$0xff]  ;;  %v4598_v2 = vld [vmem:[#allocation21_spill] sm:$0xff]  ;;  %v1373_v37 = vsel %vm1365_vm0, %v4600_v13, %v2510_v0  ;;  %v4601_v28 = vunpack.i.h.bf16 %v3376_v4  ;;  %v1370_v22 = vsel %vm1365_vm0, %v4602_v5, %v2504_v38  ;;  %v2515_v13 = vunpack.i.h.bf16 %v3582_v57 }
  0xfb   :  { %2942 = vrot.lane.b32.xlu0 %v4596_v11, %s2996_s21  ;;  %v1376_v0 = vsel %vm1365_vm0, %v4603_v25, %v2519_v54  ;;  %v4604_v4 = vld [vmem:[#allocation9_spill] sm:$0xff]  ;;  %v4605_v38 = vld [vmem:[#allocation10_spill] sm:$0xff]  ;;  %v2525_v54 = vunpack.i.h.bf16 %v3588_v61 }
  0xfc   :  { %v1371_v11 = vsel %vm1365_vm0, %v4601_v28, %v2505_v33  ;;  %v2668_v23 = vpop.permute.xlu1 %2667  ;;  %v2663_v40 = vpop.permute.xlu0 %2662  ;;  %v2514_v33 = vunpack.i.l.bf16 %v3582_v57  ;;  %v2530_v57 = vunpack.i.h.bf16 %v3586_v60  ;;  %v2524_v28 = vunpack.i.l.bf16 %v3588_v61 }
  0xfd   :  { %v2670_v20 = vunpack.i.h.bf16 %v2668_v23  ;;  %v2669_v58 = vunpack.i.l.bf16 %v2668_v23  ;;  %v2665_v9 = vunpack.i.h.bf16 %v2663_v40  ;;  %v2664_v36 = vunpack.i.l.bf16 %v2663_v40 }
  0xfe   :  { %2957 = vrot.lane.b32.xlu1 %v4604_v4, %s2996_s21 }
  0xff   :  { %2952 = vrot.lane.b32.xlu0 %v4605_v38, %s2996_s21  ;;  %v3805_v23 = vsel %vm1430_vm1, %v1372_v10, %v2669_v58  ;;  %v3808_v5 = vsel %vm1430_vm1, %v1373_v37, %v2670_v20  ;;  %v3811_v21 = vsel %vm1430_vm1, %v1370_v22, %v2664_v36  ;;  %v3814_v40 = vsel %vm1430_vm1, %v1371_v11, %v2665_v9 }
 0x100   :  { %4606 = vst [vmem:[#allocation16_spill] sm:$0xff] %v3814_v40  ;;  %v2678_v25 = vpop.permute.xlu1 %2677  ;;  %v2673_v58 = vpop.permute.xlu0 %2672  ;;  %v4607_v22 = vunpack.i.h.bf16 %v3400_v46  ;;  %v4608_v11 = vunpack.i.l.bf16 %v3402_v47  ;;  %v4609_v38 = vunpack.i.h.bf16 %v3402_v47  ;;  %v4610_v40 = vld [vmem:[#allocation11_spill] sm:$0xff]  ;;  %v4612_v47 = vunpack.i.l.bf16 %v3412_v63 }
 0x101   :  { %v2680_v10 = vunpack.i.h.bf16 %v2678_v25  ;;  %v2679_v4 = vunpack.i.l.bf16 %v2678_v25  ;;  %v2675_v20 = vunpack.i.h.bf16 %v2673_v58  ;;  %v2674_v37 = vunpack.i.l.bf16 %v2673_v58  ;;  %v4611_v25 = vld [vmem:[#allocation12_spill] sm:$0xff] }
 0x102   :  { %v1377_v9 = vsel %vm1365_vm0, %v4607_v22, %v2520_v24  ;;  %v1374_v60 = vsel %vm1365_vm0, %v4608_v11, %v2514_v33  ;;  %v1375_v61 = vsel %vm1365_vm0, %v4609_v38, %v2515_v13  ;;  %2967 = vrot.lane.b32.xlu1 %v4610_v40, %s2996_s21  ;;  %v1380_v13 = vsel %vm1365_vm0, %v4612_v47, %v2529_v45 }
 0x103   :  { %2962 = vrot.lane.b32.xlu0 %v4611_v25, %s2996_s21  ;;  %v3835_v58 = vsel %vm1430_vm1, %v1376_v0, %v2679_v4  ;;  %v3838_v46 = vsel %vm1430_vm1, %v1377_v9, %v2680_v10  ;;  %v3841_v24 = vsel %vm1430_vm1, %v1374_v60, %v2674_v37  ;;  %v3844_v33 = vsel %vm1430_vm1, %v1375_v61, %v2675_v20 }
 0x104   :  { %v4613_v40 = vunpack.i.h.bf16 %v3412_v63  ;;  %v4614_v0 = vunpack.i.l.bf16 %v3414_v3  ;;  %v4615_v10 = vunpack.i.h.bf16 %v3414_v3  ;;  %v2688_v9 = vpop.permute.xlu1 %2687  ;;  %v2683_v11 = vpop.permute.xlu0 %2682  ;;  %v2540_v45 = vunpack.i.h.bf16 %v3594_v6 }
 0x105   :  { %v2690_v20 = vunpack.i.h.bf16 %v2688_v9  ;;  %v2689_v60 = vunpack.i.l.bf16 %v2688_v9  ;;  %v2685_v38 = vunpack.i.h.bf16 %v2683_v11  ;;  %v2684_v61 = vunpack.i.l.bf16 %v2683_v11 }
 0x106   :  { %v1381_v22 = vsel %vm1365_vm0, %v4613_v40, %v2530_v57  ;;  %v1378_v4 = vsel %vm1365_vm0, %v4614_v0, %v2524_v28  ;;  %v1379_v37 = vsel %vm1365_vm0, %v4615_v10, %v2525_v54  ;;  %v2539_v63 = vunpack.i.l.bf16 %v3594_v6 }
 0x107   :  { %v2535_v57 = vunpack.i.h.bf16 %v3596_v7  ;;  %v2534_v25 = vunpack.i.l.bf16 %v3596_v7  ;;  %v3863_v28 = vsel %vm1430_vm1, %v1380_v13, %v2689_v60  ;;  %v3866_v3 = vsel %vm1430_vm1, %v1381_v22, %v2690_v20 }
 0x108   :  { %v3869_v54 = vsel %vm1430_vm1, %v1378_v4, %v2684_v61  ;;  %v3872_v47 = vsel %vm1430_vm1, %v1379_v37, %v2685_v38  ;;  %v2550_v40 = vunpack.i.h.bf16 %v3602_v55  ;;  %v2549_v6 = vunpack.i.l.bf16 %v3602_v55  ;;  %v2698_v10 = vpop.permute.xlu1 %2697  ;;  %v2693_v13 = vpop.permute.xlu0 %2692 }
 0x109   :  { %v2545_v0 = vunpack.i.h.bf16 %v3604_v8  ;;  %v2544_v7 = vunpack.i.l.bf16 %v3604_v8  ;;  %v2700_v9 = vunpack.i.h.bf16 %v2698_v10  ;;  %v2699_v11 = vunpack.i.l.bf16 %v2698_v10 }
 0x10a   :  { %v2695_v22 = vunpack.i.h.bf16 %v2693_v13  ;;  %v2694_v20 = vunpack.i.l.bf16 %v2693_v13  ;;  %v4616_v4 = vunpack.i.l.bf16 %v3424_v30  ;;  %v4617_v37 = vunpack.i.h.bf16 %v3424_v30 }
 0x10b   :  { %v4618_v55 = vunpack.i.l.bf16 %v3426_v31  ;;  %v4619_v8 = vunpack.i.h.bf16 %v3426_v31  ;;  %v4621_v31 = vunpack.i.h.bf16 %v3436_v52 }
 0x10c   :  { %v1384_v60 = vsel %vm1365_vm0, %v4616_v4, %v2539_v63  ;;  %v1385_v38 = vsel %vm1365_vm0, %v4617_v37, %v2540_v45  ;;  %v4620_v45 = vunpack.i.l.bf16 %v3436_v52  ;;  %v2703_v37 = vpop.permute.xlu0 %2702  ;;  %v2559_v52 = vunpack.i.l.bf16 %v3610_v15 }
 0x10d   :  { %v1382_v61 = vsel %vm1365_vm0, %v4618_v55, %v2534_v25  ;;  %v1383_v36 = vsel %vm1365_vm0, %v4619_v8, %v2535_v57  ;;  %v3891_v10 = vsel %vm1430_vm1, %v1384_v60, %v2699_v11  ;;  %v3894_v13 = vsel %vm1430_vm1, %v1385_v38, %v2700_v9  ;;  %v2708_v60 = vpop.permute.xlu1 %2707 }
 0x10e   :  { %v3897_v63 = vsel %vm1430_vm1, %v1382_v61, %v2694_v20  ;;  %v3900_v30 = vsel %vm1430_vm1, %v1383_v36, %v2695_v22  ;;  %v1388_v25 = vsel %vm1365_vm0, %v4620_v45, %v2549_v6  ;;  %v1389_v57 = vsel %vm1365_vm0, %v4621_v31, %v2550_v40 }
 0x10f   :  { %v4622_v11 = vunpack.i.l.bf16 %v3438_v53  ;;  %v4623_v9 = vunpack.i.h.bf16 %v3438_v53  ;;  %v2710_v36 = vunpack.i.h.bf16 %v2708_v60  ;;  %v2709_v22 = vunpack.i.l.bf16 %v2708_v60 }
 0x110   :  { %v2705_v38 = vunpack.i.h.bf16 %v2703_v37  ;;  %v2704_v55 = vunpack.i.l.bf16 %v2703_v37  ;;  %v2560_v6 = vunpack.i.h.bf16 %v3610_v15  ;;  %v2555_v40 = vunpack.i.h.bf16 %v3612_v18 }
 0x111   :  { %v1386_v4 = vsel %vm1365_vm0, %v4622_v11, %v2544_v7  ;;  %v1387_v20 = vsel %vm1365_vm0, %v4623_v9, %v2545_v0  ;;  %v2554_v61 = vunpack.i.l.bf16 %v3612_v18  ;;  %v3919_v7 = vsel %vm1430_vm1, %v1388_v25, %v2709_v22  ;;  %v2718_v11 = vpop.permute.xlu1 %2717  ;;  %v2713_v25 = vpop.permute.xlu0 %2712 }
 0x112   :  { %v3922_v53 = vsel %vm1430_vm1, %v1389_v57, %v2710_v36  ;;  %v3925_v0 = vsel %vm1430_vm1, %v1386_v4, %v2704_v55  ;;  %v3928_v8 = vsel %vm1430_vm1, %v1387_v20, %v2705_v38  ;;  %v2570_v45 = vunpack.i.h.bf16 %v3618_v14 }
 0x113   :  { %v2569_v15 = vunpack.i.l.bf16 %v3618_v14  ;;  %v2565_v31 = vunpack.i.h.bf16 %v3620_v16  ;;  %v2564_v18 = vunpack.i.l.bf16 %v3620_v16  ;;  %v2720_v9 = vunpack.i.h.bf16 %v2718_v11 }
 0x114   :  { %v2719_v60 = vunpack.i.l.bf16 %v2718_v11  ;;  %v2715_v57 = vunpack.i.h.bf16 %v2713_v25  ;;  %v2714_v37 = vunpack.i.l.bf16 %v2713_v25  ;;  %v4624_v4 = vunpack.i.l.bf16 %v3448_v17 }
 0x115   :  { %v4625_v20 = vunpack.i.h.bf16 %v3448_v17  ;;  %v4626_v14 = vunpack.i.l.bf16 %v3450_v19  ;;  %v4627_v16 = vunpack.i.h.bf16 %v3450_v19  ;;  %v4629_v19 = vunpack.i.h.bf16 %v3460_v49 }
 0x116   :  { %v1392_v36 = vsel %vm1365_vm0, %v4624_v4, %v2559_v52 }
 0x117   :  { %v1393_v22 = vsel %vm1365_vm0, %v4625_v20, %v2560_v6  ;;  %v1390_v38 = vsel %vm1365_vm0, %v4626_v14, %v2554_v61  ;;  %v1391_v55 = vsel %vm1365_vm0, %v4627_v16, %v2555_v40  ;;  %v3947_v11 = vsel %vm1430_vm1, %v1392_v36, %v2719_v60  ;;  %v2728_v36 = vpop.permute.xlu1 %2727  ;;  %v2723_v20 = vpop.permute.xlu0 %2722 }
 0x118   :  { %v3950_v25 = vsel %vm1430_vm1, %v1393_v22, %v2720_v9  ;;  %v3953_v52 = vsel %vm1430_vm1, %v1390_v38, %v2714_v37  ;;  %v3956_v17 = vsel %vm1430_vm1, %v1391_v55, %v2715_v57  ;;  %v4628_v6 = vunpack.i.l.bf16 %v3460_v49 }
 0x119   :  { %v1397_v40 = vsel %vm1365_vm0, %v4629_v19, %v2570_v45  ;;  %v4630_v60 = vunpack.i.l.bf16 %v3462_v51  ;;  %v4631_v9 = vunpack.i.h.bf16 %v3462_v51  ;;  %v2730_v57 = vunpack.i.h.bf16 %v2728_v36 }
 0x11a   :  { %v1396_v61 = vsel %vm1365_vm0, %v4628_v6, %v2569_v15  ;;  %v2729_v22 = vunpack.i.l.bf16 %v2728_v36  ;;  %v2725_v14 = vunpack.i.h.bf16 %v2723_v20  ;;  %v2724_v38 = vunpack.i.l.bf16 %v2723_v20 }
 0x11b   :  { %v1394_v4 = vsel %vm1365_vm0, %v4630_v60, %v2564_v18  ;;  %v1395_v37 = vsel %vm1365_vm0, %v4631_v9, %v2565_v31  ;;  %v2580_v15 = vunpack.i.h.bf16 %v3626_v26  ;;  %v2579_v49 = vunpack.i.l.bf16 %v3626_v26  ;;  %v2738_v60 = vpop.permute.xlu1 %2737 }
 0x11c   :  { %v2575_v45 = vunpack.i.h.bf16 %v3628_v27  ;;  %v2574_v16 = vunpack.i.l.bf16 %v3628_v27  ;;  %v3975_v18 = vsel %vm1430_vm1, %v1396_v61, %v2729_v22  ;;  %v3978_v51 = vsel %vm1430_vm1, %v1397_v40, %v2730_v57  ;;  %v2733_v61 = vpop.permute.xlu0 %2732 }
 0x11d   :  { %v3981_v31 = vsel %vm1430_vm1, %v1394_v4, %v2724_v38  ;;  %v3984_v55 = vsel %vm1430_vm1, %v1395_v37, %v2725_v14  ;;  %v2590_v6 = vunpack.i.h.bf16 %v3634_v34  ;;  %v2589_v26 = vunpack.i.l.bf16 %v3634_v34 }
 0x11e   :  { %v2585_v19 = vunpack.i.h.bf16 %v3636_v35  ;;  %v2584_v27 = vunpack.i.l.bf16 %v3636_v35  ;;  %v2740_v9 = vunpack.i.h.bf16 %v2738_v60  ;;  %v2739_v36 = vunpack.i.l.bf16 %v2738_v60 }
 0x11f   :  { %v2735_v40 = vunpack.i.h.bf16 %v2733_v61  ;;  %v2734_v20 = vunpack.i.l.bf16 %v2733_v61  ;;  %v4632_v4 = vunpack.i.l.bf16 %v3472_v29  ;;  %v4633_v37 = vunpack.i.h.bf16 %v3472_v29 }
 0x120   :  { %v4634_v34 = vunpack.i.l.bf16 %v4582_v32  ;;  %v4635_v35 = vunpack.i.h.bf16 %v4582_v32  ;;  %v4637_v32 = vunpack.i.h.bf16 %v4591_v56 }
 0x121   :  { %v1400_v57 = vsel %vm1365_vm0, %v4632_v4, %v2579_v49  ;;  %v1401_v22 = vsel %vm1365_vm0, %v4633_v37, %v2580_v15  ;;  %v4636_v15 = vunpack.i.l.bf16 %v4591_v56  ;;  %v2743_v37 = vpop.permute.xlu0 %2742  ;;  %v2599_v56 = vunpack.i.l.bf16 %v3642_v42 }
 0x122   :  { %v1398_v14 = vsel %vm1365_vm0, %v4634_v34, %v2574_v16  ;;  %v1399_v38 = vsel %vm1365_vm0, %v4635_v35, %v2575_v45  ;;  %v4003_v60 = vsel %vm1430_vm1, %v1400_v57, %v2739_v36  ;;  %v4006_v61 = vsel %vm1430_vm1, %v1401_v22, %v2740_v9  ;;  %v2748_v57 = vpop.permute.xlu1 %2747 }
 0x123   :  { %v4009_v49 = vsel %vm1430_vm1, %v1398_v14, %v2734_v20  ;;  %v4012_v29 = vsel %vm1430_vm1, %v1399_v38, %v2735_v40  ;;  %v1404_v16 = vsel %vm1365_vm0, %v4636_v15, %v2589_v26  ;;  %v1405_v45 = vsel %vm1365_vm0, %v4637_v32, %v2590_v6 }
 0x124   :  { %v4638_v36 = vunpack.i.l.bf16 %v4592_v39  ;;  %v4639_v9 = vunpack.i.h.bf16 %v4592_v39  ;;  %v2750_v40 = vunpack.i.h.bf16 %v2748_v57  ;;  %v2749_v22 = vunpack.i.l.bf16 %v2748_v57 }
 0x125   :  { %v2745_v34 = vunpack.i.h.bf16 %v2743_v37  ;;  %v2744_v14 = vunpack.i.l.bf16 %v2743_v37  ;;  %v2600_v26 = vunpack.i.h.bf16 %v3642_v42  ;;  %v2595_v6 = vunpack.i.h.bf16 %v3644_v43 }
 0x126   :  { %v1402_v4 = vsel %vm1365_vm0, %v4638_v36, %v2584_v27  ;;  %v1403_v20 = vsel %vm1365_vm0, %v4639_v9, %v2585_v19  ;;  %v2594_v35 = vunpack.i.l.bf16 %v3644_v43  ;;  %v4031_v27 = vsel %vm1430_vm1, %v1404_v16, %v2749_v22  ;;  %v2758_v36 = vpop.permute.xlu1 %2757  ;;  %v2753_v16 = vpop.permute.xlu0 %2752 }
 0x127   :  { %v4034_v39 = vsel %vm1430_vm1, %v1405_v45, %v2750_v40  ;;  %v4037_v19 = vsel %vm1430_vm1, %v1402_v4, %v2744_v14  ;;  %v4040_v38 = vsel %vm1430_vm1, %v1403_v20, %v2745_v34  ;;  %v2610_v15 = vunpack.i.h.bf16 %v3650_v48 }
 0x128   :  { %v2609_v42 = vunpack.i.l.bf16 %v3650_v48  ;;  %v2605_v32 = vunpack.i.h.bf16 %v3652_v50  ;;  %v2604_v43 = vunpack.i.l.bf16 %v3652_v50  ;;  %v2760_v9 = vunpack.i.h.bf16 %v2758_v36 }
 0x129   :  { %v2759_v57 = vunpack.i.l.bf16 %v2758_v36  ;;  %v2755_v45 = vunpack.i.h.bf16 %v2753_v16  ;;  %v2754_v37 = vunpack.i.l.bf16 %v2753_v16  ;;  %v4640_v4 = vunpack.i.l.bf16 %v4593_v41 }
 0x12a   :  { %v4641_v20 = vunpack.i.h.bf16 %v4593_v41  ;;  %v4642_v48 = vunpack.i.l.bf16 %v4594_v59  ;;  %v4643_v50 = vunpack.i.h.bf16 %v4594_v59  ;;  %v4646_v59 = vunpack.i.h.bf16 %v4597_v44 }
 0x12b   :  { %v1408_v40 = vsel %vm1365_vm0, %v4640_v4, %v2599_v56 }
 0x12c   :  { %v1409_v22 = vsel %vm1365_vm0, %v4641_v20, %v2600_v26  ;;  %v1406_v34 = vsel %vm1365_vm0, %v4642_v48, %v2594_v35  ;;  %v1407_v14 = vsel %vm1365_vm0, %v4643_v50, %v2595_v6  ;;  %v4059_v36 = vsel %vm1430_vm1, %v1408_v40, %v2759_v57  ;;  %v2768_v40 = vpop.permute.xlu1 %2767  ;;  %v2763_v20 = vpop.permute.xlu0 %2762 }
 0x12d   :  { %v4062_v16 = vsel %vm1430_vm1, %v1409_v22, %v2760_v9  ;;  %v4065_v56 = vsel %vm1430_vm1, %v1406_v34, %v2754_v37  ;;  %v4068_v41 = vsel %vm1430_vm1, %v1407_v14, %v2755_v45  ;;  %v4645_v26 = vunpack.i.l.bf16 %v4597_v44 }
 0x12e   :  { %4644 = vst [vmem:[#allocation17_spill] sm:$0xff] %v4068_v41  ;;  %v1413_v6 = vsel %vm1365_vm0, %v4646_v59, %v2610_v15  ;;  %v4647_v57 = vunpack.i.l.bf16 %v4598_v2  ;;  %v4648_v9 = vunpack.i.h.bf16 %v4598_v2  ;;  %v2770_v45 = vunpack.i.h.bf16 %v2768_v40 }
 0x12f   :  { %v1412_v35 = vsel %vm1365_vm0, %v4645_v26, %v2609_v42  ;;  %v2769_v22 = vunpack.i.l.bf16 %v2768_v40  ;;  %v2765_v48 = vunpack.i.h.bf16 %v2763_v20  ;;  %v2764_v34 = vunpack.i.l.bf16 %v2763_v20  ;;  %v4653_v26 = vld [vmem:[#allocation22_spill] sm:$0xff] }
 0x130   :  { %v1410_v4 = vsel %vm1365_vm0, %v4647_v57, %v2604_v43  ;;  %v1411_v37 = vsel %vm1365_vm0, %v4648_v9, %v2605_v32  ;;  %v2620_v42 = vunpack.i.h.bf16 %v3666_v12  ;;  %v2619_v44 = vunpack.i.l.bf16 %v3666_v12  ;;  %v4654_v57 = vld [vmem:[#allocation23_spill] sm:$0xff]  ;;  %v2778_v40 = vpop.permute.xlu1 %2777 }
 0x131   :  { %v2615_v15 = vunpack.i.h.bf16 %v3668_v1  ;;  %v2614_v50 = vunpack.i.l.bf16 %v3668_v1  ;;  %v4087_v43 = vsel %vm1430_vm1, %v1412_v35, %v2769_v22  ;;  %v4090_v2 = vsel %vm1430_vm1, %v1413_v6, %v2770_v45  ;;  %v2773_v35 = vpop.permute.xlu0 %2772 }
 0x132   :  { %4649 = vst [vmem:[#allocation18_spill] sm:$0xff] %v4087_v43  ;;  %4650 = vst [vmem:[#allocation19_spill] sm:$0xff] %v4090_v2  ;;  %v4093_v32 = vsel %vm1430_vm1, %v1410_v4, %v2764_v34  ;;  %v4096_v14 = vsel %vm1430_vm1, %v1411_v37, %v2765_v48  ;;  %v2460_v59 = vunpack.i.h.bf16 %v4653_v26  ;;  %v2459_v12 = vunpack.i.l.bf16 %v4653_v26  ;;  %v4682_v43 = vld [vmem:[#allocation5_spill] sm:$0xff]  ;;  %v4683_v2 = vld [vmem:[#allocation6_spill] sm:$0xff] }
 0x133   :  { %4651 = vst [vmem:[#allocation7_spill] sm:$0xff] %v4093_v32  ;;  %4652 = vst [vmem:[#allocation8_spill] sm:$0xff] %v4096_v14  ;;  %v2455_v9 = vunpack.i.h.bf16 %v4654_v57  ;;  %v2454_v1 = vunpack.i.l.bf16 %v4654_v57  ;;  %v2780_v20 = vunpack.i.h.bf16 %v2778_v40  ;;  %v2779_v22 = vunpack.i.l.bf16 %v2778_v40  ;;  %v4680_v32 = vld [vmem:[#allocation15_spill] sm:$0xff] }
 0x134   :  { %v2775_v6 = vunpack.i.h.bf16 %v2773_v35  ;;  %v2774_v45 = vunpack.i.l.bf16 %v2773_v35  ;;  %v1416_v4 = vsel %vm1365_vm0, %v2459_v12, %v2619_v44  ;;  %v1417_v34 = vsel %vm1365_vm0, %v2460_v59, %v2620_v42  ;;  %v2788_v35 = vpop.permute.xlu1 %2787 }
 0x135   :  { %v1414_v37 = vsel %vm1365_vm0, %v2454_v1, %v2614_v50  ;;  %v1415_v48 = vsel %vm1365_vm0, %v2455_v9, %v2615_v15  ;;  %v4107_v26 = vsel %vm1430_vm1, %v1416_v4, %v2779_v22  ;;  %v4110_v14 = vsel %vm1430_vm1, %v1417_v34, %v2780_v20  ;;  %v2783_v44 = vpop.permute.xlu0 %2782  ;;  %v4660_v9 = vld [vmem:[#allocation26_spill] sm:$0xff]  ;;  %v4662_v20 = vld [vmem:[#allocation27_spill] sm:$0xff]  ;;  %v4666_v4 = vld [vmem:[#allocation13_spill] sm:$0xff] }
 0x136   :  { %4655 = vst [vmem:[#allocation20_spill] sm:$0xff] %v4107_v26  ;;  %4656 = vst [vmem:[#allocation21_spill] sm:$0xff] %v4110_v14  ;;  %v4113_v57 = vsel %vm1430_vm1, %v1414_v37, %v2774_v45  ;;  %v4116_v40 = vsel %vm1430_vm1, %v1415_v48, %v2775_v6  ;;  %v2790_v12 = vunpack.i.h.bf16 %v2788_v35  ;;  %v2789_v42 = vunpack.i.l.bf16 %v2788_v35  ;;  %v4664_v6 = vld [vmem:[#allocation28_spill] sm:$0xff] }
 0x137   :  { %4657 = vst [vmem:[#allocation9_spill] sm:$0xff] %v4113_v57  ;;  %4658 = vst [vmem:[#allocation10_spill] sm:$0xff] %v4116_v40  ;;  %v2785_v59 = vunpack.i.h.bf16 %v2783_v44  ;;  %v2784_v50 = vunpack.i.l.bf16 %v2783_v44  ;;  %v2335_v34 = vunpack.i.h.bf16 %v4666_v4  ;;  %v4677_v57 = vld [vmem:[#allocation25_spill] sm:$0xff] }
 0x138   :  { %v4120_v15 = vsel %vm1430_vm1, %v3699_v62, %v2789_v42  ;;  %v4124_v1 = vsel %vm1430_vm1, %v4660_v9, %v2790_v12  ;;  %v2798_v37 = vpop.permute.xlu1 %2797  ;;  %v4667_v12 = vld [vmem:[#allocation14_spill] sm:$0xff]  ;;  %v2495_v26 = vunpack.i.h.bf16 %v4677_v57 }
 0x139   :  { %4659 = vst [vmem:[#allocation11_spill] sm:$0xff] %v4120_v15  ;;  %4661 = vst [vmem:[#allocation12_spill] sm:$0xff] %v4124_v1  ;;  %v4128_v22 = vsel %vm1430_vm1, %v4662_v20, %v2784_v50  ;;  %v4132_v45 = vsel %vm1430_vm1, %v4664_v6, %v2785_v59  ;;  %v2793_v48 = vpop.permute.xlu0 %2792  ;;  %v2800_v35 = vunpack.i.h.bf16 %v2798_v37  ;;  %v2799_v44 = vunpack.i.l.bf16 %v2798_v37  ;;  %v4668_v50 = vld [vmem:[#allocation29_spill] sm:$0xff]  ;;  %v4670_v59 = vld [vmem:[#allocation30_spill] sm:$0xff] }
 0x13a   :  { %4663 = vst [vmem:[#allocation22_spill] sm:$0xff] %v4128_v22  ;;  %4665 = vst [vmem:[#allocation23_spill] sm:$0xff] %v4132_v45  ;;  %v2795_v62 = vunpack.i.h.bf16 %v2793_v48  ;;  %v2794_v42 = vunpack.i.l.bf16 %v2793_v48  ;;  %v2334_v15 = vunpack.i.l.bf16 %v4666_v4  ;;  %v2340_v9 = vunpack.i.h.bf16 %v4667_v12  ;;  %v4672_v45 = vld [vmem:[#allocation31_spill] sm:$0xff]  ;;  %v4674_v48 = vld [vmem:[#allocation32_spill] sm:$0xff] }
 0x13b   :  { %v2339_v1 = vunpack.i.l.bf16 %v4667_v12  ;;  %v4140_v20 = vsel %vm1430_vm1, %v4668_v50, %v2799_v44  ;;  %v4144_v6 = vsel %vm1430_vm1, %v4670_v59, %v2800_v35  ;;  %v4676_v22 = vld [vmem:[#allocation24_spill] sm:$0xff]  ;;  %v2494_v44 = vunpack.i.l.bf16 %v4677_v57 }
 0x13c   :  { %4669 = vst [vmem:[#allocation26_spill] sm:$0xff] %v4140_v20  ;;  %4671 = vst [vmem:[#allocation27_spill] sm:$0xff] %v4144_v6  ;;  %v4148_v37 = vsel %vm1430_vm1, %v4672_v45, %v2794_v42  ;;  %v4152_v4 = vsel %vm1430_vm1, %v4674_v48, %v2795_v62  ;;  %v2500_v40 = vunpack.i.h.bf16 %v4676_v22  ;;  %v2499_v12 = vunpack.i.l.bf16 %v4676_v22  ;;  %v2808_v50 = vpop.permute.xlu1 %2807  ;;  %v4678_v45 = vld [vmem:[#allocation34_spill] sm:$0xff]  ;;  %v4679_v62 = vld [vmem:[#allocation35_spill] sm:$0xff] }
 0x13d   :  { %4673 = vst [vmem:[#allocation28_spill] sm:$0xff] %v4148_v37  ;;  %4675 = vst [vmem:[#allocation13_spill] sm:$0xff] %v4152_v4  ;;  %v2803_v20 = vpop.permute.xlu0 %2802  ;;  %v2810_v35 = vunpack.i.h.bf16 %v2808_v50  ;;  %v2809_v59 = vunpack.i.l.bf16 %v2808_v50  ;;  %v2660_v42 = vunpack.i.h.bf16 %v4678_v45  ;;  %v2659_v37 = vunpack.i.l.bf16 %v4678_v45 }
 0x13e   :  { %v2805_v6 = vunpack.i.h.bf16 %v2803_v20  ;;  %v2804_v14 = vunpack.i.l.bf16 %v2803_v20  ;;  %v2655_v48 = vunpack.i.h.bf16 %v4679_v62  ;;  %v2654_v4 = vunpack.i.l.bf16 %v4679_v62  ;;  %v4684_v20 = vld [vmem:[#allocation33_spill] sm:$0xff] }
 0x13f   :  { %v4164_v22 = vsel %vm1430_vm1, %v4680_v32, %v2809_v59  ;;  %v4168_v57 = vsel %vm1430_vm1, %v4682_v43, %v2810_v35  ;;  %v1368_v45 = vsel %vm1365_vm0, %v2339_v1, %v2499_v12  ;;  %v1369_v62 = vsel %vm1365_vm0, %v2340_v9, %v2500_v40 }
 0x140   :  { %4681 = vst [vmem:[#allocation14_spill] sm:$0xff] %v4164_v22  ;;  %v4172_v50 = vsel %vm1430_vm1, %v4683_v2, %v2804_v14  ;;  %v4176_v41 = vsel %vm1430_vm1, %v4684_v20, %v2805_v6  ;;  %v1366_v32 = vsel %vm1365_vm0, %v2334_v15, %v2494_v44  ;;  %v1367_v59 = vsel %vm1365_vm0, %v2335_v34, %v2495_v26  ;;  %v2818_v22 = vpop.permute.xlu1 %2817  ;;  %v4185_v2 = vld [vmem:[%s4528_s3] ss:$0 sm:$0xff]  ;;  %s2998_s3 = smov [#allocation2]  }
 0x141   :  { %4685 = vst [vmem:[#allocation29_spill] sm:$0xff] %v4176_v41  ;;  %v2813_v43 = vpop.permute.xlu0 %2812  ;;  %v2820_v14 = vunpack.i.h.bf16 %v2818_v22  ;;  %v2819_v35 = vunpack.i.l.bf16 %v2818_v22  ;;  %v1433_v41 = vsel %vm1430_vm1, %v1368_v45, %v2659_v37  ;;  %v1434_v1 = vsel %vm1430_vm1, %v1369_v62, %v2660_v42  ;;  %v4194_v26 = vld [vmem:[%s4529_s4] ss:$0 sm:$0xff]  ;;  %s1836_s4 = sshll.u32 %s2998_s3, 4  ;;  %s1837_s4 = int_to_ptr.vmem [resolvable:$true] %s1836_s4 }
 0x142   :  { %v2815_v6 = vunpack.i.h.bf16 %v2813_v43  ;;  %v2814_v20 = vunpack.i.l.bf16 %v2813_v43  ;;  %v1431_v40 = vsel %vm1430_vm1, %v1366_v32, %v2654_v4  ;;  %v1432_v15 = vsel %vm1430_vm1, %v1367_v59, %v2655_v48  ;;  %s2971_s14 = scalar_lea.vmem %s1837_s4, 8192  ;;  %p2976_p1 = scmp.lt.s32.totalorder %s1837_s4, %s1837_s4 }
 0x143   :  { %v1498_v34 = vsel %vm1495_vm2, %v1433_v41, %v2819_v35  ;;  %v1499_v9 = vsel %vm1495_vm2, %v1434_v1, %v2820_v14  ;;  %p2972_p0 = scmp.ne.s32.totalorder %s1837_s4, %s2971_s14  ;;  %p2977_p2 = scmp.lt.s32.totalorder %s2971_s14, %s2971_s14 }
 0x144   :  { %v1496_v12 = vsel %vm1495_vm2, %v1431_v40, %v2814_v20  ;;  %v1497_v44 = vsel %vm1495_vm2, %v1432_v15, %v2815_v6  ;;  %v1569_v37 = vmul.f32 %v4185_v2, %v1498_v34  ;;  %v1570_v42 = vmul.f32 %v4185_v2, %v1499_v9  ;;  %v2828_v22 = vpop.permute.xlu1 %2827  ;;  %v4686_v15 = vld [vmem:[#allocation16_spill] sm:$0xff] }
 0x145   :  { %v1567_v4 = vmul.f32 %v4185_v2, %v1496_v12  ;;  %v1568_v48 = vmul.f32 %v4185_v2, %v1497_v44  ;;  %v2823_v45 = vpop.permute.xlu0 %2822  ;;  %v2830_v62 = vunpack.i.h.bf16 %v2828_v22  ;;  %v2829_v32 = vunpack.i.l.bf16 %v2828_v22  ;;  %p2978_p3 = por %p2977_p2, %p2976_p1 }
 0x146   :  { %v2825_v59 = vunpack.i.h.bf16 %v2823_v45  ;;  %v2824_v41 = vunpack.i.l.bf16 %v2823_v45  ;;  %v1640_v43 = vadd.f32 %v4194_v26, %v1569_v37  ;;  %v1641_v14 = vadd.f32 %v4194_v26, %v1570_v42 }
 0x147   :  { %v1638_v35 = vadd.f32 %v4194_v26, %v1567_v4  ;;  %v1639_v6 = vadd.f32 %v4194_v26, %v1568_v48  ;;  %v1503_v20 = vsel %vm1495_vm2, %v3808_v5, %v2830_v62  ;;  %v1502_v1 = vsel %vm1495_vm2, %v3805_v23, %v2829_v32  ;;  %p2979_p4 = pnand %p2978_p3, %p2972_p0 }
 0x148   :  { %v1500_v40 = vsel %vm1495_vm2, %v3811_v21, %v2824_v41  ;;  %v1501_v34 = vsel %vm1495_vm2, %v4686_v15, %v2825_v59  ;;  %v1704_v9 = vmax.f32 %v1640_v43, 0.0  ;;  %v1705_v12 = vmax.f32 %v1641_v14, 0.0  ;;  %v2838_v42 = vpop.permute.xlu1 %2837 }
 0x149   :  { %v1702_v44 = vmax.f32 %v1638_v35, 0.0  ;;  %v1703_v37 = vmax.f32 %v1639_v6, 0.0  ;;  %v2833_v4 = vpop.permute.xlu0 %2832  ;;  %v1574_v48 = vmul.f32 %v4185_v2, %v1503_v20  ;;  %v1573_v22 = vmul.f32 %v4185_v2, %v1502_v1 }
 0x14a   :  { %v1571_v5 = vmul.f32 %v4185_v2, %v1500_v40  ;;  %v1572_v23 = vmul.f32 %v4185_v2, %v1501_v34  ;;  %1769 = vst.msk [vmem:[#allocation2 + $0x10] sm:$0xff] %vm1766_vm3, %v1704_v9  ;;  %1770 = vst.msk [vmem:[#allocation2 + $0x18] sm:$0xff] %vm1766_vm3, %v1705_v12  ;;  %v2840_v21 = vunpack.i.h.bf16 %v2838_v42  ;;  %v2839_v45 = vunpack.i.l.bf16 %v2838_v42 }
 0x14b   :  { %1767 = vst.msk [vmem:[#allocation2] sm:$0xff] %vm1766_vm3, %v1702_v44  ;;  %1768 = vst.msk [vmem:[#allocation2 + $0x8] sm:$0xff] %vm1766_vm3, %v1703_v37  ;;  %v2835_v62 = vunpack.i.h.bf16 %v2833_v4  ;;  %v2834_v32 = vunpack.i.l.bf16 %v2833_v4  ;;  %v1645_v59 = vadd.f32 %v4194_v26, %v1574_v48  ;;  %v1644_v41 = vadd.f32 %v4194_v26, %v1573_v22 }
 0x14c   :  { %v1642_v43 = vadd.f32 %v4194_v26, %v1571_v5  ;;  %v1643_v14 = vadd.f32 %v4194_v26, %v1572_v23  ;;  %v1507_v35 = vsel %vm1495_vm2, %v3838_v46, %v2840_v21  ;;  %v1506_v6 = vsel %vm1495_vm2, %v3835_v58, %v2839_v45  ;;  %v2848_v40 = vpop.permute.xlu1 %2847 }
 0x14d   :  { %v1504_v20 = vsel %vm1495_vm2, %v3841_v24, %v2834_v32  ;;  %v1505_v1 = vsel %vm1495_vm2, %v3844_v33, %v2835_v62  ;;  %v2843_v15 = vpop.permute.xlu0 %2842  ;;  %v1709_v34 = vmax.f32 %v1645_v59, 0.0  ;;  %v1708_v9 = vmax.f32 %v1644_v41, 0.0 }
 0x14e   :  { %v1706_v12 = vmax.f32 %v1642_v43, 0.0  ;;  %v1707_v44 = vmax.f32 %v1643_v14, 0.0  ;;  %v1578_v37 = vmul.f32 %v4185_v2, %v1507_v35  ;;  %v1577_v42 = vmul.f32 %v4185_v2, %v1506_v6 }
 0x14f   :  { %v1575_v46 = vmul.f32 %v4185_v2, %v1504_v20  ;;  %v1576_v58 = vmul.f32 %v4185_v2, %v1505_v1  ;;  %1774 = vst.msk [vmem:[#allocation2 + $0x38] sm:$0xff] %vm1766_vm3, %v1709_v34  ;;  %1773 = vst.msk [vmem:[#allocation2 + $0x30] sm:$0xff] %vm1766_vm3, %v1708_v9  ;;  %v2850_v24 = vunpack.i.h.bf16 %v2848_v40  ;;  %v2849_v33 = vunpack.i.l.bf16 %v2848_v40 }
 0x150   :  { %1771 = vst.msk [vmem:[#allocation2 + $0x20] sm:$0xff] %vm1766_vm3, %v1706_v12  ;;  %1772 = vst.msk [vmem:[#allocation2 + $0x28] sm:$0xff] %vm1766_vm3, %v1707_v44  ;;  %v2845_v4 = vunpack.i.h.bf16 %v2843_v15  ;;  %v2844_v48 = vunpack.i.l.bf16 %v2843_v15  ;;  %v1649_v22 = vadd.f32 %v4194_v26, %v1578_v37  ;;  %v1648_v5 = vadd.f32 %v4194_v26, %v1577_v42  ;;  %v2858_v45 = vpop.permute.xlu1 %2857 }
 0x151   :  { %v1646_v23 = vadd.f32 %v4194_v26, %v1575_v46  ;;  %v1647_v21 = vadd.f32 %v4194_v26, %v1576_v58  ;;  %v2853_v62 = vpop.permute.xlu0 %2852  ;;  %v1511_v32 = vsel %vm1495_vm2, %v3866_v3, %v2850_v24  ;;  %v1510_v59 = vsel %vm1495_vm2, %v3863_v28, %v2849_v33 }
 0x152   :  { %v1508_v41 = vsel %vm1495_vm2, %v3869_v54, %v2844_v48  ;;  %v1509_v43 = vsel %vm1495_vm2, %v3872_v47, %v2845_v4  ;;  %v1713_v14 = vmax.f32 %v1649_v22, 0.0  ;;  %v1712_v35 = vmax.f32 %v1648_v5, 0.0 }
 0x153   :  { %v1710_v6 = vmax.f32 %v1646_v23, 0.0  ;;  %v1711_v20 = vmax.f32 %v1647_v21, 0.0  ;;  %v1582_v1 = vmul.f32 %v4185_v2, %v1511_v32  ;;  %v1581_v40 = vmul.f32 %v4185_v2, %v1510_v59 }
 0x154   :  { %v1579_v15 = vmul.f32 %v4185_v2, %v1508_v41  ;;  %v1580_v3 = vmul.f32 %v4185_v2, %v1509_v43  ;;  %1778 = vst.msk [vmem:[#allocation2 + $0x58] sm:$0xff] %vm1766_vm3, %v1713_v14  ;;  %1777 = vst.msk [vmem:[#allocation2 + $0x50] sm:$0xff] %vm1766_vm3, %v1712_v35  ;;  %v2860_v28 = vunpack.i.h.bf16 %v2858_v45  ;;  %v2859_v54 = vunpack.i.l.bf16 %v2858_v45  ;;  %v2868_v9 = vpop.permute.xlu1 %2867 }
 0x155   :  { %1775 = vst.msk [vmem:[#allocation2 + $0x40] sm:$0xff] %vm1766_vm3, %v1710_v6  ;;  %1776 = vst.msk [vmem:[#allocation2 + $0x48] sm:$0xff] %vm1766_vm3, %v1711_v20  ;;  %v2855_v47 = vunpack.i.h.bf16 %v2853_v62  ;;  %v2854_v34 = vunpack.i.l.bf16 %v2853_v62  ;;  %v2863_v12 = vpop.permute.xlu0 %2862  ;;  %v1653_v44 = vadd.f32 %v4194_v26, %v1582_v1  ;;  %v1652_v37 = vadd.f32 %v4194_v26, %v1581_v40 }
 0x156   :  { %v1650_v42 = vadd.f32 %v4194_v26, %v1579_v15  ;;  %v1651_v46 = vadd.f32 %v4194_v26, %v1580_v3  ;;  %v1515_v58 = vsel %vm1495_vm2, %v3894_v13, %v2860_v28  ;;  %v1514_v24 = vsel %vm1495_vm2, %v3891_v10, %v2859_v54 }
 0x157   :  { %v1512_v33 = vsel %vm1495_vm2, %v3897_v63, %v2854_v34  ;;  %v1513_v4 = vsel %vm1495_vm2, %v3900_v30, %v2855_v47  ;;  %v1717_v48 = vmax.f32 %v1653_v44, 0.0  ;;  %v1716_v22 = vmax.f32 %v1652_v37, 0.0 }
 0x158   :  { %v1714_v5 = vmax.f32 %v1650_v42, 0.0  ;;  %v1715_v23 = vmax.f32 %v1651_v46, 0.0  ;;  %v1586_v21 = vmul.f32 %v4185_v2, %v1515_v58  ;;  %v1585_v45 = vmul.f32 %v4185_v2, %v1514_v24  ;;  %v2878_v32 = vpop.permute.xlu1 %2877 }
 0x159   :  { %v1583_v62 = vmul.f32 %v4185_v2, %v1512_v33  ;;  %v1584_v13 = vmul.f32 %v4185_v2, %v1513_v4  ;;  %v2873_v10 = vpop.permute.xlu0 %2872  ;;  %1782 = vst.msk [vmem:[#allocation2 + $0x78] sm:$0xff] %vm1766_vm3, %v1717_v48  ;;  %1781 = vst.msk [vmem:[#allocation2 + $0x70] sm:$0xff] %vm1766_vm3, %v1716_v22  ;;  %v2870_v63 = vunpack.i.h.bf16 %v2868_v9  ;;  %v2869_v30 = vunpack.i.l.bf16 %v2868_v9 }
 0x15a   :  { %1779 = vst.msk [vmem:[#allocation2 + $0x60] sm:$0xff] %vm1766_vm3, %v1714_v5  ;;  %1780 = vst.msk [vmem:[#allocation2 + $0x68] sm:$0xff] %vm1766_vm3, %v1715_v23  ;;  %v2865_v59 = vunpack.i.h.bf16 %v2863_v12  ;;  %v2864_v41 = vunpack.i.l.bf16 %v2863_v12  ;;  %v1657_v43 = vadd.f32 %v4194_v26, %v1586_v21  ;;  %v1656_v14 = vadd.f32 %v4194_v26, %v1585_v45 }
 0x15b   :  { %v1654_v35 = vadd.f32 %v4194_v26, %v1583_v62  ;;  %v1655_v6 = vadd.f32 %v4194_v26, %v1584_v13  ;;  %v1519_v20 = vsel %vm1495_vm2, %v3922_v53, %v2870_v63  ;;  %v1518_v1 = vsel %vm1495_vm2, %v3919_v7, %v2869_v30 }
 0x15c   :  { %v1516_v40 = vsel %vm1495_vm2, %v3925_v0, %v2864_v41  ;;  %v1517_v15 = vsel %vm1495_vm2, %v3928_v8, %v2865_v59  ;;  %v1721_v3 = vmax.f32 %v1657_v43, 0.0  ;;  %v1720_v28 = vmax.f32 %v1656_v14, 0.0  ;;  %v2888_v34 = vpop.permute.xlu1 %2887 }
 0x15d   :  { %v1718_v54 = vmax.f32 %v1654_v35, 0.0  ;;  %v1719_v47 = vmax.f32 %v1655_v6, 0.0  ;;  %v2883_v9 = vpop.permute.xlu0 %2882  ;;  %v1590_v12 = vmul.f32 %v4185_v2, %v1519_v20  ;;  %v1589_v44 = vmul.f32 %v4185_v2, %v1518_v1 }
 0x15e   :  { %v1587_v53 = vmul.f32 %v4185_v2, %v1516_v40  ;;  %v1588_v7 = vmul.f32 %v4185_v2, %v1517_v15  ;;  %1786 = vst.msk [vmem:[#allocation2 + $0x98] sm:$0xff] %vm1766_vm3, %v1721_v3  ;;  %1785 = vst.msk [vmem:[#allocation2 + $0x90] sm:$0xff] %vm1766_vm3, %v1720_v28  ;;  %v2880_v0 = vunpack.i.h.bf16 %v2878_v32  ;;  %v2879_v8 = vunpack.i.l.bf16 %v2878_v32 }
 0x15f   :  { %1783 = vst.msk [vmem:[#allocation2 + $0x80] sm:$0xff] %vm1766_vm3, %v1718_v54  ;;  %1784 = vst.msk [vmem:[#allocation2 + $0x88] sm:$0xff] %vm1766_vm3, %v1719_v47  ;;  %v2875_v37 = vunpack.i.h.bf16 %v2873_v10  ;;  %v2874_v42 = vunpack.i.l.bf16 %v2873_v10  ;;  %v1661_v46 = vadd.f32 %v4194_v26, %v1590_v12  ;;  %v1660_v58 = vadd.f32 %v4194_v26, %v1589_v44 }
 0x160   :  { %v1658_v24 = vadd.f32 %v4194_v26, %v1587_v53  ;;  %v1659_v33 = vadd.f32 %v4194_v26, %v1588_v7  ;;  %v1523_v4 = vsel %vm1495_vm2, %v3950_v25, %v2880_v0  ;;  %v1522_v48 = vsel %vm1495_vm2, %v3947_v11, %v2879_v8  ;;  %v2898_v23 = vpop.permute.xlu1 %2897 }
 0x161   :  { %v1520_v22 = vsel %vm1495_vm2, %v3953_v52, %v2874_v42  ;;  %v1521_v5 = vsel %vm1495_vm2, %v3956_v17, %v2875_v37  ;;  %v2893_v21 = vpop.permute.xlu0 %2892  ;;  %v1725_v45 = vmax.f32 %v1661_v46, 0.0  ;;  %v1724_v62 = vmax.f32 %v1660_v58, 0.0 }
 0x162   :  { %v1722_v13 = vmax.f32 %v1658_v24, 0.0  ;;  %v1723_v32 = vmax.f32 %v1659_v33, 0.0  ;;  %v1594_v10 = vmul.f32 %v4185_v2, %v1523_v4  ;;  %v1593_v63 = vmul.f32 %v4185_v2, %v1522_v48 }
 0x163   :  { %v1591_v25 = vmul.f32 %v4185_v2, %v1520_v22  ;;  %v1592_v11 = vmul.f32 %v4185_v2, %v1521_v5  ;;  %1790 = vst.msk [vmem:[#allocation2 + $0xb8] sm:$0xff] %vm1766_vm3, %v1725_v45  ;;  %1789 = vst.msk [vmem:[#allocation2 + $0xb0] sm:$0xff] %vm1766_vm3, %v1724_v62  ;;  %v2890_v52 = vunpack.i.h.bf16 %v2888_v34  ;;  %v2889_v17 = vunpack.i.l.bf16 %v2888_v34 }
 0x164   :  { %1787 = vst.msk [vmem:[#allocation2 + $0xa0] sm:$0xff] %vm1766_vm3, %v1722_v13  ;;  %1788 = vst.msk [vmem:[#allocation2 + $0xa8] sm:$0xff] %vm1766_vm3, %v1723_v32  ;;  %v2885_v30 = vunpack.i.h.bf16 %v2883_v9  ;;  %v2884_v59 = vunpack.i.l.bf16 %v2883_v9  ;;  %v1665_v41 = vadd.f32 %v4194_v26, %v1594_v10  ;;  %v1664_v43 = vadd.f32 %v4194_v26, %v1593_v63  ;;  %v2908_v6 = vpop.permute.xlu1 %2907 }
 0x165   :  { %v1662_v14 = vadd.f32 %v4194_v26, %v1591_v25  ;;  %v1663_v35 = vadd.f32 %v4194_v26, %v1592_v11  ;;  %v2903_v20 = vpop.permute.xlu0 %2902  ;;  %v1527_v1 = vsel %vm1495_vm2, %v3978_v51, %v2890_v52  ;;  %v1526_v40 = vsel %vm1495_vm2, %v3975_v18, %v2889_v17 }
 0x166   :  { %v1524_v15 = vsel %vm1495_vm2, %v3981_v31, %v2884_v59  ;;  %v1525_v3 = vsel %vm1495_vm2, %v3984_v55, %v2885_v30  ;;  %v1729_v28 = vmax.f32 %v1665_v41, 0.0  ;;  %v1728_v54 = vmax.f32 %v1664_v43, 0.0 }
 0x167   :  { %v1726_v47 = vmax.f32 %v1662_v14, 0.0  ;;  %v1727_v34 = vmax.f32 %v1663_v35, 0.0  ;;  %v1598_v9 = vmul.f32 %v4185_v2, %v1527_v1  ;;  %v1597_v12 = vmul.f32 %v4185_v2, %v1526_v40 }
 0x168   :  { %v1595_v44 = vmul.f32 %v4185_v2, %v1524_v15  ;;  %v1596_v51 = vmul.f32 %v4185_v2, %v1525_v3  ;;  %1794 = vst.msk [vmem:[#allocation2 + $0xd8] sm:$0xff] %vm1766_vm3, %v1729_v28  ;;  %1793 = vst.msk [vmem:[#allocation2 + $0xd0] sm:$0xff] %vm1766_vm3, %v1728_v54  ;;  %v2900_v18 = vunpack.i.h.bf16 %v2898_v23  ;;  %v2899_v31 = vunpack.i.l.bf16 %v2898_v23  ;;  %v2918_v33 = vpop.permute.xlu1 %2917 }
 0x169   :  { %1791 = vst.msk [vmem:[#allocation2 + $0xc0] sm:$0xff] %vm1766_vm3, %v1726_v47  ;;  %1792 = vst.msk [vmem:[#allocation2 + $0xc8] sm:$0xff] %vm1766_vm3, %v1727_v34  ;;  %v2895_v55 = vunpack.i.h.bf16 %v2893_v21  ;;  %v2894_v53 = vunpack.i.l.bf16 %v2893_v21  ;;  %v1669_v7 = vadd.f32 %v4194_v26, %v1598_v9  ;;  %v1668_v0 = vadd.f32 %v4194_v26, %v1597_v12  ;;  %v2913_v4 = vpop.permute.xlu0 %2912 }
 0x16a   :  { %v1666_v8 = vadd.f32 %v4194_v26, %v1595_v44  ;;  %v1667_v37 = vadd.f32 %v4194_v26, %v1596_v51  ;;  %v1531_v42 = vsel %vm1495_vm2, %v4006_v61, %v2900_v18  ;;  %v1530_v46 = vsel %vm1495_vm2, %v4003_v60, %v2899_v31  ;;  %v4687_v44 = vld [vmem:[#allocation17_spill] sm:$0xff] }
 0x16b   :  { %v1528_v58 = vsel %vm1495_vm2, %v4009_v49, %v2894_v53  ;;  %v1529_v24 = vsel %vm1495_vm2, %v4012_v29, %v2895_v55  ;;  %v1733_v48 = vmax.f32 %v1669_v7, 0.0  ;;  %v1732_v22 = vmax.f32 %v1668_v0, 0.0 }
 0x16c   :  { %v1730_v5 = vmax.f32 %v1666_v8, 0.0  ;;  %v1731_v23 = vmax.f32 %v1667_v37, 0.0  ;;  %v1602_v21 = vmul.f32 %v4185_v2, %v1531_v42  ;;  %v1601_v45 = vmul.f32 %v4185_v2, %v1530_v46  ;;  %v2928_v35 = vpop.permute.xlu1 %2927 }
 0x16d   :  { %v1599_v61 = vmul.f32 %v4185_v2, %v1528_v58  ;;  %v1600_v60 = vmul.f32 %v4185_v2, %v1529_v24  ;;  %1798 = vst.msk [vmem:[#allocation2 + $0xf8] sm:$0xff] %vm1766_vm3, %v1733_v48  ;;  %1797 = vst.msk [vmem:[#allocation2 + $0xf0] sm:$0xff] %vm1766_vm3, %v1732_v22  ;;  %v2910_v49 = vunpack.i.h.bf16 %v2908_v6  ;;  %v2909_v29 = vunpack.i.l.bf16 %v2908_v6  ;;  %v2923_v6 = vpop.permute.xlu0 %2922  ;;  %v4688_v22 = vld [vmem:[#allocation19_spill] sm:$0xff] }
 0x16e   :  { %1795 = vst.msk [vmem:[#allocation2 + $0xe0] sm:$0xff] %vm1766_vm3, %v1730_v5  ;;  %1796 = vst.msk [vmem:[#allocation2 + $0xe8] sm:$0xff] %vm1766_vm3, %v1731_v23  ;;  %v2905_v62 = vunpack.i.h.bf16 %v2903_v20  ;;  %v2904_v13 = vunpack.i.l.bf16 %v2903_v20  ;;  %v1673_v32 = vadd.f32 %v4194_v26, %v1602_v21  ;;  %v1672_v10 = vadd.f32 %v4194_v26, %v1601_v45  ;;  %v4689_v23 = vld [vmem:[#allocation18_spill] sm:$0xff]  ;;  %v4690_v45 = vld [vmem:[#allocation7_spill] sm:$0xff] }
 0x16f   :  { %v1670_v63 = vadd.f32 %v4194_v26, %v1599_v61  ;;  %v1671_v25 = vadd.f32 %v4194_v26, %v1600_v60  ;;  %v1535_v11 = vsel %vm1495_vm2, %v4034_v39, %v2910_v49  ;;  %v1534_v52 = vsel %vm1495_vm2, %v4031_v27, %v2909_v29  ;;  %v4691_v60 = vld [vmem:[#allocation8_spill] sm:$0xff] }
 0x170   :  { %v1532_v17 = vsel %vm1495_vm2, %v4037_v19, %v2904_v13  ;;  %v1533_v30 = vsel %vm1495_vm2, %v4040_v38, %v2905_v62  ;;  %v1737_v59 = vmax.f32 %v1673_v32, 0.0  ;;  %v1736_v41 = vmax.f32 %v1672_v10, 0.0  ;;  %v2938_v37 = vpop.permute.xlu1 %2937 }
 0x171   :  { %v1734_v43 = vmax.f32 %v1670_v63, 0.0  ;;  %v1735_v14 = vmax.f32 %v1671_v25, 0.0  ;;  %v1606_v20 = vmul.f32 %v4185_v2, %v1535_v11  ;;  %v1605_v1 = vmul.f32 %v4185_v2, %v1534_v52 }
 0x172   :  { %v1603_v39 = vmul.f32 %v4185_v2, %v1532_v17  ;;  %v1604_v27 = vmul.f32 %v4185_v2, %v1533_v30  ;;  %1802 = vst.msk [vmem:[#allocation2 + $0x118] sm:$0xff] %vm1766_vm3, %v1737_v59  ;;  %1801 = vst.msk [vmem:[#allocation2 + $0x110] sm:$0xff] %vm1766_vm3, %v1736_v41  ;;  %v2920_v19 = vunpack.i.h.bf16 %v2918_v33  ;;  %v2919_v38 = vunpack.i.l.bf16 %v2918_v33 }
 0x173   :  { %1799 = vst.msk [vmem:[#allocation2 + $0x100] sm:$0xff] %vm1766_vm3, %v1734_v43  ;;  %1800 = vst.msk [vmem:[#allocation2 + $0x108] sm:$0xff] %vm1766_vm3, %v1735_v14  ;;  %v2915_v40 = vunpack.i.h.bf16 %v2913_v4  ;;  %v2914_v15 = vunpack.i.l.bf16 %v2913_v4  ;;  %v1677_v3 = vadd.f32 %v4194_v26, %v1606_v20  ;;  %v1676_v28 = vadd.f32 %v4194_v26, %v1605_v1  ;;  %v4692_v1 = vld [vmem:[#allocation21_spill] sm:$0xff] }
 0x174   :  { %v1674_v54 = vadd.f32 %v4194_v26, %v1603_v39  ;;  %v1675_v47 = vadd.f32 %v4194_v26, %v1604_v27  ;;  %v1539_v34 = vsel %vm1495_vm2, %v4062_v16, %v2920_v19  ;;  %v1538_v9 = vsel %vm1495_vm2, %v4059_v36, %v2919_v38  ;;  %v2933_v36 = vpop.permute.xlu0 %2932  ;;  %v2948_v41 = vpop.permute.xlu1 %2947  ;;  %v4693_v27 = vld [vmem:[#allocation20_spill] sm:$0xff]  ;;  %v4694_v38 = vld [vmem:[#allocation9_spill] sm:$0xff] }
 0x175   :  { %v1536_v12 = vsel %vm1495_vm2, %v4065_v56, %v2914_v15  ;;  %v1537_v51 = vsel %vm1495_vm2, %v4687_v44, %v2915_v40  ;;  %v1741_v18 = vmax.f32 %v1677_v3, 0.0  ;;  %v1740_v31 = vmax.f32 %v1676_v28, 0.0  ;;  %v4695_v15 = vld [vmem:[#allocation10_spill] sm:$0xff] }
 0x176   :  { %v1738_v55 = vmax.f32 %v1674_v54, 0.0  ;;  %v1739_v53 = vmax.f32 %v1675_v47, 0.0  ;;  %v1610_v7 = vmul.f32 %v4185_v2, %v1539_v34  ;;  %v1609_v0 = vmul.f32 %v4185_v2, %v1538_v9 }
 0x177   :  { %v1607_v8 = vmul.f32 %v4185_v2, %v1536_v12  ;;  %v1608_v16 = vmul.f32 %v4185_v2, %v1537_v51  ;;  %1806 = vst.msk [vmem:[#allocation2 + $0x138] sm:$0xff] %vm1766_vm3, %v1741_v18  ;;  %1805 = vst.msk [vmem:[#allocation2 + $0x130] sm:$0xff] %vm1766_vm3, %v1740_v31  ;;  %v2930_v56 = vunpack.i.h.bf16 %v2928_v35  ;;  %v2929_v42 = vunpack.i.l.bf16 %v2928_v35 }
 0x178   :  { %1803 = vst.msk [vmem:[#allocation2 + $0x120] sm:$0xff] %vm1766_vm3, %v1738_v55  ;;  %1804 = vst.msk [vmem:[#allocation2 + $0x128] sm:$0xff] %vm1766_vm3, %v1739_v53  ;;  %v2925_v46 = vunpack.i.h.bf16 %v2923_v6  ;;  %v2924_v58 = vunpack.i.l.bf16 %v2923_v6  ;;  %v1681_v24 = vadd.f32 %v4194_v26, %v1610_v7  ;;  %v1680_v33 = vadd.f32 %v4194_v26, %v1609_v0  ;;  %v2943_v43 = vpop.permute.xlu0 %2942 }
 0x179   :  { %v1678_v4 = vadd.f32 %v4194_v26, %v1607_v8  ;;  %v1679_v48 = vadd.f32 %v4194_v26, %v1608_v16  ;;  %v1543_v5 = vsel %vm1495_vm2, %v4688_v22, %v2930_v56  ;;  %v1542_v21 = vsel %vm1495_vm2, %v4689_v23, %v2929_v42  ;;  %v4696_v56 = vld [vmem:[#allocation12_spill] sm:$0xff] }
 0x17a   :  { %v1540_v61 = vsel %vm1495_vm2, %v4690_v45, %v2924_v58  ;;  %v1541_v49 = vsel %vm1495_vm2, %v4691_v60, %v2925_v46  ;;  %v1745_v29 = vmax.f32 %v1681_v24, 0.0  ;;  %v1744_v62 = vmax.f32 %v1680_v33, 0.0  ;;  %v4697_v46 = vld [vmem:[#allocation11_spill] sm:$0xff]  ;;  %v4698_v24 = vld [vmem:[#allocation22_spill] sm:$0xff] }
 0x17b   :  { %v1742_v13 = vmax.f32 %v1678_v4, 0.0  ;;  %v1743_v32 = vmax.f32 %v1679_v48, 0.0  ;;  %v1614_v10 = vmul.f32 %v4185_v2, %v1543_v5  ;;  %v1613_v63 = vmul.f32 %v4185_v2, %v1542_v21  ;;  %v4699_v4 = vld [vmem:[#allocation23_spill] sm:$0xff] }
 0x17c   :  { %v1611_v25 = vmul.f32 %v4185_v2, %v1540_v61  ;;  %v1612_v11 = vmul.f32 %v4185_v2, %v1541_v49  ;;  %1810 = vst.msk [vmem:[#allocation2 + $0x158] sm:$0xff] %vm1766_vm3, %v1745_v29  ;;  %1809 = vst.msk [vmem:[#allocation2 + $0x150] sm:$0xff] %vm1766_vm3, %v1744_v62  ;;  %v2940_v52 = vunpack.i.h.bf16 %v2938_v37  ;;  %v2939_v17 = vunpack.i.l.bf16 %v2938_v37  ;;  %v2958_v37 = vpop.permute.xlu1 %2957 }
 0x17d   :  { %1807 = vst.msk [vmem:[#allocation2 + $0x140] sm:$0xff] %vm1766_vm3, %v1742_v13  ;;  %1808 = vst.msk [vmem:[#allocation2 + $0x148] sm:$0xff] %vm1766_vm3, %v1743_v32  ;;  %v2935_v30 = vunpack.i.h.bf16 %v2933_v36  ;;  %v2934_v59 = vunpack.i.l.bf16 %v2933_v36  ;;  %v1685_v14 = vadd.f32 %v4194_v26, %v1614_v10  ;;  %v1684_v35 = vadd.f32 %v4194_v26, %v1613_v63  ;;  %v2953_v36 = vpop.permute.xlu0 %2952 }
 0x17e   :  { %v1682_v6 = vadd.f32 %v4194_v26, %v1611_v25  ;;  %v1683_v20 = vadd.f32 %v4194_v26, %v1612_v11  ;;  %v1547_v39 = vsel %vm1495_vm2, %v4692_v1, %v2940_v52  ;;  %v1546_v19 = vsel %vm1495_vm2, %v4693_v27, %v2939_v17  ;;  %v4700_v52 = vld [vmem:[#allocation27_spill] sm:$0xff] }
 0x17f   :  { %v1544_v40 = vsel %vm1495_vm2, %v4694_v38, %v2934_v59  ;;  %v1545_v3 = vsel %vm1495_vm2, %v4695_v15, %v2935_v30  ;;  %v1749_v28 = vmax.f32 %v1685_v14, 0.0  ;;  %v1748_v54 = vmax.f32 %v1684_v35, 0.0  ;;  %v4701_v30 = vld [vmem:[#allocation26_spill] sm:$0xff]  ;;  %v4703_v14 = vld [vmem:[#allocation13_spill] sm:$0xff] }
 0x180   :  { %v1746_v47 = vmax.f32 %v1682_v6, 0.0  ;;  %v1747_v34 = vmax.f32 %v1683_v20, 0.0  ;;  %v1618_v9 = vmul.f32 %v4185_v2, %v1547_v39  ;;  %v1617_v12 = vmul.f32 %v4185_v2, %v1546_v19  ;;  %v2968_v6 = vpop.permute.xlu1 %2967 }
 0x181   :  { %v1615_v44 = vmul.f32 %v4185_v2, %v1544_v40  ;;  %v1616_v51 = vmul.f32 %v4185_v2, %v1545_v3  ;;  %1814 = vst.msk [vmem:[#allocation2 + $0x178] sm:$0xff] %vm1766_vm3, %v1749_v28  ;;  %1813 = vst.msk [vmem:[#allocation2 + $0x170] sm:$0xff] %vm1766_vm3, %v1748_v54  ;;  %v2950_v18 = vunpack.i.h.bf16 %v2948_v41  ;;  %v2949_v31 = vunpack.i.l.bf16 %v2948_v41  ;;  %v4702_v41 = vld [vmem:[#allocation28_spill] sm:$0xff]  ;;  %v2963_v20 = vpop.permute.xlu0 %2962 }
 0x182   :  { %1811 = vst.msk [vmem:[#allocation2 + $0x160] sm:$0xff] %vm1766_vm3, %v1746_v47  ;;  %1812 = vst.msk [vmem:[#allocation2 + $0x168] sm:$0xff] %vm1766_vm3, %v1747_v34  ;;  %v2945_v55 = vunpack.i.h.bf16 %v2943_v43  ;;  %v2944_v53 = vunpack.i.l.bf16 %v2943_v43  ;;  %v1689_v7 = vadd.f32 %v4194_v26, %v1618_v9  ;;  %v1688_v0 = vadd.f32 %v4194_v26, %v1617_v12 }
 0x183   :  { %v1686_v8 = vadd.f32 %v4194_v26, %v1615_v44  ;;  %v1687_v16 = vadd.f32 %v4194_v26, %v1616_v51  ;;  %v1551_v42 = vsel %vm1495_vm2, %v4696_v56, %v2950_v18  ;;  %v1550_v58 = vsel %vm1495_vm2, %v4697_v46, %v2949_v31  ;;  %v4704_v31 = vld [vmem:[#allocation14_spill] sm:$0xff] }
 0x184   :  { %v1548_v33 = vsel %vm1495_vm2, %v4698_v24, %v2944_v53  ;;  %v1549_v48 = vsel %vm1495_vm2, %v4699_v4, %v2945_v55  ;;  %v1753_v22 = vmax.f32 %v1689_v7, 0.0  ;;  %v1752_v5 = vmax.f32 %v1688_v0, 0.0  ;;  %v4705_v7 = vld [vmem:[#allocation29_spill] sm:$0xff] }
 0x185   :  { %v1750_v23 = vmax.f32 %v1686_v8, 0.0  ;;  %v1751_v21 = vmax.f32 %v1687_v16, 0.0  ;;  %v1622_v45 = vmul.f32 %v4185_v2, %v1551_v42  ;;  %v1621_v61 = vmul.f32 %v4185_v2, %v1550_v58 }
 0x186   :  { %v1619_v60 = vmul.f32 %v4185_v2, %v1548_v33  ;;  %v1620_v49 = vmul.f32 %v4185_v2, %v1549_v48  ;;  %1818 = vst.msk [vmem:[#allocation2 + $0x198] sm:$0xff] %vm1766_vm3, %v1753_v22  ;;  %1817 = vst.msk [vmem:[#allocation2 + $0x190] sm:$0xff] %vm1766_vm3, %v1752_v5  ;;  %v2960_v29 = vunpack.i.h.bf16 %v2958_v37  ;;  %v2959_v62 = vunpack.i.l.bf16 %v2958_v37 }
 0x187   :  { %1815 = vst.msk [vmem:[#allocation2 + $0x180] sm:$0xff] %vm1766_vm3, %v1750_v23  ;;  %1816 = vst.msk [vmem:[#allocation2 + $0x188] sm:$0xff] %vm1766_vm3, %v1751_v21  ;;  %v2955_v13 = vunpack.i.h.bf16 %v2953_v36  ;;  %v2954_v32 = vunpack.i.l.bf16 %v2953_v36  ;;  %v1693_v10 = vadd.f32 %v4194_v26, %v1622_v45  ;;  %v1692_v63 = vadd.f32 %v4194_v26, %v1621_v61 }
 0x188   :  { %v1690_v25 = vadd.f32 %v4194_v26, %v1619_v60  ;;  %v1691_v11 = vadd.f32 %v4194_v26, %v1620_v49  ;;  %v1555_v17 = vsel %vm1495_vm2, %v4700_v52, %v2960_v29  ;;  %v1554_v59 = vsel %vm1495_vm2, %v4701_v30, %v2959_v62 }
 0x189   :  { %v1552_v43 = vsel %vm1495_vm2, %v4702_v41, %v2954_v32  ;;  %v1553_v35 = vsel %vm1495_vm2, %v4703_v14, %v2955_v13  ;;  %v1757_v1 = vmax.f32 %v1693_v10, 0.0  ;;  %v1756_v39 = vmax.f32 %v1692_v63, 0.0 }
 0x18a   :  { %v1754_v27 = vmax.f32 %v1690_v25, 0.0  ;;  %v1755_v19 = vmax.f32 %v1691_v11, 0.0  ;;  %v1626_v38 = vmul.f32 %v4185_v2, %v1555_v17  ;;  %v1625_v40 = vmul.f32 %v4185_v2, %v1554_v59 }
 0x18b   :  { %v1623_v15 = vmul.f32 %v4185_v2, %v1552_v43  ;;  %v1624_v3 = vmul.f32 %v4185_v2, %v1553_v35  ;;  %1822 = vst.msk [vmem:[#allocation2 + $0x1b8] sm:$0xff] %vm1766_vm3, %v1757_v1  ;;  %1821 = vst.msk [vmem:[#allocation2 + $0x1b0] sm:$0xff] %vm1766_vm3, %v1756_v39  ;;  %v2970_v28 = vunpack.i.h.bf16 %v2968_v6  ;;  %v2969_v54 = vunpack.i.l.bf16 %v2968_v6 }
 0x18c   :  { %1819 = vst.msk [vmem:[#allocation2 + $0x1a0] sm:$0xff] %vm1766_vm3, %v1754_v27  ;;  %1820 = vst.msk [vmem:[#allocation2 + $0x1a8] sm:$0xff] %vm1766_vm3, %v1755_v19  ;;  %v2965_v47 = vunpack.i.h.bf16 %v2963_v20  ;;  %v2964_v34 = vunpack.i.l.bf16 %v2963_v20  ;;  %v1697_v9 = vadd.f32 %v4194_v26, %v1626_v38  ;;  %v1696_v12 = vadd.f32 %v4194_v26, %v1625_v40 }
 0x18d   :  { %v1694_v44 = vadd.f32 %v4194_v26, %v1623_v15  ;;  %v1695_v51 = vadd.f32 %v4194_v26, %v1624_v3  ;;  %v1559_v18 = vsel %vm1495_vm2, %v4168_v57, %v2970_v28  ;;  %v1558_v55 = vsel %vm1495_vm2, %v4704_v31, %v2969_v54 }
 0x18e   :  { %v1556_v53 = vsel %vm1495_vm2, %v4172_v50, %v2964_v34  ;;  %v1557_v0 = vsel %vm1495_vm2, %v4705_v7, %v2965_v47  ;;  %v1761_v8 = vmax.f32 %v1697_v9, 0.0  ;;  %v1760_v16 = vmax.f32 %v1696_v12, 0.0 }
 0x18f   :  { %v1758_v37 = vmax.f32 %v1694_v44, 0.0  ;;  %v1759_v36 = vmax.f32 %v1695_v51, 0.0  ;;  %v1630_v56 = vmul.f32 %v4185_v2, %v1559_v18  ;;  %v1629_v42 = vmul.f32 %v4185_v2, %v1558_v55 }
 0x190   :  { %v1627_v46 = vmul.f32 %v4185_v2, %v1556_v53  ;;  %v1628_v57 = vmul.f32 %v4185_v2, %v1557_v0  ;;  %1826 = vst.msk [vmem:[#allocation2 + $0x1d8] sm:$0xff] %vm1766_vm3, %v1761_v8  ;;  %1825 = vst.msk [vmem:[#allocation2 + $0x1d0] sm:$0xff] %vm1766_vm3, %v1760_v16 }
 0x191   :  { %1823 = vst.msk [vmem:[#allocation2 + $0x1c0] sm:$0xff] %vm1766_vm3, %v1758_v37  ;;  %1824 = vst.msk [vmem:[#allocation2 + $0x1c8] sm:$0xff] %vm1766_vm3, %v1759_v36  ;;  %v1701_v50 = vadd.f32 %v4194_v26, %v1630_v56  ;;  %v1700_v58 = vadd.f32 %v4194_v26, %v1629_v42 }
 0x192   :  { %v1698_v24 = vadd.f32 %v4194_v26, %v1627_v46  ;;  %v1699_v33 = vadd.f32 %v4194_v26, %v1628_v57 }
 0x193   :  { %v1765_v4 = vmax.f32 %v1701_v50, 0.0  ;;  %v1764_v2 = vmax.f32 %v1700_v58, 0.0 }
 0x194   :  { %v1762_v48 = vmax.f32 %v1698_v24, 0.0  ;;  %v1763_v22 = vmax.f32 %v1699_v33, 0.0 }
 0x195   :  { %1830 = vst.msk [vmem:[#allocation2 + $0x1f8] sm:$0xff] %vm1766_vm3, %v1765_v4  ;;  %1829 = vst.msk [vmem:[#allocation2 + $0x1f0] sm:$0xff] %vm1766_vm3, %v1764_v2 }
 0x196   :  { %1827 = vst.msk [vmem:[#allocation2 + $0x1e0] sm:$0xff] %vm1766_vm3, %v1762_v48  ;;  %1828 = vst.msk [vmem:[#allocation2 + $0x1e8] sm:$0xff] %vm1766_vm3, %v1763_v22 }
 0x197   :  { %2982 = shalt.err (!%p2979_p4)
}
 0x198   :  { %s2983_s17 = scalar_lea.hbm %s4530_s5, 8192 }
 0x199   :  { %p2984_p5 = scmp.ne.s32.totalorder %s4530_s5, %s2983_s17  ;;  %p2987_p6 = scmp.lt.u32.totalorder %s2983_s17, %s4530_s5 }
 0x19b   :  { %p2989_p7 = pnand %p2987_p6, %p2984_p5 }
 0x19d   :  { %2992 = shalt.err (!%p2989_p7)
}
 0x19e   :  { %s2999_s22 = smov 128  }
 0x19f   :  { %1842 = dma.vmem_to_hbm [thread:$0]  %s1837_s4, 8192, %s4530_s5, [#allocation3], %s2999_s22, %s2999_s22, %s2996_s21  }
 0x1a0   :  { %2993 = dma.done.wait [#allocation3], 8192  }
 0x1a1   :  { %2994 = vsyncadd [#allocation3], 4294959104 }
 0x1a2   :  { %1846 = vsyncpa [#allocation3], 1 }

</bundles_post_ra>
